<compile_context>
chip_gen: v6e
topology: v6e:2x2x1
jax: 0.10.0
libtpu: 0.0.40
codegen_flags: <defaults>
</compile_context>

<pallas_src>
import math
import jax
import jax.numpy as jnp
from jax import lax
from jax.experimental import pallas as pl
from jax.experimental.pallas import tpu as pltpu


_PAD = 8  # aligned sublane offset used for the in-kernel "same"-conv padding scratch


# ----------------------------- fused forward kernel -----------------------------

def _make_fused_kernel(cfg):
    Lp = cfg["n_subc"] * cfg["n_pilot_sym"]
    E = cfg["embed_dim"]
    H = cfg["num_heads"]
    Dh = E // H
    ek = cfg["encoder_kernel_size"]
    dk = cfg["decoder_kernel_size"]
    nblk = cfg["num_decoder_blocks"]
    scale = 1.0 / math.sqrt(Dh)
    inv_sqrt2 = 1.0 / math.sqrt(2.0)

    def _ln(x, g, b, eps=1e-5):
        mu = jnp.mean(x, axis=-1, keepdims=True)
        var = jnp.mean(jnp.square(x - mu), axis=-1, keepdims=True)
        return (x - mu) * lax.rsqrt(var + eps) * g + b

    def _conv_same(x, pad_ref, w_ref, w_base, bias, K):
        """'same' 1-D conv (cross-correlation, matches torch Conv1d), channels-last.

        x: (L, Cin) value.  pad_ref: VMEM scratch whose pad rows stay zero.
        w_ref: stacked (Cin, Cout) taps; tap k is w_ref[w_base + k].  bias: (1, Cout).
        """
        L = x.shape[0]
        pad = K // 2
        Cout = w_ref.shape[-1]
        pad_ref[_PAD:_PAD + L, :] = x                       # aligned interior store
        acc = jnp.zeros((L, Cout), jnp.float32)
        for k in range(K):                                  # static unroll over taps
            start = _PAD - pad + k
            acc = acc + jnp.dot(pad_ref[start:start + L, :], w_ref[w_base + k],
                                preferred_element_type=jnp.float32)
        return acc + bias

    def kernel(x_ref,
               in_w, in_b,
               ln1_g, ln1_b, wqkv, bqkv, wo_h, bo,
               ln2_g, ln2_b, rpj_w, rpj_b,
               ec1_w, ec1_b, ec2_w, ec2_b, lnf_g, lnf_b,
               rp_w, rp_b, rs_wT, rs_b,
               dc1_w, dc1_b, dc2_w, dc2_b, dln_g, dln_b,
               out_w, out_b,
               o_ref,
               pe_ref, pf_ref, pd_ref):
        # Zero the conv-padding scratch buffers (pad rows must read as zero).
        pe_ref[...] = jnp.zeros_like(pe_ref)
        pf_ref[...] = jnp.zeros_like(pf_ref)
        pd_ref[...] = jnp.zeros_like(pd_ref)

        # -------- input projection --------
        x_in = x_ref[0]                                                    # (Lp, feat)
        x = jnp.dot(x_in, in_w[...], preferred_element_type=jnp.float32) + in_b[...]

        # -------- encoder: pre-norm multi-head self-attention --------
        residual = x
        xn = _ln(x, ln1_g[...], ln1_b[...])
        qkv = jnp.dot(xn, wqkv[...], preferred_element_type=jnp.float32) + bqkv[...]  # (Lp, 3E)
        attn = jnp.zeros((Lp, E), jnp.float32)
        for h in range(H):                                  # static unroll over heads
            q = qkv[:, h * Dh:(h + 1) * Dh]
            k = qkv[:, E + h * Dh:E + (h + 1) * Dh]
            v = qkv[:, 2 * E + h * Dh:2 * E + (h + 1) * Dh]
            s = jnp.dot(q, k.T, preferred_element_type=jnp.float32) * scale
            s = s - jnp.max(s, axis=-1, keepdims=True)
            p = jnp.exp(s)
            p = p / jnp.sum(p, axis=-1, keepdims=True)
            hv = jnp.dot(p, v, preferred_element_type=jnp.float32)         # (Lp, Dh)
            # concat(heads) @ Wo  ==  sum_h head_h @ Wo[h*Dh:(h+1)*Dh, :]
            attn = attn + jnp.dot(hv, wo_h[h], preferred_element_type=jnp.float32)
        x = residual + attn + bo[...]

        # -------- encoder: conv pre-net with projected residual --------
        res_pre = x
        xn2 = _ln(x, ln2_g[...], ln2_b[...])
        res_proj = (jnp.dot(res_pre, rpj_w[...], preferred_element_type=jnp.float32)
                    + rpj_b[...])                                           # 1x1 conv
        h1 = _conv_same(xn2, pe_ref, ec1_w, 0, ec1_b[...], ek)
        h1 = 0.5 * h1 * (1.0 + lax.erf(h1 * inv_sqrt2))                     # exact GELU
        h2 = _conv_same(h1, pf_ref, ec2_w, 0, ec2_b[...], ek)
        enc = _ln(h2 + res_proj, lnf_g[...], lnf_b[...])                    # (Lp, F)

        # -------- resize: channel proj + sequence resize (no activation transposes) -----
        r = jnp.dot(enc, rp_w[...], preferred_element_type=jnp.float32) + rp_b[...]   # (Lp, D)
        y = jnp.dot(rs_wT[...], r, preferred_element_type=jnp.float32) + rs_b[...]    # (Lf, D)

        # -------- decoder blocks --------
        for i in range(nblk):                               # static unroll over blocks
            res = y
            t = _conv_same(y, pd_ref, dc1_w, i * dk, dc1_b[i], dk)
            t = jnp.maximum(t, 0.0)
            t = _conv_same(t, pd_ref, dc2_w, i * dk, dc2_b[i], dk)
            y = _ln(t + res, dln_g[i], dln_b[i])

        # -------- output projection --------
        out = _conv_same(y, pd_ref, out_w, 0, out_b[...], dk)              # (Lf, feat)
        o_ref[0] = out.astype(o_ref.dtype)

    return kernel


def _bcast_spec(shape):
    zeros = (0,) * len(shape)
    return pl.BlockSpec(shape, lambda b: zeros)


def channelformer_forward(params, csi_ls, cfg):
    B = csi_ls.shape[0]
    n_subc, n_sym = cfg["n_subc"], cfg["n_sym"]
    n_tx, n_rx = cfg["n_tx"], cfg["n_rx"]
    n_pilot = cfg["n_pilot_sym"]
    E = cfg["embed_dim"]
    H = cfg["num_heads"]
    Dh = E // H
    F = cfg["n_encoder_filters"]
    D = cfg["n_decoder_filters"]
    Lp = n_subc * n_pilot
    Lf = n_subc * n_sym
    feat = n_tx * n_rx * 2

    p = params
    row = lambda v: v.reshape(1, -1)

    # (B, n_subc, n_pilot, n_tx, n_rx, 2) -> (B, Lp, feat): pure reshape (same as torch .view)
    x = csi_ls.reshape(B, Lp, feat)

    # One-time weight repacking (no activation data touched): fused QKV, per-head Wo,
    # transposed sequence-resize weight, stacked decoder weights.
    wqkv = jnp.concatenate([p["wq"], p["wk"], p["wv"]], axis=1)            # (E, 3E)
    bqkv = jnp.concatenate([p["bq"], p["bk"], p["bv"]]).reshape(1, 3 * E)
    wo_h = p["wo"].reshape(H, Dh, E)                                       # per-head rows of Wo
    rs_wT = p["rs_w"].T                                                    # (Lf, Lp)
    rs_b = p["rs_b"].reshape(Lf, 1)
    dc1_w = jnp.concatenate([blk["c1_w"] for blk in p["decoder"]], axis=0)  # (nblk*dk, D, D)
    dc2_w = jnp.concatenate([blk["c2_w"] for blk in p["decoder"]], axis=0)
    dc1_b = jnp.stack([blk["c1_b"].reshape(1, D) for blk in p["decoder"]])  # (nblk, 1, D)
    dc2_b = jnp.stack([blk["c2_b"].reshape(1, D) for blk in p["decoder"]])
    dln_g = jnp.stack([blk["ln_g"].reshape(1, D) for blk in p["decoder"]])
    dln_b = jnp.stack([blk["ln_b"].reshape(1, D) for blk in p["decoder"]])

    args = (
        x,
        p["in_w"], row(p["in_b"]),
        row(p["enc_ln1_g"]), row(p["enc_ln1_b"]), wqkv, bqkv, wo_h, row(p["bo"]),
        row(p["enc_ln2_g"]), row(p["enc_ln2_b"]),
        p["enc_resproj_w"].reshape(E, F), row(p["enc_resproj_b"]),
        p["enc_conv1_w"], row(p["enc_conv1_b"]),
        p["enc_conv2_w"], row(p["enc_conv2_b"]),
        row(p["enc_lnf_g"]), row(p["enc_lnf_b"]),
        p["rp_w"], row(p["rp_b"]), rs_wT, rs_b,
        dc1_w, dc1_b, dc2_w, dc2_b, dln_g, dln_b,
        p["out_w"], row(p["out_b"]),
    )

    in_specs = [pl.BlockSpec((1, Lp, feat), lambda b: (b, 0, 0))]
    in_specs += [_bcast_spec(a.shape) for a in args[1:]]

    y = pl.pallas_call(
        _make_fused_kernel(cfg),
        grid=(B,),
        out_shape=jax.ShapeDtypeStruct((B, Lf, feat), jnp.float32),
        in_specs=in_specs,
        out_specs=pl.BlockSpec((1, Lf, feat), lambda b: (b, 0, 0)),
        scratch_shapes=[pltpu.VMEM((_PAD + Lp + 8, E), jnp.float32),   # enc conv1 pad buf
                        pltpu.VMEM((_PAD + Lp + 8, F), jnp.float32),   # enc conv2 pad buf
                        pltpu.VMEM((_PAD + Lf + 8, D), jnp.float32)],  # decoder/output pad buf
        compiler_params=pltpu.CompilerParams(dimension_semantics=("parallel",)),
    )(*args)

    # Channels-last (B, Lf, feat) is exactly the torch output after its final permute:
    # a single reshape recovers (B, n_subc, n_sym, n_tx, n_rx, 2).
    return y.reshape(B, n_subc, n_sym, n_tx, n_rx, 2)


# ----------------------------- parameters -----------------------------

def init_params(key, cfg):
    E = cfg["embed_dim"]
    F = cfg["n_encoder_filters"]
    D = cfg["n_decoder_filters"]
    feat = cfg["n_tx"] * cfg["n_rx"] * 2
    Lp = cfg["n_subc"] * cfg["n_pilot_sym"]
    Lf = cfg["n_subc"] * cfg["n_sym"]
    ek = cfg["encoder_kernel_size"]
    dk = cfg["decoder_kernel_size"]

    keys = iter(jax.random.split(key, 64))

    def w(shape, scale=0.05):
        return scale * jax.random.normal(next(keys), shape, jnp.float32)

    p = {
        "in_w": w((feat, E)), "in_b": w((E,)),
        # encoder
        "enc_ln1_g": jnp.ones((E,), jnp.float32), "enc_ln1_b": jnp.zeros((E,), jnp.float32),
        "wq": w((E, E)), "bq": w((E,)),
        "wk": w((E, E)), "bk": w((E,)),
        "wv": w((E, E)), "bv": w((E,)),
        "wo": w((E, E)), "bo": w((E,)),
        "enc_ln2_g": jnp.ones((E,), jnp.float32), "enc_ln2_b": jnp.zeros((E,), jnp.float32),
        "enc_conv1_w": w((ek, E, F)), "enc_conv1_b": w((F,)),
        "enc_conv2_w": w((ek, F, F)), "enc_conv2_b": w((F,)),
        "enc_resproj_w": w((1, E, F)), "enc_resproj_b": w((F,)),
        "enc_lnf_g": jnp.ones((F,), jnp.float32), "enc_lnf_b": jnp.zeros((F,), jnp.float32),
        # resize
        "rp_w": w((F, D)), "rp_b": w((D,)),
        "rs_w": w((Lp, Lf)), "rs_b": w((Lf,)),
        # output projection
        "out_w": w((dk, D, feat)), "out_b": w((feat,)),
    }
    p["decoder"] = [
        {
            "c1_w": w((dk, D, D)), "c1_b": w((D,)),
            "c2_w": w((dk, D, D)), "c2_b": w((D,)),
            "ln_g": jnp.ones((D,), jnp.float32), "ln_b": jnp.zeros((D,), jnp.float32),
        }
        for _ in range(cfg["num_decoder_blocks"])
    ]
    return p


# ----------------------------- pure-JAX reference (for self-check) -----------------------------

def _ln_ref(x, g, b, eps=1e-5):
    mu = x.mean(-1, keepdims=True)
    var = ((x - mu) ** 2).mean(-1, keepdims=True)
    return (x - mu) / jnp.sqrt(var + eps) * g + b


def _conv_ref(x, w, b):
    K = w.shape[0]
    pad = K // 2
    L = x.shape[1]
    xp = jnp.pad(x, ((0, 0), (pad, pad), (0, 0)))
    y = sum(jnp.einsum("blc,cd->bld", xp[:, k:k + L, :], w[k], precision="highest")
            for k in range(K))
    return y + b


def reference_forward(p, csi_ls, cfg):
    B = csi_ls.shape[0]
    E = cfg["embed_dim"]
    H = cfg["num_heads"]
    Dh = E // H
    Lp = cfg["n_subc"] * cfg["n_pilot_sym"]
    feat = cfg["n_tx"] * cfg["n_rx"] * 2
    hi = "highest"

    x = csi_ls.reshape(B, Lp, feat)
    x = jnp.einsum("blf,fe->ble", x, p["in_w"], precision=hi) + p["in_b"]

    residual = x
    xn = _ln_ref(x, p["enc_ln1_g"], p["enc_ln1_b"])

    def heads(wm, bm):
        h = jnp.einsum("ble,ef->blf", xn, wm, precision=hi) + bm
        return h.reshape(B, Lp, H, Dh).transpose(0, 2, 1, 3)

    q, k, v = heads(p["wq"], p["bq"]), heads(p["wk"], p["bk"]), heads(p["wv"], p["bv"])
    s = jnp.einsum("bhqd,bhkd->bhqk", q, k, precision=hi) / math.sqrt(Dh)
    a = jax.nn.softmax(s, axis=-1)
    o = jnp.einsum("bhqk,bhkd->bhqd", a, v, precision=hi)
    o = o.transpose(0, 2, 1, 3).reshape(B, Lp, E)
    x = residual + jnp.einsum("ble,ef->blf", o, p["wo"], precision=hi) + p["bo"]

    res_pre = x
    xn2 = _ln_ref(x, p["enc_ln2_g"], p["enc_ln2_b"])
    rp = _conv_ref(res_pre, p["enc_resproj_w"], p["enc_resproj_b"])
    h = _conv_ref(xn2, p["enc_conv1_w"], p["enc_conv1_b"])
    h = 0.5 * h * (1.0 + jax.scipy.special.erf(h / math.sqrt(2.0)))
    h = _conv_ref(h, p["enc_conv2_w"], p["enc_conv2_b"]) + rp
    enc = _ln_ref(h, p["enc_lnf_g"], p["enc_lnf_b"])

    r = jnp.einsum("blf,fd->bld", enc, p["rp_w"], precision=hi) + p["rp_b"]
    y = jnp.einsum("pf,bpd->bfd", p["rs_w"], r, precision=hi) + p["rs_b"][None, :, None]

    for blk in p["decoder"]:
        t = jnp.maximum(_conv_ref(y, blk["c1_w"], blk["c1_b"]), 0.0)
        t = _conv_ref(t, blk["c2_w"], blk["c2_b"]) + y
        y = _ln_ref(t, blk["ln_g"], blk["ln_b"])

    out = _conv_ref(y, p["out_w"], p["out_b"])
    return out.reshape(B, cfg["n_subc"], cfg["n_sym"], cfg["n_tx"], cfg["n_rx"], 2)


# ----------------------------- main -----------------------------

if __name__ == "__main__":
    cfg = dict(
        n_subc=16, n_sym=6, n_tx=2, n_rx=2, n_pilot_sym=4,
        embed_dim=32, num_heads=4,
        n_encoder_filters=5, n_decoder_filters=12, num_decoder_blocks=3,
        encoder_kernel_size=3, decoder_kernel_size=5,
    )
    B = 2
    key = jax.random.PRNGKey(0)
    k_param, k_input = jax.random.split(key)
    params = init_params(k_param, cfg)
    csi_ls = jax.random.normal(
        k_input, (B, cfg["n_subc"], cfg["n_pilot_sym"], cfg["n_tx"], cfg["n_rx"], 2),
        dtype=jnp.float32)

    fwd = jax.jit(lambda pr, xx: channelformer_forward(pr, xx, cfg))
    out = jax.block_until_ready(fwd(params, csi_ls))

    expected = (B, cfg["n_subc"], cfg["n_sym"], cfg["n_tx"], cfg["n_rx"], 2)
    assert out.shape == expected, (out.shape, expected)
    assert bool(jnp.all(jnp.isfinite(out)))

    ref = jax.jit(lambda pr, xx: reference_forward(pr, xx, cfg))(params, csi_ls)
    err = float(jnp.max(jnp.abs(out - ref)))
    assert err < 5e-2, f"max abs err vs reference: {err}"

    print("KERNEL_OK")
</pallas_src>

<mosaic_0001>
module attributes {stable_mosaic.version = 11 : i64} {
  func.func @kernel(%arg0: i32, %arg1: memref<1x64x8xf32, #tpu.memory_space<vmem>>, %arg2: memref<8x32xf32, #tpu.memory_space<vmem>>, %arg3: memref<1x32xf32, #tpu.memory_space<vmem>>, %arg4: memref<1x32xf32, #tpu.memory_space<vmem>>, %arg5: memref<1x32xf32, #tpu.memory_space<vmem>>, %arg6: memref<32x96xf32, #tpu.memory_space<vmem>>, %arg7: memref<1x96xf32, #tpu.memory_space<vmem>>, %arg8: memref<4x8x32xf32, #tpu.memory_space<vmem>>, %arg9: memref<1x32xf32, #tpu.memory_space<vmem>>, %arg10: memref<1x32xf32, #tpu.memory_space<vmem>>, %arg11: memref<1x32xf32, #tpu.memory_space<vmem>>, %arg12: memref<32x5xf32, #tpu.memory_space<vmem>>, %arg13: memref<1x5xf32, #tpu.memory_space<vmem>>, %arg14: memref<3x32x5xf32, #tpu.memory_space<vmem>>, %arg15: memref<1x5xf32, #tpu.memory_space<vmem>>, %arg16: memref<3x5x5xf32, #tpu.memory_space<vmem>>, %arg17: memref<1x5xf32, #tpu.memory_space<vmem>>, %arg18: memref<1x5xf32, #tpu.memory_space<vmem>>, %arg19: memref<1x5xf32, #tpu.memory_space<vmem>>, %arg20: memref<5x12xf32, #tpu.memory_space<vmem>>, %arg21: memref<1x12xf32, #tpu.memory_space<vmem>>, %arg22: memref<96x64xf32, #tpu.memory_space<vmem>>, %arg23: memref<96x1xf32, #tpu.memory_space<vmem>>, %arg24: memref<15x12x12xf32, #tpu.memory_space<vmem>>, %arg25: memref<3x1x12xf32, #tpu.memory_space<vmem>>, %arg26: memref<15x12x12xf32, #tpu.memory_space<vmem>>, %arg27: memref<3x1x12xf32, #tpu.memory_space<vmem>>, %arg28: memref<3x1x12xf32, #tpu.memory_space<vmem>>, %arg29: memref<3x1x12xf32, #tpu.memory_space<vmem>>, %arg30: memref<5x12x8xf32, #tpu.memory_space<vmem>>, %arg31: memref<1x8xf32, #tpu.memory_space<vmem>>, %arg32: memref<1x96x8xf32, #tpu.memory_space<vmem>>, %arg33: memref<80x32xf32, #tpu.memory_space<vmem>>, %arg34: memref<80x5xf32, #tpu.memory_space<vmem>>, %arg35: memref<112x12xf32, #tpu.memory_space<vmem>>) attributes {dimension_semantics = [#tpu.dimension_semantics<parallel>], iteration_bounds = array<i64: 2>, scalar_prefetch = 0 : i64, scratch_operands = 3 : i64, tpu.core_type = #tpu.core_type<tc>, window_params = [{transform_indices = @transform_0, window_bounds = array<i64: 1, 64, 8>}, {pipeline_mode = #tpu.pipeline_mode<synchronous>, transform_indices = @transform_1, window_bounds = array<i64: 8, 32>}, {pipeline_mode = #tpu.pipeline_mode<synchronous>, transform_indices = @transform_2, window_bounds = array<i64: 1, 32>}, {pipeline_mode = #tpu.pipeline_mode<synchronous>, transform_indices = @transform_3, window_bounds = array<i64: 1, 32>}, {pipeline_mode = #tpu.pipeline_mode<synchronous>, transform_indices = @transform_4, window_bounds = array<i64: 1, 32>}, {pipeline_mode = #tpu.pipeline_mode<synchronous>, transform_indices = @transform_5, window_bounds = array<i64: 32, 96>}, {pipeline_mode = #tpu.pipeline_mode<synchronous>, transform_indices = @transform_6, window_bounds = array<i64: 1, 96>}, {pipeline_mode = #tpu.pipeline_mode<synchronous>, transform_indices = @transform_7, window_bounds = array<i64: 4, 8, 32>}, {pipeline_mode = #tpu.pipeline_mode<synchronous>, transform_indices = @transform_8, window_bounds = array<i64: 1, 32>}, {pipeline_mode = #tpu.pipeline_mode<synchronous>, transform_indices = @transform_9, window_bounds = array<i64: 1, 32>}, {pipeline_mode = #tpu.pipeline_mode<synchronous>, transform_indices = @transform_10, window_bounds = array<i64: 1, 32>}, {pipeline_mode = #tpu.pipeline_mode<synchronous>, transform_indices = @transform_11, window_bounds = array<i64: 32, 5>}, {pipeline_mode = #tpu.pipeline_mode<synchronous>, transform_indices = @transform_12, window_bounds = array<i64: 1, 5>}, {pipeline_mode = #tpu.pipeline_mode<synchronous>, transform_indices = @transform_13, window_bounds = array<i64: 3, 32, 5>}, {pipeline_mode = #tpu.pipeline_mode<synchronous>, transform_indices = @transform_14, window_bounds = array<i64: 1, 5>}, {pipeline_mode = #tpu.pipeline_mode<synchronous>, transform_indices = @transform_15, window_bounds = array<i64: 3, 5, 5>}, {pipeline_mode = #tpu.pipeline_mode<synchronous>, transform_indices = @transform_16, window_bounds = array<i64: 1, 5>}, {pipeline_mode = #tpu.pipeline_mode<synchronous>, transform_indices = @transform_17, window_bounds = array<i64: 1, 5>}, {pipeline_mode = #tpu.pipeline_mode<synchronous>, transform_indices = @transform_18, window_bounds = array<i64: 1, 5>}, {pipeline_mode = #tpu.pipeline_mode<synchronous>, transform_indices = @transform_19, window_bounds = array<i64: 5, 12>}, {pipeline_mode = #tpu.pipeline_mode<synchronous>, transform_indices = @transform_20, window_bounds = array<i64: 1, 12>}, {pipeline_mode = #tpu.pipeline_mode<synchronous>, transform_indices = @transform_21, window_bounds = array<i64: 96, 64>}, {pipeline_mode = #tpu.pipeline_mode<synchronous>, transform_indices = @transform_22, window_bounds = array<i64: 96, 1>}, {pipeline_mode = #tpu.pipeline_mode<synchronous>, transform_indices = @transform_23, window_bounds = array<i64: 15, 12, 12>}, {pipeline_mode = #tpu.pipeline_mode<synchronous>, transform_indices = @transform_24, window_bounds = array<i64: 3, 1, 12>}, {pipeline_mode = #tpu.pipeline_mode<synchronous>, transform_indices = @transform_25, window_bounds = array<i64: 15, 12, 12>}, {pipeline_mode = #tpu.pipeline_mode<synchronous>, transform_indices = @transform_26, window_bounds = array<i64: 3, 1, 12>}, {pipeline_mode = #tpu.pipeline_mode<synchronous>, transform_indices = @transform_27, window_bounds = array<i64: 3, 1, 12>}, {pipeline_mode = #tpu.pipeline_mode<synchronous>, transform_indices = @transform_28, window_bounds = array<i64: 3, 1, 12>}, {pipeline_mode = #tpu.pipeline_mode<synchronous>, transform_indices = @transform_29, window_bounds = array<i64: 5, 12, 8>}, {pipeline_mode = #tpu.pipeline_mode<synchronous>, transform_indices = @transform_30, window_bounds = array<i64: 1, 8>}, {transform_indices = @transform_31, window_bounds = array<i64: 1, 96, 8>}]} {
    %cst = arith.constant 0.000000e+00 : f32
    %0 = vector.broadcast %cst : f32 to vector<80x32xf32>
    %c0 = arith.constant 0 : index
    %c0_0 = arith.constant 0 : index
    %1 = vector.load %arg33[%c0, %c0_0] : memref<80x32xf32, #tpu.memory_space<vmem>>, vector<80x32xf32>
    tpu.vector_store %arg33[%c0, %c0_0], %0 {strides = array<i32>} : memref<80x32xf32, #tpu.memory_space<vmem>>, vector<80x32xf32>,
    %cst_1 = arith.constant 0.000000e+00 : f32
    %2 = vector.broadcast %cst_1 : f32 to vector<80x5xf32>
    %c0_2 = arith.constant 0 : index
    %c0_3 = arith.constant 0 : index
    %3 = vector.load %arg34[%c0_2, %c0_3] : memref<80x5xf32, #tpu.memory_space<vmem>>, vector<80x5xf32>
    tpu.vector_store %arg34[%c0_2, %c0_3], %2 {strides = array<i32>} : memref<80x5xf32, #tpu.memory_space<vmem>>, vector<80x5xf32>,
    %cst_4 = arith.constant 0.000000e+00 : f32
    %4 = vector.broadcast %cst_4 : f32 to vector<112x12xf32>
    %c0_5 = arith.constant 0 : index
    %c0_6 = arith.constant 0 : index
    %5 = vector.load %arg35[%c0_5, %c0_6] : memref<112x12xf32, #tpu.memory_space<vmem>>, vector<112x12xf32>
    tpu.vector_store %arg35[%c0_5, %c0_6], %4 {strides = array<i32>} : memref<112x12xf32, #tpu.memory_space<vmem>>, vector<112x12xf32>,
    %c0_7 = arith.constant 0 : index
    %c0_8 = arith.constant 0 : index
    %c0_9 = arith.constant 0 : index
    %6 = vector.load %arg1[%c0_7, %c0_8, %c0_9] : memref<1x64x8xf32, #tpu.memory_space<vmem>>, vector<1x64x8xf32>
    %7 = vector.shape_cast %6 : vector<1x64x8xf32> to vector<64x8xf32>
    %c0_10 = arith.constant 0 : index
    %c0_11 = arith.constant 0 : index
    %8 = vector.load %arg2[%c0_10, %c0_11] : memref<8x32xf32, #tpu.memory_space<vmem>>, vector<8x32xf32>
    %cst_12 = arith.constant dense<0.000000e+00> : vector<64x32xf32>
    %9 = tpu.matmul %7, %8, %cst_12 {dimension_numbers = #tpu.dot_dimension_numbers<[1], [0], [0], [1], [0, 0, 1, 1], [], []>} : vector<64x8xf32>, vector<8x32xf32>, vector<64x32xf32> -> vector<64x32xf32>
    %c0_13 = arith.constant 0 : index
    %c0_14 = arith.constant 0 : index
    %10 = vector.load %arg3[%c0_13, %c0_14] : memref<1x32xf32, #tpu.memory_space<vmem>>, vector<1x32xf32>
    %11 = vector.broadcast %10 : vector<1x32xf32> to vector<64x32xf32>
    %12 = arith.addf %9, %11 : vector<64x32xf32>
    %c0_15 = arith.constant 0 : index
    %c0_16 = arith.constant 0 : index
    %13 = vector.load %arg4[%c0_15, %c0_16] : memref<1x32xf32, #tpu.memory_space<vmem>>, vector<1x32xf32>
    %c0_17 = arith.constant 0 : index
    %c0_18 = arith.constant 0 : index
    %14 = vector.load %arg5[%c0_17, %c0_18] : memref<1x32xf32, #tpu.memory_space<vmem>>, vector<1x32xf32>
    %cst_19 = arith.constant dense<0.000000e+00> : vector<64xf32>
    %15 = vector.multi_reduction <add>, %12, %cst_19 [1] : vector<64x32xf32> to vector<64xf32>
    %16 = vector.shape_cast %15 : vector<64xf32> to vector<64x1xf32>
    %cst_20 = arith.constant 3.200000e+01 : f32
    %17 = vector.broadcast %cst_20 : f32 to vector<64x1xf32>
    %18 = arith.divf %16, %17 : vector<64x1xf32>
    %19 = vector.broadcast %18 : vector<64x1xf32> to vector<64x32xf32>
    %20 = arith.subf %12, %19 : vector<64x32xf32>
    %21 = arith.mulf %20, %20 : vector<64x32xf32>
    %cst_21 = arith.constant dense<0.000000e+00> : vector<64xf32>
    %22 = vector.multi_reduction <add>, %21, %cst_21 [1] : vector<64x32xf32> to vector<64xf32>
    %23 = vector.shape_cast %22 : vector<64xf32> to vector<64x1xf32>
    %cst_22 = arith.constant 3.200000e+01 : f32
    %24 = vector.broadcast %cst_22 : f32 to vector<64x1xf32>
    %25 = arith.divf %23, %24 : vector<64x1xf32>
    %26 = vector.broadcast %18 : vector<64x1xf32> to vector<64x32xf32>
    %27 = arith.subf %12, %26 : vector<64x32xf32>
    %cst_23 = arith.constant 9.99999974E-6 : f32
    %28 = vector.broadcast %cst_23 : f32 to vector<64x1xf32>
    %29 = arith.addf %25, %28 : vector<64x1xf32>
    %30 = math.rsqrt %29 : vector<64x1xf32>
    %31 = vector.broadcast %30 : vector<64x1xf32> to vector<64x32xf32>
    %32 = arith.mulf %27, %31 : vector<64x32xf32>
    %33 = vector.broadcast %13 : vector<1x32xf32> to vector<64x32xf32>
    %34 = arith.mulf %32, %33 : vector<64x32xf32>
    %35 = vector.broadcast %14 : vector<1x32xf32> to vector<64x32xf32>
    %36 = arith.addf %34, %35 : vector<64x32xf32>
    %c0_24 = arith.constant 0 : index
    %c0_25 = arith.constant 0 : index
    %37 = vector.load %arg6[%c0_24, %c0_25] : memref<32x96xf32, #tpu.memory_space<vmem>>, vector<32x96xf32>
    %cst_26 = arith.constant dense<0.000000e+00> : vector<64x96xf32>
    %38 = tpu.matmul %36, %37, %cst_26 {dimension_numbers = #tpu.dot_dimension_numbers<[1], [0], [0], [1], [0, 0, 1, 1], [], []>} : vector<64x32xf32>, vector<32x96xf32>, vector<64x96xf32> -> vector<64x96xf32>
    %c0_27 = arith.constant 0 : index
    %c0_28 = arith.constant 0 : index
    %39 = vector.load %arg7[%c0_27, %c0_28] : memref<1x96xf32, #tpu.memory_space<vmem>>, vector<1x96xf32>
    %40 = vector.broadcast %39 : vector<1x96xf32> to vector<64x96xf32>
    %41 = arith.addf %38, %40 : vector<64x96xf32>
    %cst_29 = arith.constant 0.000000e+00 : f32
    %42 = vector.broadcast %cst_29 : f32 to vector<64x32xf32>
    %43 = vector.extract_strided_slice %41 {offsets = [0, 0], sizes = [64, 8], strides = [1, 1]} : vector<64x96xf32> to vector<64x8xf32>
    %44 = vector.extract_strided_slice %41 {offsets = [0, 32], sizes = [64, 8], strides = [1, 1]} : vector<64x96xf32> to vector<64x8xf32>
    %45 = vector.extract_strided_slice %41 {offsets = [0, 64], sizes = [64, 8], strides = [1, 1]} : vector<64x96xf32> to vector<64x8xf32>
    %46 = tpu.transpose %44, [1, 0] : vector<64x8xf32> -> vector<8x64xf32>
    %cst_30 = arith.constant dense<0.000000e+00> : vector<64x64xf32>
    %47 = tpu.matmul %43, %46, %cst_30 {dimension_numbers = #tpu.dot_dimension_numbers<[1], [0], [0], [1], [0, 0, 1, 1], [], []>} : vector<64x8xf32>, vector<8x64xf32>, vector<64x64xf32> -> vector<64x64xf32>
    %cst_31 = arith.constant 0.353553385 : f32
    %48 = vector.broadcast %cst_31 : f32 to vector<64x64xf32>
    %49 = arith.mulf %47, %48 : vector<64x64xf32>
    %cst_32 = arith.constant dense<0xFF800000> : vector<64xf32>
    %50 = vector.multi_reduction <maximumf>, %49, %cst_32 [1] : vector<64x64xf32> to vector<64xf32>
    %51 = vector.shape_cast %50 : vector<64xf32> to vector<64x1xf32>
    %52 = vector.broadcast %51 : vector<64x1xf32> to vector<64x64xf32>
    %53 = arith.subf %49, %52 : vector<64x64xf32>
    %54 = math.exp %53 : vector<64x64xf32>
    %cst_33 = arith.constant dense<0.000000e+00> : vector<64xf32>
    %55 = vector.multi_reduction <add>, %54, %cst_33 [1] : vector<64x64xf32> to vector<64xf32>
    %56 = vector.shape_cast %55 : vector<64xf32> to vector<64x1xf32>
    %57 = vector.broadcast %56 : vector<64x1xf32> to vector<64x64xf32>
    %58 = arith.divf %54, %57 : vector<64x64xf32>
    %cst_34 = arith.constant dense<0.000000e+00> : vector<64x8xf32>
    %59 = tpu.matmul %58, %45, %cst_34 {dimension_numbers = #tpu.dot_dimension_numbers<[1], [0], [0], [1], [0, 0, 1, 1], [], []>} : vector<64x64xf32>, vector<64x8xf32>, vector<64x8xf32> -> vector<64x8xf32>
    %c0_35 = arith.constant 0 : index
    %c0_36 = arith.constant 0 : index
    %c0_37 = arith.constant 0 : index
    %60 = vector.load %arg8[%c0_35, %c0_36, %c0_37] : memref<4x8x32xf32, #tpu.memory_space<vmem>>, vector<1x8x32xf32>
    %61 = vector.shape_cast %60 : vector<1x8x32xf32> to vector<8x32xf32>
    %cst_38 = arith.constant dense<0.000000e+00> : vector<64x32xf32>
    %62 = tpu.matmul %59, %61, %cst_38 {dimension_numbers = #tpu.dot_dimension_numbers<[1], [0], [0], [1], [0, 0, 1, 1], [], []>} : vector<64x8xf32>, vector<8x32xf32>, vector<64x32xf32> -> vector<64x32xf32>
    %63 = arith.addf %42, %62 : vector<64x32xf32>
    %64 = vector.extract_strided_slice %41 {offsets = [0, 8], sizes = [64, 8], strides = [1, 1]} : vector<64x96xf32> to vector<64x8xf32>
    %65 = vector.extract_strided_slice %41 {offsets = [0, 40], sizes = [64, 8], strides = [1, 1]} : vector<64x96xf32> to vector<64x8xf32>
    %66 = vector.extract_strided_slice %41 {offsets = [0, 72], sizes = [64, 8], strides = [1, 1]} : vector<64x96xf32> to vector<64x8xf32>
    %67 = tpu.transpose %65, [1, 0] : vector<64x8xf32> -> vector<8x64xf32>
    %cst_39 = arith.constant dense<0.000000e+00> : vector<64x64xf32>
    %68 = tpu.matmul %64, %67, %cst_39 {dimension_numbers = #tpu.dot_dimension_numbers<[1], [0], [0], [1], [0, 0, 1, 1], [], []>} : vector<64x8xf32>, vector<8x64xf32>, vector<64x64xf32> -> vector<64x64xf32>
    %cst_40 = arith.constant 0.353553385 : f32
    %69 = vector.broadcast %cst_40 : f32 to vector<64x64xf32>
    %70 = arith.mulf %68, %69 : vector<64x64xf32>
    %cst_41 = arith.constant dense<0xFF800000> : vector<64xf32>
    %71 = vector.multi_reduction <maximumf>, %70, %cst_41 [1] : vector<64x64xf32> to vector<64xf32>
    %72 = vector.shape_cast %71 : vector<64xf32> to vector<64x1xf32>
    %73 = vector.broadcast %72 : vector<64x1xf32> to vector<64x64xf32>
    %74 = arith.subf %70, %73 : vector<64x64xf32>
    %75 = math.exp %74 : vector<64x64xf32>
    %cst_42 = arith.constant dense<0.000000e+00> : vector<64xf32>
    %76 = vector.multi_reduction <add>, %75, %cst_42 [1] : vector<64x64xf32> to vector<64xf32>
    %77 = vector.shape_cast %76 : vector<64xf32> to vector<64x1xf32>
    %78 = vector.broadcast %77 : vector<64x1xf32> to vector<64x64xf32>
    %79 = arith.divf %75, %78 : vector<64x64xf32>
    %cst_43 = arith.constant dense<0.000000e+00> : vector<64x8xf32>
    %80 = tpu.matmul %79, %66, %cst_43 {dimension_numbers = #tpu.dot_dimension_numbers<[1], [0], [0], [1], [0, 0, 1, 1], [], []>} : vector<64x64xf32>, vector<64x8xf32>, vector<64x8xf32> -> vector<64x8xf32>
    %c1 = arith.constant 1 : index
    %c0_44 = arith.constant 0 : index
    %c0_45 = arith.constant 0 : index
    %81 = vector.load %arg8[%c1, %c0_44, %c0_45] : memref<4x8x32xf32, #tpu.memory_space<vmem>>, vector<1x8x32xf32>
    %82 = vector.shape_cast %81 : vector<1x8x32xf32> to vector<8x32xf32>
    %cst_46 = arith.constant dense<0.000000e+00> : vector<64x32xf32>
    %83 = tpu.matmul %80, %82, %cst_46 {dimension_numbers = #tpu.dot_dimension_numbers<[1], [0], [0], [1], [0, 0, 1, 1], [], []>} : vector<64x8xf32>, vector<8x32xf32>, vector<64x32xf32> -> vector<64x32xf32>
    %84 = arith.addf %63, %83 : vector<64x32xf32>
    %85 = vector.extract_strided_slice %41 {offsets = [0, 16], sizes = [64, 8], strides = [1, 1]} : vector<64x96xf32> to vector<64x8xf32>
    %86 = vector.extract_strided_slice %41 {offsets = [0, 48], sizes = [64, 8], strides = [1, 1]} : vector<64x96xf32> to vector<64x8xf32>
    %87 = vector.extract_strided_slice %41 {offsets = [0, 80], sizes = [64, 8], strides = [1, 1]} : vector<64x96xf32> to vector<64x8xf32>
    %88 = tpu.transpose %86, [1, 0] : vector<64x8xf32> -> vector<8x64xf32>
    %cst_47 = arith.constant dense<0.000000e+00> : vector<64x64xf32>
    %89 = tpu.matmul %85, %88, %cst_47 {dimension_numbers = #tpu.dot_dimension_numbers<[1], [0], [0], [1], [0, 0, 1, 1], [], []>} : vector<64x8xf32>, vector<8x64xf32>, vector<64x64xf32> -> vector<64x64xf32>
    %cst_48 = arith.constant 0.353553385 : f32
    %90 = vector.broadcast %cst_48 : f32 to vector<64x64xf32>
    %91 = arith.mulf %89, %90 : vector<64x64xf32>
    %cst_49 = arith.constant dense<0xFF800000> : vector<64xf32>
    %92 = vector.multi_reduction <maximumf>, %91, %cst_49 [1] : vector<64x64xf32> to vector<64xf32>
    %93 = vector.shape_cast %92 : vector<64xf32> to vector<64x1xf32>
    %94 = vector.broadcast %93 : vector<64x1xf32> to vector<64x64xf32>
    %95 = arith.subf %91, %94 : vector<64x64xf32>
    %96 = math.exp %95 : vector<64x64xf32>
    %cst_50 = arith.constant dense<0.000000e+00> : vector<64xf32>
    %97 = vector.multi_reduction <add>, %96, %cst_50 [1] : vector<64x64xf32> to vector<64xf32>
    %98 = vector.shape_cast %97 : vector<64xf32> to vector<64x1xf32>
    %99 = vector.broadcast %98 : vector<64x1xf32> to vector<64x64xf32>
    %100 = arith.divf %96, %99 : vector<64x64xf32>
    %cst_51 = arith.constant dense<0.000000e+00> : vector<64x8xf32>
    %101 = tpu.matmul %100, %87, %cst_51 {dimension_numbers = #tpu.dot_dimension_numbers<[1], [0], [0], [1], [0, 0, 1, 1], [], []>} : vector<64x64xf32>, vector<64x8xf32>, vector<64x8xf32> -> vector<64x8xf32>
    %c2 = arith.constant 2 : index
    %c0_52 = arith.constant 0 : index
    %c0_53 = arith.constant 0 : index
    %102 = vector.load %arg8[%c2, %c0_52, %c0_53] : memref<4x8x32xf32, #tpu.memory_space<vmem>>, vector<1x8x32xf32>
    %103 = vector.shape_cast %102 : vector<1x8x32xf32> to vector<8x32xf32>
    %cst_54 = arith.constant dense<0.000000e+00> : vector<64x32xf32>
    %104 = tpu.matmul %101, %103, %cst_54 {dimension_numbers = #tpu.dot_dimension_numbers<[1], [0], [0], [1], [0, 0, 1, 1], [], []>} : vector<64x8xf32>, vector<8x32xf32>, vector<64x32xf32> -> vector<64x32xf32>
    %105 = arith.addf %84, %104 : vector<64x32xf32>
    %106 = vector.extract_strided_slice %41 {offsets = [0, 24], sizes = [64, 8], strides = [1, 1]} : vector<64x96xf32> to vector<64x8xf32>
    %107 = vector.extract_strided_slice %41 {offsets = [0, 56], sizes = [64, 8], strides = [1, 1]} : vector<64x96xf32> to vector<64x8xf32>
    %108 = vector.extract_strided_slice %41 {offsets = [0, 88], sizes = [64, 8], strides = [1, 1]} : vector<64x96xf32> to vector<64x8xf32>
    %109 = tpu.transpose %107, [1, 0] : vector<64x8xf32> -> vector<8x64xf32>
    %cst_55 = arith.constant dense<0.000000e+00> : vector<64x64xf32>
    %110 = tpu.matmul %106, %109, %cst_55 {dimension_numbers = #tpu.dot_dimension_numbers<[1], [0], [0], [1], [0, 0, 1, 1], [], []>} : vector<64x8xf32>, vector<8x64xf32>, vector<64x64xf32> -> vector<64x64xf32>
    %cst_56 = arith.constant 0.353553385 : f32
    %111 = vector.broadcast %cst_56 : f32 to vector<64x64xf32>
    %112 = arith.mulf %110, %111 : vector<64x64xf32>
    %cst_57 = arith.constant dense<0xFF800000> : vector<64xf32>
    %113 = vector.multi_reduction <maximumf>, %112, %cst_57 [1] : vector<64x64xf32> to vector<64xf32>
    %114 = vector.shape_cast %113 : vector<64xf32> to vector<64x1xf32>
    %115 = vector.broadcast %114 : vector<64x1xf32> to vector<64x64xf32>
    %116 = arith.subf %112, %115 : vector<64x64xf32>
    %117 = math.exp %116 : vector<64x64xf32>
    %cst_58 = arith.constant dense<0.000000e+00> : vector<64xf32>
    %118 = vector.multi_reduction <add>, %117, %cst_58 [1] : vector<64x64xf32> to vector<64xf32>
    %119 = vector.shape_cast %118 : vector<64xf32> to vector<64x1xf32>
    %120 = vector.broadcast %119 : vector<64x1xf32> to vector<64x64xf32>
    %121 = arith.divf %117, %120 : vector<64x64xf32>
    %cst_59 = arith.constant dense<0.000000e+00> : vector<64x8xf32>
    %122 = tpu.matmul %121, %108, %cst_59 {dimension_numbers = #tpu.dot_dimension_numbers<[1], [0], [0], [1], [0, 0, 1, 1], [], []>} : vector<64x64xf32>, vector<64x8xf32>, vector<64x8xf32> -> vector<64x8xf32>
    %c3 = arith.constant 3 : index
    %c0_60 = arith.constant 0 : index
    %c0_61 = arith.constant 0 : index
    %123 = vector.load %arg8[%c3, %c0_60, %c0_61] : memref<4x8x32xf32, #tpu.memory_space<vmem>>, vector<1x8x32xf32>
    %124 = vector.shape_cast %123 : vector<1x8x32xf32> to vector<8x32xf32>
    %cst_62 = arith.constant dense<0.000000e+00> : vector<64x32xf32>
    %125 = tpu.matmul %122, %124, %cst_62 {dimension_numbers = #tpu.dot_dimension_numbers<[1], [0], [0], [1], [0, 0, 1, 1], [], []>} : vector<64x8xf32>, vector<8x32xf32>, vector<64x32xf32> -> vector<64x32xf32>
    %126 = arith.addf %105, %125 : vector<64x32xf32>
    %127 = arith.addf %12, %126 : vector<64x32xf32>
    %c0_63 = arith.constant 0 : index
    %c0_64 = arith.constant 0 : index
    %128 = vector.load %arg9[%c0_63, %c0_64] : memref<1x32xf32, #tpu.memory_space<vmem>>, vector<1x32xf32>
    %129 = vector.broadcast %128 : vector<1x32xf32> to vector<64x32xf32>
    %130 = arith.addf %127, %129 : vector<64x32xf32>
    %c0_65 = arith.constant 0 : index
    %c0_66 = arith.constant 0 : index
    %131 = vector.load %arg10[%c0_65, %c0_66] : memref<1x32xf32, #tpu.memory_space<vmem>>, vector<1x32xf32>
    %c0_67 = arith.constant 0 : index
    %c0_68 = arith.constant 0 : index
    %132 = vector.load %arg11[%c0_67, %c0_68] : memref<1x32xf32, #tpu.memory_space<vmem>>, vector<1x32xf32>
    %cst_69 = arith.constant dense<0.000000e+00> : vector<64xf32>
    %133 = vector.multi_reduction <add>, %130, %cst_69 [1] : vector<64x32xf32> to vector<64xf32>
    %134 = vector.shape_cast %133 : vector<64xf32> to vector<64x1xf32>
    %cst_70 = arith.constant 3.200000e+01 : f32
    %135 = vector.broadcast %cst_70 : f32 to vector<64x1xf32>
    %136 = arith.divf %134, %135 : vector<64x1xf32>
    %137 = vector.broadcast %136 : vector<64x1xf32> to vector<64x32xf32>
    %138 = arith.subf %130, %137 : vector<64x32xf32>
    %139 = arith.mulf %138, %138 : vector<64x32xf32>
    %cst_71 = arith.constant dense<0.000000e+00> : vector<64xf32>
    %140 = vector.multi_reduction <add>, %139, %cst_71 [1] : vector<64x32xf32> to vector<64xf32>
    %141 = vector.shape_cast %140 : vector<64xf32> to vector<64x1xf32>
    %cst_72 = arith.constant 3.200000e+01 : f32
    %142 = vector.broadcast %cst_72 : f32 to vector<64x1xf32>
    %143 = arith.divf %141, %142 : vector<64x1xf32>
    %144 = vector.broadcast %136 : vector<64x1xf32> to vector<64x32xf32>
    %145 = arith.subf %130, %144 : vector<64x32xf32>
    %cst_73 = arith.constant 9.99999974E-6 : f32
    %146 = vector.broadcast %cst_73 : f32 to vector<64x1xf32>
    %147 = arith.addf %143, %146 : vector<64x1xf32>
    %148 = math.rsqrt %147 : vector<64x1xf32>
    %149 = vector.broadcast %148 : vector<64x1xf32> to vector<64x32xf32>
    %150 = arith.mulf %145, %149 : vector<64x32xf32>
    %151 = vector.broadcast %131 : vector<1x32xf32> to vector<64x32xf32>
    %152 = arith.mulf %150, %151 : vector<64x32xf32>
    %153 = vector.broadcast %132 : vector<1x32xf32> to vector<64x32xf32>
    %154 = arith.addf %152, %153 : vector<64x32xf32>
    %c0_74 = arith.constant 0 : index
    %c0_75 = arith.constant 0 : index
    %155 = vector.load %arg12[%c0_74, %c0_75] : memref<32x5xf32, #tpu.memory_space<vmem>>, vector<32x5xf32>
    %cst_76 = arith.constant dense<0.000000e+00> : vector<64x5xf32>
    %156 = tpu.matmul %130, %155, %cst_76 {dimension_numbers = #tpu.dot_dimension_numbers<[1], [0], [0], [1], [0, 0, 1, 1], [], []>} : vector<64x32xf32>, vector<32x5xf32>, vector<64x5xf32> -> vector<64x5xf32>
    %c0_77 = arith.constant 0 : index
    %c0_78 = arith.constant 0 : index
    %157 = vector.load %arg13[%c0_77, %c0_78] : memref<1x5xf32, #tpu.memory_space<vmem>>, vector<1x5xf32>
    %158 = vector.broadcast %157 : vector<1x5xf32> to vector<64x5xf32>
    %159 = arith.addf %156, %158 : vector<64x5xf32>
    %c0_79 = arith.constant 0 : index
    %c0_80 = arith.constant 0 : index
    %160 = vector.load %arg15[%c0_79, %c0_80] : memref<1x5xf32, #tpu.memory_space<vmem>>, vector<1x5xf32>
    %c8 = arith.constant 8 : index
    %c0_81 = arith.constant 0 : index
    %161 = vector.load %arg33[%c8, %c0_81] : memref<80x32xf32, #tpu.memory_space<vmem>>, vector<64x32xf32>
    tpu.vector_store %arg33[%c8, %c0_81], %154 {strides = array<i32>} : memref<80x32xf32, #tpu.memory_space<vmem>>, vector<64x32xf32>,
    %cst_82 = arith.constant 0.000000e+00 : f32
    %162 = vector.broadcast %cst_82 : f32 to vector<64x5xf32>
    %c7 = arith.constant 7 : index
    %c0_83 = arith.constant 0 : index
    %163 = vector.load %arg33[%c7, %c0_83] : memref<80x32xf32, #tpu.memory_space<vmem>>, vector<64x32xf32>
    %c0_84 = arith.constant 0 : index
    %c0_85 = arith.constant 0 : index
    %c0_86 = arith.constant 0 : index
    %164 = vector.load %arg14[%c0_84, %c0_85, %c0_86] : memref<3x32x5xf32, #tpu.memory_space<vmem>>, vector<1x32x5xf32>
    %165 = vector.shape_cast %164 : vector<1x32x5xf32> to vector<32x5xf32>
    %cst_87 = arith.constant dense<0.000000e+00> : vector<64x5xf32>
    %166 = tpu.matmul %163, %165, %cst_87 {dimension_numbers = #tpu.dot_dimension_numbers<[1], [0], [0], [1], [0, 0, 1, 1], [], []>} : vector<64x32xf32>, vector<32x5xf32>, vector<64x5xf32> -> vector<64x5xf32>
    %167 = arith.addf %162, %166 : vector<64x5xf32>
    %c8_88 = arith.constant 8 : index
    %c0_89 = arith.constant 0 : index
    %168 = vector.load %arg33[%c8_88, %c0_89] : memref<80x32xf32, #tpu.memory_space<vmem>>, vector<64x32xf32>
    %c1_90 = arith.constant 1 : index
    %c0_91 = arith.constant 0 : index
    %c0_92 = arith.constant 0 : index
    %169 = vector.load %arg14[%c1_90, %c0_91, %c0_92] : memref<3x32x5xf32, #tpu.memory_space<vmem>>, vector<1x32x5xf32>
    %170 = vector.shape_cast %169 : vector<1x32x5xf32> to vector<32x5xf32>
    %cst_93 = arith.constant dense<0.000000e+00> : vector<64x5xf32>
    %171 = tpu.matmul %168, %170, %cst_93 {dimension_numbers = #tpu.dot_dimension_numbers<[1], [0], [0], [1], [0, 0, 1, 1], [], []>} : vector<64x32xf32>, vector<32x5xf32>, vector<64x5xf32> -> vector<64x5xf32>
    %172 = arith.addf %167, %171 : vector<64x5xf32>
    %c9 = arith.constant 9 : index
    %c0_94 = arith.constant 0 : index
    %173 = vector.load %arg33[%c9, %c0_94] : memref<80x32xf32, #tpu.memory_space<vmem>>, vector<64x32xf32>
    %c2_95 = arith.constant 2 : index
    %c0_96 = arith.constant 0 : index
    %c0_97 = arith.constant 0 : index
    %174 = vector.load %arg14[%c2_95, %c0_96, %c0_97] : memref<3x32x5xf32, #tpu.memory_space<vmem>>, vector<1x32x5xf32>
    %175 = vector.shape_cast %174 : vector<1x32x5xf32> to vector<32x5xf32>
    %cst_98 = arith.constant dense<0.000000e+00> : vector<64x5xf32>
    %176 = tpu.matmul %173, %175, %cst_98 {dimension_numbers = #tpu.dot_dimension_numbers<[1], [0], [0], [1], [0, 0, 1, 1], [], []>} : vector<64x32xf32>, vector<32x5xf32>, vector<64x5xf32> -> vector<64x5xf32>
    %177 = arith.addf %172, %176 : vector<64x5xf32>
    %178 = vector.broadcast %160 : vector<1x5xf32> to vector<64x5xf32>
    %179 = arith.addf %177, %178 : vector<64x5xf32>
    %cst_99 = arith.constant 5.000000e-01 : f32
    %180 = vector.broadcast %cst_99 : f32 to vector<64x5xf32>
    %181 = arith.mulf %180, %179 : vector<64x5xf32>
    %cst_100 = arith.constant 0.707106769 : f32
    %182 = vector.broadcast %cst_100 : f32 to vector<64x5xf32>
    %183 = arith.mulf %179, %182 : vector<64x5xf32>
    %184 = math.erf %183 : vector<64x5xf32>
    %cst_101 = arith.constant 1.000000e+00 : f32
    %185 = vector.broadcast %cst_101 : f32 to vector<64x5xf32>
    %186 = arith.addf %185, %184 : vector<64x5xf32>
    %187 = arith.mulf %181, %186 : vector<64x5xf32>
    %c0_102 = arith.constant 0 : index
    %c0_103 = arith.constant 0 : index
    %188 = vector.load %arg17[%c0_102, %c0_103] : memref<1x5xf32, #tpu.memory_space<vmem>>, vector<1x5xf32>
    %c8_104 = arith.constant 8 : index
    %c0_105 = arith.constant 0 : index
    %189 = vector.load %arg34[%c8_104, %c0_105] : memref<80x5xf32, #tpu.memory_space<vmem>>, vector<64x5xf32>
    tpu.vector_store %arg34[%c8_104, %c0_105], %187 {strides = array<i32>} : memref<80x5xf32, #tpu.memory_space<vmem>>, vector<64x5xf32>,
    %cst_106 = arith.constant 0.000000e+00 : f32
    %190 = vector.broadcast %cst_106 : f32 to vector<64x5xf32>
    %c7_107 = arith.constant 7 : index
    %c0_108 = arith.constant 0 : index
    %191 = vector.load %arg34[%c7_107, %c0_108] : memref<80x5xf32, #tpu.memory_space<vmem>>, vector<64x5xf32>
    %c0_109 = arith.constant 0 : index
    %c0_110 = arith.constant 0 : index
    %c0_111 = arith.constant 0 : index
    %192 = vector.load %arg16[%c0_109, %c0_110, %c0_111] : memref<3x5x5xf32, #tpu.memory_space<vmem>>, vector<1x5x5xf32>
    %193 = vector.shape_cast %192 : vector<1x5x5xf32> to vector<5x5xf32>
    %cst_112 = arith.constant dense<0.000000e+00> : vector<64x5xf32>
    %194 = tpu.matmul %191, %193, %cst_112 {dimension_numbers = #tpu.dot_dimension_numbers<[1], [0], [0], [1], [0, 0, 1, 1], [], []>} : vector<64x5xf32>, vector<5x5xf32>, vector<64x5xf32> -> vector<64x5xf32>
    %195 = arith.addf %190, %194 : vector<64x5xf32>
    %c8_113 = arith.constant 8 : index
    %c0_114 = arith.constant 0 : index
    %196 = vector.load %arg34[%c8_113, %c0_114] : memref<80x5xf32, #tpu.memory_space<vmem>>, vector<64x5xf32>
    %c1_115 = arith.constant 1 : index
    %c0_116 = arith.constant 0 : index
    %c0_117 = arith.constant 0 : index
    %197 = vector.load %arg16[%c1_115, %c0_116, %c0_117] : memref<3x5x5xf32, #tpu.memory_space<vmem>>, vector<1x5x5xf32>
    %198 = vector.shape_cast %197 : vector<1x5x5xf32> to vector<5x5xf32>
    %cst_118 = arith.constant dense<0.000000e+00> : vector<64x5xf32>
    %199 = tpu.matmul %196, %198, %cst_118 {dimension_numbers = #tpu.dot_dimension_numbers<[1], [0], [0], [1], [0, 0, 1, 1], [], []>} : vector<64x5xf32>, vector<5x5xf32>, vector<64x5xf32> -> vector<64x5xf32>
    %200 = arith.addf %195, %199 : vector<64x5xf32>
    %c9_119 = arith.constant 9 : index
    %c0_120 = arith.constant 0 : index
    %201 = vector.load %arg34[%c9_119, %c0_120] : memref<80x5xf32, #tpu.memory_space<vmem>>, vector<64x5xf32>
    %c2_121 = arith.constant 2 : index
    %c0_122 = arith.constant 0 : index
    %c0_123 = arith.constant 0 : index
    %202 = vector.load %arg16[%c2_121, %c0_122, %c0_123] : memref<3x5x5xf32, #tpu.memory_space<vmem>>, vector<1x5x5xf32>
    %203 = vector.shape_cast %202 : vector<1x5x5xf32> to vector<5x5xf32>
    %cst_124 = arith.constant dense<0.000000e+00> : vector<64x5xf32>
    %204 = tpu.matmul %201, %203, %cst_124 {dimension_numbers = #tpu.dot_dimension_numbers<[1], [0], [0], [1], [0, 0, 1, 1], [], []>} : vector<64x5xf32>, vector<5x5xf32>, vector<64x5xf32> -> vector<64x5xf32>
    %205 = arith.addf %200, %204 : vector<64x5xf32>
    %206 = vector.broadcast %188 : vector<1x5xf32> to vector<64x5xf32>
    %207 = arith.addf %205, %206 : vector<64x5xf32>
    %208 = arith.addf %207, %159 : vector<64x5xf32>
    %c0_125 = arith.constant 0 : index
    %c0_126 = arith.constant 0 : index
    %209 = vector.load %arg18[%c0_125, %c0_126] : memref<1x5xf32, #tpu.memory_space<vmem>>, vector<1x5xf32>
    %c0_127 = arith.constant 0 : index
    %c0_128 = arith.constant 0 : index
    %210 = vector.load %arg19[%c0_127, %c0_128] : memref<1x5xf32, #tpu.memory_space<vmem>>, vector<1x5xf32>
    %cst_129 = arith.constant dense<0.000000e+00> : vector<64xf32>
    %211 = vector.multi_reduction <add>, %208, %cst_129 [1] : vector<64x5xf32> to vector<64xf32>
    %212 = vector.shape_cast %211 : vector<64xf32> to vector<64x1xf32>
    %cst_130 = arith.constant 5.000000e+00 : f32
    %213 = vector.broadcast %cst_130 : f32 to vector<64x1xf32>
    %214 = arith.divf %212, %213 : vector<64x1xf32>
    %215 = vector.broadcast %214 : vector<64x1xf32> to vector<64x5xf32>
    %216 = arith.subf %208, %215 : vector<64x5xf32>
    %217 = arith.mulf %216, %216 : vector<64x5xf32>
    %cst_131 = arith.constant dense<0.000000e+00> : vector<64xf32>
    %218 = vector.multi_reduction <add>, %217, %cst_131 [1] : vector<64x5xf32> to vector<64xf32>
    %219 = vector.shape_cast %218 : vector<64xf32> to vector<64x1xf32>
    %cst_132 = arith.constant 5.000000e+00 : f32
    %220 = vector.broadcast %cst_132 : f32 to vector<64x1xf32>
    %221 = arith.divf %219, %220 : vector<64x1xf32>
    %222 = vector.broadcast %214 : vector<64x1xf32> to vector<64x5xf32>
    %223 = arith.subf %208, %222 : vector<64x5xf32>
    %cst_133 = arith.constant 9.99999974E-6 : f32
    %224 = vector.broadcast %cst_133 : f32 to vector<64x1xf32>
    %225 = arith.addf %221, %224 : vector<64x1xf32>
    %226 = math.rsqrt %225 : vector<64x1xf32>
    %227 = vector.broadcast %226 : vector<64x1xf32> to vector<64x5xf32>
    %228 = arith.mulf %223, %227 : vector<64x5xf32>
    %229 = vector.broadcast %209 : vector<1x5xf32> to vector<64x5xf32>
    %230 = arith.mulf %228, %229 : vector<64x5xf32>
    %231 = vector.broadcast %210 : vector<1x5xf32> to vector<64x5xf32>
    %232 = arith.addf %230, %231 : vector<64x5xf32>
    %c0_134 = arith.constant 0 : index
    %c0_135 = arith.constant 0 : index
    %233 = vector.load %arg20[%c0_134, %c0_135] : memref<5x12xf32, #tpu.memory_space<vmem>>, vector<5x12xf32>
    %cst_136 = arith.constant dense<0.000000e+00> : vector<64x12xf32>
    %234 = tpu.matmul %232, %233, %cst_136 {dimension_numbers = #tpu.dot_dimension_numbers<[1], [0], [0], [1], [0, 0, 1, 1], [], []>} : vector<64x5xf32>, vector<5x12xf32>, vector<64x12xf32> -> vector<64x12xf32>
    %c0_137 = arith.constant 0 : index
    %c0_138 = arith.constant 0 : index
    %235 = vector.load %arg21[%c0_137, %c0_138] : memref<1x12xf32, #tpu.memory_space<vmem>>, vector<1x12xf32>
    %236 = vector.broadcast %235 : vector<1x12xf32> to vector<64x12xf32>
    %237 = arith.addf %234, %236 : vector<64x12xf32>
    %c0_139 = arith.constant 0 : index
    %c0_140 = arith.constant 0 : index
    %238 = vector.load %arg22[%c0_139, %c0_140] : memref<96x64xf32, #tpu.memory_space<vmem>>, vector<96x64xf32>
    %cst_141 = arith.constant dense<0.000000e+00> : vector<96x12xf32>
    %239 = tpu.matmul %238, %237, %cst_141 {dimension_numbers = #tpu.dot_dimension_numbers<[1], [0], [0], [1], [0, 0, 1, 1], [], []>} : vector<96x64xf32>, vector<64x12xf32>, vector<96x12xf32> -> vector<96x12xf32>
    %c0_142 = arith.constant 0 : index
    %c0_143 = arith.constant 0 : index
    %240 = vector.load %arg23[%c0_142, %c0_143] : memref<96x1xf32, #tpu.memory_space<vmem>>, vector<96x1xf32>
    %241 = vector.broadcast %240 : vector<96x1xf32> to vector<96x12xf32>
    %242 = arith.addf %239, %241 : vector<96x12xf32>
    %c0_144 = arith.constant 0 : index
    %c0_145 = arith.constant 0 : index
    %c0_146 = arith.constant 0 : index
    %243 = vector.load %arg25[%c0_144, %c0_145, %c0_146] : memref<3x1x12xf32, #tpu.memory_space<vmem>>, vector<1x1x12xf32>
    %244 = vector.shape_cast %243 : vector<1x1x12xf32> to vector<1x12xf32>
    %c8_147 = arith.constant 8 : index
    %c0_148 = arith.constant 0 : index
    %245 = vector.load %arg35[%c8_147, %c0_148] : memref<112x12xf32, #tpu.memory_space<vmem>>, vector<96x12xf32>
    tpu.vector_store %arg35[%c8_147, %c0_148], %242 {strides = array<i32>} : memref<112x12xf32, #tpu.memory_space<vmem>>, vector<96x12xf32>,
    %cst_149 = arith.constant 0.000000e+00 : f32
    %246 = vector.broadcast %cst_149 : f32 to vector<96x12xf32>
    %c6 = arith.constant 6 : index
    %c0_150 = arith.constant 0 : index
    %247 = vector.load %arg35[%c6, %c0_150] : memref<112x12xf32, #tpu.memory_space<vmem>>, vector<96x12xf32>
    %c0_151 = arith.constant 0 : index
    %c0_152 = arith.constant 0 : index
    %c0_153 = arith.constant 0 : index
    %248 = vector.load %arg24[%c0_151, %c0_152, %c0_153] : memref<15x12x12xf32, #tpu.memory_space<vmem>>, vector<1x12x12xf32>
    %249 = vector.shape_cast %248 : vector<1x12x12xf32> to vector<12x12xf32>
    %cst_154 = arith.constant dense<0.000000e+00> : vector<96x12xf32>
    %250 = tpu.matmul %247, %249, %cst_154 {dimension_numbers = #tpu.dot_dimension_numbers<[1], [0], [0], [1], [0, 0, 1, 1], [], []>} : vector<96x12xf32>, vector<12x12xf32>, vector<96x12xf32> -> vector<96x12xf32>
    %251 = arith.addf %246, %250 : vector<96x12xf32>
    %c7_155 = arith.constant 7 : index
    %c0_156 = arith.constant 0 : index
    %252 = vector.load %arg35[%c7_155, %c0_156] : memref<112x12xf32, #tpu.memory_space<vmem>>, vector<96x12xf32>
    %c1_157 = arith.constant 1 : index
    %c0_158 = arith.constant 0 : index
    %c0_159 = arith.constant 0 : index
    %253 = vector.load %arg24[%c1_157, %c0_158, %c0_159] : memref<15x12x12xf32, #tpu.memory_space<vmem>>, vector<1x12x12xf32>
    %254 = vector.shape_cast %253 : vector<1x12x12xf32> to vector<12x12xf32>
    %cst_160 = arith.constant dense<0.000000e+00> : vector<96x12xf32>
    %255 = tpu.matmul %252, %254, %cst_160 {dimension_numbers = #tpu.dot_dimension_numbers<[1], [0], [0], [1], [0, 0, 1, 1], [], []>} : vector<96x12xf32>, vector<12x12xf32>, vector<96x12xf32> -> vector<96x12xf32>
    %256 = arith.addf %251, %255 : vector<96x12xf32>
    %c8_161 = arith.constant 8 : index
    %c0_162 = arith.constant 0 : index
    %257 = vector.load %arg35[%c8_161, %c0_162] : memref<112x12xf32, #tpu.memory_space<vmem>>, vector<96x12xf32>
    %c2_163 = arith.constant 2 : index
    %c0_164 = arith.constant 0 : index
    %c0_165 = arith.constant 0 : index
    %258 = vector.load %arg24[%c2_163, %c0_164, %c0_165] : memref<15x12x12xf32, #tpu.memory_space<vmem>>, vector<1x12x12xf32>
    %259 = vector.shape_cast %258 : vector<1x12x12xf32> to vector<12x12xf32>
    %cst_166 = arith.constant dense<0.000000e+00> : vector<96x12xf32>
    %260 = tpu.matmul %257, %259, %cst_166 {dimension_numbers = #tpu.dot_dimension_numbers<[1], [0], [0], [1], [0, 0, 1, 1], [], []>} : vector<96x12xf32>, vector<12x12xf32>, vector<96x12xf32> -> vector<96x12xf32>
    %261 = arith.addf %256, %260 : vector<96x12xf32>
    %c9_167 = arith.constant 9 : index
    %c0_168 = arith.constant 0 : index
    %262 = vector.load %arg35[%c9_167, %c0_168] : memref<112x12xf32, #tpu.memory_space<vmem>>, vector<96x12xf32>
    %c3_169 = arith.constant 3 : index
    %c0_170 = arith.constant 0 : index
    %c0_171 = arith.constant 0 : index
    %263 = vector.load %arg24[%c3_169, %c0_170, %c0_171] : memref<15x12x12xf32, #tpu.memory_space<vmem>>, vector<1x12x12xf32>
    %264 = vector.shape_cast %263 : vector<1x12x12xf32> to vector<12x12xf32>
    %cst_172 = arith.constant dense<0.000000e+00> : vector<96x12xf32>
    %265 = tpu.matmul %262, %264, %cst_172 {dimension_numbers = #tpu.dot_dimension_numbers<[1], [0], [0], [1], [0, 0, 1, 1], [], []>} : vector<96x12xf32>, vector<12x12xf32>, vector<96x12xf32> -> vector<96x12xf32>
    %266 = arith.addf %261, %265 : vector<96x12xf32>
    %c10 = arith.constant 10 : index
    %c0_173 = arith.constant 0 : index
    %267 = vector.load %arg35[%c10, %c0_173] : memref<112x12xf32, #tpu.memory_space<vmem>>, vector<96x12xf32>
    %c4 = arith.constant 4 : index
    %c0_174 = arith.constant 0 : index
    %c0_175 = arith.constant 0 : index
    %268 = vector.load %arg24[%c4, %c0_174, %c0_175] : memref<15x12x12xf32, #tpu.memory_space<vmem>>, vector<1x12x12xf32>
    %269 = vector.shape_cast %268 : vector<1x12x12xf32> to vector<12x12xf32>
    %cst_176 = arith.constant dense<0.000000e+00> : vector<96x12xf32>
    %270 = tpu.matmul %267, %269, %cst_176 {dimension_numbers = #tpu.dot_dimension_numbers<[1], [0], [0], [1], [0, 0, 1, 1], [], []>} : vector<96x12xf32>, vector<12x12xf32>, vector<96x12xf32> -> vector<96x12xf32>
    %271 = arith.addf %266, %270 : vector<96x12xf32>
    %272 = vector.broadcast %244 : vector<1x12xf32> to vector<96x12xf32>
    %273 = arith.addf %271, %272 : vector<96x12xf32>
    %cst_177 = arith.constant 0.000000e+00 : f32
    %274 = vector.broadcast %cst_177 : f32 to vector<96x12xf32>
    %275 = arith.maximumf %273, %274 : vector<96x12xf32>
    %c0_178 = arith.constant 0 : index
    %c0_179 = arith.constant 0 : index
    %c0_180 = arith.constant 0 : index
    %276 = vector.load %arg27[%c0_178, %c0_179, %c0_180] : memref<3x1x12xf32, #tpu.memory_space<vmem>>, vector<1x1x12xf32>
    %277 = vector.shape_cast %276 : vector<1x1x12xf32> to vector<1x12xf32>
    %c8_181 = arith.constant 8 : index
    %c0_182 = arith.constant 0 : index
    %278 = vector.load %arg35[%c8_181, %c0_182] : memref<112x12xf32, #tpu.memory_space<vmem>>, vector<96x12xf32>
    tpu.vector_store %arg35[%c8_181, %c0_182], %275 {strides = array<i32>} : memref<112x12xf32, #tpu.memory_space<vmem>>, vector<96x12xf32>,
    %cst_183 = arith.constant 0.000000e+00 : f32
    %279 = vector.broadcast %cst_183 : f32 to vector<96x12xf32>
    %c6_184 = arith.constant 6 : index
    %c0_185 = arith.constant 0 : index
    %280 = vector.load %arg35[%c6_184, %c0_185] : memref<112x12xf32, #tpu.memory_space<vmem>>, vector<96x12xf32>
    %c0_186 = arith.constant 0 : index
    %c0_187 = arith.constant 0 : index
    %c0_188 = arith.constant 0 : index
    %281 = vector.load %arg26[%c0_186, %c0_187, %c0_188] : memref<15x12x12xf32, #tpu.memory_space<vmem>>, vector<1x12x12xf32>
    %282 = vector.shape_cast %281 : vector<1x12x12xf32> to vector<12x12xf32>
    %cst_189 = arith.constant dense<0.000000e+00> : vector<96x12xf32>
    %283 = tpu.matmul %280, %282, %cst_189 {dimension_numbers = #tpu.dot_dimension_numbers<[1], [0], [0], [1], [0, 0, 1, 1], [], []>} : vector<96x12xf32>, vector<12x12xf32>, vector<96x12xf32> -> vector<96x12xf32>
    %284 = arith.addf %279, %283 : vector<96x12xf32>
    %c7_190 = arith.constant 7 : index
    %c0_191 = arith.constant 0 : index
    %285 = vector.load %arg35[%c7_190, %c0_191] : memref<112x12xf32, #tpu.memory_space<vmem>>, vector<96x12xf32>
    %c1_192 = arith.constant 1 : index
    %c0_193 = arith.constant 0 : index
    %c0_194 = arith.constant 0 : index
    %286 = vector.load %arg26[%c1_192, %c0_193, %c0_194] : memref<15x12x12xf32, #tpu.memory_space<vmem>>, vector<1x12x12xf32>
    %287 = vector.shape_cast %286 : vector<1x12x12xf32> to vector<12x12xf32>
    %cst_195 = arith.constant dense<0.000000e+00> : vector<96x12xf32>
    %288 = tpu.matmul %285, %287, %cst_195 {dimension_numbers = #tpu.dot_dimension_numbers<[1], [0], [0], [1], [0, 0, 1, 1], [], []>} : vector<96x12xf32>, vector<12x12xf32>, vector<96x12xf32> -> vector<96x12xf32>
    %289 = arith.addf %284, %288 : vector<96x12xf32>
    %c8_196 = arith.constant 8 : index
    %c0_197 = arith.constant 0 : index
    %290 = vector.load %arg35[%c8_196, %c0_197] : memref<112x12xf32, #tpu.memory_space<vmem>>, vector<96x12xf32>
    %c2_198 = arith.constant 2 : index
    %c0_199 = arith.constant 0 : index
    %c0_200 = arith.constant 0 : index
    %291 = vector.load %arg26[%c2_198, %c0_199, %c0_200] : memref<15x12x12xf32, #tpu.memory_space<vmem>>, vector<1x12x12xf32>
    %292 = vector.shape_cast %291 : vector<1x12x12xf32> to vector<12x12xf32>
    %cst_201 = arith.constant dense<0.000000e+00> : vector<96x12xf32>
    %293 = tpu.matmul %290, %292, %cst_201 {dimension_numbers = #tpu.dot_dimension_numbers<[1], [0], [0], [1], [0, 0, 1, 1], [], []>} : vector<96x12xf32>, vector<12x12xf32>, vector<96x12xf32> -> vector<96x12xf32>
    %294 = arith.addf %289, %293 : vector<96x12xf32>
    %c9_202 = arith.constant 9 : index
    %c0_203 = arith.constant 0 : index
    %295 = vector.load %arg35[%c9_202, %c0_203] : memref<112x12xf32, #tpu.memory_space<vmem>>, vector<96x12xf32>
    %c3_204 = arith.constant 3 : index
    %c0_205 = arith.constant 0 : index
    %c0_206 = arith.constant 0 : index
    %296 = vector.load %arg26[%c3_204, %c0_205, %c0_206] : memref<15x12x12xf32, #tpu.memory_space<vmem>>, vector<1x12x12xf32>
    %297 = vector.shape_cast %296 : vector<1x12x12xf32> to vector<12x12xf32>
    %cst_207 = arith.constant dense<0.000000e+00> : vector<96x12xf32>
    %298 = tpu.matmul %295, %297, %cst_207 {dimension_numbers = #tpu.dot_dimension_numbers<[1], [0], [0], [1], [0, 0, 1, 1], [], []>} : vector<96x12xf32>, vector<12x12xf32>, vector<96x12xf32> -> vector<96x12xf32>
    %299 = arith.addf %294, %298 : vector<96x12xf32>
    %c10_208 = arith.constant 10 : index
    %c0_209 = arith.constant 0 : index
    %300 = vector.load %arg35[%c10_208, %c0_209] : memref<112x12xf32, #tpu.memory_space<vmem>>, vector<96x12xf32>
    %c4_210 = arith.constant 4 : index
    %c0_211 = arith.constant 0 : index
    %c0_212 = arith.constant 0 : index
    %301 = vector.load %arg26[%c4_210, %c0_211, %c0_212] : memref<15x12x12xf32, #tpu.memory_space<vmem>>, vector<1x12x12xf32>
    %302 = vector.shape_cast %301 : vector<1x12x12xf32> to vector<12x12xf32>
    %cst_213 = arith.constant dense<0.000000e+00> : vector<96x12xf32>
    %303 = tpu.matmul %300, %302, %cst_213 {dimension_numbers = #tpu.dot_dimension_numbers<[1], [0], [0], [1], [0, 0, 1, 1], [], []>} : vector<96x12xf32>, vector<12x12xf32>, vector<96x12xf32> -> vector<96x12xf32>
    %304 = arith.addf %299, %303 : vector<96x12xf32>
    %305 = vector.broadcast %277 : vector<1x12xf32> to vector<96x12xf32>
    %306 = arith.addf %304, %305 : vector<96x12xf32>
    %307 = arith.addf %306, %242 : vector<96x12xf32>
    %c0_214 = arith.constant 0 : index
    %c0_215 = arith.constant 0 : index
    %c0_216 = arith.constant 0 : index
    %308 = vector.load %arg28[%c0_214, %c0_215, %c0_216] : memref<3x1x12xf32, #tpu.memory_space<vmem>>, vector<1x1x12xf32>
    %309 = vector.shape_cast %308 : vector<1x1x12xf32> to vector<1x12xf32>
    %c0_217 = arith.constant 0 : index
    %c0_218 = arith.constant 0 : index
    %c0_219 = arith.constant 0 : index
    %310 = vector.load %arg29[%c0_217, %c0_218, %c0_219] : memref<3x1x12xf32, #tpu.memory_space<vmem>>, vector<1x1x12xf32>
    %311 = vector.shape_cast %310 : vector<1x1x12xf32> to vector<1x12xf32>
    %cst_220 = arith.constant dense<0.000000e+00> : vector<96xf32>
    %312 = vector.multi_reduction <add>, %307, %cst_220 [1] : vector<96x12xf32> to vector<96xf32>
    %313 = vector.shape_cast %312 : vector<96xf32> to vector<96x1xf32>
    %cst_221 = arith.constant 1.200000e+01 : f32
    %314 = vector.broadcast %cst_221 : f32 to vector<96x1xf32>
    %315 = arith.divf %313, %314 : vector<96x1xf32>
    %316 = vector.broadcast %315 : vector<96x1xf32> to vector<96x12xf32>
    %317 = arith.subf %307, %316 : vector<96x12xf32>
    %318 = arith.mulf %317, %317 : vector<96x12xf32>
    %cst_222 = arith.constant dense<0.000000e+00> : vector<96xf32>
    %319 = vector.multi_reduction <add>, %318, %cst_222 [1] : vector<96x12xf32> to vector<96xf32>
    %320 = vector.shape_cast %319 : vector<96xf32> to vector<96x1xf32>
    %cst_223 = arith.constant 1.200000e+01 : f32
    %321 = vector.broadcast %cst_223 : f32 to vector<96x1xf32>
    %322 = arith.divf %320, %321 : vector<96x1xf32>
    %323 = vector.broadcast %315 : vector<96x1xf32> to vector<96x12xf32>
    %324 = arith.subf %307, %323 : vector<96x12xf32>
    %cst_224 = arith.constant 9.99999974E-6 : f32
    %325 = vector.broadcast %cst_224 : f32 to vector<96x1xf32>
    %326 = arith.addf %322, %325 : vector<96x1xf32>
    %327 = math.rsqrt %326 : vector<96x1xf32>
    %328 = vector.broadcast %327 : vector<96x1xf32> to vector<96x12xf32>
    %329 = arith.mulf %324, %328 : vector<96x12xf32>
    %330 = vector.broadcast %309 : vector<1x12xf32> to vector<96x12xf32>
    %331 = arith.mulf %329, %330 : vector<96x12xf32>
    %332 = vector.broadcast %311 : vector<1x12xf32> to vector<96x12xf32>
    %333 = arith.addf %331, %332 : vector<96x12xf32>
    %c1_225 = arith.constant 1 : index
    %c0_226 = arith.constant 0 : index
    %c0_227 = arith.constant 0 : index
    %334 = vector.load %arg25[%c1_225, %c0_226, %c0_227] : memref<3x1x12xf32, #tpu.memory_space<vmem>>, vector<1x1x12xf32>
    %335 = vector.shape_cast %334 : vector<1x1x12xf32> to vector<1x12xf32>
    %c8_228 = arith.constant 8 : index
    %c0_229 = arith.constant 0 : index
    %336 = vector.load %arg35[%c8_228, %c0_229] : memref<112x12xf32, #tpu.memory_space<vmem>>, vector<96x12xf32>
    tpu.vector_store %arg35[%c8_228, %c0_229], %333 {strides = array<i32>} : memref<112x12xf32, #tpu.memory_space<vmem>>, vector<96x12xf32>,
    %cst_230 = arith.constant 0.000000e+00 : f32
    %337 = vector.broadcast %cst_230 : f32 to vector<96x12xf32>
    %c6_231 = arith.constant 6 : index
    %c0_232 = arith.constant 0 : index
    %338 = vector.load %arg35[%c6_231, %c0_232] : memref<112x12xf32, #tpu.memory_space<vmem>>, vector<96x12xf32>
    %c5 = arith.constant 5 : index
    %c0_233 = arith.constant 0 : index
    %c0_234 = arith.constant 0 : index
    %339 = vector.load %arg24[%c5, %c0_233, %c0_234] : memref<15x12x12xf32, #tpu.memory_space<vmem>>, vector<1x12x12xf32>
    %340 = vector.shape_cast %339 : vector<1x12x12xf32> to vector<12x12xf32>
    %cst_235 = arith.constant dense<0.000000e+00> : vector<96x12xf32>
    %341 = tpu.matmul %338, %340, %cst_235 {dimension_numbers = #tpu.dot_dimension_numbers<[1], [0], [0], [1], [0, 0, 1, 1], [], []>} : vector<96x12xf32>, vector<12x12xf32>, vector<96x12xf32> -> vector<96x12xf32>
    %342 = arith.addf %337, %341 : vector<96x12xf32>
    %c7_236 = arith.constant 7 : index
    %c0_237 = arith.constant 0 : index
    %343 = vector.load %arg35[%c7_236, %c0_237] : memref<112x12xf32, #tpu.memory_space<vmem>>, vector<96x12xf32>
    %c6_238 = arith.constant 6 : index
    %c0_239 = arith.constant 0 : index
    %c0_240 = arith.constant 0 : index
    %344 = vector.load %arg24[%c6_238, %c0_239, %c0_240] : memref<15x12x12xf32, #tpu.memory_space<vmem>>, vector<1x12x12xf32>
    %345 = vector.shape_cast %344 : vector<1x12x12xf32> to vector<12x12xf32>
    %cst_241 = arith.constant dense<0.000000e+00> : vector<96x12xf32>
    %346 = tpu.matmul %343, %345, %cst_241 {dimension_numbers = #tpu.dot_dimension_numbers<[1], [0], [0], [1], [0, 0, 1, 1], [], []>} : vector<96x12xf32>, vector<12x12xf32>, vector<96x12xf32> -> vector<96x12xf32>
    %347 = arith.addf %342, %346 : vector<96x12xf32>
    %c8_242 = arith.constant 8 : index
    %c0_243 = arith.constant 0 : index
    %348 = vector.load %arg35[%c8_242, %c0_243] : memref<112x12xf32, #tpu.memory_space<vmem>>, vector<96x12xf32>
    %c7_244 = arith.constant 7 : index
    %c0_245 = arith.constant 0 : index
    %c0_246 = arith.constant 0 : index
    %349 = vector.load %arg24[%c7_244, %c0_245, %c0_246] : memref<15x12x12xf32, #tpu.memory_space<vmem>>, vector<1x12x12xf32>
    %350 = vector.shape_cast %349 : vector<1x12x12xf32> to vector<12x12xf32>
    %cst_247 = arith.constant dense<0.000000e+00> : vector<96x12xf32>
    %351 = tpu.matmul %348, %350, %cst_247 {dimension_numbers = #tpu.dot_dimension_numbers<[1], [0], [0], [1], [0, 0, 1, 1], [], []>} : vector<96x12xf32>, vector<12x12xf32>, vector<96x12xf32> -> vector<96x12xf32>
    %352 = arith.addf %347, %351 : vector<96x12xf32>
    %c9_248 = arith.constant 9 : index
    %c0_249 = arith.constant 0 : index
    %353 = vector.load %arg35[%c9_248, %c0_249] : memref<112x12xf32, #tpu.memory_space<vmem>>, vector<96x12xf32>
    %c8_250 = arith.constant 8 : index
    %c0_251 = arith.constant 0 : index
    %c0_252 = arith.constant 0 : index
    %354 = vector.load %arg24[%c8_250, %c0_251, %c0_252] : memref<15x12x12xf32, #tpu.memory_space<vmem>>, vector<1x12x12xf32>
    %355 = vector.shape_cast %354 : vector<1x12x12xf32> to vector<12x12xf32>
    %cst_253 = arith.constant dense<0.000000e+00> : vector<96x12xf32>
    %356 = tpu.matmul %353, %355, %cst_253 {dimension_numbers = #tpu.dot_dimension_numbers<[1], [0], [0], [1], [0, 0, 1, 1], [], []>} : vector<96x12xf32>, vector<12x12xf32>, vector<96x12xf32> -> vector<96x12xf32>
    %357 = arith.addf %352, %356 : vector<96x12xf32>
    %c10_254 = arith.constant 10 : index
    %c0_255 = arith.constant 0 : index
    %358 = vector.load %arg35[%c10_254, %c0_255] : memref<112x12xf32, #tpu.memory_space<vmem>>, vector<96x12xf32>
    %c9_256 = arith.constant 9 : index
    %c0_257 = arith.constant 0 : index
    %c0_258 = arith.constant 0 : index
    %359 = vector.load %arg24[%c9_256, %c0_257, %c0_258] : memref<15x12x12xf32, #tpu.memory_space<vmem>>, vector<1x12x12xf32>
    %360 = vector.shape_cast %359 : vector<1x12x12xf32> to vector<12x12xf32>
    %cst_259 = arith.constant dense<0.000000e+00> : vector<96x12xf32>
    %361 = tpu.matmul %358, %360, %cst_259 {dimension_numbers = #tpu.dot_dimension_numbers<[1], [0], [0], [1], [0, 0, 1, 1], [], []>} : vector<96x12xf32>, vector<12x12xf32>, vector<96x12xf32> -> vector<96x12xf32>
    %362 = arith.addf %357, %361 : vector<96x12xf32>
    %363 = vector.broadcast %335 : vector<1x12xf32> to vector<96x12xf32>
    %364 = arith.addf %362, %363 : vector<96x12xf32>
    %cst_260 = arith.constant 0.000000e+00 : f32
    %365 = vector.broadcast %cst_260 : f32 to vector<96x12xf32>
    %366 = arith.maximumf %364, %365 : vector<96x12xf32>
    %c1_261 = arith.constant 1 : index
    %c0_262 = arith.constant 0 : index
    %c0_263 = arith.constant 0 : index
    %367 = vector.load %arg27[%c1_261, %c0_262, %c0_263] : memref<3x1x12xf32, #tpu.memory_space<vmem>>, vector<1x1x12xf32>
    %368 = vector.shape_cast %367 : vector<1x1x12xf32> to vector<1x12xf32>
    %c8_264 = arith.constant 8 : index
    %c0_265 = arith.constant 0 : index
    %369 = vector.load %arg35[%c8_264, %c0_265] : memref<112x12xf32, #tpu.memory_space<vmem>>, vector<96x12xf32>
    tpu.vector_store %arg35[%c8_264, %c0_265], %366 {strides = array<i32>} : memref<112x12xf32, #tpu.memory_space<vmem>>, vector<96x12xf32>,
    %cst_266 = arith.constant 0.000000e+00 : f32
    %370 = vector.broadcast %cst_266 : f32 to vector<96x12xf32>
    %c6_267 = arith.constant 6 : index
    %c0_268 = arith.constant 0 : index
    %371 = vector.load %arg35[%c6_267, %c0_268] : memref<112x12xf32, #tpu.memory_space<vmem>>, vector<96x12xf32>
    %c5_269 = arith.constant 5 : index
    %c0_270 = arith.constant 0 : index
    %c0_271 = arith.constant 0 : index
    %372 = vector.load %arg26[%c5_269, %c0_270, %c0_271] : memref<15x12x12xf32, #tpu.memory_space<vmem>>, vector<1x12x12xf32>
    %373 = vector.shape_cast %372 : vector<1x12x12xf32> to vector<12x12xf32>
    %cst_272 = arith.constant dense<0.000000e+00> : vector<96x12xf32>
    %374 = tpu.matmul %371, %373, %cst_272 {dimension_numbers = #tpu.dot_dimension_numbers<[1], [0], [0], [1], [0, 0, 1, 1], [], []>} : vector<96x12xf32>, vector<12x12xf32>, vector<96x12xf32> -> vector<96x12xf32>
    %375 = arith.addf %370, %374 : vector<96x12xf32>
    %c7_273 = arith.constant 7 : index
    %c0_274 = arith.constant 0 : index
    %376 = vector.load %arg35[%c7_273, %c0_274] : memref<112x12xf32, #tpu.memory_space<vmem>>, vector<96x12xf32>
    %c6_275 = arith.constant 6 : index
    %c0_276 = arith.constant 0 : index
    %c0_277 = arith.constant 0 : index
    %377 = vector.load %arg26[%c6_275, %c0_276, %c0_277] : memref<15x12x12xf32, #tpu.memory_space<vmem>>, vector<1x12x12xf32>
    %378 = vector.shape_cast %377 : vector<1x12x12xf32> to vector<12x12xf32>
    %cst_278 = arith.constant dense<0.000000e+00> : vector<96x12xf32>
    %379 = tpu.matmul %376, %378, %cst_278 {dimension_numbers = #tpu.dot_dimension_numbers<[1], [0], [0], [1], [0, 0, 1, 1], [], []>} : vector<96x12xf32>, vector<12x12xf32>, vector<96x12xf32> -> vector<96x12xf32>
    %380 = arith.addf %375, %379 : vector<96x12xf32>
    %c8_279 = arith.constant 8 : index
    %c0_280 = arith.constant 0 : index
    %381 = vector.load %arg35[%c8_279, %c0_280] : memref<112x12xf32, #tpu.memory_space<vmem>>, vector<96x12xf32>
    %c7_281 = arith.constant 7 : index
    %c0_282 = arith.constant 0 : index
    %c0_283 = arith.constant 0 : index
    %382 = vector.load %arg26[%c7_281, %c0_282, %c0_283] : memref<15x12x12xf32, #tpu.memory_space<vmem>>, vector<1x12x12xf32>
    %383 = vector.shape_cast %382 : vector<1x12x12xf32> to vector<12x12xf32>
    %cst_284 = arith.constant dense<0.000000e+00> : vector<96x12xf32>
    %384 = tpu.matmul %381, %383, %cst_284 {dimension_numbers = #tpu.dot_dimension_numbers<[1], [0], [0], [1], [0, 0, 1, 1], [], []>} : vector<96x12xf32>, vector<12x12xf32>, vector<96x12xf32> -> vector<96x12xf32>
    %385 = arith.addf %380, %384 : vector<96x12xf32>
    %c9_285 = arith.constant 9 : index
    %c0_286 = arith.constant 0 : index
    %386 = vector.load %arg35[%c9_285, %c0_286] : memref<112x12xf32, #tpu.memory_space<vmem>>, vector<96x12xf32>
    %c8_287 = arith.constant 8 : index
    %c0_288 = arith.constant 0 : index
    %c0_289 = arith.constant 0 : index
    %387 = vector.load %arg26[%c8_287, %c0_288, %c0_289] : memref<15x12x12xf32, #tpu.memory_space<vmem>>, vector<1x12x12xf32>
    %388 = vector.shape_cast %387 : vector<1x12x12xf32> to vector<12x12xf32>
    %cst_290 = arith.constant dense<0.000000e+00> : vector<96x12xf32>
    %389 = tpu.matmul %386, %388, %cst_290 {dimension_numbers = #tpu.dot_dimension_numbers<[1], [0], [0], [1], [0, 0, 1, 1], [], []>} : vector<96x12xf32>, vector<12x12xf32>, vector<96x12xf32> -> vector<96x12xf32>
    %390 = arith.addf %385, %389 : vector<96x12xf32>
    %c10_291 = arith.constant 10 : index
    %c0_292 = arith.constant 0 : index
    %391 = vector.load %arg35[%c10_291, %c0_292] : memref<112x12xf32, #tpu.memory_space<vmem>>, vector<96x12xf32>
    %c9_293 = arith.constant 9 : index
    %c0_294 = arith.constant 0 : index
    %c0_295 = arith.constant 0 : index
    %392 = vector.load %arg26[%c9_293, %c0_294, %c0_295] : memref<15x12x12xf32, #tpu.memory_space<vmem>>, vector<1x12x12xf32>
    %393 = vector.shape_cast %392 : vector<1x12x12xf32> to vector<12x12xf32>
    %cst_296 = arith.constant dense<0.000000e+00> : vector<96x12xf32>
    %394 = tpu.matmul %391, %393, %cst_296 {dimension_numbers = #tpu.dot_dimension_numbers<[1], [0], [0], [1], [0, 0, 1, 1], [], []>} : vector<96x12xf32>, vector<12x12xf32>, vector<96x12xf32> -> vector<96x12xf32>
    %395 = arith.addf %390, %394 : vector<96x12xf32>
    %396 = vector.broadcast %368 : vector<1x12xf32> to vector<96x12xf32>
    %397 = arith.addf %395, %396 : vector<96x12xf32>
    %398 = arith.addf %397, %333 : vector<96x12xf32>
    %c1_297 = arith.constant 1 : index
    %c0_298 = arith.constant 0 : index
    %c0_299 = arith.constant 0 : index
    %399 = vector.load %arg28[%c1_297, %c0_298, %c0_299] : memref<3x1x12xf32, #tpu.memory_space<vmem>>, vector<1x1x12xf32>
    %400 = vector.shape_cast %399 : vector<1x1x12xf32> to vector<1x12xf32>
    %c1_300 = arith.constant 1 : index
    %c0_301 = arith.constant 0 : index
    %c0_302 = arith.constant 0 : index
    %401 = vector.load %arg29[%c1_300, %c0_301, %c0_302] : memref<3x1x12xf32, #tpu.memory_space<vmem>>, vector<1x1x12xf32>
    %402 = vector.shape_cast %401 : vector<1x1x12xf32> to vector<1x12xf32>
    %cst_303 = arith.constant dense<0.000000e+00> : vector<96xf32>
    %403 = vector.multi_reduction <add>, %398, %cst_303 [1] : vector<96x12xf32> to vector<96xf32>
    %404 = vector.shape_cast %403 : vector<96xf32> to vector<96x1xf32>
    %cst_304 = arith.constant 1.200000e+01 : f32
    %405 = vector.broadcast %cst_304 : f32 to vector<96x1xf32>
    %406 = arith.divf %404, %405 : vector<96x1xf32>
    %407 = vector.broadcast %406 : vector<96x1xf32> to vector<96x12xf32>
    %408 = arith.subf %398, %407 : vector<96x12xf32>
    %409 = arith.mulf %408, %408 : vector<96x12xf32>
    %cst_305 = arith.constant dense<0.000000e+00> : vector<96xf32>
    %410 = vector.multi_reduction <add>, %409, %cst_305 [1] : vector<96x12xf32> to vector<96xf32>
    %411 = vector.shape_cast %410 : vector<96xf32> to vector<96x1xf32>
    %cst_306 = arith.constant 1.200000e+01 : f32
    %412 = vector.broadcast %cst_306 : f32 to vector<96x1xf32>
    %413 = arith.divf %411, %412 : vector<96x1xf32>
    %414 = vector.broadcast %406 : vector<96x1xf32> to vector<96x12xf32>
    %415 = arith.subf %398, %414 : vector<96x12xf32>
    %cst_307 = arith.constant 9.99999974E-6 : f32
    %416 = vector.broadcast %cst_307 : f32 to vector<96x1xf32>
    %417 = arith.addf %413, %416 : vector<96x1xf32>
    %418 = math.rsqrt %417 : vector<96x1xf32>
    %419 = vector.broadcast %418 : vector<96x1xf32> to vector<96x12xf32>
    %420 = arith.mulf %415, %419 : vector<96x12xf32>
    %421 = vector.broadcast %400 : vector<1x12xf32> to vector<96x12xf32>
    %422 = arith.mulf %420, %421 : vector<96x12xf32>
    %423 = vector.broadcast %402 : vector<1x12xf32> to vector<96x12xf32>
    %424 = arith.addf %422, %423 : vector<96x12xf32>
    %c2_308 = arith.constant 2 : index
    %c0_309 = arith.constant 0 : index
    %c0_310 = arith.constant 0 : index
    %425 = vector.load %arg25[%c2_308, %c0_309, %c0_310] : memref<3x1x12xf32, #tpu.memory_space<vmem>>, vector<1x1x12xf32>
    %426 = vector.shape_cast %425 : vector<1x1x12xf32> to vector<1x12xf32>
    %c8_311 = arith.constant 8 : index
    %c0_312 = arith.constant 0 : index
    %427 = vector.load %arg35[%c8_311, %c0_312] : memref<112x12xf32, #tpu.memory_space<vmem>>, vector<96x12xf32>
    tpu.vector_store %arg35[%c8_311, %c0_312], %424 {strides = array<i32>} : memref<112x12xf32, #tpu.memory_space<vmem>>, vector<96x12xf32>,
    %cst_313 = arith.constant 0.000000e+00 : f32
    %428 = vector.broadcast %cst_313 : f32 to vector<96x12xf32>
    %c6_314 = arith.constant 6 : index
    %c0_315 = arith.constant 0 : index
    %429 = vector.load %arg35[%c6_314, %c0_315] : memref<112x12xf32, #tpu.memory_space<vmem>>, vector<96x12xf32>
    %c10_316 = arith.constant 10 : index
    %c0_317 = arith.constant 0 : index
    %c0_318 = arith.constant 0 : index
    %430 = vector.load %arg24[%c10_316, %c0_317, %c0_318] : memref<15x12x12xf32, #tpu.memory_space<vmem>>, vector<1x12x12xf32>
    %431 = vector.shape_cast %430 : vector<1x12x12xf32> to vector<12x12xf32>
    %cst_319 = arith.constant dense<0.000000e+00> : vector<96x12xf32>
    %432 = tpu.matmul %429, %431, %cst_319 {dimension_numbers = #tpu.dot_dimension_numbers<[1], [0], [0], [1], [0, 0, 1, 1], [], []>} : vector<96x12xf32>, vector<12x12xf32>, vector<96x12xf32> -> vector<96x12xf32>
    %433 = arith.addf %428, %432 : vector<96x12xf32>
    %c7_320 = arith.constant 7 : index
    %c0_321 = arith.constant 0 : index
    %434 = vector.load %arg35[%c7_320, %c0_321] : memref<112x12xf32, #tpu.memory_space<vmem>>, vector<96x12xf32>
    %c11 = arith.constant 11 : index
    %c0_322 = arith.constant 0 : index
    %c0_323 = arith.constant 0 : index
    %435 = vector.load %arg24[%c11, %c0_322, %c0_323] : memref<15x12x12xf32, #tpu.memory_space<vmem>>, vector<1x12x12xf32>
    %436 = vector.shape_cast %435 : vector<1x12x12xf32> to vector<12x12xf32>
    %cst_324 = arith.constant dense<0.000000e+00> : vector<96x12xf32>
    %437 = tpu.matmul %434, %436, %cst_324 {dimension_numbers = #tpu.dot_dimension_numbers<[1], [0], [0], [1], [0, 0, 1, 1], [], []>} : vector<96x12xf32>, vector<12x12xf32>, vector<96x12xf32> -> vector<96x12xf32>
    %438 = arith.addf %433, %437 : vector<96x12xf32>
    %c8_325 = arith.constant 8 : index
    %c0_326 = arith.constant 0 : index
    %439 = vector.load %arg35[%c8_325, %c0_326] : memref<112x12xf32, #tpu.memory_space<vmem>>, vector<96x12xf32>
    %c12 = arith.constant 12 : index
    %c0_327 = arith.constant 0 : index
    %c0_328 = arith.constant 0 : index
    %440 = vector.load %arg24[%c12, %c0_327, %c0_328] : memref<15x12x12xf32, #tpu.memory_space<vmem>>, vector<1x12x12xf32>
    %441 = vector.shape_cast %440 : vector<1x12x12xf32> to vector<12x12xf32>
    %cst_329 = arith.constant dense<0.000000e+00> : vector<96x12xf32>
    %442 = tpu.matmul %439, %441, %cst_329 {dimension_numbers = #tpu.dot_dimension_numbers<[1], [0], [0], [1], [0, 0, 1, 1], [], []>} : vector<96x12xf32>, vector<12x12xf32>, vector<96x12xf32> -> vector<96x12xf32>
    %443 = arith.addf %438, %442 : vector<96x12xf32>
    %c9_330 = arith.constant 9 : index
    %c0_331 = arith.constant 0 : index
    %444 = vector.load %arg35[%c9_330, %c0_331] : memref<112x12xf32, #tpu.memory_space<vmem>>, vector<96x12xf32>
    %c13 = arith.constant 13 : index
    %c0_332 = arith.constant 0 : index
    %c0_333 = arith.constant 0 : index
    %445 = vector.load %arg24[%c13, %c0_332, %c0_333] : memref<15x12x12xf32, #tpu.memory_space<vmem>>, vector<1x12x12xf32>
    %446 = vector.shape_cast %445 : vector<1x12x12xf32> to vector<12x12xf32>
    %cst_334 = arith.constant dense<0.000000e+00> : vector<96x12xf32>
    %447 = tpu.matmul %444, %446, %cst_334 {dimension_numbers = #tpu.dot_dimension_numbers<[1], [0], [0], [1], [0, 0, 1, 1], [], []>} : vector<96x12xf32>, vector<12x12xf32>, vector<96x12xf32> -> vector<96x12xf32>
    %448 = arith.addf %443, %447 : vector<96x12xf32>
    %c10_335 = arith.constant 10 : index
    %c0_336 = arith.constant 0 : index
    %449 = vector.load %arg35[%c10_335, %c0_336] : memref<112x12xf32, #tpu.memory_space<vmem>>, vector<96x12xf32>
    %c14 = arith.constant 14 : index
    %c0_337 = arith.constant 0 : index
    %c0_338 = arith.constant 0 : index
    %450 = vector.load %arg24[%c14, %c0_337, %c0_338] : memref<15x12x12xf32, #tpu.memory_space<vmem>>, vector<1x12x12xf32>
    %451 = vector.shape_cast %450 : vector<1x12x12xf32> to vector<12x12xf32>
    %cst_339 = arith.constant dense<0.000000e+00> : vector<96x12xf32>
    %452 = tpu.matmul %449, %451, %cst_339 {dimension_numbers = #tpu.dot_dimension_numbers<[1], [0], [0], [1], [0, 0, 1, 1], [], []>} : vector<96x12xf32>, vector<12x12xf32>, vector<96x12xf32> -> vector<96x12xf32>
    %453 = arith.addf %448, %452 : vector<96x12xf32>
    %454 = vector.broadcast %426 : vector<1x12xf32> to vector<96x12xf32>
    %455 = arith.addf %453, %454 : vector<96x12xf32>
    %cst_340 = arith.constant 0.000000e+00 : f32
    %456 = vector.broadcast %cst_340 : f32 to vector<96x12xf32>
    %457 = arith.maximumf %455, %456 : vector<96x12xf32>
    %c2_341 = arith.constant 2 : index
    %c0_342 = arith.constant 0 : index
    %c0_343 = arith.constant 0 : index
    %458 = vector.load %arg27[%c2_341, %c0_342, %c0_343] : memref<3x1x12xf32, #tpu.memory_space<vmem>>, vector<1x1x12xf32>
    %459 = vector.shape_cast %458 : vector<1x1x12xf32> to vector<1x12xf32>
    %c8_344 = arith.constant 8 : index
    %c0_345 = arith.constant 0 : index
    %460 = vector.load %arg35[%c8_344, %c0_345] : memref<112x12xf32, #tpu.memory_space<vmem>>, vector<96x12xf32>
    tpu.vector_store %arg35[%c8_344, %c0_345], %457 {strides = array<i32>} : memref<112x12xf32, #tpu.memory_space<vmem>>, vector<96x12xf32>,
    %cst_346 = arith.constant 0.000000e+00 : f32
    %461 = vector.broadcast %cst_346 : f32 to vector<96x12xf32>
    %c6_347 = arith.constant 6 : index
    %c0_348 = arith.constant 0 : index
    %462 = vector.load %arg35[%c6_347, %c0_348] : memref<112x12xf32, #tpu.memory_space<vmem>>, vector<96x12xf32>
    %c10_349 = arith.constant 10 : index
    %c0_350 = arith.constant 0 : index
    %c0_351 = arith.constant 0 : index
    %463 = vector.load %arg26[%c10_349, %c0_350, %c0_351] : memref<15x12x12xf32, #tpu.memory_space<vmem>>, vector<1x12x12xf32>
    %464 = vector.shape_cast %463 : vector<1x12x12xf32> to vector<12x12xf32>
    %cst_352 = arith.constant dense<0.000000e+00> : vector<96x12xf32>
    %465 = tpu.matmul %462, %464, %cst_352 {dimension_numbers = #tpu.dot_dimension_numbers<[1], [0], [0], [1], [0, 0, 1, 1], [], []>} : vector<96x12xf32>, vector<12x12xf32>, vector<96x12xf32> -> vector<96x12xf32>
    %466 = arith.addf %461, %465 : vector<96x12xf32>
    %c7_353 = arith.constant 7 : index
    %c0_354 = arith.constant 0 : index
    %467 = vector.load %arg35[%c7_353, %c0_354] : memref<112x12xf32, #tpu.memory_space<vmem>>, vector<96x12xf32>
    %c11_355 = arith.constant 11 : index
    %c0_356 = arith.constant 0 : index
    %c0_357 = arith.constant 0 : index
    %468 = vector.load %arg26[%c11_355, %c0_356, %c0_357] : memref<15x12x12xf32, #tpu.memory_space<vmem>>, vector<1x12x12xf32>
    %469 = vector.shape_cast %468 : vector<1x12x12xf32> to vector<12x12xf32>
    %cst_358 = arith.constant dense<0.000000e+00> : vector<96x12xf32>
    %470 = tpu.matmul %467, %469, %cst_358 {dimension_numbers = #tpu.dot_dimension_numbers<[1], [0], [0], [1], [0, 0, 1, 1], [], []>} : vector<96x12xf32>, vector<12x12xf32>, vector<96x12xf32> -> vector<96x12xf32>
    %471 = arith.addf %466, %470 : vector<96x12xf32>
    %c8_359 = arith.constant 8 : index
    %c0_360 = arith.constant 0 : index
    %472 = vector.load %arg35[%c8_359, %c0_360] : memref<112x12xf32, #tpu.memory_space<vmem>>, vector<96x12xf32>
    %c12_361 = arith.constant 12 : index
    %c0_362 = arith.constant 0 : index
    %c0_363 = arith.constant 0 : index
    %473 = vector.load %arg26[%c12_361, %c0_362, %c0_363] : memref<15x12x12xf32, #tpu.memory_space<vmem>>, vector<1x12x12xf32>
    %474 = vector.shape_cast %473 : vector<1x12x12xf32> to vector<12x12xf32>
    %cst_364 = arith.constant dense<0.000000e+00> : vector<96x12xf32>
    %475 = tpu.matmul %472, %474, %cst_364 {dimension_numbers = #tpu.dot_dimension_numbers<[1], [0], [0], [1], [0, 0, 1, 1], [], []>} : vector<96x12xf32>, vector<12x12xf32>, vector<96x12xf32> -> vector<96x12xf32>
    %476 = arith.addf %471, %475 : vector<96x12xf32>
    %c9_365 = arith.constant 9 : index
    %c0_366 = arith.constant 0 : index
    %477 = vector.load %arg35[%c9_365, %c0_366] : memref<112x12xf32, #tpu.memory_space<vmem>>, vector<96x12xf32>
    %c13_367 = arith.constant 13 : index
    %c0_368 = arith.constant 0 : index
    %c0_369 = arith.constant 0 : index
    %478 = vector.load %arg26[%c13_367, %c0_368, %c0_369] : memref<15x12x12xf32, #tpu.memory_space<vmem>>, vector<1x12x12xf32>
    %479 = vector.shape_cast %478 : vector<1x12x12xf32> to vector<12x12xf32>
    %cst_370 = arith.constant dense<0.000000e+00> : vector<96x12xf32>
    %480 = tpu.matmul %477, %479, %cst_370 {dimension_numbers = #tpu.dot_dimension_numbers<[1], [0], [0], [1], [0, 0, 1, 1], [], []>} : vector<96x12xf32>, vector<12x12xf32>, vector<96x12xf32> -> vector<96x12xf32>
    %481 = arith.addf %476, %480 : vector<96x12xf32>
    %c10_371 = arith.constant 10 : index
    %c0_372 = arith.constant 0 : index
    %482 = vector.load %arg35[%c10_371, %c0_372] : memref<112x12xf32, #tpu.memory_space<vmem>>, vector<96x12xf32>
    %c14_373 = arith.constant 14 : index
    %c0_374 = arith.constant 0 : index
    %c0_375 = arith.constant 0 : index
    %483 = vector.load %arg26[%c14_373, %c0_374, %c0_375] : memref<15x12x12xf32, #tpu.memory_space<vmem>>, vector<1x12x12xf32>
    %484 = vector.shape_cast %483 : vector<1x12x12xf32> to vector<12x12xf32>
    %cst_376 = arith.constant dense<0.000000e+00> : vector<96x12xf32>
    %485 = tpu.matmul %482, %484, %cst_376 {dimension_numbers = #tpu.dot_dimension_numbers<[1], [0], [0], [1], [0, 0, 1, 1], [], []>} : vector<96x12xf32>, vector<12x12xf32>, vector<96x12xf32> -> vector<96x12xf32>
    %486 = arith.addf %481, %485 : vector<96x12xf32>
    %487 = vector.broadcast %459 : vector<1x12xf32> to vector<96x12xf32>
    %488 = arith.addf %486, %487 : vector<96x12xf32>
    %489 = arith.addf %488, %424 : vector<96x12xf32>
    %c2_377 = arith.constant 2 : index
    %c0_378 = arith.constant 0 : index
    %c0_379 = arith.constant 0 : index
    %490 = vector.load %arg28[%c2_377, %c0_378, %c0_379] : memref<3x1x12xf32, #tpu.memory_space<vmem>>, vector<1x1x12xf32>
    %491 = vector.shape_cast %490 : vector<1x1x12xf32> to vector<1x12xf32>
    %c2_380 = arith.constant 2 : index
    %c0_381 = arith.constant 0 : index
    %c0_382 = arith.constant 0 : index
    %492 = vector.load %arg29[%c2_380, %c0_381, %c0_382] : memref<3x1x12xf32, #tpu.memory_space<vmem>>, vector<1x1x12xf32>
    %493 = vector.shape_cast %492 : vector<1x1x12xf32> to vector<1x12xf32>
    %cst_383 = arith.constant dense<0.000000e+00> : vector<96xf32>
    %494 = vector.multi_reduction <add>, %489, %cst_383 [1] : vector<96x12xf32> to vector<96xf32>
    %495 = vector.shape_cast %494 : vector<96xf32> to vector<96x1xf32>
    %cst_384 = arith.constant 1.200000e+01 : f32
    %496 = vector.broadcast %cst_384 : f32 to vector<96x1xf32>
    %497 = arith.divf %495, %496 : vector<96x1xf32>
    %498 = vector.broadcast %497 : vector<96x1xf32> to vector<96x12xf32>
    %499 = arith.subf %489, %498 : vector<96x12xf32>
    %500 = arith.mulf %499, %499 : vector<96x12xf32>
    %cst_385 = arith.constant dense<0.000000e+00> : vector<96xf32>
    %501 = vector.multi_reduction <add>, %500, %cst_385 [1] : vector<96x12xf32> to vector<96xf32>
    %502 = vector.shape_cast %501 : vector<96xf32> to vector<96x1xf32>
    %cst_386 = arith.constant 1.200000e+01 : f32
    %503 = vector.broadcast %cst_386 : f32 to vector<96x1xf32>
    %504 = arith.divf %502, %503 : vector<96x1xf32>
    %505 = vector.broadcast %497 : vector<96x1xf32> to vector<96x12xf32>
    %506 = arith.subf %489, %505 : vector<96x12xf32>
    %cst_387 = arith.constant 9.99999974E-6 : f32
    %507 = vector.broadcast %cst_387 : f32 to vector<96x1xf32>
    %508 = arith.addf %504, %507 : vector<96x1xf32>
    %509 = math.rsqrt %508 : vector<96x1xf32>
    %510 = vector.broadcast %509 : vector<96x1xf32> to vector<96x12xf32>
    %511 = arith.mulf %506, %510 : vector<96x12xf32>
    %512 = vector.broadcast %491 : vector<1x12xf32> to vector<96x12xf32>
    %513 = arith.mulf %511, %512 : vector<96x12xf32>
    %514 = vector.broadcast %493 : vector<1x12xf32> to vector<96x12xf32>
    %515 = arith.addf %513, %514 : vector<96x12xf32>
    %c0_388 = arith.constant 0 : index
    %c0_389 = arith.constant 0 : index
    %516 = vector.load %arg31[%c0_388, %c0_389] : memref<1x8xf32, #tpu.memory_space<vmem>>, vector<1x8xf32>
    %c8_390 = arith.constant 8 : index
    %c0_391 = arith.constant 0 : index
    %517 = vector.load %arg35[%c8_390, %c0_391] : memref<112x12xf32, #tpu.memory_space<vmem>>, vector<96x12xf32>
    tpu.vector_store %arg35[%c8_390, %c0_391], %515 {strides = array<i32>} : memref<112x12xf32, #tpu.memory_space<vmem>>, vector<96x12xf32>,
    %cst_392 = arith.constant 0.000000e+00 : f32
    %518 = vector.broadcast %cst_392 : f32 to vector<96x8xf32>
    %c6_393 = arith.constant 6 : index
    %c0_394 = arith.constant 0 : index
    %519 = vector.load %arg35[%c6_393, %c0_394] : memref<112x12xf32, #tpu.memory_space<vmem>>, vector<96x12xf32>
    %c0_395 = arith.constant 0 : index
    %c0_396 = arith.constant 0 : index
    %c0_397 = arith.constant 0 : index
    %520 = vector.load %arg30[%c0_395, %c0_396, %c0_397] : memref<5x12x8xf32, #tpu.memory_space<vmem>>, vector<1x12x8xf32>
    %521 = vector.shape_cast %520 : vector<1x12x8xf32> to vector<12x8xf32>
    %cst_398 = arith.constant dense<0.000000e+00> : vector<96x8xf32>
    %522 = tpu.matmul %519, %521, %cst_398 {dimension_numbers = #tpu.dot_dimension_numbers<[1], [0], [0], [1], [0, 0, 1, 1], [], []>} : vector<96x12xf32>, vector<12x8xf32>, vector<96x8xf32> -> vector<96x8xf32>
    %523 = arith.addf %518, %522 : vector<96x8xf32>
    %c7_399 = arith.constant 7 : index
    %c0_400 = arith.constant 0 : index
    %524 = vector.load %arg35[%c7_399, %c0_400] : memref<112x12xf32, #tpu.memory_space<vmem>>, vector<96x12xf32>
    %c1_401 = arith.constant 1 : index
    %c0_402 = arith.constant 0 : index
    %c0_403 = arith.constant 0 : index
    %525 = vector.load %arg30[%c1_401, %c0_402, %c0_403] : memref<5x12x8xf32, #tpu.memory_space<vmem>>, vector<1x12x8xf32>
    %526 = vector.shape_cast %525 : vector<1x12x8xf32> to vector<12x8xf32>
    %cst_404 = arith.constant dense<0.000000e+00> : vector<96x8xf32>
    %527 = tpu.matmul %524, %526, %cst_404 {dimension_numbers = #tpu.dot_dimension_numbers<[1], [0], [0], [1], [0, 0, 1, 1], [], []>} : vector<96x12xf32>, vector<12x8xf32>, vector<96x8xf32> -> vector<96x8xf32>
    %528 = arith.addf %523, %527 : vector<96x8xf32>
    %c8_405 = arith.constant 8 : index
    %c0_406 = arith.constant 0 : index
    %529 = vector.load %arg35[%c8_405, %c0_406] : memref<112x12xf32, #tpu.memory_space<vmem>>, vector<96x12xf32>
    %c2_407 = arith.constant 2 : index
    %c0_408 = arith.constant 0 : index
    %c0_409 = arith.constant 0 : index
    %530 = vector.load %arg30[%c2_407, %c0_408, %c0_409] : memref<5x12x8xf32, #tpu.memory_space<vmem>>, vector<1x12x8xf32>
    %531 = vector.shape_cast %530 : vector<1x12x8xf32> to vector<12x8xf32>
    %cst_410 = arith.constant dense<0.000000e+00> : vector<96x8xf32>
    %532 = tpu.matmul %529, %531, %cst_410 {dimension_numbers = #tpu.dot_dimension_numbers<[1], [0], [0], [1], [0, 0, 1, 1], [], []>} : vector<96x12xf32>, vector<12x8xf32>, vector<96x8xf32> -> vector<96x8xf32>
    %533 = arith.addf %528, %532 : vector<96x8xf32>
    %c9_411 = arith.constant 9 : index
    %c0_412 = arith.constant 0 : index
    %534 = vector.load %arg35[%c9_411, %c0_412] : memref<112x12xf32, #tpu.memory_space<vmem>>, vector<96x12xf32>
    %c3_413 = arith.constant 3 : index
    %c0_414 = arith.constant 0 : index
    %c0_415 = arith.constant 0 : index
    %535 = vector.load %arg30[%c3_413, %c0_414, %c0_415] : memref<5x12x8xf32, #tpu.memory_space<vmem>>, vector<1x12x8xf32>
    %536 = vector.shape_cast %535 : vector<1x12x8xf32> to vector<12x8xf32>
    %cst_416 = arith.constant dense<0.000000e+00> : vector<96x8xf32>
    %537 = tpu.matmul %534, %536, %cst_416 {dimension_numbers = #tpu.dot_dimension_numbers<[1], [0], [0], [1], [0, 0, 1, 1], [], []>} : vector<96x12xf32>, vector<12x8xf32>, vector<96x8xf32> -> vector<96x8xf32>
    %538 = arith.addf %533, %537 : vector<96x8xf32>
    %c10_417 = arith.constant 10 : index
    %c0_418 = arith.constant 0 : index
    %539 = vector.load %arg35[%c10_417, %c0_418] : memref<112x12xf32, #tpu.memory_space<vmem>>, vector<96x12xf32>
    %c4_419 = arith.constant 4 : index
    %c0_420 = arith.constant 0 : index
    %c0_421 = arith.constant 0 : index
    %540 = vector.load %arg30[%c4_419, %c0_420, %c0_421] : memref<5x12x8xf32, #tpu.memory_space<vmem>>, vector<1x12x8xf32>
    %541 = vector.shape_cast %540 : vector<1x12x8xf32> to vector<12x8xf32>
    %cst_422 = arith.constant dense<0.000000e+00> : vector<96x8xf32>
    %542 = tpu.matmul %539, %541, %cst_422 {dimension_numbers = #tpu.dot_dimension_numbers<[1], [0], [0], [1], [0, 0, 1, 1], [], []>} : vector<96x12xf32>, vector<12x8xf32>, vector<96x8xf32> -> vector<96x8xf32>
    %543 = arith.addf %538, %542 : vector<96x8xf32>
    %544 = vector.broadcast %516 : vector<1x8xf32> to vector<96x8xf32>
    %545 = arith.addf %543, %544 : vector<96x8xf32>
    %c0_423 = arith.constant 0 : index
    %c0_424 = arith.constant 0 : index
    %c0_425 = arith.constant 0 : index
    %546 = vector.load %arg32[%c0_423, %c0_424, %c0_425] : memref<1x96x8xf32, #tpu.memory_space<vmem>>, vector<1x96x8xf32>
    %547 = vector.shape_cast %546 : vector<1x96x8xf32> to vector<96x8xf32>
    %548 = vector.shape_cast %545 : vector<96x8xf32> to vector<1x96x8xf32>
    tpu.vector_store %arg32[%c0_423, %c0_424, %c0_425], %548 {strides = array<i32>} : memref<1x96x8xf32, #tpu.memory_space<vmem>>, vector<1x96x8xf32>,
    return
  }
  func.func @transform_0(%arg0: i32) -> (i32, i32, i32) {
    %c0_i32 = arith.constant 0 : i32
    %c0_i32_0 = arith.constant 0 : i32
    %c0_i32_1 = arith.constant 0 : i32
    return %arg0, %c0_i32, %c0_i32_0 : i32, i32, i32
  }
  func.func @transform_1(%arg0: i32) -> (i32, i32) {
    %c0_i32 = arith.constant 0 : i32
    %c0_i32_0 = arith.constant 0 : i32
    %c0_i32_1 = arith.constant 0 : i32
    return %c0_i32, %c0_i32_0 : i32, i32
  }
  func.func @transform_2(%arg0: i32) -> (i32, i32) {
    %c0_i32 = arith.constant 0 : i32
    %c0_i32_0 = arith.constant 0 : i32
    %c0_i32_1 = arith.constant 0 : i32
    return %c0_i32, %c0_i32_0 : i32, i32
  }
  func.func @transform_3(%arg0: i32) -> (i32, i32) {
    %c0_i32 = arith.constant 0 : i32
    %c0_i32_0 = arith.constant 0 : i32
    %c0_i32_1 = arith.constant 0 : i32
    return %c0_i32, %c0_i32_0 : i32, i32
  }
  func.func @transform_4(%arg0: i32) -> (i32, i32) {
    %c0_i32 = arith.constant 0 : i32
    %c0_i32_0 = arith.constant 0 : i32
    %c0_i32_1 = arith.constant 0 : i32
    return %c0_i32, %c0_i32_0 : i32, i32
  }
  func.func @transform_5(%arg0: i32) -> (i32, i32) {
    %c0_i32 = arith.constant 0 : i32
    %c0_i32_0 = arith.constant 0 : i32
    %c0_i32_1 = arith.constant 0 : i32
    return %c0_i32, %c0_i32_0 : i32, i32
  }
  func.func @transform_6(%arg0: i32) -> (i32, i32) {
    %c0_i32 = arith.constant 0 : i32
    %c0_i32_0 = arith.constant 0 : i32
    %c0_i32_1 = arith.constant 0 : i32
    return %c0_i32, %c0_i32_0 : i32, i32
  }
  func.func @transform_7(%arg0: i32) -> (i32, i32, i32) {
    %c0_i32 = arith.constant 0 : i32
    %c0_i32_0 = arith.constant 0 : i32
    %c0_i32_1 = arith.constant 0 : i32
    %c0_i32_2 = arith.constant 0 : i32
    return %c0_i32, %c0_i32_0, %c0_i32_1 : i32, i32, i32
  }
  func.func @transform_8(%arg0: i32) -> (i32, i32) {
    %c0_i32 = arith.constant 0 : i32
    %c0_i32_0 = arith.constant 0 : i32
    %c0_i32_1 = arith.constant 0 : i32
    return %c0_i32, %c0_i32_0 : i32, i32
  }
  func.func @transform_9(%arg0: i32) -> (i32, i32) {
    %c0_i32 = arith.constant 0 : i32
    %c0_i32_0 = arith.constant 0 : i32
    %c0_i32_1 = arith.constant 0 : i32
    return %c0_i32, %c0_i32_0 : i32, i32
  }
  func.func @transform_10(%arg0: i32) -> (i32, i32) {
    %c0_i32 = arith.constant 0 : i32
    %c0_i32_0 = arith.constant 0 : i32
    %c0_i32_1 = arith.constant 0 : i32
    return %c0_i32, %c0_i32_0 : i32, i32
  }
  func.func @transform_11(%arg0: i32) -> (i32, i32) {
    %c0_i32 = arith.constant 0 : i32
    %c0_i32_0 = arith.constant 0 : i32
    %c0_i32_1 = arith.constant 0 : i32
    return %c0_i32, %c0_i32_0 : i32, i32
  }
  func.func @transform_12(%arg0: i32) -> (i32, i32) {
    %c0_i32 = arith.constant 0 : i32
    %c0_i32_0 = arith.constant 0 : i32
    %c0_i32_1 = arith.constant 0 : i32
    return %c0_i32, %c0_i32_0 : i32, i32
  }
  func.func @transform_13(%arg0: i32) -> (i32, i32, i32) {
    %c0_i32 = arith.constant 0 : i32
    %c0_i32_0 = arith.constant 0 : i32
    %c0_i32_1 = arith.constant 0 : i32
    %c0_i32_2 = arith.constant 0 : i32
    return %c0_i32, %c0_i32_0, %c0_i32_1 : i32, i32, i32
  }
  func.func @transform_14(%arg0: i32) -> (i32, i32) {
    %c0_i32 = arith.constant 0 : i32
    %c0_i32_0 = arith.constant 0 : i32
    %c0_i32_1 = arith.constant 0 : i32
    return %c0_i32, %c0_i32_0 : i32, i32
  }
  func.func @transform_15(%arg0: i32) -> (i32, i32, i32) {
    %c0_i32 = arith.constant 0 : i32
    %c0_i32_0 = arith.constant 0 : i32
    %c0_i32_1 = arith.constant 0 : i32
    %c0_i32_2 = arith.constant 0 : i32
    return %c0_i32, %c0_i32_0, %c0_i32_1 : i32, i32, i32
  }
  func.func @transform_16(%arg0: i32) -> (i32, i32) {
    %c0_i32 = arith.constant 0 : i32
    %c0_i32_0 = arith.constant 0 : i32
    %c0_i32_1 = arith.constant 0 : i32
    return %c0_i32, %c0_i32_0 : i32, i32
  }
  func.func @transform_17(%arg0: i32) -> (i32, i32) {
    %c0_i32 = arith.constant 0 : i32
    %c0_i32_0 = arith.constant 0 : i32
    %c0_i32_1 = arith.constant 0 : i32
    return %c0_i32, %c0_i32_0 : i32, i32
  }
  func.func @transform_18(%arg0: i32) -> (i32, i32) {
    %c0_i32 = arith.constant 0 : i32
    %c0_i32_0 = arith.constant 0 : i32
    %c0_i32_1 = arith.constant 0 : i32
    return %c0_i32, %c0_i32_0 : i32, i32
  }
  func.func @transform_19(%arg0: i32) -> (i32, i32) {
    %c0_i32 = arith.constant 0 : i32
    %c0_i32_0 = arith.constant 0 : i32
    %c0_i32_1 = arith.constant 0 : i32
    return %c0_i32, %c0_i32_0 : i32, i32
  }
  func.func @transform_20(%arg0: i32) -> (i32, i32) {
    %c0_i32 = arith.constant 0 : i32
    %c0_i32_0 = arith.constant 0 : i32
    %c0_i32_1 = arith.constant 0 : i32
    return %c0_i32, %c0_i32_0 : i32, i32
  }
  func.func @transform_21(%arg0: i32) -> (i32, i32) {
    %c0_i32 = arith.constant 0 : i32
    %c0_i32_0 = arith.constant 0 : i32
    %c0_i32_1 = arith.constant 0 : i32
    return %c0_i32, %c0_i32_0 : i32, i32
  }
  func.func @transform_22(%arg0: i32) -> (i32, i32) {
    %c0_i32 = arith.constant 0 : i32
    %c0_i32_0 = arith.constant 0 : i32
    %c0_i32_1 = arith.constant 0 : i32
    return %c0_i32, %c0_i32_0 : i32, i32
  }
  func.func @transform_23(%arg0: i32) -> (i32, i32, i32) {
    %c0_i32 = arith.constant 0 : i32
    %c0_i32_0 = arith.constant 0 : i32
    %c0_i32_1 = arith.constant 0 : i32
    %c0_i32_2 = arith.constant 0 : i32
    return %c0_i32, %c0_i32_0, %c0_i32_1 : i32, i32, i32
  }
  func.func @transform_24(%arg0: i32) -> (i32, i32, i32) {
    %c0_i32 = arith.constant 0 : i32
    %c0_i32_0 = arith.constant 0 : i32
    %c0_i32_1 = arith.constant 0 : i32
    %c0_i32_2 = arith.constant 0 : i32
    return %c0_i32, %c0_i32_0, %c0_i32_1 : i32, i32, i32
  }
  func.func @transform_25(%arg0: i32) -> (i32, i32, i32) {
    %c0_i32 = arith.constant 0 : i32
    %c0_i32_0 = arith.constant 0 : i32
    %c0_i32_1 = arith.constant 0 : i32
    %c0_i32_2 = arith.constant 0 : i32
    return %c0_i32, %c0_i32_0, %c0_i32_1 : i32, i32, i32
  }
  func.func @transform_26(%arg0: i32) -> (i32, i32, i32) {
    %c0_i32 = arith.constant 0 : i32
    %c0_i32_0 = arith.constant 0 : i32
    %c0_i32_1 = arith.constant 0 : i32
    %c0_i32_2 = arith.constant 0 : i32
    return %c0_i32, %c0_i32_0, %c0_i32_1 : i32, i32, i32
  }
  func.func @transform_27(%arg0: i32) -> (i32, i32, i32) {
    %c0_i32 = arith.constant 0 : i32
    %c0_i32_0 = arith.constant 0 : i32
    %c0_i32_1 = arith.constant 0 : i32
    %c0_i32_2 = arith.constant 0 : i32
    return %c0_i32, %c0_i32_0, %c0_i32_1 : i32, i32, i32
  }
  func.func @transform_28(%arg0: i32) -> (i32, i32, i32) {
    %c0_i32 = arith.constant 0 : i32
    %c0_i32_0 = arith.constant 0 : i32
    %c0_i32_1 = arith.constant 0 : i32
    %c0_i32_2 = arith.constant 0 : i32
    return %c0_i32, %c0_i32_0, %c0_i32_1 : i32, i32, i32
  }
  func.func @transform_29(%arg0: i32) -> (i32, i32, i32) {
    %c0_i32 = arith.constant 0 : i32
    %c0_i32_0 = arith.constant 0 : i32
    %c0_i32_1 = arith.constant 0 : i32
    %c0_i32_2 = arith.constant 0 : i32
    return %c0_i32, %c0_i32_0, %c0_i32_1 : i32, i32, i32
  }
  func.func @transform_30(%arg0: i32) -> (i32, i32) {
    %c0_i32 = arith.constant 0 : i32
    %c0_i32_0 = arith.constant 0 : i32
    %c0_i32_1 = arith.constant 0 : i32
    return %c0_i32, %c0_i32_0 : i32, i32
  }
  func.func @transform_31(%arg0: i32) -> (i32, i32, i32) {
    %c0_i32 = arith.constant 0 : i32
    %c0_i32_0 = arith.constant 0 : i32
    %c0_i32_1 = arith.constant 0 : i32
    return %arg0, %c0_i32, %c0_i32_0 : i32, i32, i32
  }
}

</mosaic_0001>

<bundles_post_ra>
// kernel: _lambda_.1
= control target key start
LH: loop header
LB: loop body
LE: loop exit
PB: predicated region body
PF: predicated region fallthrough
CT: control target
= control target key end

     0   :  { %s16053_s6 = smov 1   ;;  %s16054_s10 = smov 2   ;;  %s19041_s0 = inlined_call_operand.smem [shape: u32[32], index: -1, kind: input, shape index: {}] }
   0x1   :  { %s16105_s5 = sld [smem:[%s19041_s0]]   ;;  %s16055_s14 = smov 3  }
   0x2   :  { %s16110_s9 = sld [smem:[%s19041_s0 + %s16053_s6]]   ;;  %s16056_s18 = smov 4  }
   0x3   :  { %s16115_s13 = sld [smem:[%s19041_s0 + %s16054_s10]]   ;;  %s16057_s22 = smov 5  }
   0x4   :  { %s16120_s17 = sld [smem:[%s19041_s0 + %s16055_s14]]   ;;  %s16058_s26 = smov 6  }
   0x5   :  { %s16125_s21 = sld [smem:[%s19041_s0 + %s16056_s18]]   ;;  %s16059_s30 = smov 7  }
   0x6   :  { %s16130_s25 = sld [smem:[%s19041_s0 + %s16057_s22]]   ;;  %s16060_s4 = smov 8  }
   0x7   :  { %s16135_s29 = sld [smem:[%s19041_s0 + %s16058_s26]]   ;;  %s16061_s10 = smov 9  }
   0x8   :  { %s16140_s3 = sld [smem:[%s19041_s0 + %s16059_s30]]   ;;  %s16062_s15 = smov 10  }
   0x9   :  { %s16145_s8 = sld [smem:[%s19041_s0 + %s16060_s4]]   ;;  %s16063_s20 = smov 11  }
   0xa   :  { %s16150_s14 = sld [smem:[%s19041_s0 + %s16061_s10]]   ;;  %s16064_s26 = smov 12  }
   0xb   :  { %s16155_s19 = sld [smem:[%s19041_s0 + %s16062_s15]]   ;;  %s16065_s1 = smov 13  }
   0xc   :  { %s16160_s24 = sld [smem:[%s19041_s0 + %s16063_s20]]   ;;  %s16066_s7 = smov 14  }
   0xd   :  { %s16165_s30 = sld [smem:[%s19041_s0 + %s16064_s26]]   ;;  %s16067_s15 = smov 15  }
   0xe   :  { %s16170_s6 = sld [smem:[%s19041_s0 + %s16065_s1]]   ;;  %s16068_s22 = smov 16  }
   0xf   :  { %s16175_s12 = sld [smem:[%s19041_s0 + %s16066_s7]]   ;;  %s16069_s28 = smov 17  }
  0x10   :  { %s16180_s20 = sld [smem:[%s19041_s0 + %s16067_s15]]   ;;  %s16070_s7 = smov 18  }
  0x11   :  { %s16185_s27 = sld [smem:[%s19041_s0 + %s16068_s22]]   ;;  %s16071_s15 = smov 19  }
  0x12   :  { %s16190_s4 = sld [smem:[%s19041_s0 + %s16069_s28]]   ;;  %s16072_s22 = smov 20  }
  0x13   :  { %19064 = sst [smem:[#allocation5_spill]] %s16165_s30  ;;  %s16073_s28 = smov 21  }
  0x14   :  { %s16195_s30 = sld [smem:[%s19041_s0 + %s16070_s7]]   ;;  %s16074_s7 = smov 22  }
  0x15   :  { %19065 = sst [smem:[#allocation6_spill]] %s16175_s12 }
  0x16   :  { %s16200_s12 = sld [smem:[%s19041_s0 + %s16071_s15]]   ;;  %s16075_s15 = smov 23  }
  0x17   :  { %19066 = sst [smem:[#allocation7_spill]] %s16185_s27 }
  0x18   :  { %19067 = sst [smem:[#allocation8_spill]] %s16190_s4 }
  0x19   :  { %s16205_s27 = sld [smem:[%s19041_s0 + %s16072_s22]]   ;;  %s16076_s22 = smov 24  }
  0x1a   :  { %19068 = sst [smem:[#allocation9_spill]] %s16195_s30 }
  0x1b   :  { %s16210_s4 = sld [smem:[%s19041_s0 + %s16073_s28]]   ;;  %s16077_s28 = smov 25  }
  0x1c   :  { %19069 = sst [smem:[#allocation10_spill]] %s16200_s12 }
  0x1d   :  { %s16215_s30 = sld [smem:[%s19041_s0 + %s16074_s7]]   ;;  %s16078_s7 = smov 26  }
  0x1e   :  { %s16220_s12 = sld [smem:[%s19041_s0 + %s16075_s15]]   ;;  %s16079_s15 = smov 27  }
  0x1f   :  { %19070 = sst [smem:[#allocation11_spill]] %s16205_s27 }
  0x20   :  { %s16225_s27 = sld [smem:[%s19041_s0 + %s16076_s22]]   ;;  %s16080_s22 = smov 28  }
  0x21   :  { %19071 = sst [smem:[#allocation12_spill]] %s16210_s4 }
  0x22   :  { %s16230_s4 = sld [smem:[%s19041_s0 + %s16077_s28]]   ;;  %s16081_s28 = smov 29  }
  0x23   :  { %19072 = sst [smem:[#allocation13_spill]] %s16215_s30 }
  0x24   :  { %19073 = sst [smem:[#allocation14_spill]] %s16220_s12 }
  0x25   :  { %s16235_s30 = sld [smem:[%s19041_s0 + %s16078_s7]]   ;;  %s16082_s7 = smov 30  }
  0x26   :  { %19074 = sst [smem:[#allocation15_spill]] %s16225_s27 }
  0x27   :  { %s16240_s12 = sld [smem:[%s19041_s0 + %s16079_s15]]   ;;  %s16083_s15 = smov 31  }
  0x28   :  { %19075 = sst [smem:[#allocation16_spill]] %s16230_s4 }
  0x29   :  { %s16245_s27 = sld [smem:[%s19041_s0 + %s16080_s22]]   ;;  %s16262_s22 = smov 0  }
  0x2a   :  { %s16250_s4 = sld [smem:[%s19041_s0 + %s16081_s28]]  }
  0x2b   :  { %19076 = sst [smem:[#allocation17_spill]] %s16235_s30 }
  0x2c   :  { %s16255_s30 = sld [smem:[%s19041_s0 + %s16082_s7]]  }
  0x2d   :  { %19077 = sst [smem:[#allocation18_spill]] %s16240_s12 }
  0x2e   :  { %s16260_s12 = sld [smem:[%s19041_s0 + %s16083_s15]]  }
  0x2f LB: > { %s12892_s23 = sadd.s32 4294967295, %s16051_s22   ;;  %p12896_p0 = scmp.ge.s32.totalorder %s16051_s22, 1  ;;  %s16051_s22 = sphi %s16262_s22, %s73_s22  }
  0x30   : > { %p869_p1 = scmp.lt.s32.totalorder %s16051_s22, 3 }
  0x32   : > { %p870_p2 = pnand %p12896_p0, %p869_p1 }
  0x34   : > { %873 = sbr.rel (%p870_p2) target bundleno = 7703 (0x1e17), region = 144 }
  0x39   : > { %v1004_v0 = vld [vmem:[%s16110_s9] sm:$0xff]  ;;  %p949_p3 = scmp.lt.s32.totalorder %s12892_s23, 1  ;;  %vm1012_vm0 = vcmask 64512   ;;  %vm959_vm1 = vcmask 261120   ;;  %s16084_s28 = smov 96   ;;  %vm1586_vm2 = vcmask 523264  }
  0x3a   : > { %14472 = vmatprep.subr.mxu0 %v1004_v0  ;;  %v12900_v10 = vld [vmem:[%s16115_s13] ss:$0 sm:$0xff]  ;;  %s16085_s1 = smov 64   ;;  %s16086_s2 = smov 88   ;;  %vm970_vm3 = vcmask 39936   ;;  %vm4466_vm4 = vcmask 1044480  }
  0x3b   : > { %14473 = vmatpush3.msra.mxu0 %v1004_v0  ;;  %s19123_s23 = smov (!%p949_p3, %s12892_s23), 1  ;;  %s16087_s7 = smov 120   ;;  %vm5477_vm5 = vcmask 1043456   ;;  %vm981_vm6 = vcmask 97280  }
  0x3c   : > { %s13692_s0 = sshll.u32 %s19123_s23, 6  ;;  %s16088_s10 = smov 56  }
  0x3d   : > { %s953_s26 = scalar_lea.vmem %s16105_s5, %s13692_s0  ;;  %s16089_s11 = smov 80  }
  0x3e   : > { %v996_v1 = vld [vmem:[%s953_s26] sm:$0xff]  ;;  %v997_v2 = vld [vmem:[%s953_s26 + $0x8] sm:$0xff]  ;;  %v998_v3 = vld [vmem:[%s953_s26 + $0x10] sm:$0xff]  ;;  %s16090_s15 = smov 112   ;;  %s16091_s16 = smov 72  }
  0x3f   : > { %14474 = vmatprep.mubr.msk.f32.mxu0 %vm1012_vm0, %v996_v1  ;;  %v999_v4 = vld [vmem:[%s953_s26 + $0x18] sm:$0xff]  ;;  %v1000_v5 = vld [vmem:[%s953_s26 + $0x20] sm:$0xff]  ;;  %v1001_v6 = vld [vmem:[%s953_s26 + $0x28] sm:$0xff]  ;;  %s16092_s18 = smov 104   ;;  %s16093_s0 = smov 48  }
  0x40   : > { %14475 = vmatmul.mubr.msk.f32.vlgmr.msra.gmra.mxu0 %vm1012_vm0, %v997_v2  ;;  %v1002_v7 = vld [vmem:[%s953_s26 + $0x30] sm:$0xff]  ;;  %v1003_v8 = vld [vmem:[%s953_s26 + $0x38] sm:$0xff]  ;;  %s16094_s26 = smov 40  }
  0x41   : > { %14477 = vmatprep.mubr.msk.f32.mxu0 %vm1012_vm0, %v998_v3 }
  0x44   : > { %14478 = vmatmul.mubr.msk.f32.gmra.mxu0 %vm1012_vm0, %v999_v4 }
  0x45   : > { %14480 = vmatprep.mubr.msk.f32.mxu0 %vm1012_vm0, %v1000_v5 }
  0x48   : > { %14481 = vmatmul.mubr.msk.f32.gmra.mxu0 %vm1012_vm0, %v1001_v6 }
  0x49   : > { %14483 = vmatprep.mubr.msk.f32.mxu0 %vm1012_vm0, %v1002_v7 }
  0x4c   : > { %14484 = vmatmul.mubr.msk.f32.gmra.mxu0 %vm1012_vm0, %v1003_v8 }
 0x100   : > { %v14476_v9 = vpop.f32.mrf.mxu0 }
 0x101   : > { %v16286_v14 = vadd.f32 %v14476_v9, %v12900_v10 }
 0x102   : > { %v1103_v11 = vpop.f32.mrf.mxu0 }
 0x103   : > { %v16284_v12 = vadd.f32 %v12900_v10, %v1103_v11  ;;  %v1147_v21 = vsel %vm959_vm1, %v16286_v14, 0.0  ;;  %v1279_v11 = vld [vmem:[%s16130_s25 + $0x10] sm:$0xff] }
 0x104   : > { %v14479_v13 = vpop.f32.mrf.mxu0 }
 0x105   : > { %v1144_v15 = vsel %vm959_vm1, %v16284_v12, 0.0  ;;  %v16292_v19 = vadd.f32 %v14479_v13, %v12900_v10  ;;  %v1278_v13 = vld [vmem:[%s16130_s25 + $0x8] sm:$0xff] }
 0x106   : > { %v1113_v16 = vpop.f32.mrf.mxu0  ;;  %1145 = vadd.xlane.f32.xlu0 %v1144_v15  ;;  %v1277_v15 = vld [vmem:[%s16130_s25] sm:$0xff] }
 0x107   : > { %v16290_v17 = vadd.f32 %v12900_v10, %v1113_v16  ;;  %v1153_v26 = vsel %vm959_vm1, %v16292_v19, 0.0 }
 0x108   : > { %v14482_v18 = vpop.f32.mrf.mxu0 }
 0x109   : > { %v1150_v20 = vsel %vm959_vm1, %v16290_v17, 0.0  ;;  %v16300_v25 = vadd.f32 %v14482_v18, %v12900_v10 }
 0x10a   : > { %v1123_v22 = vpop.f32.mrf.mxu0  ;;  %1151 = vadd.xlane.f32.xlu1 %v1150_v20  ;;  %1148 = vadd.xlane.f32.xlu0 %v1147_v21 }
 0x10b   : > { %v16298_v23 = vadd.f32 %v12900_v10, %v1123_v22  ;;  %v1159_v31 = vsel %vm959_vm1, %v16300_v25, 0.0 }
 0x10c   : > { %v14485_v24 = vpop.f32.mrf.mxu0 }
 0x10d   : > { %v1156_v27 = vsel %vm959_vm1, %v16298_v23, 0.0  ;;  %v16308_v30 = vadd.f32 %v14485_v24, %v12900_v10 }
 0x10e   : > { %v1133_v28 = vpop.f32.mrf.mxu0  ;;  %1154 = vadd.xlane.f32.xlu1 %v1153_v26  ;;  %1157 = vadd.xlane.f32.xlu0 %v1156_v27 }
 0x10f   : > { %v16306_v29 = vadd.f32 %v12900_v10, %v1133_v28  ;;  %v1165_v33 = vsel %vm959_vm1, %v16308_v30, 0.0  ;;  %v1280_v10 = vld [vmem:[%s16130_s25 + $0x18] sm:$0xff] }
 0x110   : > { %14486 = vmatprep.subr.mxu1 %v1280_v10 }
 0x111   : > { %v1162_v32 = vsel %vm959_vm1, %v16306_v29, 0.0  ;;  %14487 = vmatpush3.msra.mxu1 %v1280_v10 }
 0x112   : > { %1160 = vadd.xlane.f32.xlu1 %v1159_v31  ;;  %1163 = vadd.xlane.f32.xlu0 %v1162_v32 }
 0x113   : > { %14488 = vmatprep.subr.mxu1 %v1279_v11 }
 0x114   : > { %14489 = vmatpush3.msra.mxu1 %v1279_v11 }
 0x115   : > { %14490 = vmatprep.subr.mxu1 %v1278_v13 }
 0x116   : > { %1166 = vadd.xlane.f32.xlu1 %v1165_v33  ;;  %14491 = vmatpush3.msra.mxu1 %v1278_v13 }
 0x117   : > { %14492 = vmatprep.subr.mxu1 %v1277_v15 }
 0x118   : > { %14493 = vmatpush3.msra.mxu1 %v1277_v15 }
 0x18f   : > { %v1146_v34 = vpop.xlane.xlu0 %1145 }
 0x190   : > { %v1169_v35 = vmul.f32 0.03125, %v1146_v34 }
 0x192   : > { %v16317_v36 = vsub.f32 %v16284_v12, %v1169_v35 }
 0x193   : > { %v1152_v37 = vpop.xlane.xlu1 %1151  ;;  %v1149_v38 = vpop.xlane.xlu0 %1148 }
 0x194   : > { %v1171_v39 = vmul.f32 0.03125, %v1152_v37  ;;  %v1170_v40 = vmul.f32 0.03125, %v1149_v38  ;;  %v1185_v41 = vmul.f32 %v16317_v36, %v16317_v36 }
 0x196   : > { %v16322_v42 = vsub.f32 %v16290_v17, %v1171_v39  ;;  %v16325_v43 = vsub.f32 %v16286_v14, %v1170_v40  ;;  %v1193_v44 = vsel %vm959_vm1, %v1185_v41, 0.0 }
 0x197   : > { %v1155_v45 = vpop.xlane.xlu1 %1154  ;;  %1194 = vadd.xlane.f32.xlu0 %v1193_v44  ;;  %v1158_v46 = vpop.xlane.xlu0 %1157 }
 0x198   : > { %v1172_v47 = vmul.f32 0.03125, %v1155_v45  ;;  %v1173_v48 = vmul.f32 0.03125, %v1158_v46  ;;  %v1187_v49 = vmul.f32 %v16322_v42, %v16322_v42  ;;  %v1186_v50 = vmul.f32 %v16325_v43, %v16325_v43 }
 0x19a   : > { %v16333_v51 = vsub.f32 %v16292_v19, %v1172_v47  ;;  %v16336_v52 = vsub.f32 %v16298_v23, %v1173_v48  ;;  %v1199_v53 = vsel %vm959_vm1, %v1187_v49, 0.0  ;;  %v1196_v54 = vsel %vm959_vm1, %v1186_v50, 0.0  ;;  %v12909_v49 = vld [vmem:[%s16120_s17] ss:$0 sm:$0xff] }
 0x19b   : > { %v1161_v55 = vpop.xlane.xlu1 %1160  ;;  %1200 = vadd.xlane.f32.xlu0 %v1199_v53  ;;  %1197 = vadd.xlane.f32.xlu1 %v1196_v54  ;;  %v1164_v56 = vpop.xlane.xlu0 %1163  ;;  %v12910_v54 = vld [vmem:[%s16125_s21] ss:$0 sm:$0xff] }
 0x19c   : > { %v1174_v57 = vmul.f32 0.03125, %v1161_v55  ;;  %v1175_v58 = vmul.f32 0.03125, %v1164_v56  ;;  %v1188_v59 = vmul.f32 %v16333_v51, %v16333_v51  ;;  %v1189_v60 = vmul.f32 %v16336_v52, %v16336_v52 }
 0x19e   : > { %v16345_v61 = vsub.f32 %v16300_v25, %v1174_v57  ;;  %v16348_v62 = vsub.f32 %v16306_v29, %v1175_v58  ;;  %v1202_v63 = vsel %vm959_vm1, %v1188_v59, 0.0  ;;  %v1205_v0 = vsel %vm959_vm1, %v1189_v60, 0.0 }
 0x19f   : > { %v1167_v1 = vpop.xlane.xlu1 %1166  ;;  %1203 = vadd.xlane.f32.xlu1 %v1202_v63  ;;  %1206 = vadd.xlane.f32.xlu0 %v1205_v0 }
 0x1a0   : > { %v1176_v2 = vmul.f32 0.03125, %v1167_v1  ;;  %v1190_v3 = vmul.f32 %v16345_v61, %v16345_v61  ;;  %v1191_v4 = vmul.f32 %v16348_v62, %v16348_v62 }
 0x1a2   : > { %v16357_v5 = vsub.f32 %v16308_v30, %v1176_v2  ;;  %v1208_v6 = vsel %vm959_vm1, %v1190_v3, 0.0  ;;  %v1211_v7 = vsel %vm959_vm1, %v1191_v4, 0.0 }
 0x1a3   : > { %1209 = vadd.xlane.f32.xlu1 %v1208_v6  ;;  %1212 = vadd.xlane.f32.xlu0 %v1211_v7 }
 0x1a4   : > { %v1192_v8 = vmul.f32 %v16357_v5, %v16357_v5 }
 0x1a6   : > { %v1214_v9 = vsel %vm959_vm1, %v1192_v8, 0.0 }
 0x1a7   : > { %1215 = vadd.xlane.f32.xlu1 %v1214_v9 }
 0x220   : > { %v1195_v16 = vpop.xlane.xlu0 %1194 }
 0x221   : > { %v1217_v18 = vmul.f32 0.03125, %v1195_v16 }
 0x223   : > { %v1225_v20 = vadd.f32 1e-05, %v1217_v18 }
 0x224   : > { %v1198_v21 = vpop.xlane.xlu1 %1197  ;;  %v1201_v22 = vpop.xlane.xlu0 %1200 }
 0x225   : > { %15781 = vrsqrt.f32 %v1225_v20  ;;  %v1218_v24 = vmul.f32 0.03125, %v1198_v21  ;;  %v1219_v26 = vmul.f32 0.03125, %v1201_v22  ;;  %v12911_v22 = vld [vmem:[%s16135_s29] ss:$0 sm:$0xff] }
 0x227   : > { %v1226_v27 = vadd.f32 1e-05, %v1218_v24  ;;  %v1227_v28 = vadd.f32 1e-05, %v1219_v26 }
 0x228   : > { %v1204_v31 = vpop.xlane.xlu1 %1203  ;;  %v1207_v32 = vpop.xlane.xlu0 %1206 }
 0x229   : > { %15783 = vrsqrt.f32 %v1226_v27  ;;  %v1220_v33 = vmul.f32 0.03125, %v1204_v31  ;;  %v1221_v34 = vmul.f32 0.03125, %v1207_v32 }
 0x22a   : > { %15785 = vrsqrt.f32 %v1227_v28 }
 0x22b   : > { %v1228_v35 = vadd.f32 1e-05, %v1220_v33  ;;  %v1229_v37 = vadd.f32 1e-05, %v1221_v34 }
 0x22c   : > { %v1210_v38 = vpop.xlane.xlu1 %1209  ;;  %v1213_v39 = vpop.xlane.xlu0 %1212 }
 0x22d   : > { %15787 = vrsqrt.f32 %v1228_v35  ;;  %v1222_v40 = vmul.f32 0.03125, %v1210_v38  ;;  %v1223_v41 = vmul.f32 0.03125, %v1213_v39 }
 0x22e   : > { %15789 = vrsqrt.f32 %v1229_v37 }
 0x22f   : > { %v1230_v44 = vadd.f32 1e-05, %v1222_v40  ;;  %v1231_v45 = vadd.f32 1e-05, %v1223_v41 }
 0x230   : > { %v1216_v46 = vpop.xlane.xlu1 %1215 }
 0x231   : > { %15791 = vrsqrt.f32 %v1230_v44  ;;  %v1224_v47 = vmul.f32 0.03125, %v1216_v46 }
 0x232   : > { %v15782_v48 = vpop.eup %15781  ;;  %15793 = vrsqrt.f32 %v1231_v45 }
 0x233   : > { %v1232_v50 = vadd.f32 1e-05, %v1224_v47  ;;  %v1241_v53 = vmul.f32 %v15782_v48, %v16317_v36 }
 0x235   : > { %15795 = vrsqrt.f32 %v1232_v50  ;;  %v1255_v55 = vmul.f32 %v12909_v49, %v1241_v53 }
 0x236   : > { %v15784_v56 = vpop.eup %15783 }
 0x237   : > { %v15786_v57 = vpop.eup %15785  ;;  %v1269_v58 = vadd.f32 %v12910_v54, %v1255_v55  ;;  %v1242_v59 = vmul.f32 %v15784_v56, %v16325_v43 }
 0x238   : > { %v1243_v60 = vmul.f32 %v15786_v57, %v16322_v42 }
 0x239   : > { %14494 = vmatprep.mubr.msk.f32.mxu1 %vm959_vm1, %v1269_v58  ;;  %v1256_v63 = vmul.f32 %v12909_v49, %v1242_v59 }
 0x23a   : > { %v15788_v0 = vpop.eup %15787  ;;  %v1257_v1 = vmul.f32 %v12909_v49, %v1243_v60 }
 0x23b   : > { %v15790_v2 = vpop.eup %15789  ;;  %v1270_v3 = vadd.f32 %v12910_v54, %v1256_v63  ;;  %v1244_v4 = vmul.f32 %v15788_v0, %v16333_v51 }
 0x23c   : > { %v1271_v36 = vadd.f32 %v12910_v54, %v1257_v1  ;;  %v1245_v6 = vmul.f32 %v15790_v2, %v16336_v52 }
 0x23d   : > { %14495 = vmatmul.mubr.msk.f32.vlgmr.msra.gmra.mxu1 %vm959_vm1, %v1270_v3  ;;  %v1258_v7 = vmul.f32 %v12909_v49, %v1244_v4 }
 0x23e   : > { %v15792_v8 = vpop.eup %15791  ;;  %14497 = vmatprep.mubr.msk.f32.mxu1 %vm959_vm1, %v1271_v36  ;;  %v1259_v43 = vmul.f32 %v12909_v49, %v1245_v6 }
 0x23f   : > { %v15794_v42 = vpop.eup %15793  ;;  %v1272_v9 = vadd.f32 %v12910_v54, %v1258_v7  ;;  %v1246_v10 = vmul.f32 %v15792_v8, %v16345_v61 }
 0x240   : > { %v1273_v11 = vadd.f32 %v12910_v54, %v1259_v43  ;;  %v1247_v13 = vmul.f32 %v15794_v42, %v16348_v62 }
 0x241   : > { %14498 = vmatmul.mubr.msk.f32.gmra.mxu1 %vm959_vm1, %v1272_v9  ;;  %v1260_v51 = vmul.f32 %v12909_v49, %v1246_v10 }
 0x242   : > { %v15796_v15 = vpop.eup %15795  ;;  %14500 = vmatprep.mubr.msk.f32.mxu1 %vm959_vm1, %v1273_v11  ;;  %v1261_v52 = vmul.f32 %v12909_v49, %v1247_v13 }
 0x243   : > { %v1274_v16 = vadd.f32 %v12910_v54, %v1260_v51  ;;  %v1248_v18 = vmul.f32 %v15796_v15, %v16357_v5 }
 0x244   : > { %v1275_v20 = vadd.f32 %v12910_v54, %v1261_v52 }
 0x245   : > { %14501 = vmatmul.mubr.msk.f32.gmra.mxu1 %vm959_vm1, %v1274_v16  ;;  %v1262_v21 = vmul.f32 %v12909_v49, %v1248_v18 }
 0x246   : > { %14503 = vmatprep.mubr.msk.f32.mxu1 %vm959_vm1, %v1275_v20 }
 0x247   : > { %v1276_v61 = vadd.f32 %v12910_v54, %v1262_v21 }
 0x249   : > { %14504 = vmatmul.mubr.msk.f32.gmra.mxu1 %vm959_vm1, %v1276_v61 }
 0x2fd   : > { %v14496_v62 = vpop.f32.mrf.mxu1 }
 0x2fe   : > { %v16402_v39 = vadd.f32 %v14496_v62, %v12911_v22 }
 0x2ff   : > { %v1378_v24 = vpop.f32.mrf.mxu1 }
 0x300   : > { %v16387_v26 = vadd.f32 %v12911_v22, %v1378_v24 }
 0x301   : > { %v14499_v27 = vpop.f32.mrf.mxu1 }
 0x302   : > { %14522 = vmatprep.mubr.msk.f32.mxu0 %vm1012_vm0, %v16387_v26  ;;  %v16396_v37 = vadd.f32 %v14499_v27, %v12911_v22 }
 0x303   : > { %v1388_v28 = vpop.f32.mrf.mxu1 }
 0x304   : > { %v16409_v41 = vadd.f32 %v12911_v22, %v1388_v28 }
 0x305   : > { %v14502_v5 = vpop.f32.mrf.mxu1 }
 0x306   : > { %v16399_v38 = vadd.f32 %v14502_v5, %v12911_v22 }
 0x307   : > { %v1398_v31 = vpop.f32.mrf.mxu1 }
 0x308   : > { %v16405_v40 = vadd.f32 %v12911_v22, %v1398_v31 }
 0x309   : > { %v14505_v32 = vpop.f32.mrf.mxu1 }
 0x30a   : > { %v16391_v33 = vadd.f32 %v14505_v32, %v12911_v22 }
 0x30b   : > { %v1408_v34 = vpop.f32.mrf.mxu1 }
 0x30c   : > { %v16393_v35 = vadd.f32 %v12911_v22, %v1408_v34  ;;  %1439 = vrot.lane.b32.xlu0 %v16391_v33, %s16084_s28 }
 0x30e   : > { %1437 = vrot.lane.b32.xlu1 %v16393_v35, %s16084_s28 }
 0x310   : > { %1431 = vrot.lane.b32.xlu0 %v16396_v37, %s16084_s28 }
 0x312   : > { %1435 = vrot.lane.b32.xlu1 %v16399_v38, %s16084_s28 }
 0x314   : > { %1427 = vrot.lane.b32.xlu0 %v16402_v39, %s16084_s28 }
 0x316   : > { %1433 = vrot.lane.b32.xlu1 %v16405_v40, %s16084_s28 }
 0x318   : > { %1689 = vrot.lane.b32.xlu0 %v16391_v33, %s16085_s1 }
 0x31a   : > { %1429 = vrot.lane.b32.xlu1 %v16409_v41, %s16084_s28 }
 0x31c   : > { %1681 = vrot.lane.b32.xlu0 %v16396_v37, %s16085_s1 }
 0x31e   : > { %1425 = vrot.lane.b32.xlu1 %v16387_v26, %s16084_s28  ;;  %s19078_s28 = sld [smem:[#allocation6_spill]] }
 0x320   : > { %1677 = vrot.lane.b32.xlu0 %v16402_v39, %s16085_s1 }
 0x322   : > { %1685 = vrot.lane.b32.xlu1 %v16399_v38, %s16085_s1 }
 0x324   : > { %1859 = vrot.lane.b32.xlu0 %v16391_v33, %s16086_s2 }
 0x326   : > { %1683 = vrot.lane.b32.xlu1 %v16405_v40, %s16085_s1 }
 0x32a   : > { %1679 = vrot.lane.b32.xlu1 %v16409_v41, %s16085_s1 }
 0x32e   : > { %1675 = vrot.lane.b32.xlu1 %v16387_v26, %s16085_s1 }
 0x332   : > { %1687 = vrot.lane.b32.xlu1 %v16393_v35, %s16085_s1  ;;  %s19079_s1 = sld [smem:[#allocation5_spill]] }
 0x336   : > { %1857 = vrot.lane.b32.xlu1 %v16393_v35, %s16086_s2 }
 0x37e   : > { %v1440_v44 = vpop.permute.xlu0 %1439 }
 0x37f   : > { %14506 = vmatprep.subr.msk.mxu0 %vm1012_vm0, %v1440_v44 }
 0x380   : > { %14507 = vmatpush3.xpose.msk.msra.mxu0 %vm1012_vm0, %v1440_v44  ;;  %v1438_v45 = vpop.permute.xlu1 %1437 }
 0x381   : > { %14508 = vmatprep.subr.msk.mxu0 %vm1012_vm0, %v1438_v45 }
 0x382   : > { %v1432_v46 = vpop.permute.xlu0 %1431 }
 0x384   : > { %14509 = vmatpush3.xpose.msk.msra.mxu0 %vm1012_vm0, %v1438_v45  ;;  %v1436_v47 = vpop.permute.xlu1 %1435 }
 0x385   : > { %14510 = vmatprep.subr.msk.mxu0 %vm1012_vm0, %v1436_v47 }
 0x386   : > { %v1428_v48 = vpop.permute.xlu0 %1427 }
 0x388   : > { %14511 = vmatpush3.xpose.msk.msra.mxu0 %vm1012_vm0, %v1436_v47  ;;  %v1434_v49 = vpop.permute.xlu1 %1433 }
 0x389   : > { %14512 = vmatprep.subr.msk.mxu0 %vm1012_vm0, %v1434_v49 }
 0x38a   : > { %v1690_v50 = vpop.permute.xlu0 %1689 }
 0x38b   : > { %14534 = vmatprep.subr.mxu1 %v1690_v50 }
 0x38c   : > { %14513 = vmatpush3.xpose.msk.msra.mxu0 %vm1012_vm0, %v1434_v49  ;;  %14535 = vmatpush3.msra.mxu1 %v1690_v50  ;;  %v1430_v53 = vpop.permute.xlu1 %1429 }
 0x38d   : > { %14514 = vmatprep.subr.msk.mxu0 %vm1012_vm0, %v1432_v46 }
 0x38e   : > { %v1682_v60 = vpop.permute.xlu0 %1681 }
 0x390   : > { %14515 = vmatpush3.xpose.msk.msra.mxu0 %vm1012_vm0, %v1432_v46  ;;  %v1426_v54 = vpop.permute.xlu1 %1425 }
 0x391   : > { %14516 = vmatprep.subr.msk.mxu0 %vm1012_vm0, %v1430_v53 }
 0x392   : > { %v1678_v63 = vpop.permute.xlu0 %1677 }
 0x394   : > { %14517 = vmatpush3.xpose.msk.msra.mxu0 %vm1012_vm0, %v1430_v53  ;;  %v1686_v55 = vpop.permute.xlu1 %1685 }
 0x395   : > { %14518 = vmatprep.subr.msk.mxu0 %vm1012_vm0, %v1428_v48 }
 0x396   : > { %v16455_v0 = vpop.permute.xlu0 %1859 }
 0x398   : > { %14519 = vmatpush3.xpose.msk.msra.mxu0 %vm1012_vm0, %v1428_v48  ;;  %v1684_v56 = vpop.permute.xlu1 %1683 }
 0x399   : > { %14520 = vmatprep.subr.msk.mxu0 %vm1012_vm0, %v1426_v54 }
 0x39c   : > { %14521 = vmatpush3.xpose.msk.msra.mxu0 %vm1012_vm0, %v1426_v54  ;;  %v1680_v57 = vpop.permute.xlu1 %1679 }
 0x39f   : > { %14523 = vmatmul.mubr.msk.f32.vlgmr.msra.gmra.mxu0 %vm1012_vm0, %v16402_v39 }
 0x3a0   : > { %14525 = vmatprep.mubr.msk.f32.mxu0 %vm1012_vm0, %v16409_v41  ;;  %v1676_v58 = vpop.permute.xlu1 %1675 }
 0x3a3   : > { %14526 = vmatmul.mubr.msk.f32.gmra.mxu0 %vm1012_vm0, %v16396_v37 }
 0x3a4   : > { %14528 = vmatprep.mubr.msk.f32.mxu0 %vm1012_vm0, %v16405_v40  ;;  %v1688_v59 = vpop.permute.xlu1 %1687 }
 0x3a5   : > { %14536 = vmatprep.subr.mxu1 %v1688_v59 }
 0x3a6   : > { %14537 = vmatpush3.msra.mxu1 %v1688_v59 }
 0x3a7   : > { %14529 = vmatmul.mubr.msk.f32.gmra.mxu0 %vm1012_vm0, %v16399_v38  ;;  %14538 = vmatprep.subr.mxu1 %v1686_v55 }
 0x3a8   : > { %14531 = vmatprep.mubr.msk.f32.mxu0 %vm1012_vm0, %v16393_v35  ;;  %14539 = vmatpush3.msra.mxu1 %v1686_v55  ;;  %v16471_v24 = vpop.permute.xlu1 %1857 }
 0x3a9   : > { %14540 = vmatprep.subr.mxu1 %v1684_v56 }
 0x3aa   : > { %14541 = vmatpush3.msra.mxu1 %v1684_v56 }
 0x3ab   : > { %14532 = vmatmul.mubr.msk.f32.gmra.mxu0 %vm1012_vm0, %v16391_v33  ;;  %14542 = vmatprep.subr.mxu1 %v1682_v60 }
 0x3ac   : > { %14543 = vmatpush3.msra.mxu1 %v1682_v60 }
 0x3ad   : > { %14544 = vmatprep.subr.mxu1 %v1680_v57 }
 0x3ae   : > { %14545 = vmatpush3.msra.mxu1 %v1680_v57 }
 0x3af   : > { %14546 = vmatprep.subr.mxu1 %v1678_v63 }
 0x3b0   : > { %14547 = vmatpush3.msra.mxu1 %v1678_v63 }
 0x3b1   : > { %14548 = vmatprep.subr.mxu1 %v1676_v58 }
 0x3b2   : > { %14549 = vmatpush3.msra.mxu1 %v1676_v58 }
 0x3b3   : > { %14562 = vmatprep.subr.msk.mxu1 %vm1012_vm0, %v16455_v0 }
 0x45f   : > { %v14524_v1 = vpop.f32.mrf.mxu0 }
 0x460   : > { %v1579_v2 = vmul.f32 0.35355338, %v14524_v1 }
 0x461   : > { %v1539_v3 = vpop.f32.mrf.mxu0 }
 0x462   : > { %v1578_v4 = vmul.f32 0.35355338, %v1539_v3  ;;  %v1590_v36 = vsel %vm1586_vm2, %v1579_v2, -inf }
 0x463   : > { %1591 = vmax.xlane.f32.xlu1 %v1590_v36  ;;  %v14527_v6 = vpop.f32.mrf.mxu0 }
 0x464   : > { %v1581_v7 = vmul.f32 0.35355338, %v14527_v6  ;;  %v1587_v8 = vsel %vm1586_vm2, %v1578_v4, -inf }
 0x465   : > { %1588 = vmax.xlane.f32.xlu0 %v1587_v8  ;;  %v1549_v43 = vpop.f32.mrf.mxu0 }
 0x466   : > { %v1580_v9 = vmul.f32 0.35355338, %v1549_v43  ;;  %v1596_v11 = vsel %vm1586_vm2, %v1581_v7, -inf }
 0x467   : > { %v14530_v42 = vpop.f32.mrf.mxu0 }
 0x468   : > { %v1583_v10 = vmul.f32 0.35355338, %v14530_v42  ;;  %v1593_v18 = vsel %vm1586_vm2, %v1580_v9, -inf }
 0x469   : > { %1597 = vmax.xlane.f32.xlu0 %v1596_v11  ;;  %v1559_v13 = vpop.f32.mrf.mxu0 }
 0x46a   : > { %v1602_v51 = vsel %vm1586_vm2, %v1583_v10, -inf  ;;  %v1582_v52 = vmul.f32 0.35355338, %v1559_v13 }
 0x46b   : > { %1603 = vmax.xlane.f32.xlu1 %v1602_v51  ;;  %v14533_v15 = vpop.f32.mrf.mxu0 }
 0x46c   : > { %v1585_v16 = vmul.f32 0.35355338, %v14533_v15  ;;  %v1599_v62 = vsel %vm1586_vm2, %v1582_v52, -inf }
 0x46d   : > { %1594 = vmax.xlane.f32.xlu0 %v1593_v18  ;;  %v1569_v20 = vpop.f32.mrf.mxu0 }
 0x46e   : > { %v1608_v21 = vsel %vm1586_vm2, %v1585_v16, -inf  ;;  %v1584_v61 = vmul.f32 0.35355338, %v1569_v20 }
 0x46f   : > { %1609 = vmax.xlane.f32.xlu1 %v1608_v21 }
 0x470   : > { %v1605_v22 = vsel %vm1586_vm2, %v1584_v61, -inf }
 0x471   : > { %1600 = vmax.xlane.f32.xlu0 %v1599_v62 }
 0x475   : > { %1606 = vmax.xlane.f32.xlu0 %v1605_v22 }
 0x480   : > { %1853 = vrot.lane.b32.xlu1 %v16405_v40, %s16086_s2 }
 0x48b   : > { %1855 = vrot.lane.b32.xlu0 %v16399_v38, %s16086_s2 }
 0x4ec   : > { %v1592_v27 = vpop.xlane.xlu1 %1591 }
 0x4ed   : > { %v1612_v28 = vsub.f32 %v1579_v2, %v1592_v27 }
 0x4ee   : > { %v1589_v5 = vpop.xlane.xlu0 %1588 }
 0x4ef   : > { %v1621_v31 = vmul.f32 1.442695, %v1612_v28  ;;  %v1611_v32 = vsub.f32 %v1578_v4, %v1589_v5 }
 0x4f1   : > { %15797 = vpow2.f32 %v1621_v31  ;;  %v1619_v34 = vmul.f32 1.442695, %v1611_v32 }
 0x4f2   : > { %v1598_v48 = vpop.xlane.xlu0 %1597 }
 0x4f3   : > { %15799 = vpow2.f32 %v1619_v34  ;;  %v1614_v53 = vsub.f32 %v1581_v7, %v1598_v48 }
 0x4f4   : > { %v1604_v50 = vpop.xlane.xlu1 %1603 }
 0x4f5   : > { %v1625_v56 = vmul.f32 1.442695, %v1614_v53  ;;  %v1616_v57 = vsub.f32 %v1583_v10, %v1604_v50 }
 0x4f6   : > { %v1595_v49 = vpop.xlane.xlu0 %1594 }
 0x4f7   : > { %v1613_v55 = vsub.f32 %v1580_v9, %v1595_v49  ;;  %15801 = vpow2.f32 %v1625_v56  ;;  %v1629_v1 = vmul.f32 1.442695, %v1616_v57 }
 0x4f8   : > { %v1610_v58 = vpop.xlane.xlu1 %1609 }
 0x4f9   : > { %v1623_v59 = vmul.f32 1.442695, %v1613_v55  ;;  %v1618_v2 = vsub.f32 %v1585_v16, %v1610_v58 }
 0x4fa   : > { %v1601_v54 = vpop.xlane.xlu0 %1600 }
 0x4fb   : > { %v1615_v60 = vsub.f32 %v1582_v52, %v1601_v54  ;;  %15803 = vpow2.f32 %v1623_v59  ;;  %v1633_v36 = vmul.f32 1.442695, %v1618_v2 }
 0x4fc   : > { %15805 = vpow2.f32 %v1629_v1  ;;  %v1854_v18 = vpop.permute.xlu1 %1853 }
 0x4fd   : > { %v1627_v3 = vmul.f32 1.442695, %v1615_v60 }
 0x4fe   : > { %v16473_v44 = vpop.eup %15797  ;;  %v1607_v63 = vpop.xlane.xlu0 %1606 }
 0x4ff   : > { %v1638_v45 = vsel %vm1586_vm2, %v16473_v44, 0.0  ;;  %v1617_v4 = vsub.f32 %v1584_v61, %v1607_v63  ;;  %15807 = vpow2.f32 %v1627_v3 }
 0x500   : > { %v16477_v46 = vpop.eup %15799  ;;  %1639 = vadd.xlane.f32.xlu1 %v1638_v45  ;;  %15809 = vpow2.f32 %v1633_v36 }
 0x501   : > { %v1635_v47 = vsel %vm1586_vm2, %v16477_v46, 0.0  ;;  %v1631_v6 = vmul.f32 1.442695, %v1617_v4 }
 0x502   : > { %1636 = vadd.xlane.f32.xlu0 %v1635_v47  ;;  %v1856_v20 = vpop.permute.xlu0 %1855 }
 0x503   : > { %15811 = vpow2.f32 %v1631_v6 }
 0x504   : > { %v16485_v7 = vpop.eup %15801 }
 0x505   : > { %v1644_v43 = vsel %vm1586_vm2, %v16485_v7, 0.0 }
 0x508   : > { %v16487_v8 = vpop.eup %15803 }
 0x509   : > { %v16491_v42 = vpop.eup %15805  ;;  %v1641_v9 = vsel %vm1586_vm2, %v16487_v8, 0.0 }
 0x50a   : > { %v1650_v11 = vsel %vm1586_vm2, %v16491_v42, 0.0 }
 0x50c   : > { %v16495_v10 = vpop.eup %15807 }
 0x50d   : > { %v16499_v13 = vpop.eup %15809  ;;  %v1647_v51 = vsel %vm1586_vm2, %v16495_v10, 0.0 }
 0x50e   : > { %v1656_v52 = vsel %vm1586_vm2, %v16499_v13, 0.0 }
 0x510   : > { %v16503_v15 = vpop.eup %15811 }
 0x511   : > { %1849 = vrot.lane.b32.xlu1 %v16409_v41, %s16086_s2  ;;  %v1653_v16 = vsel %vm1586_vm2, %v16503_v15, 0.0 }
 0x518   : > { %1851 = vrot.lane.b32.xlu0 %v16396_v37, %s16086_s2 }
 0x535   : > { %1645 = vadd.xlane.f32.xlu1 %v1644_v43  ;;  %v1828_v43 = vld [vmem:[%s16140_s3] sm:$0xff] }
 0x537   : > { %1642 = vadd.xlane.f32.xlu0 %v1641_v9 }
 0x539   : > { %1651 = vadd.xlane.f32.xlu1 %v1650_v11 }
 0x53b   : > { %1648 = vadd.xlane.f32.xlu0 %v1647_v51 }
 0x53d   : > { %1657 = vadd.xlane.f32.xlu1 %v1656_v52 }
 0x53f   : > { %1654 = vadd.xlane.f32.xlu0 %v1653_v16 }
 0x54e   : > { %1845 = vrot.lane.b32.xlu1 %v16387_v26, %s16086_s2 }
 0x552   : > { %1831 = vrot.lane.b32.xlu1 %v16402_v39, %s16087_s7 }
 0x555   : > { %1847 = vrot.lane.b32.xlu0 %v16402_v39, %s16086_s2  ;;  %s19080_s2 = sld [smem:[#allocation7_spill]] }
 0x556   : > { %1835 = vrot.lane.b32.xlu1 %v16396_v37, %s16087_s7 }
 0x559   : > { %1829 = vrot.lane.b32.xlu0 %v16387_v26, %s16087_s7 }
 0x55a   : > { %1839 = vrot.lane.b32.xlu1 %v16399_v38, %s16087_s7 }
 0x55d   : > { %1833 = vrot.lane.b32.xlu0 %v16409_v41, %s16087_s7 }
 0x55e   : > { %1843 = vrot.lane.b32.xlu1 %v16391_v33, %s16087_s7 }
 0x561   : > { %1837 = vrot.lane.b32.xlu0 %v16405_v40, %s16087_s7 }
 0x562   : > { %2106 = vrot.lane.b32.xlu1 %v16393_v35, %s16088_s10 }
 0x565   : > { %1841 = vrot.lane.b32.xlu0 %v16393_v35, %s16087_s7  ;;  %s19081_s7 = sld [smem:[#allocation10_spill]] }
 0x569   : > { %2108 = vrot.lane.b32.xlu0 %v16391_v33, %s16088_s10 }
 0x589   : > { %v1640_v21 = vpop.xlane.xlu1 %1639 }
 0x58a   : > { %15813 = vrcp.f32 %v1640_v21 }
 0x58b   : > { %v1637_v61 = vpop.xlane.xlu0 %1636 }
 0x58c   : > { %15815 = vrcp.f32 %v1637_v61 }
 0x58d   : > { %v1850_v31 = vpop.permute.xlu1 %1849 }
 0x58f   : > { %v1852_v5 = vpop.permute.xlu0 %1851 }
 0x597   : > { %v15814_v62 = vpop.eup %15813 }
 0x598   : > { %v1662_v28 = vmul.f32 %v15814_v62, %v16473_v44 }
 0x599   : > { %v15816_v22 = vpop.eup %15815 }
 0x59a   : > { %v1660_v27 = vmul.f32 %v15816_v22, %v16477_v46 }
 0x59c   : > { %14550 = vmatprep.mubr.msk.f32.mxu1 %vm1586_vm2, %v1660_v27 }
 0x59d   : > { %14551 = vmatmul.mubr.msk.f32.vlgmr.msra.gmra.mxu1 %vm1586_vm2, %v1662_v28 }
 0x59e   : > { %14563 = vmatpush3.xpose.msk.msra.mxu1 %vm1012_vm0, %v16455_v0 }
 0x59f   : > { %14564 = vmatprep.subr.msk.mxu1 %vm1012_vm0, %v16471_v24 }
 0x5a2   : > { %14565 = vmatpush3.xpose.msk.msra.mxu1 %vm1012_vm0, %v16471_v24 }
 0x5a3   : > { %14566 = vmatprep.subr.msk.mxu1 %vm1012_vm0, %v1856_v20 }
 0x5a6   : > { %14567 = vmatpush3.xpose.msk.msra.mxu1 %vm1012_vm0, %v1856_v20 }
 0x5a7   : > { %14568 = vmatprep.subr.msk.mxu1 %vm1012_vm0, %v1854_v18 }
 0x5aa   : > { %14569 = vmatpush3.xpose.msk.msra.mxu1 %vm1012_vm0, %v1854_v18 }
 0x5ab   : > { %14570 = vmatprep.subr.msk.mxu1 %vm1012_vm0, %v1852_v5 }
 0x5ae   : > { %14571 = vmatpush3.xpose.msk.msra.mxu1 %vm1012_vm0, %v1852_v5 }
 0x5af   : > { %14572 = vmatprep.subr.msk.mxu1 %vm1012_vm0, %v1850_v31 }
 0x5b2   : > { %14573 = vmatpush3.xpose.msk.msra.mxu1 %vm1012_vm0, %v1850_v31 }
 0x5be   : > { %v1646_v0 = vpop.xlane.xlu1 %1645 }
 0x5bf   : > { %15817 = vrcp.f32 %v1646_v0 }
 0x5c0   : > { %v1643_v24 = vpop.xlane.xlu0 %1642 }
 0x5c1   : > { %15819 = vrcp.f32 %v1643_v24 }
 0x5c2   : > { %v1652_v32 = vpop.xlane.xlu1 %1651 }
 0x5c3   : > { %15821 = vrcp.f32 %v1652_v32 }
 0x5c4   : > { %v1649_v34 = vpop.xlane.xlu0 %1648 }
 0x5c5   : > { %15823 = vrcp.f32 %v1649_v34 }
 0x5c6   : > { %v1658_v44 = vpop.xlane.xlu1 %1657 }
 0x5c7   : > { %15825 = vrcp.f32 %v1658_v44 }
 0x5c8   : > { %v1655_v45 = vpop.xlane.xlu0 %1654 }
 0x5c9   : > { %15827 = vrcp.f32 %v1655_v45 }
 0x5ca   : > { %v1846_v46 = vpop.permute.xlu1 %1845 }
 0x5cc   : > { %v1848_v47 = vpop.permute.xlu0 %1847  ;;  %v15818_v48 = vpop.eup %15817 }
 0x5cd   : > { %14574 = vmatprep.subr.msk.mxu1 %vm1012_vm0, %v1848_v47  ;;  %v1666_v55 = vmul.f32 %v15818_v48, %v16485_v7 }
 0x5ce   : > { %v15820_v49 = vpop.eup %15819  ;;  %14575 = vmatpush3.xpose.msk.msra.mxu1 %vm1012_vm0, %v1848_v47  ;;  %v1832_v50 = vpop.permute.xlu1 %1831 }
 0x5cf   : > { %14576 = vmatprep.subr.msk.mxu1 %vm1012_vm0, %v1846_v46  ;;  %v1664_v53 = vmul.f32 %v15820_v49, %v16487_v8 }
 0x5d0   : > { %v1830_v54 = vpop.permute.xlu0 %1829  ;;  %v15822_v56 = vpop.eup %15821 }
 0x5d1   : > { %14553 = vmatprep.mubr.msk.f32.mxu1 %vm1586_vm2, %v1664_v53  ;;  %v1670_v63 = vmul.f32 %v15822_v56, %v16491_v42 }
 0x5d2   : > { %v15824_v57 = vpop.eup %15823  ;;  %14554 = vmatmul.mubr.msk.f32.gmra.mxu1 %vm1586_vm2, %v1666_v55  ;;  %v1836_v58 = vpop.permute.xlu1 %1835 }
 0x5d3   : > { %14577 = vmatpush3.xpose.msk.msra.mxu1 %vm1012_vm0, %v1846_v46  ;;  %v1668_v59 = vmul.f32 %v15824_v57, %v16495_v10 }
 0x5d4   : > { %v1834_v60 = vpop.permute.xlu0 %1833  ;;  %v15826_v1 = vpop.eup %15825  ;;  %14632 = vmatprep.subr.mxu1 %v1828_v43 }
 0x5d5   : > { %14556 = vmatprep.mubr.msk.f32.mxu1 %vm1586_vm2, %v1668_v59  ;;  %v1674_v6 = vmul.f32 %v15826_v1, %v16499_v13 }
 0x5d6   : > { %v15828_v2 = vpop.eup %15827  ;;  %14557 = vmatmul.mubr.msk.f32.gmra.mxu1 %vm1586_vm2, %v1670_v63  ;;  %v1840_v3 = vpop.permute.xlu1 %1839 }
 0x5d7   : > { %v1672_v4 = vmul.f32 %v15828_v2, %v16503_v15 }
 0x5d8   : > { %v1838_v36 = vpop.permute.xlu0 %1837 }
 0x5d9   : > { %14559 = vmatprep.mubr.msk.f32.mxu1 %vm1586_vm2, %v1672_v4 }
 0x5da   : > { %14560 = vmatmul.mubr.msk.f32.gmra.mxu1 %vm1586_vm2, %v1674_v6  ;;  %v1844_v7 = vpop.permute.xlu1 %1843 }
 0x5db   : > { %14578 = vmatprep.mubr.msk.f32.mxu1 %vm1012_vm0, %v1830_v54 }
 0x5dc   : > { %v1842_v8 = vpop.permute.xlu0 %1841 }
 0x5de   : > { %14579 = vmatmul.mubr.msk.f32.vlgmr.msra.gmra.mxu1 %vm1012_vm0, %v1832_v50  ;;  %v2107_v9 = vpop.permute.xlu1 %2106 }
 0x5df   : > { %14581 = vmatprep.mubr.msk.f32.mxu1 %vm1012_vm0, %v1834_v60  ;;  %14633 = vmatpush3.msra.mxu1 %v1828_v43 }
 0x5e0   : > { %v2109_v42 = vpop.permute.xlu0 %2108 }
 0x5e1   : > { %14590 = vmatprep.subr.mxu0 %v2109_v42 }
 0x5e2   : > { %14582 = vmatmul.mubr.msk.f32.gmra.mxu1 %vm1012_vm0, %v1836_v58  ;;  %14591 = vmatpush3.msra.mxu0 %v2109_v42 }
 0x5e3   : > { %14584 = vmatprep.mubr.msk.f32.mxu1 %vm1012_vm0, %v1838_v36  ;;  %14592 = vmatprep.subr.mxu0 %v2107_v9 }
 0x5e4   : > { %14593 = vmatpush3.msra.mxu0 %v2107_v9 }
 0x5e6   : > { %14585 = vmatmul.mubr.msk.f32.gmra.mxu1 %vm1012_vm0, %v1840_v3 }
 0x5e7   : > { %14587 = vmatprep.mubr.msk.f32.mxu1 %vm1012_vm0, %v1842_v8 }
 0x5ea   : > { %14588 = vmatmul.mubr.msk.f32.gmra.mxu1 %vm1012_vm0, %v1844_v7 }
 0x65d   : > { %v14552_v10 = vpop.f32.mrf.mxu1 }
 0x65f   : > { %v1789_v11 = vpop.f32.mrf.mxu1 }
 0x660   : > { %14634 = vmatprep.mubr.msk.f32.mxu1 %vm1012_vm0, %v1789_v11 }
 0x661   : > { %14635 = vmatmul.mubr.msk.f32.vlgmr.msra.gmra.mxu1 %vm1012_vm0, %v14552_v10 }
 0x692   : > { %v14555_v13 = vpop.f32.mrf.mxu1 }
 0x694   : > { %v1799_v51 = vpop.f32.mrf.mxu1 }
 0x695   : > { %14637 = vmatprep.mubr.msk.f32.mxu1 %vm1012_vm0, %v1799_v51 }
 0x696   : > { %v14558_v15 = vpop.f32.mrf.mxu1  ;;  %14638 = vmatmul.mubr.msk.f32.gmra.mxu1 %vm1012_vm0, %v14555_v13 }
 0x698   : > { %v1809_v52 = vpop.f32.mrf.mxu1 }
 0x699   : > { %14640 = vmatprep.mubr.msk.f32.mxu1 %vm1012_vm0, %v1809_v52 }
 0x69a   : > { %v14561_v16 = vpop.f32.mrf.mxu1  ;;  %14641 = vmatmul.mubr.msk.f32.gmra.mxu1 %vm1012_vm0, %v14558_v15 }
 0x69c   : > { %v1819_v18 = vpop.f32.mrf.mxu1 }
 0x69d   : > { %14643 = vmatprep.mubr.msk.f32.mxu1 %vm1012_vm0, %v1819_v18 }
 0x69e   : > { %v14580_v20 = vpop.f32.mrf.mxu1  ;;  %14644 = vmatmul.mubr.msk.f32.gmra.mxu1 %vm1012_vm0, %v14561_v16 }
 0x69f   : > { %v1999_v21 = vmul.f32 0.35355338, %v14580_v20 }
 0x6a0   : > { %v1959_v61 = vpop.f32.mrf.mxu1 }
 0x6a1   : > { %v1998_v62 = vmul.f32 0.35355338, %v1959_v61  ;;  %v2009_v22 = vsel %vm1586_vm2, %v1999_v21, -inf }
 0x6a2   : > { %2010 = vmax.xlane.f32.xlu1 %v2009_v22  ;;  %v14583_v27 = vpop.f32.mrf.mxu1 }
 0x6a3   : > { %v2001_v28 = vmul.f32 0.35355338, %v14583_v27  ;;  %v2006_v5 = vsel %vm1586_vm2, %v1998_v62, -inf }
 0x6a4   : > { %2007 = vmax.xlane.f32.xlu0 %v2006_v5  ;;  %v1969_v31 = vpop.f32.mrf.mxu1 }
 0x6a5   : > { %v2000_v24 = vmul.f32 0.35355338, %v1969_v31  ;;  %v2015_v34 = vsel %vm1586_vm2, %v2001_v28, -inf }
 0x6a6   : > { %v14586_v0 = vpop.f32.mrf.mxu1 }
 0x6a7   : > { %v16578_v32 = vmul.f32 0.35355338, %v14586_v0  ;;  %v2012_v49 = vsel %vm1586_vm2, %v2000_v24, -inf }
 0x6a8   : > { %2016 = vmax.xlane.f32.xlu0 %v2015_v34  ;;  %v1979_v44 = vpop.f32.mrf.mxu1 }
 0x6a9   : > { %v2021_v45 = vsel %vm1586_vm2, %v16578_v32, -inf  ;;  %v2002_v47 = vmul.f32 0.35355338, %v1979_v44 }
 0x6aa   : > { %2022 = vmax.xlane.f32.xlu1 %v2021_v45  ;;  %v14589_v46 = vpop.f32.mrf.mxu1 }
 0x6ab   : > { %v2005_v48 = vmul.f32 0.35355338, %v14589_v46  ;;  %v2018_v53 = vsel %vm1586_vm2, %v2002_v47, -inf }
 0x6ac   : > { %2013 = vmax.xlane.f32.xlu0 %v2012_v49  ;;  %v1989_v54 = vpop.f32.mrf.mxu1 }
 0x6ad   : > { %v2027_v50 = vsel %vm1586_vm2, %v2005_v48, -inf  ;;  %v2004_v55 = vmul.f32 0.35355338, %v1989_v54 }
 0x6ae   : > { %2028 = vmax.xlane.f32.xlu1 %v2027_v50 }
 0x6af   : > { %v2024_v56 = vsel %vm1586_vm2, %v2004_v55, -inf }
 0x6b0   : > { %2019 = vmax.xlane.f32.xlu0 %v2018_v53 }
 0x6bf   : > { %2104 = vrot.lane.b32.xlu1 %v16399_v38, %s16088_s10 }
 0x6c6   : > { %2102 = vrot.lane.b32.xlu0 %v16405_v40, %s16088_s10 }
 0x6ca   : > { %2100 = vrot.lane.b32.xlu0 %v16396_v37, %s16088_s10 }
 0x6e9   : > { %2025 = vmax.xlane.f32.xlu0 %v2024_v56 }
 0x72b   : > { %v2011_v57 = vpop.xlane.xlu1 %2010 }
 0x72c   : > { %v2031_v58 = vsub.f32 %v1999_v21, %v2011_v57 }
 0x72d   : > { %v2008_v59 = vpop.xlane.xlu0 %2007 }
 0x72e   : > { %v2040_v60 = vmul.f32 1.442695, %v2031_v58  ;;  %v2030_v63 = vsub.f32 %v1998_v62, %v2008_v59 }
 0x730   : > { %15829 = vpow2.f32 %v2040_v60  ;;  %v2038_v1 = vmul.f32 1.442695, %v2030_v63 }
 0x731   : > { %v2017_v2 = vpop.xlane.xlu0 %2016 }
 0x732   : > { %15831 = vpow2.f32 %v2038_v1  ;;  %v2033_v3 = vsub.f32 %v2001_v28, %v2017_v2 }
 0x733   : > { %v2023_v4 = vpop.xlane.xlu1 %2022 }
 0x734   : > { %v2044_v36 = vmul.f32 1.442695, %v2033_v3  ;;  %v2035_v21 = vsub.f32 %v16578_v32, %v2023_v4 }
 0x735   : > { %v2014_v6 = vpop.xlane.xlu0 %2013 }
 0x736   : > { %15833 = vpow2.f32 %v2044_v36  ;;  %v2032_v16 = vsub.f32 %v2000_v24, %v2014_v6  ;;  %v2048_v62 = vmul.f32 1.442695, %v2035_v21  ;;  %v12968_v6 = vld [vmem:[%s16140_s3 + $0x8] sm:$0xff] }
 0x737   : > { %v2029_v7 = vpop.xlane.xlu1 %2028 }
 0x738   : > { %v2042_v18 = vmul.f32 1.442695, %v2032_v16  ;;  %v2037_v22 = vsub.f32 %v2005_v48, %v2029_v7 }
 0x739   : > { %v2020_v8 = vpop.xlane.xlu0 %2019 }
 0x73a   : > { %v2034_v20 = vsub.f32 %v2002_v47, %v2020_v8  ;;  %15835 = vpow2.f32 %v2042_v18  ;;  %v2052_v27 = vmul.f32 1.442695, %v2037_v22 }
 0x73b   : > { %v2105_v43 = vpop.permute.xlu1 %2104 }
 0x73c   : > { %14594 = vmatprep.subr.mxu0 %v2105_v43  ;;  %v2046_v61 = vmul.f32 1.442695, %v2034_v20 }
 0x73d   : > { %v16593_v42 = vpop.eup %15829  ;;  %v2103_v9 = vpop.permute.xlu0 %2102  ;;  %14595 = vmatpush3.msra.mxu0 %v2105_v43 }
 0x73e   : > { %14596 = vmatprep.subr.mxu0 %v2103_v9  ;;  %v2057_v10 = vsel %vm1586_vm2, %v16593_v42, 0.0  ;;  %15837 = vpow2.f32 %v2046_v61 }
 0x73f   : > { %v16597_v11 = vpop.eup %15831  ;;  %2058 = vadd.xlane.f32.xlu1 %v2057_v10  ;;  %14597 = vmatpush3.msra.mxu0 %v2103_v9  ;;  %15839 = vpow2.f32 %v2048_v62 }
 0x740   : > { %v2054_v13 = vsel %vm1586_vm2, %v16597_v11, 0.0  ;;  %15841 = vpow2.f32 %v2052_v27 }
 0x741   : > { %v2101_v51 = vpop.permute.xlu0 %2100  ;;  %2055 = vadd.xlane.f32.xlu0 %v2054_v13 }
 0x742   : > { %14598 = vmatprep.subr.mxu0 %v2101_v51 }
 0x743   : > { %v16601_v15 = vpop.eup %15833  ;;  %14599 = vmatpush3.msra.mxu0 %v2101_v51 }
 0x744   : > { %v2063_v52 = vsel %vm1586_vm2, %v16601_v15, 0.0 }
 0x745   : > { %2064 = vadd.xlane.f32.xlu0 %v2063_v52 }
 0x747   : > { %v16610_v28 = vpop.eup %15835 }
 0x748   : > { %v2060_v0 = vsel %vm1586_vm2, %v16610_v28, 0.0 }
 0x74b   : > { %v16614_v24 = vpop.eup %15837 }
 0x74c   : > { %v2066_v32 = vsel %vm1586_vm2, %v16614_v24, 0.0  ;;  %v16618_v44 = vpop.eup %15839 }
 0x74d   : > { %v2069_v45 = vsel %vm1586_vm2, %v16618_v44, 0.0  ;;  %v16622_v46 = vpop.eup %15841 }
 0x74e   : > { %v2075_v47 = vsel %vm1586_vm2, %v16622_v46, 0.0 }
 0x750   : > { %2098 = vrot.lane.b32.xlu1 %v16409_v41, %s16088_s10 }
 0x75b   : > { %2096 = vrot.lane.b32.xlu0 %v16402_v39, %s16088_s10 }
 0x772   : > { %v2026_v5 = vpop.xlane.xlu0 %2025 }
 0x773   : > { %v2036_v31 = vsub.f32 %v2004_v55, %v2026_v5 }
 0x774   : > { %2061 = vadd.xlane.f32.xlu1 %v2060_v0 }
 0x775   : > { %v2050_v34 = vmul.f32 1.442695, %v2036_v31 }
 0x777   : > { %15843 = vpow2.f32 %v2050_v34 }
 0x778   : > { %2067 = vadd.xlane.f32.xlu1 %v2066_v32 }
 0x77c   : > { %2070 = vadd.xlane.f32.xlu1 %v2069_v45 }
 0x780   : > { %2076 = vadd.xlane.f32.xlu1 %v2075_v47 }
 0x784   : > { %v16626_v48 = vpop.eup %15843 }
 0x785   : > { %v2072_v49 = vsel %vm1586_vm2, %v16626_v48, 0.0 }
 0x786   : > { %2073 = vadd.xlane.f32.xlu0 %v2072_v49 }
 0x791   : > { %2537 = vrot.lane.b32.xlu1 %v16391_v33, %s16089_s11 }
 0x795   : > { %2535 = vrot.lane.b32.xlu1 %v16393_v35, %s16089_s11 }
 0x799   : > { %2531 = vrot.lane.b32.xlu1 %v16405_v40, %s16089_s11 }
 0x79c   : > { %2094 = vrot.lane.b32.xlu0 %v16387_v26, %s16088_s10  ;;  %s19082_s10 = sld [smem:[#allocation8_spill]] }
 0x79d   : > { %2527 = vrot.lane.b32.xlu1 %v16409_v41, %s16089_s11 }
 0x7a0   : > { %2533 = vrot.lane.b32.xlu0 %v16399_v38, %s16089_s11 }
 0x7a1   : > { %2523 = vrot.lane.b32.xlu1 %v16387_v26, %s16089_s11 }
 0x7a4   : > { %2529 = vrot.lane.b32.xlu0 %v16396_v37, %s16089_s11 }
 0x7a5   : > { %2509 = vrot.lane.b32.xlu1 %v16402_v39, %s16090_s15 }
 0x7a8   : > { %2525 = vrot.lane.b32.xlu0 %v16402_v39, %s16089_s11  ;;  %s19083_s11 = sld [smem:[#allocation9_spill]] }
 0x7a9   : > { %2513 = vrot.lane.b32.xlu1 %v16396_v37, %s16090_s15 }
 0x7ac   : > { %2507 = vrot.lane.b32.xlu0 %v16387_v26, %s16090_s15 }
 0x7ad   : > { %2517 = vrot.lane.b32.xlu1 %v16399_v38, %s16090_s15 }
 0x7b0   : > { %2511 = vrot.lane.b32.xlu0 %v16409_v41, %s16090_s15 }
 0x7b1   : > { %2521 = vrot.lane.b32.xlu1 %v16391_v33, %s16090_s15 }
 0x7b4   : > { %2515 = vrot.lane.b32.xlu0 %v16405_v40, %s16090_s15 }
 0x7b5   : > { %3092 = vrot.lane.b32.xlu1 %v16393_v35, %s16091_s16 }
 0x7b8   : > { %2519 = vrot.lane.b32.xlu0 %v16393_v35, %s16090_s15  ;;  %s19084_s15 = sld [smem:[#allocation12_spill]] }
 0x7b9   : > { %3088 = vrot.lane.b32.xlu1 %v16405_v40, %s16091_s16 }
 0x7bc   : > { %3094 = vrot.lane.b32.xlu0 %v16391_v33, %s16091_s16 }
 0x7bd   : > { %3084 = vrot.lane.b32.xlu1 %v16409_v41, %s16091_s16 }
 0x7c0   : > { %3090 = vrot.lane.b32.xlu0 %v16399_v38, %s16091_s16 }
 0x7c1   : > { %3080 = vrot.lane.b32.xlu1 %v16387_v26, %s16091_s16 }
 0x7c4   : > { %3086 = vrot.lane.b32.xlu0 %v16396_v37, %s16091_s16 }
 0x7c5   : > { %3066 = vrot.lane.b32.xlu1 %v16402_v39, %s16092_s18 }
 0x7c8   : > { %3082 = vrot.lane.b32.xlu0 %v16402_v39, %s16091_s16  ;;  %v2059_v50 = vpop.xlane.xlu1 %2058  ;;  %s19085_s16 = sld [smem:[#allocation13_spill]] }
 0x7c9   : > { %3070 = vrot.lane.b32.xlu1 %v16396_v37, %s16092_s18 }
 0x7ca   : > { %v2056_v53 = vpop.xlane.xlu0 %2055 }
 0x7cb   : > { %15845 = vrcp.f32 %v2056_v53 }
 0x7cc   : > { %3064 = vrot.lane.b32.xlu0 %v16387_v26, %s16092_s18  ;;  %v2099_v54 = vpop.permute.xlu1 %2098  ;;  %15847 = vrcp.f32 %v2059_v50 }
 0x7cd   : > { %3074 = vrot.lane.b32.xlu1 %v16399_v38, %s16092_s18  ;;  %14600 = vmatprep.subr.mxu0 %v2099_v54 }
 0x7ce   : > { %v2065_v55 = vpop.xlane.xlu0 %2064  ;;  %14601 = vmatpush3.msra.mxu0 %v2099_v54 }
 0x7d0   : > { %3068 = vrot.lane.b32.xlu0 %v16409_v41, %s16092_s18 }
 0x7d1   : > { %3078 = vrot.lane.b32.xlu1 %v16391_v33, %s16092_s18 }
 0x7d2   : > { %v2097_v56 = vpop.permute.xlu0 %2096 }
 0x7d3   : > { %14602 = vmatprep.subr.mxu0 %v2097_v56 }
 0x7d4   : > { %3072 = vrot.lane.b32.xlu0 %v16405_v40, %s16092_s18  ;;  %14603 = vmatpush3.msra.mxu0 %v2097_v56 }
 0x7d8   : > { %v15846_v57 = vpop.eup %15845  ;;  %3076 = vrot.lane.b32.xlu0 %v16393_v35, %s16092_s18  ;;  %s19086_s18 = sld [smem:[#allocation14_spill]] }
 0x7d9   : > { %v2079_v58 = vmul.f32 %v15846_v57, %v16597_v11  ;;  %v15848_v3 = vpop.eup %15847 }
 0x7da   : > { %v2081_v7 = vmul.f32 %v15848_v3, %v16593_v42 }
 0x7db   : > { %14606 = vmatprep.mubr.msk.f32.mxu0 %vm1586_vm2, %v2079_v58 }
 0x7fd   : > { %v2062_v59 = vpop.xlane.xlu1 %2061 }
 0x7fe   : > { %15849 = vrcp.f32 %v2062_v59 }
 0x7ff   : > { %15851 = vrcp.f32 %v2065_v55 }
 0x801   : > { %v2068_v60 = vpop.xlane.xlu1 %2067 }
 0x802   : > { %15853 = vrcp.f32 %v2068_v60 }
 0x805   : > { %v2071_v63 = vpop.xlane.xlu1 %2070 }
 0x806   : > { %15855 = vrcp.f32 %v2071_v63 }
 0x809   : > { %v2077_v1 = vpop.xlane.xlu1 %2076 }
 0x80a   : > { %15857 = vrcp.f32 %v2077_v1 }
 0x80b   : > { %v15850_v4 = vpop.eup %15849 }
 0x80c   : > { %v15852_v8 = vpop.eup %15851  ;;  %v2083_v43 = vmul.f32 %v15850_v4, %v16610_v28 }
 0x80d   : > { %v2538_v10 = vpop.permute.xlu1 %2537  ;;  %v2085_v11 = vmul.f32 %v15852_v8, %v16601_v15 }
 0x80f   : > { %v2074_v2 = vpop.xlane.xlu0 %2073  ;;  %v15854_v9 = vpop.eup %15853 }
 0x810   : > { %15859 = vrcp.f32 %v2074_v2  ;;  %v2087_v42 = vmul.f32 %v15854_v9, %v16614_v24 }
 0x811   : > { %v2536_v61 = vpop.permute.xlu1 %2535 }
 0x813   : > { %v2095_v36 = vpop.permute.xlu0 %2094  ;;  %v15856_v13 = vpop.eup %15855 }
 0x814   : > { %14604 = vmatprep.subr.mxu0 %v2095_v36  ;;  %v2089_v52 = vmul.f32 %v15856_v13, %v16618_v44 }
 0x815   : > { %14605 = vmatpush3.msra.mxu0 %v2095_v36  ;;  %v2532_v22 = vpop.permute.xlu1 %2531 }
 0x816   : > { %14607 = vmatmul.mubr.msk.f32.vlgmr.msra.gmra.mxu0 %vm1586_vm2, %v2081_v7  ;;  %14618 = vmatprep.subr.mxu0 %v12968_v6 }
 0x817   : > { %14609 = vmatprep.mubr.msk.f32.mxu0 %vm1586_vm2, %v2083_v43  ;;  %14619 = vmatpush3.msra.mxu0 %v12968_v6  ;;  %v15858_v51 = vpop.eup %15857  ;;  %v2534_v15 = vpop.permute.xlu0 %2533 }
 0x818   : > { %14646 = vmatprep.subr.msk.mxu0 %vm1012_vm0, %v2538_v10  ;;  %v2093_v20 = vmul.f32 %v15858_v51, %v16622_v46 }
 0x819   : > { %v2528_v5 = vpop.permute.xlu1 %2527 }
 0x81a   : > { %14610 = vmatmul.mubr.msk.f32.gmra.mxu0 %vm1586_vm2, %v2085_v11 }
 0x81b   : > { %14612 = vmatprep.mubr.msk.f32.mxu0 %vm1586_vm2, %v2087_v42  ;;  %v2530_v21 = vpop.permute.xlu0 %2529 }
 0x81d   : > { %v15860_v16 = vpop.eup %15859  ;;  %v2524_v32 = vpop.permute.xlu1 %2523 }
 0x81e   : > { %14613 = vmatmul.mubr.msk.f32.gmra.mxu0 %vm1586_vm2, %v2089_v52  ;;  %v2091_v18 = vmul.f32 %v15860_v16, %v16626_v48 }
 0x81f   : > { %v2526_v62 = vpop.permute.xlu0 %2525 }
 0x820   : > { %14615 = vmatprep.mubr.msk.f32.mxu0 %vm1586_vm2, %v2091_v18 }
 0x821   : > { %v2510_v48 = vpop.permute.xlu1 %2509 }
 0x822   : > { %14616 = vmatmul.mubr.msk.f32.gmra.mxu0 %vm1586_vm2, %v2093_v20 }
 0x823   : > { %v2508_v27 = vpop.permute.xlu0 %2507 }
 0x825   : > { %v2514_v53 = vpop.permute.xlu1 %2513 }
 0x827   : > { %v2512_v24 = vpop.permute.xlu0 %2511 }
 0x829   : > { %v2518_v55 = vpop.permute.xlu1 %2517 }
 0x82b   : > { %v2516_v46 = vpop.permute.xlu0 %2515 }
 0x82d   : > { %v2522_v57 = vpop.permute.xlu1 %2521 }
 0x82f   : > { %v2520_v50 = vpop.permute.xlu0 %2519 }
 0x831   : > { %v3093_v59 = vpop.permute.xlu1 %3092 }
 0x833   : > { %v3095_v54 = vpop.permute.xlu0 %3094 }
 0x835   : > { %v3089_v63 = vpop.permute.xlu1 %3088 }
 0x837   : > { %v3091_v56 = vpop.permute.xlu0 %3090 }
 0x839   : > { %v3085_v2 = vpop.permute.xlu1 %3084 }
 0x83b   : > { %v3087_v58 = vpop.permute.xlu0 %3086 }
 0x83d   : > { %v3081_v3 = vpop.permute.xlu1 %3080 }
 0x83f   : > { %v3083_v60 = vpop.permute.xlu0 %3082 }
 0x841   : > { %v3067_v4 = vpop.permute.xlu1 %3066 }
 0x843   : > { %v3065_v1 = vpop.permute.xlu0 %3064 }
 0x845   : > { %v3071_v6 = vpop.permute.xlu1 %3070 }
 0x847   : > { %v3069_v36 = vpop.permute.xlu0 %3068 }
 0x849   : > { %v3075_v8 = vpop.permute.xlu1 %3074 }
 0x84b   : > { %v3073_v7 = vpop.permute.xlu0 %3072 }
 0x84d   : > { %v3079_v9 = vpop.permute.xlu1 %3078 }
 0x84f   : > { %v3077_v43 = vpop.permute.xlu0 %3076 }
 0x8d6   : > { %v14608_v28 = vpop.f32.mrf.mxu0 }
 0x8d8   : > { %v2208_v31 = vpop.f32.mrf.mxu0 }
 0x8d9   : > { %14620 = vmatprep.mubr.msk.f32.mxu0 %vm1012_vm0, %v2208_v31 }
 0x8da   : > { %v14611_v0 = vpop.f32.mrf.mxu0  ;;  %14621 = vmatmul.mubr.msk.f32.vlgmr.msra.gmra.mxu0 %vm1012_vm0, %v14608_v28 }
 0x8db   : > { %14647 = vmatpush3.xpose.msk.msra.mxu0 %vm1012_vm0, %v2538_v10 }
 0x8dc   : > { %14648 = vmatprep.subr.msk.mxu0 %vm1012_vm0, %v2536_v61  ;;  %v2218_v34 = vpop.f32.mrf.mxu0 }
 0x8dd   : > { %14623 = vmatprep.mubr.msk.f32.mxu0 %vm1012_vm0, %v2218_v34 }
 0x8de   : > { %v14614_v44 = vpop.f32.mrf.mxu0  ;;  %14624 = vmatmul.mubr.msk.f32.gmra.mxu0 %vm1012_vm0, %v14611_v0 }
 0x8df   : > { %14649 = vmatpush3.xpose.msk.msra.mxu0 %vm1012_vm0, %v2536_v61 }
 0x8e0   : > { %14650 = vmatprep.subr.msk.mxu0 %vm1012_vm0, %v2534_v15  ;;  %v2228_v45 = vpop.f32.mrf.mxu0 }
 0x8e1   : > { %14626 = vmatprep.mubr.msk.f32.mxu0 %vm1012_vm0, %v2228_v45 }
 0x8e2   : > { %v14617_v47 = vpop.f32.mrf.mxu0  ;;  %14627 = vmatmul.mubr.msk.f32.gmra.mxu0 %vm1012_vm0, %v14614_v44 }
 0x8e3   : > { %14651 = vmatpush3.xpose.msk.msra.mxu0 %vm1012_vm0, %v2534_v15 }
 0x8e4   : > { %14652 = vmatprep.subr.msk.mxu0 %vm1012_vm0, %v2532_v22  ;;  %v2238_v49 = vpop.f32.mrf.mxu0 }
 0x8e5   : > { %14629 = vmatprep.mubr.msk.f32.mxu0 %vm1012_vm0, %v2238_v49 }
 0x8e6   : > { %14630 = vmatmul.mubr.msk.f32.gmra.mxu0 %vm1012_vm0, %v14617_v47 }
 0x8e7   : > { %14653 = vmatpush3.xpose.msk.msra.mxu0 %vm1012_vm0, %v2532_v22  ;;  %14662 = vmatprep.mubr.msk.f32.mxu0 %vm1012_vm0, %v2508_v27 }
 0x8e8   : > { %14654 = vmatprep.subr.msk.mxu0 %vm1012_vm0, %v2530_v21 }
 0x8eb   : > { %14655 = vmatpush3.xpose.msk.msra.mxu0 %vm1012_vm0, %v2530_v21 }
 0x8ec   : > { %14656 = vmatprep.subr.msk.mxu0 %vm1012_vm0, %v2528_v5 }
 0x8ef   : > { %14657 = vmatpush3.xpose.msk.msra.mxu0 %vm1012_vm0, %v2528_v5 }
 0x8f0   : > { %14658 = vmatprep.subr.msk.mxu0 %vm1012_vm0, %v2526_v62 }
 0x8f3   : > { %14659 = vmatpush3.xpose.msk.msra.mxu0 %vm1012_vm0, %v2526_v62 }
 0x8f4   : > { %14660 = vmatprep.subr.msk.mxu0 %vm1012_vm0, %v2524_v32 }
 0x8f7   : > { %14661 = vmatpush3.xpose.msk.msra.mxu0 %vm1012_vm0, %v2524_v32 }
 0x8f8   : > { %14716 = vmatprep.subr.msk.mxu0 %vm1012_vm0, %v3095_v54 }
 0x8fa   : > { %14663 = vmatmul.mubr.msk.f32.vlgmr.msra.gmra.mxu0 %vm1012_vm0, %v2510_v48 }
 0x8fb   : > { %14665 = vmatprep.mubr.msk.f32.mxu0 %vm1012_vm0, %v2512_v24  ;;  %14717 = vmatpush3.xpose.msk.msra.mxu0 %vm1012_vm0, %v3095_v54 }
 0x8fc   : > { %14718 = vmatprep.subr.msk.mxu0 %vm1012_vm0, %v3093_v59 }
 0x8fe   : > { %14666 = vmatmul.mubr.msk.f32.gmra.mxu0 %vm1012_vm0, %v2514_v53 }
 0x8ff   : > { %14668 = vmatprep.mubr.msk.f32.mxu0 %vm1012_vm0, %v2516_v46  ;;  %14719 = vmatpush3.xpose.msk.msra.mxu0 %vm1012_vm0, %v3093_v59 }
 0x900   : > { %14720 = vmatprep.subr.msk.mxu0 %vm1012_vm0, %v3091_v56 }
 0x902   : > { %14669 = vmatmul.mubr.msk.f32.gmra.mxu0 %vm1012_vm0, %v2518_v55 }
 0x903   : > { %14671 = vmatprep.mubr.msk.f32.mxu0 %vm1012_vm0, %v2520_v50  ;;  %14721 = vmatpush3.xpose.msk.msra.mxu0 %vm1012_vm0, %v3091_v56 }
 0x904   : > { %14722 = vmatprep.subr.msk.mxu0 %vm1012_vm0, %v3089_v63 }
 0x906   : > { %14672 = vmatmul.mubr.msk.f32.gmra.mxu0 %vm1012_vm0, %v2522_v57 }
 0x907   : > { %14723 = vmatpush3.xpose.msk.msra.mxu0 %vm1012_vm0, %v3089_v63  ;;  %14732 = vmatprep.mubr.msk.f32.mxu0 %vm1012_vm0, %v3065_v1 }
 0x908   : > { %14724 = vmatprep.subr.msk.mxu0 %vm1012_vm0, %v3087_v58 }
 0x90b   : > { %14725 = vmatpush3.xpose.msk.msra.mxu0 %vm1012_vm0, %v3087_v58 }
 0x90c   : > { %14726 = vmatprep.subr.msk.mxu0 %vm1012_vm0, %v3085_v2 }
 0x90f   : > { %14727 = vmatpush3.xpose.msk.msra.mxu0 %vm1012_vm0, %v3085_v2 }
 0x910   : > { %14728 = vmatprep.subr.msk.mxu0 %vm1012_vm0, %v3083_v60 }
 0x913   : > { %14729 = vmatpush3.xpose.msk.msra.mxu0 %vm1012_vm0, %v3083_v60 }
 0x914   : > { %14730 = vmatprep.subr.msk.mxu0 %vm1012_vm0, %v3081_v3 }
 0x917   : > { %14731 = vmatpush3.xpose.msk.msra.mxu0 %vm1012_vm0, %v3081_v3 }
 0x91a   : > { %14733 = vmatmul.mubr.msk.f32.vlgmr.msra.gmra.mxu0 %vm1012_vm0, %v3067_v4 }
 0x91b   : > { %14735 = vmatprep.mubr.msk.f32.mxu0 %vm1012_vm0, %v3069_v36 }
 0x91e   : > { %14736 = vmatmul.mubr.msk.f32.gmra.mxu0 %vm1012_vm0, %v3071_v6 }
 0x91f   : > { %14738 = vmatprep.mubr.msk.f32.mxu0 %vm1012_vm0, %v3073_v7 }
 0x922   : > { %14739 = vmatmul.mubr.msk.f32.gmra.mxu0 %vm1012_vm0, %v3075_v8 }
 0x923   : > { %14741 = vmatprep.mubr.msk.f32.mxu0 %vm1012_vm0, %v3077_v43 }
 0x926   : > { %14742 = vmatmul.mubr.msk.f32.gmra.mxu0 %vm1012_vm0, %v3079_v9 }
 0x99a   : > { %v16737_v10 = vpop.f32.mrf.mxu0 }
 0x99c   : > { %v16739_v11 = vpop.f32.mrf.mxu0 }
 0x99e   : > { %v16741_v13 = vpop.f32.mrf.mxu0 }
 0x9a0   : > { %v16743_v42 = vpop.f32.mrf.mxu0 }
 0x9a2   : > { %v16745_v51 = vpop.f32.mrf.mxu0 }
 0x9a4   : > { %v16747_v52 = vpop.f32.mrf.mxu0 }
 0x9a6   : > { %v16749_v16 = vpop.f32.mrf.mxu0 }
 0x9a8   : > { %v16751_v18 = vpop.f32.mrf.mxu0 }
 0x9ba   : > { %v14664_v20 = vpop.f32.mrf.mxu0 }
 0x9bb   : > { %v2677_v15 = vmul.f32 0.35355338, %v14664_v20 }
 0x9bc   : > { %v2637_v21 = vpop.f32.mrf.mxu0 }
 0x9bd   : > { %v2676_v61 = vmul.f32 0.35355338, %v2637_v21  ;;  %v2687_v62 = vsel %vm1586_vm2, %v2677_v15, -inf }
 0x9be   : > { %2688 = vmax.xlane.f32.xlu1 %v2687_v62  ;;  %v14667_v22 = vpop.f32.mrf.mxu0 }
 0x9bf   : > { %v2679_v27 = vmul.f32 0.35355338, %v14667_v22  ;;  %v2684_v28 = vsel %vm1586_vm2, %v2676_v61, -inf }
 0x9c0   : > { %2685 = vmax.xlane.f32.xlu0 %v2684_v28  ;;  %v2647_v5 = vpop.f32.mrf.mxu0 }
 0x9c1   : > { %v2678_v0 = vmul.f32 0.35355338, %v2647_v5  ;;  %v2693_v34 = vsel %vm1586_vm2, %v2679_v27, -inf }
 0x9c2   : > { %v14670_v31 = vpop.f32.mrf.mxu0 }
 0x9c3   : > { %v2681_v24 = vmul.f32 0.35355338, %v14670_v31  ;;  %v2690_v48 = vsel %vm1586_vm2, %v2678_v0, -inf }
 0x9c4   : > { %2694 = vmax.xlane.f32.xlu0 %v2693_v34  ;;  %v2657_v32 = vpop.f32.mrf.mxu0 }
 0x9c5   : > { %v2699_v44 = vsel %vm1586_vm2, %v2681_v24, -inf  ;;  %v2680_v46 = vmul.f32 0.35355338, %v2657_v32 }
 0x9c6   : > { %2700 = vmax.xlane.f32.xlu1 %v2699_v44  ;;  %v14673_v45 = vpop.f32.mrf.mxu0 }
 0x9c7   : > { %v2683_v47 = vmul.f32 0.35355338, %v14673_v45  ;;  %v2696_v54 = vsel %vm1586_vm2, %v2680_v46, -inf }
 0x9c8   : > { %2691 = vmax.xlane.f32.xlu0 %v2690_v48  ;;  %v2667_v49 = vpop.f32.mrf.mxu0 }
 0x9c9   : > { %v2705_v50 = vsel %vm1586_vm2, %v2683_v47, -inf  ;;  %v2682_v53 = vmul.f32 0.35355338, %v2667_v49 }
 0x9ca   : > { %2706 = vmax.xlane.f32.xlu1 %v2705_v50 }
 0x9cb   : > { %v2702_v55 = vsel %vm1586_vm2, %v2682_v53, -inf }
 0x9cc   : > { %2697 = vmax.xlane.f32.xlu0 %v2696_v54 }
 0x9d0   : > { %2703 = vmax.xlane.f32.xlu0 %v2702_v55 }
 0x9db   : > { %2784 = vrot.lane.b32.xlu1 %v16393_v35, %s16093_s0 }
 0x9df   : > { %2782 = vrot.lane.b32.xlu1 %v16399_v38, %s16093_s0 }
 0x9e3   : > { %2780 = vrot.lane.b32.xlu1 %v16405_v40, %s16093_s0 }
 0x9e6   : > { %2786 = vrot.lane.b32.xlu0 %v16391_v33, %s16093_s0 }
 0x9e7   : > { %2776 = vrot.lane.b32.xlu1 %v16409_v41, %s16093_s0 }
 0x9ea   : > { %2778 = vrot.lane.b32.xlu0 %v16396_v37, %s16093_s0 }
 0xa47   : > { %v2689_v56 = vpop.xlane.xlu1 %2688 }
 0xa48   : > { %v2709_v57 = vsub.f32 %v2677_v15, %v2689_v56 }
 0xa49   : > { %v2686_v58 = vpop.xlane.xlu0 %2685 }
 0xa4a   : > { %v2718_v59 = vmul.f32 1.442695, %v2709_v57  ;;  %v2708_v60 = vsub.f32 %v2676_v61, %v2686_v58 }
 0xa4c   : > { %15861 = vpow2.f32 %v2718_v59  ;;  %v2716_v63 = vmul.f32 1.442695, %v2708_v60 }
 0xa4d   : > { %v2695_v1 = vpop.xlane.xlu0 %2694 }
 0xa4e   : > { %15863 = vpow2.f32 %v2716_v63  ;;  %v2711_v2 = vsub.f32 %v2679_v27, %v2695_v1  ;;  %v14734_v1 = vpop.f32.mrf.mxu0 }
 0xa4f   : > { %v2701_v3 = vpop.xlane.xlu1 %2700 }
 0xa50   : > { %v2722_v4 = vmul.f32 1.442695, %v2711_v2  ;;  %v2713_v36 = vsub.f32 %v2681_v24, %v2701_v3  ;;  %v3194_v2 = vpop.f32.mrf.mxu0 }
 0xa51   : > { %v2692_v6 = vpop.xlane.xlu0 %2691 }
 0xa52   : > { %15865 = vpow2.f32 %v2722_v4  ;;  %v2726_v7 = vmul.f32 1.442695, %v2713_v36  ;;  %v2710_v8 = vsub.f32 %v2678_v0, %v2692_v6  ;;  %v14737_v3 = vpop.f32.mrf.mxu0  ;;  %v16809_v6 = vmul.f32 0.35355338, %v14734_v1  ;;  %v13009_v1 = vld [vmem:[%s16140_s3 + $0x10] sm:$0xff] }
 0xa53   : > { %v2707_v43 = vpop.xlane.xlu1 %2706 }
 0xa54   : > { %15867 = vpow2.f32 %v2726_v7  ;;  %v2720_v9 = vmul.f32 1.442695, %v2710_v8  ;;  %v2715_v20 = vsub.f32 %v2683_v47, %v2707_v43  ;;  %v3204_v4 = vpop.f32.mrf.mxu0  ;;  %v16811_v8 = vmul.f32 0.35355338, %v3194_v2 }
 0xa55   : > { %v2698_v15 = vpop.xlane.xlu0 %2697 }
 0xa56   : > { %15869 = vpow2.f32 %v2720_v9  ;;  %v2730_v21 = vmul.f32 1.442695, %v2715_v20  ;;  %v2712_v61 = vsub.f32 %v2680_v46, %v2698_v15  ;;  %v14740_v36 = vpop.f32.mrf.mxu0  ;;  %v3244_v9 = vsel %vm1586_vm2, %v16809_v6, -inf }
 0xa57   : > { %v2785_v62 = vpop.permute.xlu1 %2784  ;;  %v16813_v43 = vmul.f32 0.35355338, %v14740_v36  ;;  %v16817_v15 = vmul.f32 0.35355338, %v3204_v4 }
 0xa58   : > { %v2724_v22 = vmul.f32 1.442695, %v2712_v61  ;;  %15871 = vpow2.f32 %v2730_v21  ;;  %v3214_v7 = vpop.f32.mrf.mxu0  ;;  %v3241_v21 = vsel %vm1586_vm2, %v16811_v8, -inf }
 0xa59   : > { %v16773_v28 = vpop.eup %15861  ;;  %v2704_v27 = vpop.xlane.xlu0 %2703 }
 0xa5a   : > { %15873 = vpow2.f32 %v2724_v22  ;;  %v2714_v5 = vsub.f32 %v2682_v53, %v2704_v27  ;;  %v2735_v31 = vsel %vm1586_vm2, %v16773_v28, 0.0  ;;  %v14743_v20 = vpop.f32.mrf.mxu0  ;;  %v16825_v22 = vmul.f32 0.35355338, %v14737_v3 }
 0xa5b   : > { %v16777_v0 = vpop.eup %15863  ;;  %2736 = vadd.xlane.f32.xlu1 %v2735_v31  ;;  %v2783_v34 = vpop.permute.xlu1 %2782  ;;  %v16821_v61 = vmul.f32 0.35355338, %v14743_v20  ;;  %v3247_v27 = vsel %vm1586_vm2, %v16817_v15, -inf  ;;  %v16831_v31 = vmul.f32 0.35355338, %v3214_v7 }
 0xa5c   : > { %v2728_v24 = vmul.f32 1.442695, %v2714_v5  ;;  %v2732_v32 = vsel %vm1586_vm2, %v16777_v0, 0.0 }
 0xa5d   : > { %2733 = vadd.xlane.f32.xlu0 %v2732_v32  ;;  %v2787_v44 = vpop.permute.xlu0 %2786  ;;  %v3262_v5 = vsel %vm1586_vm2, %v16821_v61, -inf }
 0xa5e   : > { %15875 = vpow2.f32 %v2728_v24  ;;  %14674 = vmatprep.subr.mxu1 %v2787_v44  ;;  %v3250_v24 = vsel %vm1586_vm2, %v16825_v22, -inf }
 0xa5f   : > { %v16781_v45 = vpop.eup %15865  ;;  %14675 = vmatpush3.msra.mxu1 %v2787_v44  ;;  %v2781_v48 = vpop.permute.xlu1 %2780  ;;  %v3253_v44 = vsel %vm1586_vm2, %v16831_v31, -inf }
 0xa60   : > { %14676 = vmatprep.subr.mxu1 %v2785_v62  ;;  %v2741_v46 = vsel %vm1586_vm2, %v16781_v45, 0.0 }
 0xa61   : > { %v16785_v47 = vpop.eup %15867  ;;  %2742 = vadd.xlane.f32.xlu1 %v2741_v46  ;;  %14677 = vmatpush3.msra.mxu1 %v2785_v62  ;;  %v2779_v55 = vpop.permute.xlu0 %2778  ;;  %v3256_v62 = vsel %vm1586_vm2, %v16813_v43, -inf }
 0xa62   : > { %14678 = vmatprep.subr.mxu1 %v2783_v34  ;;  %v2747_v53 = vsel %vm1586_vm2, %v16785_v47, 0.0 }
 0xa63   : > { %v16787_v49 = vpop.eup %15869  ;;  %14679 = vmatpush3.msra.mxu1 %v2783_v34  ;;  %v2777_v57 = vpop.permute.xlu1 %2776 }
 0xa64   : > { %14680 = vmatprep.subr.mxu1 %v2781_v48  ;;  %v2738_v50 = vsel %vm1586_vm2, %v16787_v49, 0.0  ;;  %v3224_v34 = vpop.f32.mrf.mxu0 }
 0xa65   : > { %2739 = vadd.xlane.f32.xlu0 %v2738_v50  ;;  %2748 = vadd.xlane.f32.xlu1 %v2747_v53  ;;  %v16793_v54 = vpop.eup %15871  ;;  %v16835_v32 = vmul.f32 0.35355338, %v3224_v34 }
 0xa66   : > { %14681 = vmatpush3.msra.mxu1 %v2781_v48  ;;  %v2753_v59 = vsel %vm1586_vm2, %v16793_v54, 0.0 }
 0xa67   : > { %v16795_v56 = vpop.eup %15873  ;;  %14682 = vmatprep.subr.mxu1 %v2779_v55  ;;  %v3259_v46 = vsel %vm1586_vm2, %v16835_v32, -inf }
 0xa68   : > { %14683 = vmatpush3.msra.mxu1 %v2779_v55  ;;  %v2744_v58 = vsel %vm1586_vm2, %v16795_v56, 0.0 }
 0xa69   : > { %14684 = vmatprep.subr.mxu1 %v2777_v57  ;;  %2745 = vadd.xlane.f32.xlu0 %v2744_v58 }
 0xa6a   : > { %2754 = vadd.xlane.f32.xlu1 %v2753_v59  ;;  %14685 = vmatpush3.msra.mxu1 %v2777_v57 }
 0xa6b   : > { %v16801_v60 = vpop.eup %15875 }
 0xa6c   : > { %v2750_v63 = vsel %vm1586_vm2, %v16801_v60, 0.0 }
 0xa6d   : > { %2751 = vadd.xlane.f32.xlu0 %v2750_v63 }
 0xa7b   : > { %2772 = vrot.lane.b32.xlu1 %v16387_v26, %s16093_s0 }
 0xa83   : > { %2774 = vrot.lane.b32.xlu0 %v16402_v39, %s16093_s0  ;;  %s19087_s0 = sld [smem:[#allocation11_spill]] }
 0xa9f   : > { %3245 = vmax.xlane.f32.xlu1 %v3244_v9 }
 0xaa2   : > { %3242 = vmax.xlane.f32.xlu0 %v3241_v21 }
 0xaa3   : > { %3257 = vmax.xlane.f32.xlu1 %v3256_v62 }
 0xaa6   : > { %3248 = vmax.xlane.f32.xlu0 %v3247_v27 }
 0xaa7   : > { %3263 = vmax.xlane.f32.xlu1 %v3262_v5 }
 0xaaa   : > { %3251 = vmax.xlane.f32.xlu0 %v3250_v24 }
 0xaae   : > { %3254 = vmax.xlane.f32.xlu0 %v3253_v44 }
 0xab2   : > { %3260 = vmax.xlane.f32.xlu0 %v3259_v46 }
 0xab8   : > { %3341 = vrot.lane.b32.xlu1 %v16393_v35, %s16094_s26 }
 0xabc   : > { %3339 = vrot.lane.b32.xlu1 %v16399_v38, %s16094_s26 }
 0xac0   : > { %3337 = vrot.lane.b32.xlu1 %v16405_v40, %s16094_s26 }
 0xac4   : > { %3333 = vrot.lane.b32.xlu1 %v16409_v41, %s16094_s26 }
 0xac8   : > { %3343 = vrot.lane.b32.xlu0 %v16391_v33, %s16094_s26 }
 0xacc   : > { %3335 = vrot.lane.b32.xlu0 %v16396_v37, %s16094_s26 }
 0xae4   : > { %v2737_v48 = vpop.xlane.xlu1 %2736 }
 0xae6   : > { %v2734_v50 = vpop.xlane.xlu0 %2733 }
 0xae7   : > { %15877 = vrcp.f32 %v2734_v50 }
 0xae8   : > { %15879 = vrcp.f32 %v2737_v48 }
 0xaea   : > { %v2743_v53 = vpop.xlane.xlu1 %2742 }
 0xaee   : > { %v2740_v35 = vpop.xlane.xlu0 %2739  ;;  %v2749_v38 = vpop.xlane.xlu1 %2748 }
 0xaef   : > { %15881 = vrcp.f32 %v2740_v35 }
 0xaf0   : > { %15883 = vrcp.f32 %v2743_v53 }
 0xaf2   : > { %v2746_v55 = vpop.xlane.xlu0 %2745 }
 0xaf3   : > { %15885 = vrcp.f32 %v2746_v55  ;;  %v2755_v33 = vpop.xlane.xlu1 %2754 }
 0xaf4   : > { %v15878_v40 = vpop.eup %15877  ;;  %15887 = vrcp.f32 %v2749_v38 }
 0xaf5   : > { %v2757_v41 = vmul.f32 %v15878_v40, %v16777_v0  ;;  %v15880_v37 = vpop.eup %15879 }
 0xaf6   : > { %v2752_v57 = vpop.xlane.xlu0 %2751  ;;  %v2759_v2 = vmul.f32 %v15880_v37, %v16773_v28 }
 0xaf7   : > { %15889 = vrcp.f32 %v2752_v57  ;;  %14690 = vmatprep.mubr.msk.f32.mxu1 %vm1586_vm2, %v2757_v41  ;;  %v2773_v63 = vpop.permute.xlu1 %2772 }
 0xaf8   : > { %15891 = vrcp.f32 %v2755_v33 }
 0xafa   : > { %v2775_v58 = vpop.permute.xlu0 %2774 }
 0xafb   : > { %14686 = vmatprep.subr.mxu1 %v2775_v58 }
 0xafc   : > { %v15882_v59 = vpop.eup %15881  ;;  %14687 = vmatpush3.msra.mxu1 %v2775_v58 }
 0xafd   : > { %14688 = vmatprep.subr.mxu1 %v2773_v63  ;;  %v2761_v3 = vmul.f32 %v15882_v59, %v16787_v49  ;;  %v15884_v4 = vpop.eup %15883 }
 0xafe   : > { %14689 = vmatpush3.msra.mxu1 %v2773_v63  ;;  %v2763_v36 = vmul.f32 %v15884_v4, %v16781_v45 }
 0xaff   : > { %14691 = vmatmul.mubr.msk.f32.vlgmr.msra.gmra.mxu1 %vm1586_vm2, %v2759_v2  ;;  %14702 = vmatprep.subr.mxu1 %v13009_v1 }
 0xb00   : > { %v15886_v0 = vpop.eup %15885  ;;  %14693 = vmatprep.mubr.msk.f32.mxu1 %vm1586_vm2, %v2761_v3  ;;  %14703 = vmatpush3.msra.mxu1 %v13009_v1 }
 0xb01   : > { %v2765_v7 = vmul.f32 %v15886_v0, %v16795_v56  ;;  %v15888_v9 = vpop.eup %15887 }
 0xb02   : > { %v2767_v49 = vmul.f32 %v15888_v9, %v16785_v47 }
 0xb03   : > { %14694 = vmatmul.mubr.msk.f32.gmra.mxu1 %vm1586_vm2, %v2763_v36 }
 0xb04   : > { %v15890_v28 = vpop.eup %15889  ;;  %14696 = vmatprep.mubr.msk.f32.mxu1 %vm1586_vm2, %v2765_v7 }
 0xb05   : > { %v2769_v20 = vmul.f32 %v15890_v28, %v16801_v60  ;;  %v15892_v21 = vpop.eup %15891  ;;  %v16914_v28 = vpop.f32.mrf.mxu1 }
 0xb06   : > { %v2771_v62 = vmul.f32 %v15892_v21, %v16793_v54 }
 0xb07   : > { %14697 = vmatmul.mubr.msk.f32.gmra.mxu1 %vm1586_vm2, %v2767_v49  ;;  %v16916_v49 = vpop.f32.mrf.mxu1 }
 0xb08   : > { %14699 = vmatprep.mubr.msk.f32.mxu1 %vm1586_vm2, %v2769_v20 }
 0xb09   : > { %v16918_v20 = vpop.f32.mrf.mxu1 }
 0xb0b   : > { %14700 = vmatmul.mubr.msk.f32.gmra.mxu1 %vm1586_vm2, %v2771_v62  ;;  %v16920_v21 = vpop.f32.mrf.mxu1 }
 0xb0d   : > { %v16922_v62 = vpop.f32.mrf.mxu1 }
 0xb28   : > { %v3246_v45 = vpop.xlane.xlu1 %3245 }
 0xb29   : > { %v3266_v56 = vsub.f32 %v16809_v6, %v3246_v45  ;;  %v16924_v45 = vpop.f32.mrf.mxu1 }
 0xb2b   : > { %v3275_v27 = vmul.f32 1.442695, %v3266_v56  ;;  %v3243_v5 = vpop.xlane.xlu0 %3242 }
 0xb2c   : > { %v3265_v24 = vsub.f32 %v16811_v8, %v3243_v5  ;;  %v3258_v47 = vpop.xlane.xlu1 %3257 }
 0xb2d   : > { %15893 = vpow2.f32 %v3275_v27  ;;  %v3270_v46 = vsub.f32 %v16813_v43, %v3258_v47  ;;  %v16926_v27 = vpop.f32.mrf.mxu1 }
 0xb2e   : > { %v3273_v34 = vmul.f32 1.442695, %v3265_v24 }
 0xb2f   : > { %v3249_v60 = vpop.xlane.xlu0 %3248  ;;  %v3283_v6 = vmul.f32 1.442695, %v3270_v46 }
 0xb30   : > { %15895 = vpow2.f32 %v3273_v34  ;;  %v3267_v44 = vsub.f32 %v16817_v15, %v3249_v60  ;;  %v3264_v54 = vpop.xlane.xlu1 %3263 }
 0xb31   : > { %v3272_v35 = vsub.f32 %v16821_v61, %v3264_v54 }
 0xb32   : > { %v3277_v48 = vmul.f32 1.442695, %v3267_v44 }
 0xb33   : > { %v3252_v50 = vpop.xlane.xlu0 %3251  ;;  %v3287_v15 = vmul.f32 1.442695, %v3272_v35 }
 0xb34   : > { %15897 = vpow2.f32 %v3277_v48  ;;  %v3268_v53 = vsub.f32 %v16825_v22, %v3252_v50  ;;  %v3342_v56 = vpop.permute.xlu1 %3341 }
 0xb36   : > { %v3279_v38 = vmul.f32 1.442695, %v3268_v53 }
 0xb37   : > { %v3255_v8 = vpop.xlane.xlu0 %3254 }
 0xb38   : > { %15899 = vpow2.f32 %v3279_v38  ;;  %v3269_v55 = vsub.f32 %v16831_v31, %v3255_v8  ;;  %v3340_v5 = vpop.permute.xlu1 %3339 }
 0xb39   : > { %15901 = vpow2.f32 %v3283_v6 }
 0xb3a   : > { %v16877_v40 = vpop.eup %15893  ;;  %v3281_v41 = vmul.f32 1.442695, %v3269_v55 }
 0xb3b   : > { %v3261_v43 = vpop.xlane.xlu0 %3260  ;;  %v3292_v33 = vsel %vm1586_vm2, %v16877_v40, 0.0 }
 0xb3c   : > { %15903 = vpow2.f32 %v3281_v41  ;;  %v3271_v22 = vsub.f32 %v16835_v32, %v3261_v43  ;;  %3293 = vadd.xlane.f32.xlu1 %v3292_v33  ;;  %v3338_v47 = vpop.permute.xlu1 %3337 }
 0xb3d   : > { %v16882_v57 = vpop.eup %15895  ;;  %15905 = vpow2.f32 %v3287_v15 }
 0xb3e   : > { %v3285_v61 = vmul.f32 1.442695, %v3271_v22  ;;  %v3289_v31 = vsel %vm1586_vm2, %v16882_v57, 0.0 }
 0xb3f   : > { %3290 = vadd.xlane.f32.xlu0 %v3289_v31  ;;  %v3344_v37 = vpop.permute.xlu0 %3343 }
 0xb40   : > { %15907 = vpow2.f32 %v3285_v61  ;;  %14744 = vmatprep.subr.mxu1 %v3344_v37  ;;  %v3334_v48 = vpop.permute.xlu1 %3333 }
 0xb41   : > { %v16886_v58 = vpop.eup %15897 }
 0xb42   : > { %v3295_v59 = vsel %vm1586_vm2, %v16886_v58, 0.0 }
 0xb43   : > { %3296 = vadd.xlane.f32.xlu0 %v3295_v59  ;;  %v3336_v60 = vpop.permute.xlu0 %3335 }
 0xb45   : > { %v16890_v63 = vpop.eup %15899 }
 0xb46   : > { %v3298_v32 = vsel %vm1586_vm2, %v16890_v63, 0.0  ;;  %v16894_v1 = vpop.eup %15901 }
 0xb47   : > { %3299 = vadd.xlane.f32.xlu1 %v3298_v32  ;;  %v3304_v4 = vsel %vm1586_vm2, %v16894_v1, 0.0 }
 0xb49   : > { %v16896_v2 = vpop.eup %15903 }
 0xb4a   : > { %v3301_v3 = vsel %vm1586_vm2, %v16896_v2, 0.0  ;;  %v16902_v0 = vpop.eup %15905 }
 0xb4b   : > { %3302 = vadd.xlane.f32.xlu0 %v3301_v3  ;;  %3305 = vadd.xlane.f32.xlu1 %v3304_v4  ;;  %v3310_v9 = vsel %vm1586_vm2, %v16902_v0, 0.0 }
 0xb4d   : > { %v16904_v36 = vpop.eup %15907 }
 0xb4e   : > { %v3307_v7 = vsel %vm1586_vm2, %v16904_v36, 0.0 }
 0xb4f   : > { %3308 = vadd.xlane.f32.xlu0 %v3307_v7  ;;  %3311 = vadd.xlane.f32.xlu1 %v3310_v9 }
 0xb60   : > { %3329 = vrot.lane.b32.xlu1 %v16387_v26, %s16094_s26  ;;  %v16928_v26 = vpop.f32.mrf.mxu1 }
 0xb65   : > { %3331 = vrot.lane.b32.xlu0 %v16402_v39, %s16094_s26  ;;  %s19093_s26 = sld [smem:[#allocation16_spill]] }
 0xbbf   : > { %v14692_v24 = vpop.f32.mrf.mxu1 }
 0xbc1   : > { %v2886_v39 = vpop.f32.mrf.mxu1 }
 0xbc2   : > { %14704 = vmatprep.mubr.msk.f32.mxu1 %vm1012_vm0, %v2886_v39 }
 0xbc3   : > { %v14695_v34 = vpop.f32.mrf.mxu1  ;;  %14705 = vmatmul.mubr.msk.f32.vlgmr.msra.gmra.mxu1 %vm1012_vm0, %v14692_v24 }
 0xbc4   : > { %14745 = vmatpush3.msra.mxu1 %v3344_v37 }
 0xbc5   : > { %14746 = vmatprep.subr.mxu1 %v3342_v56  ;;  %v2896_v44 = vpop.f32.mrf.mxu1  ;;  %v3294_v6 = vpop.xlane.xlu1 %3293 }
 0xbc6   : > { %14747 = vmatpush3.msra.mxu1 %v3342_v56  ;;  %14707 = vmatprep.mubr.msk.f32.mxu1 %vm1012_vm0, %v2896_v44 }
 0xbc7   : > { %14748 = vmatprep.subr.mxu1 %v3340_v5  ;;  %v14698_v46 = vpop.f32.mrf.mxu1  ;;  %14708 = vmatmul.mubr.msk.f32.gmra.mxu1 %vm1012_vm0, %v14695_v34 }
 0xbc8   : > { %14749 = vmatpush3.msra.mxu1 %v3340_v5  ;;  %v3291_v54 = vpop.xlane.xlu0 %3290 }
 0xbc9   : > { %15909 = vrcp.f32 %v3291_v54  ;;  %14750 = vmatprep.subr.mxu1 %v3338_v47  ;;  %v2906_v50 = vpop.f32.mrf.mxu1 }
 0xbca   : > { %14751 = vmatpush3.msra.mxu1 %v3338_v47  ;;  %14710 = vmatprep.mubr.msk.f32.mxu1 %vm1012_vm0, %v2906_v50  ;;  %15911 = vrcp.f32 %v3294_v6 }
 0xbcb   : > { %14752 = vmatprep.subr.mxu1 %v3336_v60  ;;  %v14701_v53 = vpop.f32.mrf.mxu1  ;;  %14711 = vmatmul.mubr.msk.f32.gmra.mxu1 %vm1012_vm0, %v14698_v46 }
 0xbcc   : > { %14753 = vmatpush3.msra.mxu1 %v3336_v60  ;;  %v3297_v35 = vpop.xlane.xlu0 %3296 }
 0xbcd   : > { %14754 = vmatprep.subr.mxu1 %v3334_v48  ;;  %v2916_v38 = vpop.f32.mrf.mxu1  ;;  %15913 = vrcp.f32 %v3297_v35 }
 0xbce   : > { %14755 = vmatpush3.msra.mxu1 %v3334_v48  ;;  %14713 = vmatprep.mubr.msk.f32.mxu1 %vm1012_vm0, %v2916_v38 }
 0xbcf   : > { %14714 = vmatmul.mubr.msk.f32.gmra.mxu1 %vm1012_vm0, %v14701_v53  ;;  %v2504_v53 = vadd.f32 %v16926_v27, %v16749_v16 }
 0xbd0   : > { %v3300_v8 = vpop.xlane.xlu1 %3299 }
 0xbd1   : > { %15915 = vrcp.f32 %v3300_v8  ;;  %v3781_v8 = vld [vmem:[%s16160_s24 + $0x18] sm:$0xff] }
 0xbd2   : > { %14786 = vmatprep.subr.mxu0 %v3781_v8 }
 0xbd3   : > { %14787 = vmatpush3.msra.mxu0 %v3781_v8 }
 0xbd4   : > { %v3303_v55 = vpop.xlane.xlu0 %3302  ;;  %v3306_v15 = vpop.xlane.xlu1 %3305 }
 0xbd5   : > { %15917 = vrcp.f32 %v3303_v55  ;;  %v3780_v55 = vld [vmem:[%s16160_s24 + $0x10] sm:$0xff] }
 0xbd6   : > { %v15910_v41 = vpop.eup %15909  ;;  %15919 = vrcp.f32 %v3306_v15  ;;  %14788 = vmatprep.subr.mxu0 %v3780_v55  ;;  %v3779_v15 = vld [vmem:[%s16160_s24 + $0x8] sm:$0xff] }
 0xbd7   : > { %v3314_v43 = vmul.f32 %v15910_v41, %v16882_v57  ;;  %v15912_v61 = vpop.eup %15911  ;;  %14789 = vmatpush3.msra.mxu0 %v3780_v55  ;;  %v3778_v41 = vld [vmem:[%s16160_s24] sm:$0xff] }
 0xbd8   : > { %v3309_v33 = vpop.xlane.xlu0 %3308  ;;  %v3312_v22 = vpop.xlane.xlu1 %3311  ;;  %v3316_v32 = vmul.f32 %v15912_v61, %v16877_v40  ;;  %14790 = vmatprep.subr.mxu0 %v3779_v15 }
 0xbd9   : > { %15921 = vrcp.f32 %v3309_v33  ;;  %14760 = vmatprep.mubr.msk.f32.mxu1 %vm1586_vm2, %v3314_v43  ;;  %14791 = vmatpush3.msra.mxu0 %v3779_v15  ;;  %v2469_v43 = vadd.f32 %v16916_v49, %v16739_v11  ;;  %v2489_v11 = vadd.f32 %v16924_v45, %v16747_v52 }
 0xbda   : > { %15923 = vrcp.f32 %v3312_v22  ;;  %v15914_v37 = vpop.eup %15913  ;;  %14792 = vmatprep.subr.mxu0 %v3778_v41 }
 0xbdb   : > { %v3318_v4 = vmul.f32 %v15914_v37, %v16886_v58  ;;  %14793 = vmatpush3.msra.mxu0 %v3778_v41 }
 0xbdc   : > { %v3332_v31 = vpop.permute.xlu0 %3331  ;;  %v3330_v59 = vpop.permute.xlu1 %3329 }
 0xbdd   : > { %14756 = vmatprep.subr.mxu1 %v3332_v31 }
 0xbde   : > { %14757 = vmatpush3.msra.mxu1 %v3332_v31  ;;  %v15916_v3 = vpop.eup %15915  ;;  %v13051_v31 = vld [vmem:[%s16145_s8] ss:$0 sm:$0xff] }
 0xbdf   : > { %14758 = vmatprep.subr.mxu1 %v3330_v59  ;;  %v3320_v7 = vmul.f32 %v15916_v3, %v16890_v63  ;;  %v13042_v63 = vld [vmem:[%s16140_s3 + $0x18] sm:$0xff] }
 0xbe0   : > { %14759 = vmatpush3.msra.mxu1 %v3330_v59  ;;  %v2479_v59 = vadd.f32 %v16920_v21, %v16743_v42 }
 0xbe1   : > { %14761 = vmatmul.mubr.msk.f32.vlgmr.msra.gmra.mxu1 %vm1586_vm2, %v3316_v32  ;;  %14772 = vmatprep.subr.mxu1 %v13042_v63 }
 0xbe2   : > { %v15918_v57 = vpop.eup %15917  ;;  %14763 = vmatprep.mubr.msk.f32.mxu1 %vm1586_vm2, %v3318_v4  ;;  %14773 = vmatpush3.msra.mxu1 %v13042_v63 }
 0xbe3   : > { %v3322_v9 = vmul.f32 %v15918_v57, %v16896_v2  ;;  %v15920_v56 = vpop.eup %15919  ;;  %v2474_v2 = vadd.f32 %v16914_v28, %v16737_v10 }
 0xbe4   : > { %v3324_v40 = vmul.f32 %v15920_v56, %v16894_v1 }
 0xbe5   : > { %14764 = vmatmul.mubr.msk.f32.gmra.mxu1 %vm1586_vm2, %v3320_v7 }
 0xbe6   : > { %v15922_v5 = vpop.eup %15921  ;;  %14766 = vmatprep.mubr.msk.f32.mxu1 %vm1586_vm2, %v3322_v9 }
 0xbe7   : > { %v3326_v58 = vmul.f32 %v15922_v5, %v16904_v36  ;;  %v15924_v24 = vpop.eup %15923  ;;  %v2484_v36 = vadd.f32 %v16918_v20, %v16741_v13 }
 0xbe8   : > { %v3328_v39 = vmul.f32 %v15924_v24, %v16902_v0  ;;  %v2494_v0 = vadd.f32 %v16922_v62, %v16745_v51 }
 0xbe9   : > { %14767 = vmatmul.mubr.msk.f32.gmra.mxu1 %vm1586_vm2, %v3324_v40 }
 0xbea   : > { %14769 = vmatprep.mubr.msk.f32.mxu1 %vm1586_vm2, %v3326_v58 }
 0xbed   : > { %14770 = vmatmul.mubr.msk.f32.gmra.mxu1 %vm1586_vm2, %v3328_v39 }
 0xc83   : > { %v14706_v47 = vpop.f32.mrf.mxu1 }
 0xc84   : > { %v3057_v34 = vadd.f32 %v14706_v47, %v2474_v2 }
 0xc85   : > { %v3017_v1 = vpop.f32.mrf.mxu1 }
 0xc86   : > { %v3056_v22 = vadd.f32 %v3017_v1, %v2469_v43 }
 0xc87   : > { %v14709_v60 = vpop.f32.mrf.mxu1 }
 0xc88   : > { %v3059_v44 = vadd.f32 %v14709_v60, %v2484_v36 }
 0xc89   : > { %v3027_v46 = vpop.f32.mrf.mxu1 }
 0xc8a   : > { %v3058_v57 = vadd.f32 %v3027_v46, %v2479_v59 }
 0xc8b   : > { %v14712_v48 = vpop.f32.mrf.mxu1 }
 0xc8c   : > { %v3061_v54 = vadd.f32 %v14712_v48, %v2494_v0 }
 0xc8d   : > { %v3037_v50 = vpop.f32.mrf.mxu1 }
 0xc8e   : > { %v3060_v42 = vadd.f32 %v3037_v50, %v2489_v11 }
 0xc8f   : > { %v14715_v6 = vpop.f32.mrf.mxu1 }
 0xc90   : > { %v16963_v10 = vadd.f32 %v14715_v6, %v2504_v53  ;;  %v16095_v6 = vmov 0.0  }
 0xc91   : > { %v16965_v28 = vpop.f32.mrf.mxu1  ;;  %962 = vst.msk [vmem:[#allocation2 + $0x10] sm:$0xff] %vm959_vm1, %v16095_v6  ;;  %960 = vst.msk [vmem:[#allocation2] sm:$0xff] %vm959_vm1, %v16095_v6 }
 0xc92   : > { %961 = vst.msk [vmem:[#allocation2 + $0x8] sm:$0xff] %vm959_vm1, %v16095_v6  ;;  %963 = vst.msk [vmem:[#allocation2 + $0x18] sm:$0xff] %vm959_vm1, %v16095_v6 }
 0xc93   : > { %964 = vst.msk [vmem:[#allocation2 + $0x20] sm:$0xff] %vm959_vm1, %v16095_v6  ;;  %965 = vst.msk [vmem:[#allocation2 + $0x28] sm:$0xff] %vm959_vm1, %v16095_v6 }
 0xc94   : > { %966 = vst.msk [vmem:[#allocation2 + $0x30] sm:$0xff] %vm959_vm1, %v16095_v6  ;;  %967 = vst.msk [vmem:[#allocation2 + $0x38] sm:$0xff] %vm959_vm1, %v16095_v6 }
 0xc95   : > { %968 = vst.msk [vmem:[#allocation2 + $0x40] sm:$0xff] %vm959_vm1, %v16095_v6  ;;  %969 = vst.msk [vmem:[#allocation2 + $0x48] sm:$0xff] %vm959_vm1, %v16095_v6 }
 0xc96   : > { %973 = vst.msk [vmem:[#allocation3 + $0x10] sm:$0xff] %vm970_vm3, %v16095_v6  ;;  %971 = vst.msk [vmem:[#allocation3] sm:$0xff] %vm970_vm3, %v16095_v6 }
 0xc97   : > { %972 = vst.msk [vmem:[#allocation3 + $0x8] sm:$0xff] %vm970_vm3, %v16095_v6  ;;  %974 = vst.msk [vmem:[#allocation3 + $0x18] sm:$0xff] %vm970_vm3, %v16095_v6 }
 0xc98   : > { %975 = vst.msk [vmem:[#allocation3 + $0x20] sm:$0xff] %vm970_vm3, %v16095_v6  ;;  %976 = vst.msk [vmem:[#allocation3 + $0x28] sm:$0xff] %vm970_vm3, %v16095_v6 }
 0xc99   : > { %977 = vst.msk [vmem:[#allocation3 + $0x30] sm:$0xff] %vm970_vm3, %v16095_v6  ;;  %978 = vst.msk [vmem:[#allocation3 + $0x38] sm:$0xff] %vm970_vm3, %v16095_v6 }
 0xc9a   : > { %979 = vst.msk [vmem:[#allocation3 + $0x40] sm:$0xff] %vm970_vm3, %v16095_v6  ;;  %980 = vst.msk [vmem:[#allocation3 + $0x48] sm:$0xff] %vm970_vm3, %v16095_v6 }
 0xc9b   : > { %984 = vst.msk [vmem:[#allocation4 + $0x10] sm:$0xff] %vm981_vm6, %v16095_v6  ;;  %982 = vst.msk [vmem:[#allocation4] sm:$0xff] %vm981_vm6, %v16095_v6 }
 0xc9c   : > { %983 = vst.msk [vmem:[#allocation4 + $0x8] sm:$0xff] %vm981_vm6, %v16095_v6  ;;  %985 = vst.msk [vmem:[#allocation4 + $0x18] sm:$0xff] %vm981_vm6, %v16095_v6 }
 0xc9d   : > { %986 = vst.msk [vmem:[#allocation4 + $0x20] sm:$0xff] %vm981_vm6, %v16095_v6  ;;  %987 = vst.msk [vmem:[#allocation4 + $0x28] sm:$0xff] %vm981_vm6, %v16095_v6 }
 0xc9e   : > { %988 = vst.msk [vmem:[#allocation4 + $0x30] sm:$0xff] %vm981_vm6, %v16095_v6  ;;  %989 = vst.msk [vmem:[#allocation4 + $0x38] sm:$0xff] %vm981_vm6, %v16095_v6 }
 0xc9f   : > { %990 = vst.msk [vmem:[#allocation4 + $0x40] sm:$0xff] %vm981_vm6, %v16095_v6  ;;  %991 = vst.msk [vmem:[#allocation4 + $0x48] sm:$0xff] %vm981_vm6, %v16095_v6 }
 0xca0   : > { %992 = vst.msk [vmem:[#allocation4 + $0x50] sm:$0xff] %vm981_vm6, %v16095_v6  ;;  %993 = vst.msk [vmem:[#allocation4 + $0x58] sm:$0xff] %vm981_vm6, %v16095_v6 }
 0xca1   : > { %v14762_v35 = vpop.f32.mrf.mxu1  ;;  %994 = vst.msk [vmem:[#allocation4 + $0x60] sm:$0xff] %vm981_vm6, %v16095_v6  ;;  %995 = vst.msk [vmem:[#allocation4 + $0x68] sm:$0xff] %vm981_vm6, %v16095_v6 }
 0xca3   : > { %v3443_v13 = vpop.f32.mrf.mxu1 }
 0xca4   : > { %14774 = vmatprep.mubr.msk.f32.mxu1 %vm1012_vm0, %v3443_v13 }
 0xca5   : > { %v14765_v20 = vpop.f32.mrf.mxu1  ;;  %14775 = vmatmul.mubr.msk.f32.vlgmr.msra.gmra.mxu1 %vm1012_vm0, %v14762_v35 }
 0xca7   : > { %v3453_v51 = vpop.f32.mrf.mxu1 }
 0xca8   : > { %14777 = vmatprep.mubr.msk.f32.mxu1 %vm1012_vm0, %v3453_v51 }
 0xca9   : > { %v14768_v62 = vpop.f32.mrf.mxu1  ;;  %14778 = vmatmul.mubr.msk.f32.gmra.mxu1 %vm1012_vm0, %v14765_v20 }
 0xcab   : > { %v3463_v16 = vpop.f32.mrf.mxu1 }
 0xcac   : > { %14780 = vmatprep.mubr.msk.f32.mxu1 %vm1012_vm0, %v3463_v16 }
 0xcad   : > { %v14771_v27 = vpop.f32.mrf.mxu1  ;;  %14781 = vmatmul.mubr.msk.f32.gmra.mxu1 %vm1012_vm0, %v14768_v62 }
 0xcaf   : > { %v3473_v38 = vpop.f32.mrf.mxu1 }
 0xcb0   : > { %14783 = vmatprep.mubr.msk.f32.mxu1 %vm1012_vm0, %v3473_v38 }
 0xcb1   : > { %14784 = vmatmul.mubr.msk.f32.gmra.mxu1 %vm1012_vm0, %v14771_v27 }
 0xd65   : > { %v14776_v33 = vpop.f32.mrf.mxu1 }
 0xd66   : > { %v3614_v61 = vadd.f32 %v14776_v33, %v3057_v34 }
 0xd67   : > { %v3574_v37 = vpop.f32.mrf.mxu1 }
 0xd68   : > { %v3622_v32 = vadd.f32 %v3614_v61, %v16286_v14  ;;  %v3613_v3 = vadd.f32 %v3574_v37, %v3056_v22 }
 0xd69   : > { %v14779_v4 = vpop.f32.mrf.mxu1 }
 0xd6a   : > { %v16985_v7 = vadd.f32 %v13051_v31, %v3622_v32  ;;  %v3621_v9 = vadd.f32 %v3613_v3, %v16284_v12  ;;  %v3616_v56 = vadd.f32 %v14779_v4, %v3059_v44 }
 0xd6b   : > { %v3584_v49 = vpop.f32.mrf.mxu1 }
 0xd6c   : > { %v16990_v5 = vadd.f32 %v13051_v31, %v3621_v9  ;;  %v3624_v40 = vadd.f32 %v3616_v56, %v16292_v19  ;;  %v3615_v58 = vadd.f32 %v3584_v49, %v3058_v57  ;;  %v3649_v14 = vsel %vm959_vm1, %v16985_v7, 0.0 }
 0xd6d   : > { %3650 = vadd.xlane.f32.xlu1 %v3649_v14  ;;  %v14782_v21 = vpop.f32.mrf.mxu1  ;;  %v2499_v19 = vadd.f32 %v16928_v26, %v16751_v18 }
 0xd6e   : > { %v16995_v24 = vadd.f32 %v13051_v31, %v3624_v40  ;;  %v3623_v12 = vadd.f32 %v3615_v58, %v16290_v17  ;;  %v3618_v39 = vadd.f32 %v14782_v21, %v3061_v54  ;;  %14794 = vmatprep.mubr.msk.f32.mxu0 %vm959_vm1, %v16990_v5  ;;  %v3646_v52 = vsel %vm959_vm1, %v16990_v5, 0.0 }
 0xd6f   : > { %14795 = vmatmul.mubr.msk.f32.vlgmr.msra.gmra.mxu0 %vm959_vm1, %v16985_v7  ;;  %3647 = vadd.xlane.f32.xlu0 %v3646_v52  ;;  %v3594_v45 = vpop.f32.mrf.mxu1  ;;  %v3062_v47 = vadd.f32 %v16965_v28, %v2499_v19  ;;  %v13066_v19 = vld [vmem:[%s16170_s6 + $0x38] sm:$0xff] }
 0xd70   : > { %v17006_v63 = vadd.f32 %v13051_v31, %v3623_v12  ;;  %v3626_v2 = vadd.f32 %v3618_v39, %v16300_v25  ;;  %v3617_v17 = vadd.f32 %v3594_v45, %v3060_v42  ;;  %v3655_v18 = vsel %vm959_vm1, %v16995_v24, 0.0  ;;  %v3938_v45 = vld [vmem:[%s16170_s6 + $0x18] sm:$0xff]  ;;  %14806 = vmatprep.subr.mxu1 %v13066_v19 }
 0xd71   : > { %v14785_v34 = vpop.f32.mrf.mxu1  ;;  %14826 = vmatprep.subr.mxu0 %v3938_v45  ;;  %14807 = vmatpush3.msra.mxu1 %v13066_v19 }
 0xd72   : > { %v3641_v1 = vadd.f32 %v13051_v31, %v3626_v2  ;;  %v3625_v36 = vadd.f32 %v3617_v17, %v16298_v23  ;;  %v3620_v60 = vadd.f32 %v14785_v34, %v16963_v10  ;;  %14797 = vmatprep.mubr.msk.f32.mxu0 %vm959_vm1, %v17006_v63  ;;  %v3652_v54 = vsel %vm959_vm1, %v17006_v63, 0.0  ;;  %14827 = vmatpush3.msra.mxu0 %v3938_v45  ;;  %v3937_v2 = vld [vmem:[%s16170_s6 + $0x10] sm:$0xff]  ;;  %v13064_v17 = vld [vmem:[%s16170_s6 + $0x28] sm:$0xff]  ;;  %v13063_v34 = vld [vmem:[%s16170_s6 + $0x20] sm:$0xff] }
 0xd73   : > { %3656 = vadd.xlane.f32.xlu0 %v3655_v18  ;;  %v3604_v26 = vpop.f32.mrf.mxu1  ;;  %14798 = vmatmul.mubr.msk.f32.gmra.mxu0 %vm959_vm1, %v16995_v24 }
 0xd74   : > { %v3640_v25 = vadd.f32 %v13051_v31, %v3625_v36  ;;  %v3628_v44 = vadd.f32 %v3620_v60, %v16308_v30  ;;  %v3619_v46 = vadd.f32 %v3604_v26, %v3062_v47  ;;  %v3661_v0 = vsel %vm959_vm1, %v3641_v1, 0.0  ;;  %14828 = vmatprep.subr.mxu0 %v3937_v2  ;;  %v3936_v47 = vld [vmem:[%s16170_s6 + $0x8] sm:$0xff]  ;;  %v17103_v36 = vld [vmem:[%s16170_s6 + $0x58] sm:$0xff] }
 0xd75   : > { %3662 = vadd.xlane.f32.xlu1 %v3661_v0  ;;  %14829 = vmatpush3.msra.mxu0 %v3937_v2 }
 0xd76   : > { %v3643_v23 = vadd.f32 %v13051_v31, %v3628_v44  ;;  %v3627_v48 = vadd.f32 %v3619_v46, %v16306_v29  ;;  %14800 = vmatprep.mubr.msk.f32.mxu0 %vm959_vm1, %v3640_v25  ;;  %v3658_v30 = vsel %vm959_vm1, %v3640_v25, 0.0  ;;  %14830 = vmatprep.subr.mxu0 %v3936_v47 }
 0xd77   : > { %3653 = vadd.xlane.f32.xlu0 %v3652_v54  ;;  %14801 = vmatmul.mubr.msk.f32.gmra.mxu0 %vm959_vm1, %v3641_v1 }
 0xd78   : > { %v3642_v50 = vadd.f32 %v13051_v31, %v3627_v48  ;;  %v3667_v53 = vsel %vm959_vm1, %v3643_v23, 0.0  ;;  %14831 = vmatpush3.msra.mxu0 %v3936_v47 }
 0xd79   : > { %3668 = vadd.xlane.f32.xlu1 %v3667_v53 }
 0xd7a   : > { %14803 = vmatprep.mubr.msk.f32.mxu0 %vm959_vm1, %v3642_v50  ;;  %v3664_v29 = vsel %vm959_vm1, %v3642_v50, 0.0 }
 0xd7b   : > { %3659 = vadd.xlane.f32.xlu0 %v3658_v30  ;;  %14804 = vmatmul.mubr.msk.f32.gmra.mxu0 %vm959_vm1, %v3643_v23 }
 0xd7f   : > { %3665 = vadd.xlane.f32.xlu0 %v3664_v29 }
 0xdf6   : > { %v3651_v10 = vpop.xlane.xlu1 %3650 }
 0xdf7   : > { %v3671_v28 = vmul.f32 0.03125, %v3651_v10 }
 0xdf8   : > { %v3648_v35 = vpop.xlane.xlu0 %3647 }
 0xdf9   : > { %v17051_v13 = vsub.f32 %v16985_v7, %v3671_v28  ;;  %v3670_v20 = vmul.f32 0.03125, %v3648_v35 }
 0xdfb   : > { %v17054_v51 = vsub.f32 %v16990_v5, %v3670_v20  ;;  %v3687_v62 = vmul.f32 %v17051_v13, %v17051_v13 }
 0xdfc   : > { %v3657_v16 = vpop.xlane.xlu0 %3656 }
 0xdfd   : > { %v3673_v27 = vmul.f32 0.03125, %v3657_v16  ;;  %v3697_v38 = vsel %vm959_vm1, %v3687_v62, 0.0  ;;  %v3686_v8 = vmul.f32 %v17054_v51, %v17054_v51 }
 0xdfe   : > { %v3663_v55 = vpop.xlane.xlu1 %3662  ;;  %3698 = vadd.xlane.f32.xlu1 %v3697_v38 }
 0xdff   : > { %v17062_v15 = vsub.f32 %v16995_v24, %v3673_v27  ;;  %v3675_v41 = vmul.f32 0.03125, %v3663_v55  ;;  %v3694_v43 = vsel %vm959_vm1, %v3686_v8, 0.0  ;;  %v13052_v8 = vld [vmem:[%s16150_s14] ss:$0 sm:$0xff] }
 0xe00   : > { %v3654_v33 = vpop.xlane.xlu0 %3653  ;;  %3695 = vadd.xlane.f32.xlu0 %v3694_v43 }
 0xe01   : > { %v17065_v22 = vsub.f32 %v3641_v1, %v3675_v41  ;;  %v3672_v61 = vmul.f32 0.03125, %v3654_v33  ;;  %v3689_v31 = vmul.f32 %v17062_v15, %v17062_v15  ;;  %v3935_v1 = vld [vmem:[%s16170_s6] sm:$0xff] }
 0xe02   : > { %v3669_v37 = vpop.xlane.xlu1 %3668  ;;  %14832 = vmatprep.subr.mxu0 %v3935_v1 }
 0xe03   : > { %v17070_v59 = vsub.f32 %v17006_v63, %v3672_v61  ;;  %v3677_v32 = vmul.f32 0.03125, %v3669_v37  ;;  %v3703_v3 = vsel %vm959_vm1, %v3689_v31, 0.0  ;;  %v3691_v4 = vmul.f32 %v17065_v22, %v17065_v22  ;;  %v13065_v63 = vld [vmem:[%s16170_s6 + $0x30] sm:$0xff]  ;;  %14833 = vmatpush3.msra.mxu0 %v3935_v1  ;;  %v13053_v61 = vld [vmem:[%s16155_s19] ss:$0 sm:$0xff]  ;;  %v13084_v1 = vld [vmem:[%s16170_s6 + $0x48] sm:$0xff] }
 0xe04   : > { %v3660_v57 = vpop.xlane.xlu0 %3659  ;;  %3704 = vadd.xlane.f32.xlu1 %v3703_v3  ;;  %14808 = vmatprep.subr.mxu1 %v13065_v63 }
 0xe05   : > { %v17075_v7 = vsub.f32 %v3643_v23, %v3677_v32  ;;  %v3674_v9 = vmul.f32 0.03125, %v3660_v57  ;;  %v3688_v56 = vmul.f32 %v17070_v59, %v17070_v59  ;;  %v3709_v49 = vsel %vm959_vm1, %v3691_v4, 0.0  ;;  %14809 = vmatpush3.msra.mxu1 %v13065_v63 }
 0xe06   : > { %14810 = vmatprep.subr.mxu1 %v13064_v17 }
 0xe07   : > { %v17079_v11 = vsub.f32 %v3640_v25, %v3674_v9  ;;  %v3700_v5 = vsel %vm959_vm1, %v3688_v56, 0.0  ;;  %v3693_v40 = vmul.f32 %v17075_v7, %v17075_v7  ;;  %14811 = vmatpush3.msra.mxu1 %v13064_v17  ;;  %v13085_v17 = vld [vmem:[%s16170_s6 + $0x50] sm:$0xff] }
 0xe08   : > { %3710 = vadd.xlane.f32.xlu1 %v3709_v49  ;;  %3701 = vadd.xlane.f32.xlu0 %v3700_v5  ;;  %v3666_v58 = vpop.xlane.xlu0 %3665 }
 0xe09   : > { %v3676_v14 = vmul.f32 0.03125, %v3666_v58  ;;  %v3690_v42 = vmul.f32 %v17079_v11, %v17079_v11  ;;  %v3715_v24 = vsel %vm959_vm1, %v3693_v40, 0.0  ;;  %14812 = vmatprep.subr.mxu1 %v13063_v34 }
 0xe0a   : > { %14813 = vmatpush3.msra.mxu1 %v13063_v34 }
 0xe0b   : > { %v17087_v21 = vsub.f32 %v3642_v50, %v3676_v14  ;;  %v3706_v12 = vsel %vm959_vm1, %v3690_v42, 0.0  ;;  %14846 = vmatprep.subr.mxu1 %v17103_v36 }
 0xe0c   : > { %3716 = vadd.xlane.f32.xlu1 %v3715_v24  ;;  %3707 = vadd.xlane.f32.xlu0 %v3706_v12 }
 0xe0d   : > { %v3692_v39 = vmul.f32 %v17087_v21, %v17087_v21 }
 0xe0f   : > { %v3712_v52 = vsel %vm959_vm1, %v3692_v39, 0.0 }
 0xe10   : > { %3713 = vadd.xlane.f32.xlu0 %v3712_v52 }
 0xe87   : > { %v3699_v60 = vpop.xlane.xlu1 %3698 }
 0xe88   : > { %v3719_v18 = vmul.f32 0.03125, %v3699_v60 }
 0xe89   : > { %v3696_v26 = vpop.xlane.xlu0 %3695 }
 0xe8a   : > { %v3727_v25 = vadd.f32 1e-05, %v3719_v18  ;;  %v3718_v44 = vmul.f32 0.03125, %v3696_v26  ;;  %v13083_v26 = vld [vmem:[%s16170_s6 + $0x40] sm:$0xff] }
 0xe8c   : > { %15925 = vrsqrt.f32 %v3727_v25  ;;  %v3726_v46 = vadd.f32 1e-05, %v3718_v44 }
 0xe8d   : > { %v3705_v0 = vpop.xlane.xlu1 %3704 }
 0xe8e   : > { %15927 = vrsqrt.f32 %v3726_v46  ;;  %v3721_v23 = vmul.f32 0.03125, %v3705_v0 }
 0xe90   : > { %v3729_v48 = vadd.f32 1e-05, %v3721_v23 }
 0xe91   : > { %v3711_v54 = vpop.xlane.xlu1 %3710  ;;  %v3702_v50 = vpop.xlane.xlu0 %3701 }
 0xe92   : > { %15929 = vrsqrt.f32 %v3729_v48  ;;  %v3723_v53 = vmul.f32 0.03125, %v3711_v54  ;;  %v3720_v30 = vmul.f32 0.03125, %v3702_v50 }
 0xe94   : > { %v3731_v29 = vadd.f32 1e-05, %v3723_v53  ;;  %v3728_v10 = vadd.f32 1e-05, %v3720_v30 }
 0xe95   : > { %v3717_v28 = vpop.xlane.xlu1 %3716  ;;  %v3708_v35 = vpop.xlane.xlu0 %3707 }
 0xe96   : > { %15931 = vrsqrt.f32 %v3731_v29  ;;  %v3725_v20 = vmul.f32 0.03125, %v3717_v28  ;;  %v3722_v62 = vmul.f32 0.03125, %v3708_v35 }
 0xe97   : > { %15933 = vrsqrt.f32 %v3728_v10 }
 0xe98   : > { %v3733_v16 = vadd.f32 1e-05, %v3725_v20  ;;  %v3730_v27 = vadd.f32 1e-05, %v3722_v62 }
 0xe99   : > { %v15926_v38 = vpop.eup %15925  ;;  %v3714_v55 = vpop.xlane.xlu0 %3713 }
 0xe9a   : > { %v3743_v41 = vmul.f32 %v15926_v38, %v17051_v13  ;;  %15935 = vrsqrt.f32 %v3733_v16  ;;  %v3724_v43 = vmul.f32 0.03125, %v3714_v55  ;;  %v4431_v55 = vld [vmem:[%s16180_s20] sm:$0x1f] }
 0xe9b   : > { %v15928_v33 = vpop.eup %15927  ;;  %15937 = vrsqrt.f32 %v3730_v27 }
 0xe9c   : > { %v3757_v31 = vmul.f32 %v13052_v8, %v3743_v41  ;;  %v3742_v37 = vmul.f32 %v15928_v33, %v17054_v51  ;;  %v3732_v32 = vadd.f32 1e-05, %v3724_v43  ;;  %v17179_v41 = vld [vmem:[%s16180_s20 + $0x10] sm:$0x1f]  ;;  %v17183_v43 = vpop.f32.mrf.mxu0 }
 0xe9e   : > { %v3771_v3 = vadd.f32 %v13053_v61, %v3757_v31  ;;  %v3756_v4 = vmul.f32 %v13052_v8, %v3742_v37  ;;  %15939 = vrsqrt.f32 %v3732_v32  ;;  %v17185_v33 = vpop.f32.mrf.mxu0 }
 0xe9f   : > { %v15930_v57 = vpop.eup %15929 }
 0xea0   : > { %3920 = vst.msk [vmem:[#allocation2 + $0x10] sm:$0xff] %vm959_vm1, %v3771_v3  ;;  %v3770_v9 = vadd.f32 %v13053_v61, %v3756_v4  ;;  %v3745_v56 = vmul.f32 %v15930_v57, %v17062_v15 }
 0xea2   : > { %3919 = vst.msk [vmem:[#allocation2 + $0x8] sm:$0xff] %vm959_vm1, %v3770_v9  ;;  %v3759_v13 = vmul.f32 %v13052_v8, %v3745_v56 }
 0xea3   : > { %v15932_v49 = vpop.eup %15931 }
 0xea4   : > { %v15934_v5 = vpop.eup %15933  ;;  %v3773_v40 = vadd.f32 %v13053_v61, %v3759_v13  ;;  %v3747_v58 = vmul.f32 %v15932_v49, %v17065_v22 }
 0xea5   : > { %v3744_v51 = vmul.f32 %v15934_v5, %v17070_v59 }
 0xea6   : > { %3922 = vst.msk [vmem:[#allocation2 + $0x20] sm:$0xff] %vm959_vm1, %v3773_v40  ;;  %v3761_v14 = vmul.f32 %v13052_v8, %v3747_v58 }
 0xea7   : > { %v15936_v42 = vpop.eup %15935  ;;  %v3758_v24 = vmul.f32 %v13052_v8, %v3744_v51  ;;  %v3940_v59 = vld [vmem:[#allocation2 + $0x10] sm:$0xff] }
 0xea8   : > { %v15938_v12 = vpop.eup %15937  ;;  %v3775_v39 = vadd.f32 %v13053_v61, %v3761_v14  ;;  %v3749_v15 = vmul.f32 %v15936_v42, %v17075_v7 }
 0xea9   : > { %v3772_v52 = vadd.f32 %v13053_v61, %v3758_v24  ;;  %v3746_v19 = vmul.f32 %v15938_v12, %v17079_v11  ;;  %v3939_v45 = vld [vmem:[#allocation2 + $0x8] sm:$0xff] }
 0xeaa   : > { %v3927_v63 = vld [vmem:[#allocation2 + $0x7] sm:$0xff]  ;;  %v3928_v2 = vld [vmem:[#allocation2 + $0xf] sm:$0xff]  ;;  %3924 = vst.msk [vmem:[#allocation2 + $0x30] sm:$0xff] %vm959_vm1, %v3775_v39  ;;  %v3763_v22 = vmul.f32 %v13052_v8, %v3749_v15  ;;  %14814 = vmatprep.mubr.msk.f32.mxu1 %vm959_vm1, %v3939_v45  ;;  %v13095_v15 = vld [vmem:[%s19078_s28] ss:$0 sm:$0xff]  ;;  %s19094_s28 = sld [smem:[#allocation15_spill]] }
 0xeab   : > { %14834 = vmatprep.mubr.msk.f32.mxu0 %vm959_vm1, %v3927_v63  ;;  %v15940_v47 = vpop.eup %15939  ;;  %3921 = vst.msk [vmem:[#allocation2 + $0x18] sm:$0xff] %vm959_vm1, %v3772_v52  ;;  %v3760_v7 = vmul.f32 %v13052_v8, %v3746_v19  ;;  %14815 = vmatmul.mubr.msk.f32.vlgmr.msra.gmra.mxu1 %vm959_vm1, %v3940_v59  ;;  %v4210_v10 = vld [vmem:[#allocation2 + $0x9] sm:$0xff] }
 0xeac   : > { %14835 = vmatmul.mubr.msk.f32.vlgmr.msra.gmra.mxu0 %vm959_vm1, %v3928_v2  ;;  %v3777_v11 = vadd.f32 %v13053_v61, %v3763_v22  ;;  %v3748_v34 = vmul.f32 %v15940_v47, %v17087_v21  ;;  %14847 = vmatpush3.msra.mxu1 %v17103_v36 }
 0xead   : > { %v3774_v60 = vadd.f32 %v13053_v61, %v3760_v7  ;;  %14848 = vmatprep.subr.mxu1 %v13085_v17  ;;  %v3942_v36 = vld [vmem:[#allocation2 + $0x20] sm:$0xff] }
 0xeae   : > { %3926 = vst.msk [vmem:[#allocation2 + $0x40] sm:$0xff] %vm959_vm1, %v3777_v11  ;;  %v3762_v18 = vmul.f32 %v13052_v8, %v3748_v34  ;;  %14849 = vmatpush3.msra.mxu1 %v13085_v17  ;;  %v13096_v8 = vld [vmem:[%s16180_s20 + $0x8] sm:$0x1f] }
 0xeaf   : > { %3923 = vst.msk [vmem:[#allocation2 + $0x28] sm:$0xff] %vm959_vm1, %v3774_v60  ;;  %14850 = vmatprep.subr.mxu1 %v13084_v1  ;;  %14866 = vmatprep.subr.msk.mxu0 %vm4466_vm4, %v13096_v8 }
 0xeb0   : > { %v3776_v25 = vadd.f32 %v13053_v61, %v3762_v18  ;;  %14851 = vmatpush3.msra.mxu1 %v13084_v1  ;;  %14867 = vmatpush3.msk.msra.mxu0 %vm4466_vm4, %v13096_v8  ;;  %v17187_v61 = vpop.f32.mrf.mxu0 }
 0xeb1   : > { %14852 = vmatprep.subr.mxu1 %v13083_v26  ;;  %v3944_v54 = vld [vmem:[#allocation2 + $0x30] sm:$0xff]  ;;  %14894 = vmatprep.subr.msk.mxu0 %vm4466_vm4, %v17179_v41 }
 0xeb2   : > { %3925 = vst.msk [vmem:[#allocation2 + $0x38] sm:$0xff] %vm959_vm1, %v3776_v25  ;;  %v3941_v44 = vld [vmem:[#allocation2 + $0x18] sm:$0xff]  ;;  %14853 = vmatpush3.msra.mxu1 %v13083_v26  ;;  %v17189_v31 = vpop.f32.mrf.mxu0 }
 0xeb3   : > { %v3929_v21 = vld [vmem:[#allocation2 + $0x17] sm:$0xff]  ;;  %v3930_v46 = vld [vmem:[#allocation2 + $0x1f] sm:$0xff]  ;;  %14817 = vmatprep.mubr.msk.f32.mxu1 %vm959_vm1, %v3941_v44  ;;  %14880 = vmatprep.subr.msk.mxu1 %vm4466_vm4, %v4431_v55 }
 0xeb4   : > { %14837 = vmatprep.mubr.msk.f32.mxu0 %vm959_vm1, %v3929_v21  ;;  %14818 = vmatmul.mubr.msk.f32.gmra.mxu1 %vm959_vm1, %v3942_v36  ;;  %v4211_v28 = vld [vmem:[#allocation2 + $0x11] sm:$0xff]  ;;  %v4212_v35 = vld [vmem:[#allocation2 + $0x19] sm:$0xff]  ;;  %v17191_v37 = vpop.f32.mrf.mxu0 }
 0xeb5   : > { %14838 = vmatmul.mubr.msk.f32.gmra.mxu0 %vm959_vm1, %v3930_v46  ;;  %v3946_v29 = vld [vmem:[#allocation2 + $0x40] sm:$0xff] }
 0xeb6   : > { %v3943_v0 = vld [vmem:[#allocation2 + $0x28] sm:$0xff]  ;;  %v17193_v32 = vpop.f32.mrf.mxu0 }
 0xeb7   : > { %v3931_v23 = vld [vmem:[#allocation2 + $0x27] sm:$0xff]  ;;  %v3932_v48 = vld [vmem:[#allocation2 + $0x2f] sm:$0xff]  ;;  %14820 = vmatprep.mubr.msk.f32.mxu1 %vm959_vm1, %v3943_v0 }
 0xeb8   : > { %14840 = vmatprep.mubr.msk.f32.mxu0 %vm959_vm1, %v3931_v23  ;;  %14821 = vmatmul.mubr.msk.f32.gmra.mxu1 %vm959_vm1, %v3944_v54  ;;  %v4213_v20 = vld [vmem:[#allocation2 + $0x21] sm:$0xff]  ;;  %v4214_v62 = vld [vmem:[#allocation2 + $0x29] sm:$0xff]  ;;  %v17195_v3 = vpop.f32.mrf.mxu0 }
 0xeb9   : > { %14841 = vmatmul.mubr.msk.f32.gmra.mxu0 %vm959_vm1, %v3932_v48  ;;  %v3945_v50 = vld [vmem:[#allocation2 + $0x38] sm:$0xff]  ;;  %v4217_v38 = vld [vmem:[#allocation2 + $0x41] sm:$0xff] }
 0xeba   : > { %v3933_v53 = vld [vmem:[#allocation2 + $0x37] sm:$0xff]  ;;  %v3934_v30 = vld [vmem:[#allocation2 + $0x3f] sm:$0xff]  ;;  %14823 = vmatprep.mubr.msk.f32.mxu1 %vm959_vm1, %v3945_v50  ;;  %v17197_v57 = vpop.f32.mrf.mxu0 }
 0xebb   : > { %14843 = vmatprep.mubr.msk.f32.mxu0 %vm959_vm1, %v3933_v53  ;;  %v4215_v16 = vld [vmem:[#allocation2 + $0x31] sm:$0xff]  ;;  %v4216_v27 = vld [vmem:[#allocation2 + $0x39] sm:$0xff] }
 0xebc   : > { %14824 = vmatmul.mubr.msk.f32.gmra.mxu1 %vm959_vm1, %v3946_v29 }
 0xebd   : > { %14844 = vmatmul.mubr.msk.f32.gmra.mxu0 %vm959_vm1, %v3934_v30  ;;  %14854 = vmatprep.mubr.msk.f32.mxu1 %vm959_vm1, %v4210_v10 }
 0xec0   : > { %14855 = vmatmul.mubr.msk.f32.vlgmr.msra.gmra.mxu1 %vm959_vm1, %v4211_v28 }
 0xec1   : > { %14857 = vmatprep.mubr.msk.f32.mxu1 %vm959_vm1, %v4212_v35  ;;  %14881 = vmatpush3.msk.msra.mxu1 %vm4466_vm4, %v4431_v55 }
 0xec4   : > { %14858 = vmatmul.mubr.msk.f32.gmra.mxu1 %vm959_vm1, %v4213_v20 }
 0xec5   : > { %14860 = vmatprep.mubr.msk.f32.mxu1 %vm959_vm1, %v4214_v62 }
 0xec8   : > { %14861 = vmatmul.mubr.msk.f32.gmra.mxu1 %vm959_vm1, %v4215_v16 }
 0xec9   : > { %14863 = vmatprep.mubr.msk.f32.mxu1 %vm959_vm1, %v4216_v27 }
 0xecc   : > { %14864 = vmatmul.mubr.msk.f32.gmra.mxu1 %vm959_vm1, %v4217_v38 }
 0xf6b   : > { %v14816_v4 = vpop.f32.mrf.mxu1 }
 0xf6c   : > { %v14836_v9 = vpop.f32.mrf.mxu0 }
 0xf6d   : > { %v4042_v56 = vpop.f32.mrf.mxu1  ;;  %v4177_v12 = vadd.f32 %v14836_v9, %v14816_v4 }
 0xf6e   : > { %v4171_v49 = vpop.f32.mrf.mxu0 }
 0xf6f   : > { %v4172_v19 = vadd.f32 %v4171_v49, %v4042_v56 }
 0xf74   : > { %v14819_v13 = vpop.f32.mrf.mxu1 }
 0xf75   : > { %v14839_v40 = vpop.f32.mrf.mxu0 }
 0xf76   : > { %v4052_v5 = vpop.f32.mrf.mxu1  ;;  %v4187_v2 = vadd.f32 %v14839_v40, %v14819_v13 }
 0xf77   : > { %v4181_v14 = vpop.f32.mrf.mxu0 }
 0xf78   : > { %v14822_v58 = vpop.f32.mrf.mxu1  ;;  %v4182_v1 = vadd.f32 %v4181_v14, %v4052_v5 }
 0xf79   : > { %v14842_v39 = vpop.f32.mrf.mxu0 }
 0xf7a   : > { %v4062_v51 = vpop.f32.mrf.mxu1  ;;  %v4197_v18 = vadd.f32 %v14842_v39, %v14822_v58 }
 0xf7b   : > { %v4191_v22 = vpop.f32.mrf.mxu0 }
 0xf7c   : > { %v14825_v42 = vpop.f32.mrf.mxu1  ;;  %v4192_v36 = vadd.f32 %v4191_v22, %v4062_v51 }
 0xf7d   : > { %v14845_v26 = vpop.f32.mrf.mxu0 }
 0xf7e   : > { %v4072_v24 = vpop.f32.mrf.mxu1  ;;  %v4207_v50 = vadd.f32 %v14845_v26, %v14825_v42 }
 0xf7f   : > { %v4201_v53 = vpop.f32.mrf.mxu0 }
 0xf80   : > { %v14856_v52 = vpop.f32.mrf.mxu1  ;;  %v4202_v16 = vadd.f32 %v4201_v53, %v4072_v24 }
 0xf81   : > { %v4353_v45 = vadd.f32 %v14856_v52, %v4177_v12 }
 0xf82   : > { %v4313_v63 = vpop.f32.mrf.mxu1 }
 0xf83   : > { %v4367_v59 = vadd.f32 %v13095_v15, %v4353_v45  ;;  %v4352_v17 = vadd.f32 %v4313_v63, %v4172_v19 }
 0xf84   : > { %v14859_v47 = vpop.f32.mrf.mxu1 }
 0xf85   : > { %v4383_v7 = vmul.f32 0.70710677, %v4367_v59  ;;  %v4366_v11 = vadd.f32 %v13095_v15, %v4352_v17  ;;  %v4355_v34 = vadd.f32 %v14859_v47, %v4187_v2  ;;  %v4375_v49 = vmul.f32 0.5, %v4367_v59 }
 0xf86   : > { %v4323_v60 = vpop.f32.mrf.mxu1 }
 0xf87   : > { %15941 = verf.f32 %v4383_v7  ;;  %v4382_v25 = vmul.f32 0.70710677, %v4366_v11  ;;  %v4369_v44 = vadd.f32 %v13095_v15, %v4355_v34  ;;  %v4354_v21 = vadd.f32 %v4323_v60, %v4182_v1 }
 0xf88   : > { %v14862_v46 = vpop.f32.mrf.mxu1  ;;  %v4374_v51 = vmul.f32 0.5, %v4366_v11 }
 0xf89   : > { %15943 = verf.f32 %v4382_v25  ;;  %v4385_v0 = vmul.f32 0.70710677, %v4369_v44  ;;  %v4357_v23 = vadd.f32 %v14862_v46, %v4197_v18  ;;  %v4368_v48 = vadd.f32 %v13095_v15, %v4354_v21 }
 0xf8a   : > { %v4333_v54 = vpop.f32.mrf.mxu1  ;;  %v4377_v12 = vmul.f32 0.5, %v4369_v44 }
 0xf8b   : > { %15945 = verf.f32 %v4385_v0  ;;  %v4371_v30 = vadd.f32 %v13095_v15, %v4357_v23  ;;  %v4356_v29 = vadd.f32 %v4333_v54, %v4192_v36  ;;  %v4384_v10 = vmul.f32 0.70710677, %v4368_v48 }
 0xf8c   : > { %v14865_v28 = vpop.f32.mrf.mxu1  ;;  %v4376_v45 = vmul.f32 0.5, %v4368_v48 }
 0xf8d   : > { %v4387_v35 = vmul.f32 0.70710677, %v4371_v30  ;;  %v4370_v20 = vadd.f32 %v13095_v15, %v4356_v29  ;;  %v4359_v62 = vadd.f32 %v14865_v28, %v4207_v50  ;;  %15947 = verf.f32 %v4384_v10 }
 0xf8e   : > { %v4343_v27 = vpop.f32.mrf.mxu1  ;;  %v4379_v2 = vmul.f32 0.5, %v4371_v30 }
 0xf8f   : > { %15949 = verf.f32 %v4387_v35  ;;  %v4386_v38 = vmul.f32 0.70710677, %v4370_v20  ;;  %v4373_v8 = vadd.f32 %v13095_v15, %v4359_v62  ;;  %v4358_v55 = vadd.f32 %v4343_v27, %v4202_v16 }
 0xf90   : > { %v4378_v7 = vmul.f32 0.5, %v4370_v20 }
 0xf91   : > { %15951 = verf.f32 %v4386_v38  ;;  %v4389_v4 = vmul.f32 0.70710677, %v4373_v8  ;;  %v4372_v9 = vadd.f32 %v13095_v15, %v4358_v55  ;;  %v4381_v60 = vmul.f32 0.5, %v4373_v8 }
 0xf93   : > { %15953 = verf.f32 %v4389_v4  ;;  %v4388_v13 = vmul.f32 0.70710677, %v4372_v9  ;;  %v4380_v0 = vmul.f32 0.5, %v4372_v9 }
 0xf94   : > { %v15942_v56 = vpop.eup %15941 }
 0xf95   : > { %v4399_v5 = vadd.f32 1.0, %v15942_v56  ;;  %15955 = verf.f32 %v4388_v13 }
 0xf96   : > { %v15944_v40 = vpop.eup %15943 }
 0xf97   : > { %v4407_v58 = vmul.f32 %v4399_v5, %v4375_v49  ;;  %v4398_v14 = vadd.f32 1.0, %v15944_v40 }
 0xf98   : > { %v15946_v42 = vpop.eup %15945 }
 0xf99   : > { %4416 = vst.msk [vmem:[#allocation3 + $0x10] sm:$0xff] %vm970_vm3, %v4407_v58  ;;  %v4406_v24 = vmul.f32 %v4398_v14, %v4374_v51  ;;  %v4401_v39 = vadd.f32 1.0, %v15946_v42 }
 0xf9a   : > { %v15948_v52 = vpop.eup %15947 }
 0xf9b   : > { %4415 = vst.msk [vmem:[#allocation3 + $0x8] sm:$0xff] %vm970_vm3, %v4406_v24  ;;  %v4409_v15 = vmul.f32 %v4401_v39, %v4377_v12  ;;  %v4400_v63 = vadd.f32 1.0, %v15948_v52 }
 0xf9c   : > { %v15950_v19 = vpop.eup %15949 }
 0xf9d   : > { %4418 = vst.msk [vmem:[#allocation3 + $0x20] sm:$0xff] %vm970_vm3, %v4409_v15  ;;  %v4403_v22 = vadd.f32 1.0, %v15950_v19  ;;  %v4408_v17 = vmul.f32 %v4400_v63, %v4376_v45  ;;  %v13054_v63 = vld [vmem:[%s19079_s1] ss:$0 sm:$0xff]  ;;  %s19095_s1 = sld [smem:[#allocation17_spill]] }
 0xf9e   : > { %v15952_v59 = vpop.eup %15951 }
 0xf9f   : > { %v4411_v47 = vmul.f32 %v4403_v22, %v4379_v2  ;;  %v4402_v11 = vadd.f32 1.0, %v15952_v59  ;;  %4417 = vst.msk [vmem:[#allocation3 + $0x18] sm:$0xff] %vm970_vm3, %v4408_v17  ;;  %v13125_v2 = vld [vmem:[%s19080_s2] ss:$0 sm:$0xff]  ;;  %s19101_s2 = sld [smem:[#allocation18_spill]] }
 0xfa0   : > { %v15954_v34 = vpop.eup %15953  ;;  %v4433_v36 = vld [vmem:[#allocation3 + $0x10] sm:$0xff] }
 0xfa1   : > { %4420 = vst.msk [vmem:[#allocation3 + $0x30] sm:$0xff] %vm970_vm3, %v4411_v47  ;;  %v4410_v1 = vmul.f32 %v4402_v11, %v4378_v7  ;;  %v4405_v18 = vadd.f32 1.0, %v15954_v34  ;;  %v3885_v11 = vadd.f32 %v17183_v43, %v13054_v63 }
 0xfa2   : > { %v4432_v26 = vld [vmem:[#allocation3 + $0x8] sm:$0xff]  ;;  %v15956_v21 = vpop.eup %15955 }
 0xfa3   : > { %v4423_v25 = vld [vmem:[#allocation3 + $0x7] sm:$0xff]  ;;  %v4424_v44 = vld [vmem:[#allocation3 + $0xf] sm:$0xff]  ;;  %4419 = vst.msk [vmem:[#allocation3 + $0x28] sm:$0xff] %vm970_vm3, %v4410_v1  ;;  %v4413_v46 = vmul.f32 %v4405_v18, %v4381_v60  ;;  %14868 = vmatprep.mubr.msk.f32.mxu0 %vm970_vm3, %v4432_v26  ;;  %v4404_v23 = vadd.f32 1.0, %v15956_v21  ;;  %v3880_v18 = vadd.f32 %v13054_v63, %v17185_v33 }
 0xfa4   : > { %14882 = vmatprep.mubr.msk.f32.mxu1 %vm970_vm3, %v4423_v25  ;;  %14869 = vmatmul.mubr.msk.f32.vlgmr.msra.gmra.mxu0 %vm970_vm3, %v4433_v36  ;;  %v4435_v30 = vld [vmem:[#allocation3 + $0x20] sm:$0xff]  ;;  %v4707_v27 = vld [vmem:[#allocation3 + $0x9] sm:$0xff] }
 0xfa5   : > { %14883 = vmatmul.mubr.msk.f32.vlgmr.msra.gmra.mxu1 %vm970_vm3, %v4424_v44  ;;  %4422 = vst.msk [vmem:[#allocation3 + $0x40] sm:$0xff] %vm970_vm3, %v4413_v46  ;;  %14895 = vmatpush3.msk.msra.mxu0 %vm4466_vm4, %v17179_v41  ;;  %v4412_v48 = vmul.f32 %v4404_v23, %v4380_v0  ;;  %v3895_v0 = vadd.f32 %v17187_v61, %v13054_v63 }
 0xfa6   : > { %v4434_v54 = vld [vmem:[#allocation3 + $0x18] sm:$0xff]  ;;  %v3905_v61 = vadd.f32 %v17191_v37, %v13054_v63  ;;  %v3915_v37 = vadd.f32 %v17195_v3, %v13054_v63 }
 0xfa7   : > { %v4425_v50 = vld [vmem:[#allocation3 + $0x17] sm:$0xff]  ;;  %v4426_v53 = vld [vmem:[#allocation3 + $0x1f] sm:$0xff]  ;;  %4421 = vst.msk [vmem:[#allocation3 + $0x38] sm:$0xff] %vm970_vm3, %v4412_v48  ;;  %14871 = vmatprep.mubr.msk.f32.mxu0 %vm970_vm3, %v4434_v54 }
 0xfa8   : > { %14885 = vmatprep.mubr.msk.f32.mxu1 %vm970_vm3, %v4425_v50  ;;  %14872 = vmatmul.mubr.msk.f32.gmra.mxu0 %vm970_vm3, %v4435_v30  ;;  %v4437_v41 = vld [vmem:[#allocation3 + $0x30] sm:$0xff]  ;;  %v4709_v8 = vld [vmem:[#allocation3 + $0x19] sm:$0xff]  ;;  %v3890_v30 = vadd.f32 %v13054_v63, %v17189_v31  ;;  %v3900_v31 = vadd.f32 %v13054_v63, %v17193_v32  ;;  %v3910_v32 = vadd.f32 %v13054_v63, %v17197_v57 }
 0xfa9   : > { %14886 = vmatmul.mubr.msk.f32.gmra.mxu1 %vm970_vm3, %v4426_v53  ;;  %v4708_v38 = vld [vmem:[#allocation3 + $0x11] sm:$0xff] }
 0xfaa   : > { %v4436_v29 = vld [vmem:[#allocation3 + $0x28] sm:$0xff] }
 0xfab   : > { %v4427_v10 = vld [vmem:[#allocation3 + $0x27] sm:$0xff]  ;;  %v4428_v28 = vld [vmem:[#allocation3 + $0x2f] sm:$0xff]  ;;  %14874 = vmatprep.mubr.msk.f32.mxu0 %vm970_vm3, %v4436_v29 }
 0xfac   : > { %14888 = vmatprep.mubr.msk.f32.mxu1 %vm970_vm3, %v4427_v10  ;;  %14875 = vmatmul.mubr.msk.f32.gmra.mxu0 %vm970_vm3, %v4437_v41  ;;  %v4439_v16 = vld [vmem:[#allocation3 + $0x40] sm:$0xff]  ;;  %v4711_v4 = vld [vmem:[#allocation3 + $0x29] sm:$0xff] }
 0xfad   : > { %14889 = vmatmul.mubr.msk.f32.gmra.mxu1 %vm970_vm3, %v4428_v28  ;;  %v4710_v55 = vld [vmem:[#allocation3 + $0x21] sm:$0xff] }
 0xfae   : > { %v4438_v35 = vld [vmem:[#allocation3 + $0x38] sm:$0xff]  ;;  %v4714_v13 = vld [vmem:[#allocation3 + $0x41] sm:$0xff] }
 0xfaf   : > { %v4429_v20 = vld [vmem:[#allocation3 + $0x37] sm:$0xff]  ;;  %v4430_v62 = vld [vmem:[#allocation3 + $0x3f] sm:$0xff]  ;;  %14877 = vmatprep.mubr.msk.f32.mxu0 %vm970_vm3, %v4438_v35 }
 0xfb0   : > { %14891 = vmatprep.mubr.msk.f32.mxu1 %vm970_vm3, %v4429_v20  ;;  %14878 = vmatmul.mubr.msk.f32.gmra.mxu0 %vm970_vm3, %v4439_v16  ;;  %v4712_v9 = vld [vmem:[#allocation3 + $0x31] sm:$0xff]  ;;  %v4713_v56 = vld [vmem:[#allocation3 + $0x39] sm:$0xff] }
 0xfb1   : > { %14892 = vmatmul.mubr.msk.f32.gmra.mxu1 %vm970_vm3, %v4430_v62  ;;  %14896 = vmatprep.mubr.msk.f32.mxu0 %vm970_vm3, %v4707_v27 }
 0xfb4   : > { %14897 = vmatmul.mubr.msk.f32.vlgmr.msra.gmra.mxu0 %vm970_vm3, %v4708_v38 }
 0xfb5   : > { %14899 = vmatprep.mubr.msk.f32.mxu0 %vm970_vm3, %v4709_v8 }
 0xfb8   : > { %14900 = vmatmul.mubr.msk.f32.gmra.mxu0 %vm970_vm3, %v4710_v55 }
 0xfb9   : > { %14902 = vmatprep.mubr.msk.f32.mxu0 %vm970_vm3, %v4711_v4 }
 0xfbc   : > { %14903 = vmatmul.mubr.msk.f32.gmra.mxu0 %vm970_vm3, %v4712_v9 }
 0xfbd   : > { %14905 = vmatprep.mubr.msk.f32.mxu0 %vm970_vm3, %v4713_v56 }
 0xfc0   : > { %14906 = vmatmul.mubr.msk.f32.gmra.mxu0 %vm970_vm3, %v4714_v13 }
0x1064   : > { %v14870_v49 = vpop.f32.mrf.mxu0 }
0x1065   : > { %v14884_v5 = vpop.f32.mrf.mxu1 }
0x1066   : > { %v4536_v40 = vpop.f32.mrf.mxu0  ;;  %v4674_v45 = vadd.f32 %v14884_v5, %v14870_v49 }
0x1067   : > { %v4668_v58 = vpop.f32.mrf.mxu1 }
0x1068   : > { %v14873_v51 = vpop.f32.mrf.mxu0  ;;  %v4669_v59 = vadd.f32 %v4668_v58, %v4536_v40 }
0x1069   : > { %v14887_v14 = vpop.f32.mrf.mxu1 }
0x106a   : > { %v4546_v42 = vpop.f32.mrf.mxu0  ;;  %v4684_v34 = vadd.f32 %v14887_v14, %v14873_v51 }
0x106b   : > { %v4678_v12 = vpop.f32.mrf.mxu1 }
0x106c   : > { %v14876_v24 = vpop.f32.mrf.mxu0  ;;  %v4679_v25 = vadd.f32 %v4678_v12, %v4546_v42 }
0x106d   : > { %v14890_v15 = vpop.f32.mrf.mxu1 }
0x106e   : > { %v4556_v39 = vpop.f32.mrf.mxu0  ;;  %v4694_v23 = vadd.f32 %v14890_v15, %v14876_v24 }
0x106f   : > { %v4688_v17 = vpop.f32.mrf.mxu1 }
0x1070   : > { %v14879_v52 = vpop.f32.mrf.mxu0  ;;  %v4689_v29 = vadd.f32 %v4688_v17, %v4556_v39 }
0x1071   : > { %v14893_v44 = vpop.f32.mrf.mxu1 }
0x1072   : > { %v4566_v19 = vpop.f32.mrf.mxu0  ;;  %v4704_v62 = vadd.f32 %v14893_v44, %v14879_v52 }
0x1073   : > { %v4698_v10 = vpop.f32.mrf.mxu1 }
0x1074   : > { %v14898_v22 = vpop.f32.mrf.mxu0  ;;  %v4699_v4 = vadd.f32 %v4698_v10, %v4566_v19 }
0x1075   : > { %v4850_v47 = vadd.f32 %v14898_v22, %v4674_v45 }
0x1076   : > { %v4810_v7 = vpop.f32.mrf.mxu0 }
0x1077   : > { %v4864_v1 = vadd.f32 %v13125_v2, %v4850_v47  ;;  %v4849_v60 = vadd.f32 %v4810_v7, %v4669_v59 }
0x1078   : > { %v14901_v26 = vpop.f32.mrf.mxu0 }
0x1079   : > { %v4863_v21 = vadd.f32 %v13125_v2, %v4849_v60  ;;  %v4852_v46 = vadd.f32 %v14901_v26, %v4684_v34  ;;  %v4872_v36 = vadd.f32 %v4864_v1, %v3885_v11 }
0x107a   : > { %v4820_v48 = vpop.f32.mrf.mxu0 }
0x107b   : > { %v4866_v54 = vadd.f32 %v13125_v2, %v4852_v46  ;;  %v4851_v50 = vadd.f32 %v4820_v48, %v4679_v25  ;;  %v4884_v53 = vsel %vm970_vm3, %v4872_v36, 0.0  ;;  %v4871_v43 = vadd.f32 %v4863_v21, %v3880_v18 }
0x107c   : > { %4885 = vadd.xlane.f32.xlu1 %v4884_v53  ;;  %v14904_v33 = vpop.f32.mrf.mxu0 }
0x107d   : > { %v4865_v28 = vadd.f32 %v13125_v2, %v4851_v50  ;;  %v4854_v41 = vadd.f32 %v14904_v33, %v4694_v23  ;;  %v4881_v35 = vsel %vm970_vm3, %v4871_v43, 0.0  ;;  %v4874_v20 = vadd.f32 %v4866_v54, %v3895_v0 }
0x107e   : > { %4882 = vadd.xlane.f32.xlu0 %v4881_v35  ;;  %v4830_v16 = vpop.f32.mrf.mxu0 }
0x107f   : > { %v4868_v27 = vadd.f32 %v13125_v2, %v4854_v41  ;;  %v4853_v38 = vadd.f32 %v4830_v16, %v4689_v29  ;;  %v4890_v8 = vsel %vm970_vm3, %v4874_v20, 0.0  ;;  %v4873_v55 = vadd.f32 %v4865_v28, %v3890_v30 }
0x1080   : > { %4891 = vadd.xlane.f32.xlu1 %v4890_v8  ;;  %v14907_v9 = vpop.f32.mrf.mxu0 }
0x1081   : > { %v4867_v56 = vadd.f32 %v13125_v2, %v4853_v38  ;;  %v4856_v13 = vadd.f32 %v14907_v9, %v4704_v62  ;;  %v4887_v49 = vsel %vm970_vm3, %v4873_v55, 0.0  ;;  %v4876_v5 = vadd.f32 %v4868_v27, %v3905_v61  ;;  %v5014_v38 = vld [vmem:[%s19081_s7] sm:$0x1f]  ;;  %s15726_s7 = smul.u32 96, %s19123_s23 }
0x1082   : > { %4888 = vadd.xlane.f32.xlu0 %v4887_v49  ;;  %v4840_v40 = vpop.f32.mrf.mxu0  ;;  %14908 = vmatprep.subr.msk.mxu1 %vm4466_vm4, %v5014_v38 }
0x1083   : > { %v4870_v58 = vadd.f32 %v13125_v2, %v4856_v13  ;;  %v4855_v51 = vadd.f32 %v4840_v40, %v4699_v4  ;;  %v4896_v14 = vsel %vm970_vm3, %v4876_v5, 0.0  ;;  %v4875_v42 = vadd.f32 %v4867_v56, %v3900_v31  ;;  %14909 = vmatpush3.msk.msra.mxu1 %vm4466_vm4, %v5014_v38  ;;  %v5166_v38 = vld [vmem:[%s19085_s16] sm:$0xff] }
0x1084   : > { %4897 = vadd.xlane.f32.xlu1 %v4896_v14 }
0x1085   : > { %v4869_v24 = vadd.f32 %v13125_v2, %v4855_v51  ;;  %v4893_v12 = vsel %vm970_vm3, %v4875_v42, 0.0  ;;  %v4878_v39 = vadd.f32 %v4870_v58, %v3915_v37 }
0x1086   : > { %4894 = vadd.xlane.f32.xlu0 %v4893_v12 }
0x1087   : > { %v4902_v52 = vsel %vm970_vm3, %v4878_v39, 0.0  ;;  %v4877_v15 = vadd.f32 %v4869_v24, %v3910_v32 }
0x1088   : > { %4903 = vadd.xlane.f32.xlu1 %v4902_v52 }
0x1089   : > { %v4899_v3 = vsel %vm970_vm3, %v4877_v15, 0.0 }
0x108a   : > { %4900 = vadd.xlane.f32.xlu0 %v4899_v3 }
0x1105   : > { %v4886_v19 = vpop.xlane.xlu1 %4885 }
0x1106   : > { %v4907_v45 = vmul.f32 0.2, %v4886_v19 }
0x1107   : > { %v4883_v22 = vpop.xlane.xlu0 %4882 }
0x1108   : > { %v17252_v59 = vsub.f32 %v4872_v36, %v4907_v45  ;;  %v4906_v17 = vmul.f32 0.2, %v4883_v22 }
0x1109   : > { %v4892_v47 = vpop.xlane.xlu1 %4891 }
0x110a   : > { %v17254_v57 = vsub.f32 %v4871_v43, %v4906_v17  ;;  %v4909_v63 = vmul.f32 0.2, %v4892_v47  ;;  %v4923_v2 = vmul.f32 %v17252_v59, %v17252_v59  ;;  %v13126_v17 = vld [vmem:[%s19082_s10] ss:$0 sm:$0xff]  ;;  %s18990_s10 = scalar_lea.vmem %s16260_s12, %s15726_s7 }
0x110b   : > { %v4889_v7 = vpop.xlane.xlu0 %4888 }
0x110c   : > { %v17258_v11 = vsub.f32 %v4874_v20, %v4909_v63  ;;  %v4908_v34 = vmul.f32 0.2, %v4889_v7  ;;  %v4933_v1 = vsel %vm970_vm3, %v4923_v2, 0.0  ;;  %v4922_v60 = vmul.f32 %v17254_v57, %v17254_v57 }
0x110d   : > { %v4898_v18 = vpop.xlane.xlu1 %4897  ;;  %4934 = vadd.xlane.f32.xlu1 %v4933_v1  ;;  %v13127_v1 = vld [vmem:[%s19083_s11] ss:$0 sm:$0xff] }
0x110e   : > { %v17263_v26 = vsub.f32 %v4873_v55, %v4908_v34  ;;  %v4911_v25 = vmul.f32 0.2, %v4898_v18  ;;  %v4930_v44 = vsel %vm970_vm3, %v4922_v60, 0.0  ;;  %v4925_v21 = vmul.f32 %v17258_v11, %v17258_v11 }
0x110f   : > { %v4895_v46 = vpop.xlane.xlu0 %4894  ;;  %4931 = vadd.xlane.f32.xlu0 %v4930_v44 }
0x1110   : > { %v17268_v36 = vsub.f32 %v4876_v5, %v4911_v25  ;;  %v4910_v0 = vmul.f32 0.2, %v4895_v46  ;;  %v4939_v23 = vsel %vm970_vm3, %v4925_v21, 0.0  ;;  %v4924_v48 = vmul.f32 %v17263_v26, %v17263_v26 }
0x1111   : > { %4940 = vadd.xlane.f32.xlu1 %v4939_v23  ;;  %v4904_v54 = vpop.xlane.xlu1 %4903 }
0x1112   : > { %v17273_v50 = vsub.f32 %v4875_v42, %v4910_v0  ;;  %v4913_v53 = vmul.f32 0.2, %v4904_v54  ;;  %v4936_v43 = vsel %vm970_vm3, %v4924_v48, 0.0  ;;  %v4927_v30 = vmul.f32 %v17268_v36, %v17268_v36 }
0x1113   : > { %4937 = vadd.xlane.f32.xlu0 %v4936_v43  ;;  %v4901_v29 = vpop.xlane.xlu0 %4900 }
0x1114   : > { %v17278_v33 = vsub.f32 %v4878_v39, %v4913_v53  ;;  %v4912_v10 = vmul.f32 0.2, %v4901_v29  ;;  %v4945_v28 = vsel %vm970_vm3, %v4927_v30, 0.0  ;;  %v4926_v41 = vmul.f32 %v17273_v50, %v17273_v50 }
0x1115   : > { %4946 = vadd.xlane.f32.xlu1 %v4945_v28 }
0x1116   : > { %v17283_v35 = vsub.f32 %v4877_v15, %v4912_v10  ;;  %v4942_v20 = vsel %vm970_vm3, %v4926_v41, 0.0  ;;  %v4929_v61 = vmul.f32 %v17278_v33, %v17278_v33 }
0x1117   : > { %4943 = vadd.xlane.f32.xlu0 %v4942_v20 }
0x1118   : > { %v4951_v62 = vsel %vm970_vm3, %v4929_v61, 0.0  ;;  %v4928_v16 = vmul.f32 %v17283_v35, %v17283_v35 }
0x1119   : > { %4952 = vadd.xlane.f32.xlu1 %v4951_v62  ;;  %v5154_v62 = vld [vmem:[%s19084_s15] sm:$0xff] }
0x111a   : > { %v4948_v27 = vsel %vm970_vm3, %v4928_v16, 0.0  ;;  %14938 = vmatprep.mubr.msk.f32.mxu0 %vm1586_vm2, %v5154_v62  ;;  %v16096_v16 = vmov 0  }
0x111b   : > { %4949 = vadd.xlane.f32.xlu0 %v4948_v27  ;;  %15780 = vset.pattern.permute.xlu1 %v16096_v16  ;;  %v5168_v27 = vld [vmem:[%s19085_s16 + $0x10] sm:$0xff] }
0x111c   : > { %15779 = vset.pattern.permute.xlu0 %v16096_v16 }
0x1131   : > { %5180 = vperm.xlu0 %15779, %v5166_v38  }
0x1196   : > { %v4935_v8 = vpop.xlane.xlu1 %4934 }
0x1197   : > { %v4955_v55 = vmul.f32 0.2, %v4935_v8  ;;  %v5175_v8 = vld [vmem:[%s19085_s16 + $0x48] sm:$0xff] }
0x1198   : > { %v4932_v31 = vpop.xlane.xlu0 %4931  ;;  %5225 = vperm.xlu0 %15779, %v5175_v8  }
0x1199   : > { %v4963_v4 = vadd.f32 1e-05, %v4955_v55  ;;  %v4954_v9 = vmul.f32 0.2, %v4932_v31  ;;  %v5169_v55 = vld [vmem:[%s19085_s16 + $0x18] sm:$0xff] }
0x119a   : > { %v4941_v56 = vpop.xlane.xlu1 %4940  ;;  %v5177_v31 = vld [vmem:[%s19085_s16 + $0x58] sm:$0xff] }
0x119b   : > { %15957 = vrsqrt.f32 %v4963_v4  ;;  %v4962_v13 = vadd.f32 1e-05, %v4954_v9  ;;  %v4957_v49 = vmul.f32 0.2, %v4941_v56  ;;  %v5170_v4 = vld [vmem:[%s19085_s16 + $0x20] sm:$0xff]  ;;  %v5171_v9 = vld [vmem:[%s19085_s16 + $0x28] sm:$0xff] }
0x119c   : > { %v4938_v5 = vpop.xlane.xlu0 %4937  ;;  %5235 = vperm.xlu0 %15779, %v5177_v31   ;;  %v5172_v56 = vld [vmem:[%s19085_s16 + $0x30] sm:$0xff] }
0x119d   : > { %15959 = vrsqrt.f32 %v4962_v13  ;;  %v4965_v37 = vadd.f32 1e-05, %v4957_v49  ;;  %v4956_v40 = vmul.f32 0.2, %v4938_v5  ;;  %v5173_v13 = vld [vmem:[%s19085_s16 + $0x38] sm:$0xff]  ;;  %v5174_v49 = vld [vmem:[%s19085_s16 + $0x40] sm:$0xff] }
0x119e   : > { %v4947_v58 = vpop.xlane.xlu1 %4946  ;;  %v13151_v5 = vld [vmem:[%s19086_s18 + $0x18] sm:$0xf] }
0x119f   : > { %15961 = vrsqrt.f32 %v4965_v37  ;;  %v4964_v51 = vadd.f32 1e-05, %v4956_v40  ;;  %v4959_v14 = vmul.f32 0.2, %v4947_v58  ;;  %14956 = vmatprep.subr.msk.mxu1 %vm5477_vm5, %v13151_v5  ;;  %v5176_v37 = vld [vmem:[%s19085_s16 + $0x50] sm:$0xff] }
0x11a0   : > { %v4944_v42 = vpop.xlane.xlu0 %4943 }
0x11a1   : > { %15963 = vrsqrt.f32 %v4964_v51  ;;  %v4967_v32 = vadd.f32 1e-05, %v4959_v14  ;;  %v4958_v24 = vmul.f32 0.2, %v4944_v42 }
0x11a2   : > { %v4953_v12 = vpop.xlane.xlu1 %4952 }
0x11a3   : > { %15965 = vrsqrt.f32 %v4967_v32  ;;  %v4966_v39 = vadd.f32 1e-05, %v4958_v24  ;;  %v4961_v52 = vmul.f32 0.2, %v4953_v12  ;;  %v13128_v24 = vld [vmem:[%s19087_s0] ss:$0 sm:$0xff] }
0x11a4   : > { %v4950_v15 = vpop.xlane.xlu0 %4949 }
0x11a5   : > { %15967 = vrsqrt.f32 %v4966_v39  ;;  %v4969_v3 = vadd.f32 1e-05, %v4961_v52  ;;  %v4960_v19 = vmul.f32 0.2, %v4950_v15 }
0x11a7   : > { %15969 = vrsqrt.f32 %v4969_v3  ;;  %v4968_v45 = vadd.f32 1e-05, %v4960_v19 }
0x11a8   : > { %v15958_v22 = vpop.eup %15957 }
0x11a9   : > { %v4979_v47 = vmul.f32 %v15958_v22, %v17252_v59  ;;  %15971 = vrsqrt.f32 %v4968_v45 }
0x11aa   : > { %v15960_v63 = vpop.eup %15959 }
0x11ab   : > { %v4978_v2 = vmul.f32 %v15960_v63, %v17254_v57  ;;  %v4993_v34 = vmul.f32 %v13126_v17, %v4979_v47  ;;  %v5155_v47 = vld [vmem:[%s19084_s15 + $0x8] sm:$0xff]  ;;  %v5156_v63 = vld [vmem:[%s19084_s15 + $0x10] sm:$0xff] }
0x11ac   : > { %v15962_v7 = vpop.eup %15961 }
0x11ad   : > { %v4992_v60 = vmul.f32 %v13126_v17, %v4978_v2  ;;  %v4981_v18 = vmul.f32 %v15962_v7, %v17258_v11  ;;  %v5007_v0 = vadd.f32 %v13127_v1, %v4993_v34  ;;  %v5157_v2 = vld [vmem:[%s19084_s15 + $0x18] sm:$0xff]  ;;  %v5158_v7 = vld [vmem:[%s19084_s15 + $0x20] sm:$0xff]  ;;  %v5159_v34 = vld [vmem:[%s19084_s15 + $0x28] sm:$0xff] }
0x11ae   : > { %v15964_v25 = vpop.eup %15963 }
0x11af   : > { %v5006_v44 = vadd.f32 %v13127_v1, %v4992_v60  ;;  %v4980_v21 = vmul.f32 %v15964_v25, %v17263_v26  ;;  %v4995_v23 = vmul.f32 %v13126_v17, %v4981_v18  ;;  %v5161_v60 = vld [vmem:[%s19084_s15 + $0x38] sm:$0xff]  ;;  %v5162_v18 = vld [vmem:[%s19084_s15 + $0x40] sm:$0xff]  ;;  %v5163_v25 = vld [vmem:[%s19084_s15 + $0x48] sm:$0xff] }
0x11b0   : > { %v15966_v46 = vpop.eup %15965 }
0x11b1   : > { %14910 = vmatprep.mubr.msk.f32.mxu1 %vm970_vm3, %v5006_v44  ;;  %v4994_v59 = vmul.f32 %v13126_v17, %v4980_v21  ;;  %v4983_v48 = vmul.f32 %v15966_v46, %v17268_v36  ;;  %v5009_v11 = vadd.f32 %v13127_v1, %v4995_v23  ;;  %v5164_v44 = vld [vmem:[%s19084_s15 + $0x50] sm:$0xff]  ;;  %v5165_v21 = vld [vmem:[%s19084_s15 + $0x58] sm:$0xff]  ;;  %v5425_v46 = vld [vmem:[%s19086_s18 + $0x8] sm:$0xf] }
0x11b2   : > { %v15968_v54 = vpop.eup %15967  ;;  %14911 = vmatmul.mubr.msk.f32.vlgmr.msra.gmra.mxu1 %vm970_vm3, %v5007_v0  ;;  %v13150_v0 = vld [vmem:[%s19086_s18 + $0x10] sm:$0xff]  ;;  %v5424_v23 = vld [vmem:[%s19086_s18] sm:$0xff] }
0x11b3   : > { %v5008_v57 = vadd.f32 %v13127_v1, %v4994_v59  ;;  %v4982_v53 = vmul.f32 %v15968_v54, %v17273_v50  ;;  %v4997_v30 = vmul.f32 %v13126_v17, %v4983_v48  ;;  %14957 = vmatpush3.msk.msra.mxu1 %vm5477_vm5, %v13151_v5  ;;  %v13179_v59 = vld [vmem:[%s19086_s18 + $0x28] sm:$0xf]  ;;  %v13194_v48 = vld [vmem:[%s19086_s18 + $0x38] sm:$0xf]  ;;  %v13178_v5 = vld [vmem:[%s19086_s18 + $0x20] sm:$0xff] }
0x11b4   : > { %v15970_v43 = vpop.eup %15969  ;;  %14958 = vmatprep.subr.mxu1 %v13150_v0 }
0x11b5   : > { %14913 = vmatprep.mubr.msk.f32.mxu1 %vm970_vm3, %v5008_v57  ;;  %v4996_v26 = vmul.f32 %v13126_v17, %v4982_v53  ;;  %v4985_v29 = vmul.f32 %v15970_v43, %v17278_v33  ;;  %v5011_v41 = vadd.f32 %v13127_v1, %v4997_v30  ;;  %14959 = vmatpush3.msra.mxu1 %v13150_v0 }
0x11b6   : > { %v15972_v10 = vpop.eup %15971  ;;  %14914 = vmatmul.mubr.msk.f32.gmra.mxu1 %vm970_vm3, %v5009_v11  ;;  %15000 = vmatprep.subr.msk.mxu1 %vm5477_vm5, %v13179_v59 }
0x11b7   : > { %v5010_v36 = vadd.f32 %v13127_v1, %v4996_v26  ;;  %v4984_v28 = vmul.f32 %v15972_v10, %v17283_v35  ;;  %v4999_v20 = vmul.f32 %v13126_v17, %v4985_v29  ;;  %v5167_v35 = vld [vmem:[%s19085_s16 + $0x8] sm:$0xff]  ;;  %v5181_v29 = vpop.permute.xlu0 %5180 }
0x11b8   : > { %5185 = vperm.xlu1 %15780, %v5167_v35  }
0x11b9   : > { %14916 = vmatprep.mubr.msk.f32.mxu1 %vm970_vm3, %v5010_v36  ;;  %v4998_v50 = vmul.f32 %v13126_v17, %v4984_v28  ;;  %v5013_v33 = vadd.f32 %v13127_v1, %v4999_v20 }
0x11ba   : > { %14917 = vmatmul.mubr.msk.f32.gmra.mxu1 %vm970_vm3, %v5011_v41 }
0x11bb   : > { %v5012_v61 = vadd.f32 %v13127_v1, %v4998_v50  ;;  %v5160_v1 = vld [vmem:[%s19084_s15 + $0x30] sm:$0xff] }
0x11bc   : > { %5190 = vperm.xlu1 %15780, %v5168_v27  }
0x11bd   : > { %14919 = vmatprep.mubr.msk.f32.mxu1 %vm970_vm3, %v5012_v61 }
0x11be   : > { %14920 = vmatmul.mubr.msk.f32.gmra.mxu1 %vm970_vm3, %v5013_v33 }
0x11c0   : > { %5195 = vperm.xlu1 %15780, %v5169_v55  }
0x11c4   : > { %5200 = vperm.xlu1 %15780, %v5170_v4  }
0x11c8   : > { %5205 = vperm.xlu1 %15780, %v5171_v9  }
0x11cc   : > { %5210 = vperm.xlu1 %15780, %v5172_v56  }
0x11d0   : > { %5215 = vperm.xlu1 %15780, %v5173_v13  }
0x11d4   : > { %5220 = vperm.xlu1 %15780, %v5174_v49  }
0x11d8   : > { %5230 = vperm.xlu1 %15780, %v5176_v37   ;;  %v13193_v37 = vld [vmem:[%s19086_s18 + $0x30] sm:$0xff] }
0x1213   : > { %v5226_v56 = vpop.permute.xlu0 %5225 }
0x1233   : > { %v5186_v54 = vpop.permute.xlu1 %5185 }
0x1237   : > { %v5191_v57 = vpop.permute.xlu1 %5190 }
0x123b   : > { %v5196_v53 = vpop.permute.xlu1 %5195 }
0x123f   : > { %v5201_v43 = vpop.permute.xlu1 %5200 }
0x1243   : > { %v5206_v11 = vpop.permute.xlu1 %5205 }
0x1247   : > { %v5211_v28 = vpop.permute.xlu1 %5210 }
0x124b   : > { %v5216_v35 = vpop.permute.xlu1 %5215 }
0x1272   : > { %v14912_v40 = vpop.f32.mrf.mxu1 }
0x1273   : > { %v5121_v22 = vadd.f32 %v14912_v40, %v13128_v24  ;;  %v5221_v40 = vpop.permute.xlu1 %5220 }
0x1274   : > { %v5115_v58 = vpop.f32.mrf.mxu1 }
0x1275   : > { %v5116_v17 = vadd.f32 %v13128_v24, %v5115_v58 }
0x1276   : > { %v14915_v51 = vpop.f32.mrf.mxu1 }
0x1277   : > { %v5131_v19 = vadd.f32 %v14915_v51, %v13128_v24 }
0x1278   : > { %v5125_v14 = vpop.f32.mrf.mxu1 }
0x1279   : > { %v5126_v45 = vadd.f32 %v13128_v24, %v5125_v14 }
0x127a   : > { %v14918_v42 = vpop.f32.mrf.mxu1 }
0x127b   : > { %v5141_v3 = vadd.f32 %v14918_v42, %v13128_v24 }
0x127c   : > { %v5135_v32 = vpop.f32.mrf.mxu1 }
0x127d   : > { %v5136_v6 = vadd.f32 %v13128_v24, %v5135_v32 }
0x127e   : > { %v14921_v12 = vpop.f32.mrf.mxu1 }
0x127f   : > { %v5151_v39 = vadd.f32 %v14921_v12, %v13128_v24 }
0x1280   : > { %v5145_v52 = vpop.f32.mrf.mxu1 }
0x1281   : > { %v5146_v15 = vadd.f32 %v13128_v24, %v5145_v52  ;;  %14922 = vmatprep.subr.mxu0 %v5151_v39  ;;  %v13209_v52 = vld [vmem:[%s19086_s18 + $0x48] sm:$0xf] }
0x1282   : > { %14923 = vmatpush3.msra.mxu0 %v5151_v39 }
0x1283   : > { %14924 = vmatprep.subr.mxu0 %v5146_v15 }
0x1284   : > { %14925 = vmatpush3.msra.mxu0 %v5146_v15  ;;  %v5236_v15 = vpop.permute.xlu0 %5235 }
0x1285   : > { %14926 = vmatprep.subr.mxu0 %v5141_v3 }
0x1286   : > { %14927 = vmatpush3.msra.mxu0 %v5141_v3 }
0x1287   : > { %14928 = vmatprep.subr.mxu0 %v5136_v6 }
0x1288   : > { %14929 = vmatpush3.msra.mxu0 %v5136_v6 }
0x1289   : > { %14930 = vmatprep.subr.mxu0 %v5131_v19 }
0x128a   : > { %14931 = vmatpush3.msra.mxu0 %v5131_v19 }
0x128b   : > { %14932 = vmatprep.subr.mxu0 %v5126_v45 }
0x128c   : > { %14933 = vmatpush3.msra.mxu0 %v5126_v45 }
0x128d   : > { %14934 = vmatprep.subr.mxu0 %v5121_v22 }
0x128e   : > { %14935 = vmatpush3.msra.mxu0 %v5121_v22 }
0x128f   : > { %14936 = vmatprep.subr.mxu0 %v5116_v17 }
0x1290   : > { %14937 = vmatpush3.msra.mxu0 %v5116_v17 }
0x1291   : > { %14939 = vmatmul.mubr.msk.f32.vlgmr.msra.gmra.mxu0 %vm1586_vm2, %v5155_v47  ;;  %14978 = vmatprep.subr.msk.mxu0 %vm5477_vm5, %v5425_v46  ;;  %v5231_v47 = vpop.permute.xlu1 %5230 }
0x1292   : > { %14941 = vmatprep.mubr.msk.f32.mxu0 %vm1586_vm2, %v5156_v63  ;;  %14979 = vmatpush3.msk.msra.mxu0 %vm5477_vm5, %v5425_v46 }
0x1293   : > { %14980 = vmatprep.subr.mxu0 %v5424_v23 }
0x1294   : > { %14981 = vmatpush3.msra.mxu0 %v5424_v23 }
0x1295   : > { %14942 = vmatmul.mubr.msk.f32.gmra.mxu0 %vm1586_vm2, %v5157_v2  ;;  %15022 = vmatprep.subr.msk.mxu0 %vm5477_vm5, %v13194_v48 }
0x1296   : > { %14944 = vmatprep.mubr.msk.f32.mxu0 %vm1586_vm2, %v5158_v7 }
0x1299   : > { %14945 = vmatmul.mubr.msk.f32.gmra.mxu0 %vm1586_vm2, %v5159_v34 }
0x129a   : > { %14947 = vmatprep.mubr.msk.f32.mxu0 %vm1586_vm2, %v5160_v1 }
0x129d   : > { %14948 = vmatmul.mubr.msk.f32.gmra.mxu0 %vm1586_vm2, %v5161_v60 }
0x129e   : > { %14950 = vmatprep.mubr.msk.f32.mxu0 %vm1586_vm2, %v5162_v18 }
0x12a1   : > { %14951 = vmatmul.mubr.msk.f32.gmra.mxu0 %vm1586_vm2, %v5163_v25 }
0x12a2   : > { %14953 = vmatprep.mubr.msk.f32.mxu0 %vm1586_vm2, %v5164_v44 }
0x12a5   : > { %14954 = vmatmul.mubr.msk.f32.gmra.mxu0 %vm1586_vm2, %v5165_v21 }
0x1351   : > { %v14940_v30 = vpop.f32.mrf.mxu0 }
0x1352   : > { %v17390_v26 = vadd.f32 %v14940_v30, %v5186_v54  ;;  %v13208_v30 = vld [vmem:[%s19086_s18 + $0x40] sm:$0xff] }
0x1353   : > { %v5340_v10 = vpop.f32.mrf.mxu0 }
0x1354   : > { %5401 = vst.msk [vmem:[#allocation4 + $0x10] sm:$0xff] %vm981_vm6, %v17390_v26  ;;  %v17394_v36 = vadd.f32 %v5340_v10, %v5181_v29 }
0x1355   : > { %v14943_v41 = vpop.f32.mrf.mxu0 }
0x1356   : > { %5400 = vst.msk [vmem:[#allocation4 + $0x8] sm:$0xff] %vm981_vm6, %v17394_v36  ;;  %v17398_v20 = vadd.f32 %v14943_v41, %v5196_v53 }
0x1357   : > { %v5350_v50 = vpop.f32.mrf.mxu0 }
0x1358   : > { %5403 = vst.msk [vmem:[#allocation4 + $0x20] sm:$0xff] %vm981_vm6, %v17398_v20  ;;  %v17402_v61 = vadd.f32 %v5350_v50, %v5191_v57 }
0x1359   : > { %v14946_v33 = vpop.f32.mrf.mxu0 }
0x135a   : > { %5402 = vst.msk [vmem:[#allocation4 + $0x18] sm:$0xff] %vm981_vm6, %v17402_v61  ;;  %v17406_v62 = vadd.f32 %v14946_v33, %v5206_v11 }
0x135b   : > { %v5360_v16 = vpop.f32.mrf.mxu0  ;;  %v5771_v53 = vld [vmem:[#allocation4 + $0x10] sm:$0xff] }
0x135c   : > { %5405 = vst.msk [vmem:[#allocation4 + $0x30] sm:$0xff] %vm981_vm6, %v17406_v62  ;;  %v17410_v27 = vadd.f32 %v5360_v16, %v5201_v43 }
0x135d   : > { %v5413_v38 = vld [vmem:[#allocation4 + $0xe] sm:$0xff]  ;;  %v14949_v55 = vpop.f32.mrf.mxu0  ;;  %v5412_v9 = vld [vmem:[#allocation4 + $0x6] sm:$0xff] }
0x135e   : > { %v5427_v8 = vld [vmem:[#allocation4 + $0xf] sm:$0xff]  ;;  %5404 = vst.msk [vmem:[#allocation4 + $0x28] sm:$0xff] %vm981_vm6, %v17410_v27  ;;  %v17414_v31 = vadd.f32 %v14949_v55, %v5216_v35  ;;  %v5426_v4 = vld [vmem:[#allocation4 + $0x7] sm:$0xff]  ;;  %14982 = vmatprep.mubr.msk.f32.mxu0 %vm981_vm6, %v5412_v9 }
0x135f   : > { %14960 = vmatprep.mubr.msk.f32.mxu1 %vm981_vm6, %v5426_v4  ;;  %v5370_v13 = vpop.f32.mrf.mxu0  ;;  %14983 = vmatmul.mubr.msk.f32.vlgmr.msra.gmra.mxu0 %vm981_vm6, %v5413_v38  ;;  %v5770_v54 = vld [vmem:[#allocation4 + $0x8] sm:$0xff]  ;;  %v5773_v10 = vld [vmem:[#allocation4 + $0x20] sm:$0xff] }
0x1360   : > { %5407 = vst.msk [vmem:[#allocation4 + $0x40] sm:$0xff] %vm981_vm6, %v17414_v31  ;;  %v17420_v49 = vadd.f32 %v5370_v13, %v5211_v28  ;;  %14961 = vmatmul.mubr.msk.f32.vlgmr.msra.gmra.mxu1 %vm981_vm6, %v5427_v8  ;;  %15023 = vmatpush3.msk.msra.mxu0 %vm5477_vm5, %v13194_v48  ;;  %v5961_v48 = vld [vmem:[#allocation4 + $0x9] sm:$0xff] }
0x1361   : > { %v5414_v58 = vld [vmem:[#allocation4 + $0x16] sm:$0xff]  ;;  %v5415_v51 = vld [vmem:[#allocation4 + $0x1e] sm:$0xff]  ;;  %15001 = vmatpush3.msk.msra.mxu1 %vm5477_vm5, %v13179_v59  ;;  %v14952_v42 = vpop.f32.mrf.mxu0  ;;  %15024 = vmatprep.subr.mxu0 %v13193_v37 }
0x1362   : > { %19088 = vst [vmem:[#allocation19_spill] sm:$0xff] %v17420_v49  ;;  %v5428_v14 = vld [vmem:[#allocation4 + $0x17] sm:$0xff]  ;;  %v5429_v32 = vld [vmem:[#allocation4 + $0x1f] sm:$0xff]  ;;  %5406 = vst.msk [vmem:[#allocation4 + $0x38] sm:$0xff] %vm981_vm6, %v17420_v49  ;;  %v17430_v24 = vadd.f32 %v14952_v42, %v5226_v56  ;;  %14985 = vmatprep.mubr.msk.f32.mxu0 %vm981_vm6, %v5414_v58  ;;  %15002 = vmatprep.subr.mxu1 %v13178_v5 }
0x1363   : > { %14963 = vmatprep.mubr.msk.f32.mxu1 %vm981_vm6, %v5428_v14  ;;  %v5380_v12 = vpop.f32.mrf.mxu0  ;;  %14986 = vmatmul.mubr.msk.f32.gmra.mxu0 %vm981_vm6, %v5415_v51  ;;  %v5962_v57 = vld [vmem:[#allocation4 + $0x11] sm:$0xff]  ;;  %v5963_v43 = vld [vmem:[#allocation4 + $0x19] sm:$0xff] }
0x1364   : > { %19089 = vst [vmem:[#allocation20_spill] sm:$0xff] %v17430_v24  ;;  %5409 = vst.msk [vmem:[#allocation4 + $0x50] sm:$0xff] %vm981_vm6, %v17430_v24  ;;  %v17436_v39 = vadd.f32 %v5380_v12, %v5221_v40  ;;  %14964 = vmatmul.mubr.msk.f32.gmra.mxu1 %vm981_vm6, %v5429_v32  ;;  %15025 = vmatpush3.msra.mxu0 %v13193_v37  ;;  %v5772_v11 = vld [vmem:[#allocation4 + $0x18] sm:$0xff]  ;;  %v5775_v33 = vld [vmem:[#allocation4 + $0x30] sm:$0xff] }
0x1365   : > { %v5416_v3 = vld [vmem:[#allocation4 + $0x26] sm:$0xff]  ;;  %v5417_v6 = vld [vmem:[#allocation4 + $0x2e] sm:$0xff]  ;;  %v14955_v45 = vpop.f32.mrf.mxu0  ;;  %15003 = vmatpush3.msra.mxu1 %v13178_v5  ;;  %v6154_v14 = vld [vmem:[#allocation4 + $0x1a] sm:$0xff] }
0x1366   : > { %19090 = vst [vmem:[#allocation21_spill] sm:$0xff] %v17436_v39  ;;  %v5430_v19 = vld [vmem:[#allocation4 + $0x27] sm:$0xff]  ;;  %v5431_v22 = vld [vmem:[#allocation4 + $0x2f] sm:$0xff]  ;;  %5408 = vst.msk [vmem:[#allocation4 + $0x48] sm:$0xff] %vm981_vm6, %v17436_v39  ;;  %v17443_v17 = vadd.f32 %v14955_v45, %v5236_v15  ;;  %14988 = vmatprep.mubr.msk.f32.mxu0 %vm981_vm6, %v5416_v3  ;;  %15044 = vmatprep.subr.msk.mxu1 %vm5477_vm5, %v13209_v52 }
0x1367   : > { %14966 = vmatprep.mubr.msk.f32.mxu1 %vm981_vm6, %v5430_v19  ;;  %v5390_v63 = vpop.f32.mrf.mxu0  ;;  %14989 = vmatmul.mubr.msk.f32.gmra.mxu0 %vm981_vm6, %v5417_v6  ;;  %v5964_v29 = vld [vmem:[#allocation4 + $0x21] sm:$0xff]  ;;  %v5965_v28 = vld [vmem:[#allocation4 + $0x29] sm:$0xff]  ;;  %v6153_v51 = vld [vmem:[#allocation4 + $0x12] sm:$0xff] }
0x1368   : > { %19091 = vst [vmem:[#allocation22_spill] sm:$0xff] %v17443_v17  ;;  %5411 = vst.msk [vmem:[#allocation4 + $0x60] sm:$0xff] %vm981_vm6, %v17443_v17  ;;  %v17450_v2 = vadd.f32 %v5390_v63, %v5231_v47  ;;  %14967 = vmatmul.mubr.msk.f32.gmra.mxu1 %vm981_vm6, %v5431_v22  ;;  %v5774_v41 = vld [vmem:[#allocation4 + $0x28] sm:$0xff]  ;;  %v5777_v8 = vld [vmem:[#allocation4 + $0x40] sm:$0xff] }
0x1369   : > { %v5418_v7 = vld [vmem:[#allocation4 + $0x36] sm:$0xff]  ;;  %v5419_v34 = vld [vmem:[#allocation4 + $0x3e] sm:$0xff]  ;;  %v6152_v58 = vld [vmem:[#allocation4 + $0xa] sm:$0xff] }
0x136a   : > { %19092 = vst [vmem:[#allocation23_spill] sm:$0xff] %v17450_v2  ;;  %v5432_v1 = vld [vmem:[#allocation4 + $0x37] sm:$0xff]  ;;  %v5433_v60 = vld [vmem:[#allocation4 + $0x3f] sm:$0xff]  ;;  %5410 = vst.msk [vmem:[#allocation4 + $0x58] sm:$0xff] %vm981_vm6, %v17450_v2  ;;  %14991 = vmatprep.mubr.msk.f32.mxu0 %vm981_vm6, %v5418_v7 }
0x136b   : > { %14969 = vmatprep.mubr.msk.f32.mxu1 %vm981_vm6, %v5432_v1  ;;  %14992 = vmatmul.mubr.msk.f32.gmra.mxu0 %vm981_vm6, %v5419_v34  ;;  %v5966_v50 = vld [vmem:[#allocation4 + $0x31] sm:$0xff]  ;;  %v5967_v35 = vld [vmem:[#allocation4 + $0x39] sm:$0xff]  ;;  %v6155_v42 = vld [vmem:[#allocation4 + $0x22] sm:$0xff] }
0x136c   : > { %14970 = vmatmul.mubr.msk.f32.gmra.mxu1 %vm981_vm6, %v5433_v60  ;;  %v5776_v16 = vld [vmem:[#allocation4 + $0x38] sm:$0xff]  ;;  %v5779_v56 = vld [vmem:[#allocation4 + $0x50] sm:$0xff]  ;;  %v6399_v63 = vld [vmem:[%s19093_s26 + $0x8] sm:$0xf] }
0x136d   : > { %v5420_v18 = vld [vmem:[#allocation4 + $0x46] sm:$0xff]  ;;  %v5421_v25 = vld [vmem:[#allocation4 + $0x4e] sm:$0xff]  ;;  %v13225_v22 = vld [vmem:[%s19093_s26 + $0x18] sm:$0xf] }
0x136e   : > { %v5434_v44 = vld [vmem:[#allocation4 + $0x47] sm:$0xff]  ;;  %v5435_v21 = vld [vmem:[#allocation4 + $0x4f] sm:$0xff]  ;;  %14994 = vmatprep.mubr.msk.f32.mxu0 %vm981_vm6, %v5420_v18  ;;  %15066 = vmatprep.subr.msk.mxu0 %vm5477_vm5, %v13225_v22  ;;  %v17520_v1 = vld [vmem:[%s19093_s26 + $0x38] sm:$0xf] }
0x136f   : > { %14972 = vmatprep.mubr.msk.f32.mxu1 %vm981_vm6, %v5434_v44  ;;  %14995 = vmatmul.mubr.msk.f32.gmra.mxu0 %vm981_vm6, %v5421_v25  ;;  %v5968_v38 = vld [vmem:[#allocation4 + $0x41] sm:$0xff]  ;;  %v5969_v55 = vld [vmem:[#allocation4 + $0x49] sm:$0xff]  ;;  %v6157_v12 = vld [vmem:[#allocation4 + $0x32] sm:$0xff] }
0x1370   : > { %14973 = vmatmul.mubr.msk.f32.gmra.mxu1 %vm981_vm6, %v5435_v21  ;;  %v5778_v4 = vld [vmem:[#allocation4 + $0x48] sm:$0xff]  ;;  %v5781_v37 = vld [vmem:[#allocation4 + $0x60] sm:$0xff]  ;;  %v13224_v47 = vld [vmem:[%s19093_s26 + $0x10] sm:$0xff] }
0x1371   : > { %v5422_v46 = vld [vmem:[#allocation4 + $0x56] sm:$0xff]  ;;  %v5423_v0 = vld [vmem:[#allocation4 + $0x5e] sm:$0xff]  ;;  %v6156_v32 = vld [vmem:[#allocation4 + $0x2a] sm:$0xff] }
0x1372   : > { %v5436_v23 = vld [vmem:[#allocation4 + $0x57] sm:$0xff]  ;;  %v5437_v59 = vld [vmem:[#allocation4 + $0x5f] sm:$0xff]  ;;  %14997 = vmatprep.mubr.msk.f32.mxu0 %vm981_vm6, %v5422_v46  ;;  %v6160_v3 = vld [vmem:[#allocation4 + $0x4a] sm:$0xff] }
0x1373   : > { %14975 = vmatprep.mubr.msk.f32.mxu1 %vm981_vm6, %v5436_v23  ;;  %14998 = vmatmul.mubr.msk.f32.gmra.mxu0 %vm981_vm6, %v5423_v0  ;;  %v5970_v9 = vld [vmem:[#allocation4 + $0x51] sm:$0xff]  ;;  %v5971_v13 = vld [vmem:[#allocation4 + $0x59] sm:$0xff]  ;;  %v5972_v40 = vld [vmem:[#allocation4 + $0x61] sm:$0xff] }
0x1374   : > { %14976 = vmatmul.mubr.msk.f32.gmra.mxu1 %vm981_vm6, %v5437_v59  ;;  %15026 = vmatprep.mubr.msk.f32.mxu0 %vm981_vm6, %v5961_v48  ;;  %v5780_v5 = vld [vmem:[#allocation4 + $0x58] sm:$0xff]  ;;  %v6159_v15 = vld [vmem:[#allocation4 + $0x42] sm:$0xff]  ;;  %v17543_v39 = vld [vmem:[%s19094_s28] ss:$0 sm:$0xff] }
0x1375   : > { %15004 = vmatprep.mubr.msk.f32.mxu1 %vm981_vm6, %v5770_v54  ;;  %v6161_v6 = vld [vmem:[#allocation4 + $0x52] sm:$0xff]  ;;  %v6162_v19 = vld [vmem:[#allocation4 + $0x5a] sm:$0xff]  ;;  %v6163_v45 = vld [vmem:[#allocation4 + $0x62] sm:$0xff] }
0x1376   : > { %v6398_v7 = vld [vmem:[%s19093_s26] sm:$0xff]  ;;  %v17515_v34 = vld [vmem:[%s19093_s26 + $0x28] sm:$0xf] }
0x1377   : > { %15027 = vmatmul.mubr.msk.f32.vlgmr.msra.gmra.mxu0 %vm981_vm6, %v5962_v57 }
0x1378   : > { %15005 = vmatmul.mubr.msk.f32.vlgmr.msra.gmra.mxu1 %vm981_vm6, %v5771_v53  ;;  %15029 = vmatprep.mubr.msk.f32.mxu0 %vm981_vm6, %v5963_v43 }
0x1379   : > { %15007 = vmatprep.mubr.msk.f32.mxu1 %vm981_vm6, %v5772_v11  ;;  %15045 = vmatpush3.msk.msra.mxu1 %vm5477_vm5, %v13209_v52  ;;  %v6158_v52 = vld [vmem:[#allocation4 + $0x3a] sm:$0xff] }
0x137a   : > { %15046 = vmatprep.subr.mxu1 %v13208_v30  ;;  %15067 = vmatpush3.msk.msra.mxu0 %vm5477_vm5, %v13225_v22 }
0x137b   : > { %15030 = vmatmul.mubr.msk.f32.gmra.mxu0 %vm981_vm6, %v5964_v29  ;;  %15047 = vmatpush3.msra.mxu1 %v13208_v30 }
0x137c   : > { %15008 = vmatmul.mubr.msk.f32.gmra.mxu1 %vm981_vm6, %v5773_v10  ;;  %15032 = vmatprep.mubr.msk.f32.mxu0 %vm981_vm6, %v5965_v28 }
0x137d   : > { %15010 = vmatprep.mubr.msk.f32.mxu1 %vm981_vm6, %v5774_v41  ;;  %15068 = vmatprep.subr.mxu0 %v13224_v47 }
0x137e   : > { %15069 = vmatpush3.msra.mxu0 %v13224_v47  ;;  %15088 = vmatprep.subr.msk.mxu1 %vm5477_vm5, %v6399_v63 }
0x137f   : > { %15033 = vmatmul.mubr.msk.f32.gmra.mxu0 %vm981_vm6, %v5966_v50  ;;  %15110 = vmatprep.subr.msk.mxu0 %vm5477_vm5, %v17515_v34 }
0x1380   : > { %15011 = vmatmul.mubr.msk.f32.gmra.mxu1 %vm981_vm6, %v5775_v33  ;;  %15035 = vmatprep.mubr.msk.f32.mxu0 %vm981_vm6, %v5967_v35 }
0x1381   : > { %15013 = vmatprep.mubr.msk.f32.mxu1 %vm981_vm6, %v5776_v16 }
0x1383   : > { %15036 = vmatmul.mubr.msk.f32.gmra.mxu0 %vm981_vm6, %v5968_v38 }
0x1384   : > { %15014 = vmatmul.mubr.msk.f32.gmra.mxu1 %vm981_vm6, %v5777_v8  ;;  %15038 = vmatprep.mubr.msk.f32.mxu0 %vm981_vm6, %v5969_v55 }
0x1385   : > { %15016 = vmatprep.mubr.msk.f32.mxu1 %vm981_vm6, %v5778_v4 }
0x1387   : > { %15039 = vmatmul.mubr.msk.f32.gmra.mxu0 %vm981_vm6, %v5970_v9 }
0x1388   : > { %15017 = vmatmul.mubr.msk.f32.gmra.mxu1 %vm981_vm6, %v5779_v56  ;;  %15041 = vmatprep.mubr.msk.f32.mxu0 %vm981_vm6, %v5971_v13 }
0x1389   : > { %15019 = vmatprep.mubr.msk.f32.mxu1 %vm981_vm6, %v5780_v5 }
0x138b   : > { %15042 = vmatmul.mubr.msk.f32.gmra.mxu0 %vm981_vm6, %v5972_v40 }
0x138c   : > { %15020 = vmatmul.mubr.msk.f32.gmra.mxu1 %vm981_vm6, %v5781_v37 }
0x138d   : > { %15048 = vmatprep.mubr.msk.f32.mxu1 %vm981_vm6, %v6152_v58 }
0x1390   : > { %15049 = vmatmul.mubr.msk.f32.vlgmr.msra.gmra.mxu1 %vm981_vm6, %v6153_v51 }
0x1391   : > { %15051 = vmatprep.mubr.msk.f32.mxu1 %vm981_vm6, %v6154_v14  ;;  %15089 = vmatpush3.msk.msra.mxu1 %vm5477_vm5, %v6399_v63 }
0x1392   : > { %15090 = vmatprep.subr.mxu1 %v6398_v7 }
0x1393   : > { %15091 = vmatpush3.msra.mxu1 %v6398_v7 }
0x1394   : > { %15052 = vmatmul.mubr.msk.f32.gmra.mxu1 %vm981_vm6, %v6155_v42  ;;  %15132 = vmatprep.subr.msk.mxu1 %vm5477_vm5, %v17520_v1 }
0x1395   : > { %15054 = vmatprep.mubr.msk.f32.mxu1 %vm981_vm6, %v6156_v32 }
0x1398   : > { %15055 = vmatmul.mubr.msk.f32.gmra.mxu1 %vm981_vm6, %v6157_v12 }
0x1399   : > { %15057 = vmatprep.mubr.msk.f32.mxu1 %vm981_vm6, %v6158_v52 }
0x139c   : > { %15058 = vmatmul.mubr.msk.f32.gmra.mxu1 %vm981_vm6, %v6159_v15 }
0x139d   : > { %15060 = vmatprep.mubr.msk.f32.mxu1 %vm981_vm6, %v6160_v3 }
0x13a0   : > { %15061 = vmatmul.mubr.msk.f32.gmra.mxu1 %vm981_vm6, %v6161_v6 }
0x13a1   : > { %15063 = vmatprep.mubr.msk.f32.mxu1 %vm981_vm6, %v6162_v19 }
0x13a4   : > { %15064 = vmatmul.mubr.msk.f32.gmra.mxu1 %vm981_vm6, %v6163_v45 }
0x141f   : > { %v14984_v18 = vpop.f32.mrf.mxu0 }
0x1420   : > { %v14962_v60 = vpop.f32.mrf.mxu1 }
0x1421   : > { %v5711_v44 = vpop.f32.mrf.mxu0  ;;  %v5717_v32 = vadd.f32 %v14984_v18, %v14962_v60 }
0x1422   : > { %v5547_v25 = vpop.f32.mrf.mxu1 }
0x1423   : > { %v14987_v46 = vpop.f32.mrf.mxu0  ;;  %v5712_v52 = vadd.f32 %v5711_v44, %v5547_v25 }
0x1424   : > { %v14965_v21 = vpop.f32.mrf.mxu1 }
0x1425   : > { %v5721_v23 = vpop.f32.mrf.mxu0  ;;  %v5727_v19 = vadd.f32 %v14987_v46, %v14965_v21 }
0x1426   : > { %v5557_v0 = vpop.f32.mrf.mxu1 }
0x1427   : > { %v14990_v48 = vpop.f32.mrf.mxu0  ;;  %v5722_v47 = vadd.f32 %v5721_v23, %v5557_v0 }
0x1428   : > { %v14968_v59 = vpop.f32.mrf.mxu1 }
0x1429   : > { %v5731_v57 = vpop.f32.mrf.mxu0  ;;  %v5737_v2 = vadd.f32 %v14990_v48, %v14968_v59 }
0x142a   : > { %v5567_v54 = vpop.f32.mrf.mxu1 }
0x142b   : > { %v14993_v43 = vpop.f32.mrf.mxu0  ;;  %v5732_v25 = vadd.f32 %v5731_v57, %v5567_v54 }
0x142c   : > { %v14971_v53 = vpop.f32.mrf.mxu1 }
0x142d   : > { %v5741_v30 = vpop.f32.mrf.mxu0 }
0x142e   : > { %v5577_v11 = vpop.f32.mrf.mxu1 }
0x142f   : > { %v14996_v10 = vpop.f32.mrf.mxu0 }
0x1430   : > { %v17524_v29 = vpop.f32.mrf.mxu1 }
0x1431   : > { %v17528_v41 = vpop.f32.mrf.mxu0 }
0x1432   : > { %v17526_v28 = vpop.f32.mrf.mxu1 }
0x1433   : > { %v17532_v33 = vpop.f32.mrf.mxu0 }
0x1434   : > { %v17530_v50 = vpop.f32.mrf.mxu1 }
0x1435   : > { %v17536_v16 = vpop.f32.mrf.mxu0 }
0x1436   : > { %v17534_v35 = vpop.f32.mrf.mxu1 }
0x1437   : > { %v15028_v8 = vpop.f32.mrf.mxu0 }
0x1438   : > { %v15006_v38 = vpop.f32.mrf.mxu1 }
0x1439   : > { %v6081_v4 = vpop.f32.mrf.mxu0  ;;  %v5950_v15 = vadd.f32 %v15006_v38, %v5717_v32 }
0x143a   : > { %v5890_v55 = vpop.f32.mrf.mxu1 }
0x143b   : > { %v15031_v13 = vpop.f32.mrf.mxu0  ;;  %v5949_v45 = vadd.f32 %v5890_v55, %v5712_v52  ;;  %v6141_v63 = vadd.f32 %v15028_v8, %v5950_v15  ;;  %v5747_v55 = vadd.f32 %v14993_v43, %v14971_v53  ;;  %v5742_v15 = vadd.f32 %v5741_v30, %v5577_v11 }
0x143c   : > { %v15009_v9 = vpop.f32.mrf.mxu1 }
0x143d   : > { %v6091_v40 = vpop.f32.mrf.mxu0  ;;  %v5952_v7 = vadd.f32 %v15009_v9, %v5727_v19  ;;  %v6140_v49 = vadd.f32 %v6081_v4, %v5949_v45 }
0x143e   : > { %v5900_v56 = vpop.f32.mrf.mxu1 }
0x143f   : > { %v15034_v14 = vpop.f32.mrf.mxu0  ;;  %v5951_v60 = vadd.f32 %v5900_v56, %v5722_v47  ;;  %v6143_v32 = vadd.f32 %v15031_v13, %v5952_v7 }
0x1440   : > { %v15012_v5 = vpop.f32.mrf.mxu1 }
0x1441   : > { %v6101_v3 = vpop.f32.mrf.mxu0  ;;  %v5954_v44 = vadd.f32 %v15012_v5, %v5737_v2  ;;  %v6142_v8 = vadd.f32 %v6091_v40, %v5951_v60  ;;  %v5752_v40 = vadd.f32 %v17528_v41, %v17526_v28 }
0x1442   : > { %v5910_v37 = vpop.f32.mrf.mxu1 }
0x1443   : > { %v15037_v17 = vpop.f32.mrf.mxu0  ;;  %v5953_v52 = vadd.f32 %v5910_v37, %v5732_v25  ;;  %v6145_v4 = vadd.f32 %v15034_v14, %v5954_v44 }
0x1444   : > { %v15015_v58 = vpop.f32.mrf.mxu1 }
0x1445   : > { %v6111_v0 = vpop.f32.mrf.mxu0  ;;  %v6144_v53 = vadd.f32 %v6101_v3, %v5953_v52 }
0x1446   : > { %v5920_v51 = vpop.f32.mrf.mxu1 }
0x1447   : > { %v15040_v43 = vpop.f32.mrf.mxu0  ;;  %v5955_v5 = vadd.f32 %v5920_v51, %v5742_v15  ;;  %v5767_v51 = vadd.f32 %v17532_v33, %v17530_v50 }
0x1448   : > { %v15018_v42 = vpop.f32.mrf.mxu1 }
0x1449   : > { %v6121_v47 = vpop.f32.mrf.mxu0  ;;  %v6146_v7 = vadd.f32 %v6111_v0, %v5955_v5 }
0x144a   : > { %v5930_v12 = vpop.f32.mrf.mxu1 }
0x144b   : > { %v5957_v3 = vadd.f32 %v5930_v12, %v5752_v40 }
0x144c   : > { %v17538_v6 = vpop.f32.mrf.mxu1 }
0x144d   : > { %v5960_v25 = vadd.f32 %v17538_v6, %v5767_v51  ;;  %v6148_v44 = vadd.f32 %v6121_v47, %v5957_v3 }
0x144e   : > { %v17540_v22 = vpop.f32.mrf.mxu1 }
0x1450   : > { %v15050_v24 = vpop.f32.mrf.mxu1 }
0x1451   : > { %v6332_v18 = vadd.f32 %v15050_v24, %v6141_v63  ;;  %v5956_v24 = vadd.f32 %v15015_v58, %v5747_v55 }
0x1452   : > { %v6272_v38 = vpop.f32.mrf.mxu1 }
0x1453   : > { %v6350_v21 = vadd.f32 %v17543_v39, %v6332_v18  ;;  %v6331_v46 = vadd.f32 %v6272_v38, %v6140_v49  ;;  %v5757_v49 = vadd.f32 %v14996_v10, %v17524_v29  ;;  %v6147_v19 = vadd.f32 %v15037_v17, %v5956_v24  ;;  %v15043_v38 = vpop.f32.mrf.mxu0 }
0x1454   : > { %v15053_v23 = vpop.f32.mrf.mxu1  ;;  %v5762_v17 = vadd.f32 %v17536_v16, %v17534_v35 }
0x1455   : > { %v6362_v59 = vmax.f32 %v6350_v21, 0.0  ;;  %v6349_v48 = vadd.f32 %v17543_v39, %v6331_v46  ;;  %v6334_v9 = vadd.f32 %v15053_v23, %v6143_v32  ;;  %v5958_v58 = vadd.f32 %v15018_v42, %v5757_v49  ;;  %v13252_v23 = vld [vmem:[%s19093_s26 + $0x20] sm:$0xff] }
0x1456   : > { %v6282_v56 = vpop.f32.mrf.mxu1  ;;  %v5959_v35 = vadd.f32 %v17540_v22, %v5762_v17 }
0x1457   : > { %6375 = vst.msk [vmem:[#allocation4 + $0x10] sm:$0xff] %vm981_vm6, %v6362_v59  ;;  %v6361_v2 = vmax.f32 %v6349_v48, 0.0  ;;  %v6352_v54 = vadd.f32 %v17543_v39, %v6334_v9  ;;  %v6333_v57 = vadd.f32 %v6282_v56, %v6142_v8  ;;  %v6149_v42 = vadd.f32 %v15040_v43, %v5958_v58  ;;  %v13267_v8 = vld [vmem:[%s19093_s26 + $0x30] sm:$0xff] }
0x1458   : > { %v15056_v13 = vpop.f32.mrf.mxu1  ;;  %v6151_v48 = vadd.f32 %v15043_v38, %v5960_v25  ;;  %v13282_v38 = vld [vmem:[%s19093_s26 + $0x40] sm:$0xff] }
0x1459   : > { %6374 = vst.msk [vmem:[#allocation4 + $0x8] sm:$0xff] %vm981_vm6, %v6361_v2  ;;  %v6364_v37 = vmax.f32 %v6352_v54, 0.0  ;;  %v6351_v11 = vadd.f32 %v17543_v39, %v6333_v57  ;;  %v6336_v30 = vadd.f32 %v15056_v13, %v6145_v4  ;;  %v6131_v4 = vpop.f32.mrf.mxu0 }
0x145a   : > { %v6292_v14 = vpop.f32.mrf.mxu1  ;;  %v6150_v57 = vadd.f32 %v6131_v4, %v5959_v35 }
0x145b   : > { %6377 = vst.msk [vmem:[#allocation4 + $0x20] sm:$0xff] %vm981_vm6, %v6364_v37  ;;  %v6363_v45 = vmax.f32 %v6351_v11, 0.0  ;;  %v6354_v29 = vadd.f32 %v17543_v39, %v6336_v30  ;;  %v6335_v10 = vadd.f32 %v6292_v14, %v6144_v53 }
0x145c   : > { %v15059_v63 = vpop.f32.mrf.mxu1 }
0x145d   : > { %6376 = vst.msk [vmem:[#allocation4 + $0x18] sm:$0xff] %vm981_vm6, %v6363_v45  ;;  %v6366_v60 = vmax.f32 %v6354_v29, 0.0  ;;  %v6353_v28 = vadd.f32 %v17543_v39, %v6335_v10  ;;  %v6338_v41 = vadd.f32 %v15059_v63, %v6147_v19 }
0x145e   : > { %v6302_v18 = vpop.f32.mrf.mxu1 }
0x145f   : > { %6379 = vst.msk [vmem:[#allocation4 + $0x30] sm:$0xff] %vm981_vm6, %v6366_v60  ;;  %v6365_v50 = vmax.f32 %v6353_v28, 0.0  ;;  %v6356_v33 = vadd.f32 %v17543_v39, %v6338_v41  ;;  %v6337_v12 = vadd.f32 %v6302_v18, %v6146_v7 }
0x1460   : > { %v15062_v32 = vpop.f32.mrf.mxu1  ;;  %v6400_v21 = vld [vmem:[#allocation4 + $0x7] sm:$0xff]  ;;  %v6401_v55 = vld [vmem:[#allocation4 + $0xf] sm:$0xff] }
0x1461   : > { %v6386_v46 = vld [vmem:[#allocation4 + $0x6] sm:$0xff]  ;;  %6378 = vst.msk [vmem:[#allocation4 + $0x28] sm:$0xff] %vm981_vm6, %v6365_v50  ;;  %v6368_v16 = vmax.f32 %v6356_v33, 0.0  ;;  %v6355_v6 = vadd.f32 %v17543_v39, %v6337_v12  ;;  %v6340_v52 = vadd.f32 %v15062_v32, %v6149_v42  ;;  %15070 = vmatprep.mubr.msk.f32.mxu0 %vm981_vm6, %v6400_v21  ;;  %v6387_v0 = vld [vmem:[#allocation4 + $0xe] sm:$0xff] }
0x1462   : > { %15092 = vmatprep.mubr.msk.f32.mxu1 %vm981_vm6, %v6386_v46  ;;  %v6312_v59 = vpop.f32.mrf.mxu1  ;;  %15071 = vmatmul.mubr.msk.f32.vlgmr.msra.gmra.mxu0 %vm981_vm6, %v6401_v55  ;;  %v6743_v18 = vld [vmem:[#allocation4 + $0x8] sm:$0xff]  ;;  %v6744_v50 = vld [vmem:[#allocation4 + $0x10] sm:$0xff]  ;;  %v6746_v32 = vld [vmem:[#allocation4 + $0x20] sm:$0xff] }
0x1463   : > { %15093 = vmatmul.mubr.msk.f32.vlgmr.msra.gmra.mxu1 %vm981_vm6, %v6387_v0  ;;  %6381 = vst.msk [vmem:[#allocation4 + $0x40] sm:$0xff] %vm981_vm6, %v6368_v16  ;;  %v6367_v22 = vmax.f32 %v6355_v6, 0.0  ;;  %v6358_v9 = vadd.f32 %v17543_v39, %v6340_v52  ;;  %v6339_v15 = vadd.f32 %v6312_v59, %v6148_v44  ;;  %15111 = vmatpush3.msk.msra.mxu0 %vm5477_vm5, %v17515_v34  ;;  %v6934_v25 = vld [vmem:[#allocation4 + $0x9] sm:$0xff] }
0x1464   : > { %15133 = vmatpush3.msk.msra.mxu1 %vm5477_vm5, %v17520_v1  ;;  %v15065_v56 = vpop.f32.mrf.mxu1  ;;  %v6402_v24 = vld [vmem:[#allocation4 + $0x17] sm:$0xff]  ;;  %v6403_v54 = vld [vmem:[#allocation4 + $0x1f] sm:$0xff]  ;;  %15112 = vmatprep.subr.mxu0 %v13252_v23  ;;  %v13283_v1 = vld [vmem:[%s19093_s26 + $0x48] sm:$0xf] }
0x1465   : > { %v6388_v2 = vld [vmem:[#allocation4 + $0x16] sm:$0xff]  ;;  %15134 = vmatprep.subr.mxu1 %v13267_v8  ;;  %6380 = vst.msk [vmem:[#allocation4 + $0x38] sm:$0xff] %vm981_vm6, %v6367_v22  ;;  %v6370_v49 = vmax.f32 %v6358_v9, 0.0  ;;  %v6357_v53 = vadd.f32 %v17543_v39, %v6339_v15  ;;  %v6342_v43 = vadd.f32 %v15065_v56, %v6151_v48  ;;  %15073 = vmatprep.mubr.msk.f32.mxu0 %vm981_vm6, %v6402_v24  ;;  %v6389_v34 = vld [vmem:[#allocation4 + $0x1e] sm:$0xff]  ;;  %v7125_v24 = vld [vmem:[#allocation4 + $0xa] sm:$0xff] }
0x1466   : > { %15095 = vmatprep.mubr.msk.f32.mxu1 %vm981_vm6, %v6388_v2  ;;  %v6322_v13 = vpop.f32.mrf.mxu1  ;;  %15074 = vmatmul.mubr.msk.f32.gmra.mxu0 %vm981_vm6, %v6403_v54  ;;  %v6935_v33 = vld [vmem:[#allocation4 + $0x11] sm:$0xff]  ;;  %v6936_v44 = vld [vmem:[#allocation4 + $0x19] sm:$0xff] }
0x1467   : > { %15096 = vmatmul.mubr.msk.f32.gmra.mxu1 %vm981_vm6, %v6389_v34  ;;  %6383 = vst.msk [vmem:[#allocation4 + $0x50] sm:$0xff] %vm981_vm6, %v6370_v49  ;;  %v6369_v5 = vmax.f32 %v6357_v53, 0.0  ;;  %v6360_v37 = vadd.f32 %v17543_v39, %v6342_v43  ;;  %v6341_v11 = vadd.f32 %v6322_v13, %v6150_v57  ;;  %15113 = vmatpush3.msra.mxu0 %v13252_v23  ;;  %v6745_v12 = vld [vmem:[#allocation4 + $0x18] sm:$0xff]  ;;  %v6748_v35 = vld [vmem:[#allocation4 + $0x30] sm:$0xff] }
0x1468   : > { %15135 = vmatpush3.msra.mxu1 %v13267_v8  ;;  %v6404_v30 = vld [vmem:[#allocation4 + $0x27] sm:$0xff]  ;;  %v6405_v58 = vld [vmem:[#allocation4 + $0x2f] sm:$0xff]  ;;  %15154 = vmatprep.subr.msk.mxu0 %vm5477_vm5, %v13283_v1  ;;  %v7127_v54 = vld [vmem:[#allocation4 + $0x1a] sm:$0xff] }
0x1469   : > { %v6390_v40 = vld [vmem:[#allocation4 + $0x26] sm:$0xff]  ;;  %6382 = vst.msk [vmem:[#allocation4 + $0x48] sm:$0xff] %vm981_vm6, %v6369_v5  ;;  %v6372_v14 = vmax.f32 %v6360_v37, 0.0  ;;  %v6359_v19 = vadd.f32 %v17543_v39, %v6341_v11  ;;  %15076 = vmatprep.mubr.msk.f32.mxu0 %vm981_vm6, %v6404_v30  ;;  %v6391_v45 = vld [vmem:[#allocation4 + $0x2e] sm:$0xff] }
0x146a   : > { %15098 = vmatprep.mubr.msk.f32.mxu1 %vm981_vm6, %v6390_v40  ;;  %15077 = vmatmul.mubr.msk.f32.gmra.mxu0 %vm981_vm6, %v6405_v58  ;;  %v6937_v21 = vld [vmem:[#allocation4 + $0x21] sm:$0xff]  ;;  %v6938_v55 = vld [vmem:[#allocation4 + $0x29] sm:$0xff]  ;;  %v7126_v2 = vld [vmem:[#allocation4 + $0x12] sm:$0xff] }
0x146b   : > { %15099 = vmatmul.mubr.msk.f32.gmra.mxu1 %vm981_vm6, %v6391_v45  ;;  %6385 = vst.msk [vmem:[#allocation4 + $0x60] sm:$0xff] %vm981_vm6, %v6372_v14  ;;  %v6371_v29 = vmax.f32 %v6359_v19, 0.0  ;;  %v6747_v46 = vld [vmem:[#allocation4 + $0x28] sm:$0xff]  ;;  %v6750_v0 = vld [vmem:[#allocation4 + $0x40] sm:$0xff] }
0x146c   : > { %v6406_v10 = vld [vmem:[#allocation4 + $0x37] sm:$0xff]  ;;  %v6407_v3 = vld [vmem:[#allocation4 + $0x3f] sm:$0xff]  ;;  %v7129_v49 = vld [vmem:[#allocation4 + $0x2a] sm:$0xff] }
0x146d   : > { %v6392_v51 = vld [vmem:[#allocation4 + $0x36] sm:$0xff]  ;;  %6384 = vst.msk [vmem:[#allocation4 + $0x58] sm:$0xff] %vm981_vm6, %v6371_v29  ;;  %15079 = vmatprep.mubr.msk.f32.mxu0 %vm981_vm6, %v6406_v10  ;;  %v6393_v39 = vld [vmem:[#allocation4 + $0x3e] sm:$0xff] }
0x146e   : > { %15101 = vmatprep.mubr.msk.f32.mxu1 %vm981_vm6, %v6392_v51  ;;  %15080 = vmatmul.mubr.msk.f32.gmra.mxu0 %vm981_vm6, %v6407_v3  ;;  %v6939_v16 = vld [vmem:[#allocation4 + $0x31] sm:$0xff]  ;;  %v6940_v52 = vld [vmem:[#allocation4 + $0x39] sm:$0xff]  ;;  %v7128_v57 = vld [vmem:[#allocation4 + $0x22] sm:$0xff] }
0x146f   : > { %15102 = vmatmul.mubr.msk.f32.gmra.mxu1 %vm981_vm6, %v6393_v39  ;;  %v6749_v6 = vld [vmem:[#allocation4 + $0x38] sm:$0xff]  ;;  %v6752_v48 = vld [vmem:[#allocation4 + $0x50] sm:$0xff] }
0x1470   : > { %v6408_v47 = vld [vmem:[#allocation4 + $0x47] sm:$0xff]  ;;  %v6409_v7 = vld [vmem:[#allocation4 + $0x4f] sm:$0xff]  ;;  %v7131_v43 = vld [vmem:[#allocation4 + $0x3a] sm:$0xff] }
0x1471   : > { %v6394_v63 = vld [vmem:[#allocation4 + $0x46] sm:$0xff]  ;;  %15082 = vmatprep.mubr.msk.f32.mxu0 %vm981_vm6, %v6408_v47  ;;  %v6395_v60 = vld [vmem:[#allocation4 + $0x4e] sm:$0xff] }
0x1472   : > { %15104 = vmatprep.mubr.msk.f32.mxu1 %vm981_vm6, %v6394_v63  ;;  %15083 = vmatmul.mubr.msk.f32.gmra.mxu0 %vm981_vm6, %v6409_v7  ;;  %v6941_v23 = vld [vmem:[#allocation4 + $0x41] sm:$0xff]  ;;  %v6942_v59 = vld [vmem:[#allocation4 + $0x49] sm:$0xff]  ;;  %v7130_v53 = vld [vmem:[#allocation4 + $0x32] sm:$0xff] }
0x1473   : > { %15105 = vmatmul.mubr.msk.f32.gmra.mxu1 %vm981_vm6, %v6395_v60  ;;  %v6751_v8 = vld [vmem:[#allocation4 + $0x48] sm:$0xff]  ;;  %v6754_v4 = vld [vmem:[#allocation4 + $0x60] sm:$0xff] }
0x1474   : > { %v6410_v28 = vld [vmem:[#allocation4 + $0x57] sm:$0xff]  ;;  %v6411_v17 = vld [vmem:[#allocation4 + $0x5f] sm:$0xff] }
0x1475   : > { %v6396_v41 = vld [vmem:[#allocation4 + $0x56] sm:$0xff]  ;;  %15085 = vmatprep.mubr.msk.f32.mxu0 %vm981_vm6, %v6410_v28  ;;  %v6397_v42 = vld [vmem:[#allocation4 + $0x5e] sm:$0xff] }
0x1476   : > { %15107 = vmatprep.mubr.msk.f32.mxu1 %vm981_vm6, %v6396_v41  ;;  %15086 = vmatmul.mubr.msk.f32.gmra.mxu0 %vm981_vm6, %v6411_v17  ;;  %v6943_v22 = vld [vmem:[#allocation4 + $0x51] sm:$0xff]  ;;  %v6944_v15 = vld [vmem:[#allocation4 + $0x59] sm:$0xff]  ;;  %v6945_v56 = vld [vmem:[#allocation4 + $0x61] sm:$0xff] }
0x1477   : > { %15108 = vmatmul.mubr.msk.f32.gmra.mxu1 %vm981_vm6, %v6397_v42  ;;  %15114 = vmatprep.mubr.msk.f32.mxu0 %vm981_vm6, %v6743_v18  ;;  %v6753_v9 = vld [vmem:[#allocation4 + $0x58] sm:$0xff]  ;;  %v7132_v34 = vld [vmem:[#allocation4 + $0x42] sm:$0xff] }
0x1478   : > { %15136 = vmatprep.mubr.msk.f32.mxu1 %vm981_vm6, %v6934_v25  ;;  %v7134_v13 = vld [vmem:[#allocation4 + $0x52] sm:$0xff]  ;;  %v7135_v5 = vld [vmem:[#allocation4 + $0x5a] sm:$0xff]  ;;  %v7136_v37 = vld [vmem:[#allocation4 + $0x62] sm:$0xff] }
0x147a   : > { %15115 = vmatmul.mubr.msk.f32.vlgmr.msra.gmra.mxu0 %vm981_vm6, %v6744_v50 }
0x147b   : > { %15137 = vmatmul.mubr.msk.f32.vlgmr.msra.gmra.mxu1 %vm981_vm6, %v6935_v33  ;;  %15117 = vmatprep.mubr.msk.f32.mxu0 %vm981_vm6, %v6745_v12 }
0x147c   : > { %15139 = vmatprep.mubr.msk.f32.mxu1 %vm981_vm6, %v6936_v44  ;;  %15155 = vmatpush3.msk.msra.mxu0 %vm5477_vm5, %v13283_v1  ;;  %v7133_v1 = vld [vmem:[#allocation4 + $0x4a] sm:$0xff] }
0x147d   : > { %15156 = vmatprep.subr.mxu0 %v13282_v38 }
0x147e   : > { %15118 = vmatmul.mubr.msk.f32.gmra.mxu0 %vm981_vm6, %v6746_v32 }
0x147f   : > { %15140 = vmatmul.mubr.msk.f32.gmra.mxu1 %vm981_vm6, %v6937_v21  ;;  %15120 = vmatprep.mubr.msk.f32.mxu0 %vm981_vm6, %v6747_v46 }
0x1480   : > { %15142 = vmatprep.mubr.msk.f32.mxu1 %vm981_vm6, %v6938_v55  ;;  %15157 = vmatpush3.msra.mxu0 %v13282_v38 }
0x1482   : > { %15121 = vmatmul.mubr.msk.f32.gmra.mxu0 %vm981_vm6, %v6748_v35 }
0x1483   : > { %15143 = vmatmul.mubr.msk.f32.gmra.mxu1 %vm981_vm6, %v6939_v16  ;;  %15123 = vmatprep.mubr.msk.f32.mxu0 %vm981_vm6, %v6749_v6 }
0x1484   : > { %15145 = vmatprep.mubr.msk.f32.mxu1 %vm981_vm6, %v6940_v52 }
0x1486   : > { %15124 = vmatmul.mubr.msk.f32.gmra.mxu0 %vm981_vm6, %v6750_v0 }
0x1487   : > { %15146 = vmatmul.mubr.msk.f32.gmra.mxu1 %vm981_vm6, %v6941_v23  ;;  %15126 = vmatprep.mubr.msk.f32.mxu0 %vm981_vm6, %v6751_v8 }
0x1488   : > { %15148 = vmatprep.mubr.msk.f32.mxu1 %vm981_vm6, %v6942_v59 }
0x148a   : > { %15127 = vmatmul.mubr.msk.f32.gmra.mxu0 %vm981_vm6, %v6752_v48 }
0x148b   : > { %15149 = vmatmul.mubr.msk.f32.gmra.mxu1 %vm981_vm6, %v6943_v22  ;;  %15129 = vmatprep.mubr.msk.f32.mxu0 %vm981_vm6, %v6753_v9 }
0x148c   : > { %15151 = vmatprep.mubr.msk.f32.mxu1 %vm981_vm6, %v6944_v15 }
0x148e   : > { %15130 = vmatmul.mubr.msk.f32.gmra.mxu0 %vm981_vm6, %v6754_v4 }
0x148f   : > { %15152 = vmatmul.mubr.msk.f32.gmra.mxu1 %vm981_vm6, %v6945_v56  ;;  %15158 = vmatprep.mubr.msk.f32.mxu0 %vm981_vm6, %v7125_v24 }
0x1492   : > { %15159 = vmatmul.mubr.msk.f32.vlgmr.msra.gmra.mxu0 %vm981_vm6, %v7126_v2 }
0x1493   : > { %15161 = vmatprep.mubr.msk.f32.mxu0 %vm981_vm6, %v7127_v54 }
0x1496   : > { %15162 = vmatmul.mubr.msk.f32.gmra.mxu0 %vm981_vm6, %v7128_v57 }
0x1497   : > { %15164 = vmatprep.mubr.msk.f32.mxu0 %vm981_vm6, %v7129_v49 }
0x149a   : > { %15165 = vmatmul.mubr.msk.f32.gmra.mxu0 %vm981_vm6, %v7130_v53 }
0x149b   : > { %15167 = vmatprep.mubr.msk.f32.mxu0 %vm981_vm6, %v7131_v43 }
0x149e   : > { %15168 = vmatmul.mubr.msk.f32.gmra.mxu0 %vm981_vm6, %v7132_v34  ;;  %v17669_v34 = vld [vmem:[%s19095_s1] ss:$0 sm:$0xff] }
0x149f   : > { %15170 = vmatprep.mubr.msk.f32.mxu0 %vm981_vm6, %v7133_v1 }
0x14a2   : > { %15171 = vmatmul.mubr.msk.f32.gmra.mxu0 %vm981_vm6, %v7134_v13 }
0x14a3   : > { %15173 = vmatprep.mubr.msk.f32.mxu0 %vm981_vm6, %v7135_v5 }
0x14a6   : > { %15174 = vmatmul.mubr.msk.f32.gmra.mxu0 %vm981_vm6, %v7136_v37 }
0x1522   : > { %v15072_v11 = vpop.f32.mrf.mxu0 }
0x1523   : > { %v15094_v30 = vpop.f32.mrf.mxu1 }
0x1524   : > { %v6520_v40 = vpop.f32.mrf.mxu0  ;;  %v6690_v59 = vadd.f32 %v15094_v30, %v15072_v11 }
0x1525   : > { %v6684_v58 = vpop.f32.mrf.mxu1 }
0x1526   : > { %v15075_v14 = vpop.f32.mrf.mxu0  ;;  %v6685_v22 = vadd.f32 %v6684_v58, %v6520_v40 }
0x1527   : > { %v15097_v19 = vpop.f32.mrf.mxu1 }
0x1528   : > { %v6530_v45 = vpop.f32.mrf.mxu0  ;;  %v6700_v56 = vadd.f32 %v15097_v19, %v15075_v14 }
0x1529   : > { %v6694_v29 = vpop.f32.mrf.mxu1 }
0x152a   : > { %v15078_v10 = vpop.f32.mrf.mxu0  ;;  %v6695_v54 = vadd.f32 %v6694_v29, %v6530_v45 }
0x152b   : > { %v15100_v51 = vpop.f32.mrf.mxu1 }
0x152c   : > { %v6540_v3 = vpop.f32.mrf.mxu0  ;;  %v6710_v43 = vadd.f32 %v15100_v51, %v15078_v10 }
0x152d   : > { %v6704_v39 = vpop.f32.mrf.mxu1 }
0x152e   : > { %v15081_v47 = vpop.f32.mrf.mxu0  ;;  %v6705_v11 = vadd.f32 %v6704_v39, %v6540_v3 }
0x152f   : > { %v15103_v63 = vpop.f32.mrf.mxu1 }
0x1530   : > { %v6550_v7 = vpop.f32.mrf.mxu0 }
0x1531   : > { %v6714_v60 = vpop.f32.mrf.mxu1 }
0x1532   : > { %v17648_v28 = vpop.f32.mrf.mxu0 }
0x1533   : > { %v17650_v41 = vpop.f32.mrf.mxu1 }
0x1534   : > { %v17652_v17 = vpop.f32.mrf.mxu0 }
0x1535   : > { %v17654_v42 = vpop.f32.mrf.mxu1 }
0x1536   : > { %v17656_v18 = vpop.f32.mrf.mxu0 }
0x1537   : > { %v17658_v25 = vpop.f32.mrf.mxu1 }
0x1538   : > { %v17660_v50 = vpop.f32.mrf.mxu0 }
0x1539   : > { %v17662_v33 = vpop.f32.mrf.mxu1 }
0x153a   : > { %v15116_v12 = vpop.f32.mrf.mxu0 }
0x153b   : > { %v15138_v44 = vpop.f32.mrf.mxu1  ;;  %v6923_v9 = vadd.f32 %v15116_v12, %v6690_v59 }
0x153c   : > { %v6863_v38 = vpop.f32.mrf.mxu0 }
0x153d   : > { %v7054_v32 = vpop.f32.mrf.mxu1  ;;  %v6922_v24 = vadd.f32 %v6863_v38, %v6685_v22  ;;  %v7114_v57 = vadd.f32 %v15138_v44, %v6923_v9  ;;  %v6720_v38 = vadd.f32 %v15103_v63, %v15081_v47 }
0x153e   : > { %v15119_v21 = vpop.f32.mrf.mxu0 }
0x153f   : > { %v15141_v55 = vpop.f32.mrf.mxu1  ;;  %v6925_v49 = vadd.f32 %v15119_v21, %v6700_v56  ;;  %v7113_v13 = vadd.f32 %v7054_v32, %v6922_v24  ;;  %v6715_v32 = vadd.f32 %v6714_v60, %v6550_v7 }
0x1540   : > { %v6873_v46 = vpop.f32.mrf.mxu0 }
0x1541   : > { %v7064_v6 = vpop.f32.mrf.mxu1  ;;  %v6924_v5 = vadd.f32 %v6873_v46, %v6695_v54  ;;  %v7116_v58 = vadd.f32 %v15141_v55, %v6925_v49  ;;  %v6740_v54 = vadd.f32 %v17658_v25, %v17656_v18 }
0x1542   : > { %v15122_v35 = vpop.f32.mrf.mxu0 }
0x1543   : > { %v15144_v23 = vpop.f32.mrf.mxu1  ;;  %v6927_v30 = vadd.f32 %v15122_v35, %v6710_v43  ;;  %v7115_v44 = vadd.f32 %v7064_v6, %v6924_v5 }
0x1544   : > { %v6883_v16 = vpop.f32.mrf.mxu0 }
0x1545   : > { %v7074_v15 = vpop.f32.mrf.mxu1  ;;  %v6926_v45 = vadd.f32 %v6883_v16, %v6705_v11  ;;  %v7118_v46 = vadd.f32 %v15144_v23, %v6927_v30  ;;  %v6730_v16 = vadd.f32 %v17650_v41, %v17648_v28 }
0x1546   : > { %v15125_v52 = vpop.f32.mrf.mxu0 }
0x1547   : > { %v15147_v53 = vpop.f32.mrf.mxu1  ;;  %v6929_v3 = vadd.f32 %v15125_v52, %v6720_v38  ;;  %v7117_v6 = vadd.f32 %v7074_v15, %v6926_v45  ;;  %v19096_v38 = vld [vmem:[#allocation19_spill] sm:$0xff] }
0x1548   : > { %v6893_v0 = vpop.f32.mrf.mxu0 }
0x1549   : > { %v7084_v12 = vpop.f32.mrf.mxu1  ;;  %v7120_v28 = vadd.f32 %v15147_v53, %v6929_v3 }
0x154a   : > { %v15128_v8 = vpop.f32.mrf.mxu0 }
0x154b   : > { %v15150_v35 = vpop.f32.mrf.mxu1  ;;  %v6931_v9 = vadd.f32 %v15128_v8, %v6730_v16 }
0x154c   : > { %v6903_v48 = vpop.f32.mrf.mxu0 }
0x154d   : > { %v7094_v41 = vpop.f32.mrf.mxu1 }
0x154e   : > { %v17664_v4 = vpop.f32.mrf.mxu0 }
0x154f   : > { %v6933_v25 = vadd.f32 %v17664_v4, %v6740_v54 }
0x1550   : > { %v17666_v2 = vpop.f32.mrf.mxu0 }
0x1552   : > { %v15160_v1 = vpop.f32.mrf.mxu0 }
0x1553   : > { %v7305_v37 = vadd.f32 %v15160_v1, %v7114_v57  ;;  %v7122_v1 = vadd.f32 %v15150_v35, %v6931_v9 }
0x1554   : > { %v7245_v40 = vpop.f32.mrf.mxu0 }
0x1555   : > { %v7323_v14 = vadd.f32 %v17669_v34, %v7305_v37  ;;  %v7304_v19 = vadd.f32 %v7245_v40, %v7113_v13 }
0x1556   : > { %v15163_v29 = vpop.f32.mrf.mxu0 }
0x1557   : > { %v7322_v10 = vadd.f32 %v17669_v34, %v7304_v19  ;;  %v7307_v51 = vadd.f32 %v15163_v29, %v7116_v58  ;;  %v17674_v21 = vadd.f32 %v7323_v14, %v17390_v26  ;;  %v6928_v26 = vadd.f32 %v6893_v0, %v6715_v32 }
0x1558   : > { %v7255_v39 = vpop.f32.mrf.mxu0 }
0x1559   : > { %v7325_v55 = vadd.f32 %v17669_v34, %v7307_v51  ;;  %v7306_v59 = vadd.f32 %v7255_v39, %v7115_v44  ;;  %v7351_v47 = vsel %vm981_vm6, %v17674_v21, 0.0  ;;  %v17680_v63 = vadd.f32 %v7322_v10, %v17394_v36 }
0x155a   : > { %v15166_v22 = vpop.f32.mrf.mxu0  ;;  %7352 = vadd.xlane.f32.xlu0 %v7351_v47  ;;  %v6725_v36 = vadd.f32 %v17654_v42, %v17652_v17  ;;  %v7119_v57 = vadd.f32 %v7084_v12, %v6928_v26 }
0x155b   : > { %v7324_v7 = vadd.f32 %v17669_v34, %v7306_v59  ;;  %v7309_v60 = vadd.f32 %v15166_v22, %v7118_v46  ;;  %v7348_v52 = vsel %vm981_vm6, %v17680_v63, 0.0  ;;  %v17688_v23 = vadd.f32 %v7325_v55, %v17398_v20  ;;  %v19097_v46 = vld [vmem:[#allocation20_spill] sm:$0xff]  ;;  %v19098_v59 = vld [vmem:[#allocation21_spill] sm:$0xff]  ;;  %v19099_v22 = vld [vmem:[#allocation22_spill] sm:$0xff] }
0x155c   : > { %v7265_v56 = vpop.f32.mrf.mxu0  ;;  %7349 = vadd.xlane.f32.xlu1 %v7348_v52  ;;  %v6930_v20 = vadd.f32 %v6903_v48, %v6725_v36  ;;  %v15153_v48 = vpop.f32.mrf.mxu1 }
0x155d   : > { %v7327_v0 = vadd.f32 %v17669_v34, %v7309_v60  ;;  %v7308_v15 = vadd.f32 %v7265_v56, %v7117_v6  ;;  %v17694_v24 = vadd.f32 %v7324_v7, %v17402_v61  ;;  %v7357_v17 = vsel %vm981_vm6, %v17688_v23, 0.0  ;;  %v19100_v60 = vld [vmem:[#allocation23_spill] sm:$0xff] }
0x155e   : > { %v15169_v49 = vpop.f32.mrf.mxu0  ;;  %v6735_v61 = vadd.f32 %v17662_v33, %v17660_v50  ;;  %v7121_v11 = vadd.f32 %v7094_v41, %v6930_v20  ;;  %v7104_v14 = vpop.f32.mrf.mxu1 }
0x155f   : > { %v7326_v42 = vadd.f32 %v17669_v34, %v7308_v15  ;;  %v7311_v8 = vadd.f32 %v15169_v49, %v7120_v28  ;;  %v7354_v53 = vsel %vm981_vm6, %v17694_v24, 0.0  ;;  %v17704_v43 = vadd.f32 %v7327_v0, %v17406_v62 }
0x1560   : > { %v7275_v18 = vpop.f32.mrf.mxu0  ;;  %7358 = vadd.xlane.f32.xlu1 %v7357_v17  ;;  %7355 = vadd.xlane.f32.xlu0 %v7354_v53  ;;  %v6932_v62 = vadd.f32 %v17666_v2, %v6735_v61 }
0x1561   : > { %v7329_v13 = vadd.f32 %v17669_v34, %v7311_v8  ;;  %v7310_v5 = vadd.f32 %v7275_v18, %v7119_v57  ;;  %v17711_v37 = vadd.f32 %v7326_v42, %v17410_v27  ;;  %v7363_v50 = vsel %vm981_vm6, %v17704_v43, 0.0 }
0x1562   : > { %v15172_v30 = vpop.f32.mrf.mxu0  ;;  %v7124_v27 = vadd.f32 %v15153_v48, %v6933_v25  ;;  %v7123_v29 = vadd.f32 %v7104_v14, %v6932_v62 }
0x1563   : > { %v7328_v33 = vadd.f32 %v17669_v34, %v7310_v5  ;;  %v7313_v40 = vadd.f32 %v15172_v30, %v7122_v1  ;;  %v7360_v4 = vsel %vm981_vm6, %v17711_v37, 0.0  ;;  %v17720_v58 = vadd.f32 %v7329_v13, %v17414_v31 }
0x1564   : > { %v7285_v12 = vpop.f32.mrf.mxu0  ;;  %7364 = vadd.xlane.f32.xlu1 %v7363_v50  ;;  %7361 = vadd.xlane.f32.xlu0 %v7360_v4 }
0x1565   : > { %v7331_v2 = vadd.f32 %v17669_v34, %v7313_v40  ;;  %v7312_v19 = vadd.f32 %v7285_v12, %v7121_v11  ;;  %v7340_v45 = vadd.f32 %v7328_v33, %v19096_v38  ;;  %v7369_v10 = vsel %vm981_vm6, %v17720_v58, 0.0 }
0x1566   : > { %v15175_v44 = vpop.f32.mrf.mxu0 }
0x1567   : > { %v7330_v51 = vadd.f32 %v17669_v34, %v7312_v19  ;;  %v7315_v32 = vadd.f32 %v15175_v44, %v7124_v27  ;;  %v7366_v31 = vsel %vm981_vm6, %v7340_v45, 0.0  ;;  %v17729_v3 = vadd.f32 %v7331_v2, %v19097_v46 }
0x1568   : > { %v7295_v39 = vpop.f32.mrf.mxu0  ;;  %7370 = vadd.xlane.f32.xlu1 %v7369_v10  ;;  %7367 = vadd.xlane.f32.xlu0 %v7366_v31 }
0x1569   : > { %v7333_v35 = vadd.f32 %v17669_v34, %v7315_v32  ;;  %v7314_v55 = vadd.f32 %v7295_v39, %v7123_v29  ;;  %v7342_v47 = vadd.f32 %v7330_v51, %v19098_v59  ;;  %v7375_v6 = vsel %vm981_vm6, %v17729_v3, 0.0 }
0x156b   : > { %v7332_v16 = vadd.f32 %v17669_v34, %v7314_v55  ;;  %v7372_v26 = vsel %vm981_vm6, %v7342_v47, 0.0  ;;  %v17738_v7 = vadd.f32 %v7333_v35, %v19099_v22 }
0x156c   : > { %7376 = vadd.xlane.f32.xlu1 %v7375_v6  ;;  %7373 = vadd.xlane.f32.xlu0 %v7372_v26 }
0x156d   : > { %v17741_v52 = vadd.f32 %v7332_v16, %v19100_v60  ;;  %v7381_v36 = vsel %vm981_vm6, %v17738_v7, 0.0  ;;  %v13304_v60 = vld [vmem:[%s19086_s18 + $0x68] sm:$0xf] }
0x156e   : > { %15176 = vmatprep.subr.msk.mxu1 %vm5477_vm5, %v13304_v60 }
0x156f   : > { %v7378_v9 = vsel %vm981_vm6, %v17741_v52, 0.0  ;;  %15177 = vmatpush3.msk.msra.mxu1 %vm5477_vm5, %v13304_v60 }
0x1570   : > { %7382 = vadd.xlane.f32.xlu1 %v7381_v36  ;;  %7379 = vadd.xlane.f32.xlu0 %v7378_v9  ;;  %v13303_v36 = vld [vmem:[%s19086_s18 + $0x60] sm:$0xff]  ;;  %v13301_v9 = vld [vmem:[%s19086_s18 + $0x50] sm:$0xff] }
0x1571   : > { %15178 = vmatprep.subr.mxu1 %v13303_v36 }
0x1572   : > { %15179 = vmatpush3.msra.mxu1 %v13303_v36 }
0x15e3   : > { %v7353_v34 = vpop.xlane.xlu0 %7352 }
0x15e4   : > { %v7386_v56 = vmul.f32 0.083333336, %v7353_v34  ;;  %v17826_v34 = vld [vmem:[%s19086_s18 + $0x78] sm:$0xf] }
0x15e5   : > { %v7350_v28 = vpop.xlane.xlu1 %7349  ;;  %15220 = vmatprep.subr.msk.mxu1 %vm5477_vm5, %v17826_v34 }
0x15e6   : > { %v17748_v41 = vsub.f32 %v17674_v21, %v7386_v56  ;;  %v7385_v0 = vmul.f32 0.083333336, %v7350_v28  ;;  %v17831_v56 = vld [vmem:[%s19086_s18 + $0x88] sm:$0xf] }
0x15e8   : > { %v17751_v15 = vsub.f32 %v17680_v63, %v7385_v0  ;;  %v7410_v54 = vmul.f32 %v17748_v41, %v17748_v41 }
0x15e9   : > { %v7359_v57 = vpop.xlane.xlu1 %7358  ;;  %v7356_v20 = vpop.xlane.xlu0 %7355 }
0x15ea   : > { %v7388_v49 = vmul.f32 0.083333336, %v7359_v57  ;;  %v7387_v17 = vmul.f32 0.083333336, %v7356_v20  ;;  %v7424_v42 = vsel %vm981_vm6, %v7410_v54, 0.0  ;;  %v7409_v8 = vmul.f32 %v17751_v15, %v17751_v15 }
0x15eb   : > { %7425 = vadd.xlane.f32.xlu1 %v7424_v42 }
0x15ec   : > { %v17759_v21 = vsub.f32 %v17688_v23, %v7388_v49  ;;  %v17762_v53 = vsub.f32 %v17694_v24, %v7387_v17  ;;  %v7421_v63 = vsel %vm981_vm6, %v7409_v8, 0.0 }
0x15ed   : > { %v7365_v61 = vpop.xlane.xlu1 %7364  ;;  %v7362_v1 = vpop.xlane.xlu0 %7361  ;;  %7422 = vadd.xlane.f32.xlu0 %v7421_v63 }
0x15ee   : > { %v7390_v18 = vmul.f32 0.083333336, %v7365_v61  ;;  %v7389_v25 = vmul.f32 0.083333336, %v7362_v1  ;;  %v7412_v48 = vmul.f32 %v17759_v21, %v17759_v21  ;;  %v7411_v13 = vmul.f32 %v17762_v53, %v17762_v53 }
0x15f0   : > { %v17770_v5 = vsub.f32 %v17704_v43, %v7390_v18  ;;  %v17773_v23 = vsub.f32 %v17711_v37, %v7389_v25  ;;  %v7430_v24 = vsel %vm981_vm6, %v7412_v48, 0.0  ;;  %v7427_v11 = vsel %vm981_vm6, %v7411_v13, 0.0 }
0x15f1   : > { %v7371_v62 = vpop.xlane.xlu1 %7370  ;;  %v7368_v30 = vpop.xlane.xlu0 %7367  ;;  %7431 = vadd.xlane.f32.xlu1 %v7430_v24  ;;  %7428 = vadd.xlane.f32.xlu0 %v7427_v11 }
0x15f2   : > { %v7392_v50 = vmul.f32 0.083333336, %v7371_v62  ;;  %v7391_v33 = vmul.f32 0.083333336, %v7368_v30  ;;  %v7414_v40 = vmul.f32 %v17770_v5, %v17770_v5  ;;  %v7413_v43 = vmul.f32 %v17773_v23, %v17773_v23 }
0x15f4   : > { %v17782_v4 = vsub.f32 %v17720_v58, %v7392_v50  ;;  %v17784_v37 = vsub.f32 %v7340_v45, %v7391_v33  ;;  %v7436_v12 = vsel %vm981_vm6, %v7414_v40, 0.0  ;;  %v7433_v27 = vsel %vm981_vm6, %v7413_v43, 0.0 }
0x15f5   : > { %v7377_v14 = vpop.xlane.xlu1 %7376  ;;  %v7374_v2 = vpop.xlane.xlu0 %7373  ;;  %7437 = vadd.xlane.f32.xlu1 %v7436_v12  ;;  %7434 = vadd.xlane.f32.xlu0 %v7433_v27  ;;  %v17836_v27 = vld [vmem:[%s19101_s2] ss:$0 sm:$0xff] }
0x15f6   : > { %v7394_v19 = vmul.f32 0.083333336, %v7377_v14  ;;  %v7393_v38 = vmul.f32 0.083333336, %v7374_v2  ;;  %v7416_v29 = vmul.f32 %v17782_v4, %v17782_v4  ;;  %v7415_v44 = vmul.f32 %v17784_v37, %v17784_v37 }
0x15f8   : > { %v17793_v58 = vsub.f32 %v17729_v3, %v7394_v19  ;;  %v17795_v45 = vsub.f32 %v7342_v47, %v7393_v38  ;;  %v7442_v10 = vsel %vm981_vm6, %v7416_v29, 0.0  ;;  %v7439_v51 = vsel %vm981_vm6, %v7415_v44, 0.0 }
0x15f9   : > { %7443 = vadd.xlane.f32.xlu1 %v7442_v10  ;;  %v7383_v32 = vpop.xlane.xlu1 %7382  ;;  %7440 = vadd.xlane.f32.xlu0 %v7439_v51  ;;  %v7380_v31 = vpop.xlane.xlu0 %7379  ;;  %v17840_v10 = vld [vmem:[%s16245_s27] ss:$0 sm:$0xff] }
0x15fa   : > { %v7396_v46 = vmul.f32 0.083333336, %v7383_v32  ;;  %v7395_v39 = vmul.f32 0.083333336, %v7380_v31  ;;  %v7418_v35 = vmul.f32 %v17793_v58, %v17793_v58  ;;  %v7417_v3 = vmul.f32 %v17795_v45, %v17795_v45 }
0x15fc   : > { %v17804_v55 = vsub.f32 %v17738_v7, %v7396_v46  ;;  %v17807_v59 = vsub.f32 %v17741_v52, %v7395_v39  ;;  %v7448_v47 = vsel %vm981_vm6, %v7418_v35, 0.0  ;;  %v7445_v16 = vsel %vm981_vm6, %v7417_v3, 0.0  ;;  %v13302_v52 = vld [vmem:[%s19086_s18 + $0x58] sm:$0xf] }
0x15fd   : > { %7449 = vadd.xlane.f32.xlu1 %v7448_v47  ;;  %7446 = vadd.xlane.f32.xlu0 %v7445_v16 }
0x15fe   : > { %v7420_v6 = vmul.f32 %v17804_v55, %v17804_v55  ;;  %v7419_v26 = vmul.f32 %v17807_v59, %v17807_v59  ;;  %15198 = vmatprep.subr.msk.mxu0 %vm5477_vm5, %v13302_v52 }
0x15ff   : > { %15199 = vmatpush3.msk.msra.mxu0 %vm5477_vm5, %v13302_v52 }
0x1600   : > { %v7454_v22 = vsel %vm981_vm6, %v7420_v6, 0.0  ;;  %v7451_v7 = vsel %vm981_vm6, %v7419_v26, 0.0  ;;  %15200 = vmatprep.subr.mxu0 %v13301_v9 }
0x1601   : > { %7455 = vadd.xlane.f32.xlu1 %v7454_v22  ;;  %7452 = vadd.xlane.f32.xlu0 %v7451_v7 }
0x1602   : > { %15201 = vmatpush3.msra.mxu0 %v13301_v9 }
0x1603   : > { %15242 = vmatprep.subr.msk.mxu0 %vm5477_vm5, %v17831_v56 }
0x1674   : > { %v7426_v28 = vpop.xlane.xlu1 %7425 }
0x1675   : > { %v7458_v0 = vmul.f32 0.083333336, %v7426_v28 }
0x1676   : > { %v7423_v54 = vpop.xlane.xlu0 %7422 }
0x1677   : > { %v7470_v57 = vadd.f32 1e-05, %v7458_v0  ;;  %v7457_v20 = vmul.f32 0.083333336, %v7423_v54 }
0x1679   : > { %15973 = vrsqrt.f32 %v7470_v57  ;;  %v7469_v49 = vadd.f32 1e-05, %v7457_v20 }
0x167a   : > { %v7432_v17 = vpop.xlane.xlu1 %7431  ;;  %v7429_v42 = vpop.xlane.xlu0 %7428 }
0x167b   : > { %15975 = vrsqrt.f32 %v7469_v49  ;;  %v7460_v8 = vmul.f32 0.083333336, %v7432_v17  ;;  %v7459_v63 = vmul.f32 0.083333336, %v7429_v42 }
0x167d   : > { %v7472_v61 = vadd.f32 1e-05, %v7460_v8  ;;  %v7471_v1 = vadd.f32 1e-05, %v7459_v63 }
0x167e   : > { %v7438_v18 = vpop.xlane.xlu1 %7437  ;;  %v7435_v25 = vpop.xlane.xlu0 %7434 }
0x167f   : > { %15977 = vrsqrt.f32 %v7472_v61  ;;  %v7462_v48 = vmul.f32 0.083333336, %v7438_v18  ;;  %v7461_v13 = vmul.f32 0.083333336, %v7435_v25 }
0x1680   : > { %15979 = vrsqrt.f32 %v7471_v1 }
0x1681   : > { %v7474_v24 = vadd.f32 1e-05, %v7462_v48  ;;  %v7473_v11 = vadd.f32 1e-05, %v7461_v13  ;;  %v13331_v13 = vld [vmem:[%s19086_s18 + $0x70] sm:$0xff] }
0x1682   : > { %v7444_v62 = vpop.xlane.xlu1 %7443  ;;  %v7441_v30 = vpop.xlane.xlu0 %7440 }
0x1683   : > { %15981 = vrsqrt.f32 %v7474_v24  ;;  %v7464_v50 = vmul.f32 0.083333336, %v7444_v62  ;;  %v7463_v33 = vmul.f32 0.083333336, %v7441_v30 }
0x1684   : > { %15983 = vrsqrt.f32 %v7473_v11 }
0x1685   : > { %v7476_v40 = vadd.f32 1e-05, %v7464_v50  ;;  %v7475_v43 = vadd.f32 1e-05, %v7463_v33 }
0x1686   : > { %v15974_v12 = vpop.eup %15973  ;;  %v7450_v14 = vpop.xlane.xlu1 %7449 }
0x1687   : > { %v7447_v2 = vpop.xlane.xlu0 %7446  ;;  %v7494_v19 = vmul.f32 %v15974_v12, %v17748_v41  ;;  %15985 = vrsqrt.f32 %v7476_v40  ;;  %v7466_v38 = vmul.f32 0.083333336, %v7450_v14  ;;  %v17906_v40 = vld [vmem:[%s19086_s18 + $0x98] sm:$0xf] }
0x1688   : > { %v7465_v29 = vmul.f32 0.083333336, %v7447_v2  ;;  %v15976_v44 = vpop.eup %15975  ;;  %15987 = vrsqrt.f32 %v7475_v43 }
0x1689   : > { %v7512_v51 = vmul.f32 %v17836_v27, %v7494_v19  ;;  %v7493_v32 = vmul.f32 %v15976_v44, %v17751_v15  ;;  %v7478_v31 = vadd.f32 1e-05, %v7466_v38 }
0x168a   : > { %v7477_v46 = vadd.f32 1e-05, %v7465_v29  ;;  %v7456_v39 = vpop.xlane.xlu1 %7455 }
0x168b   : > { %v7453_v35 = vpop.xlane.xlu0 %7452  ;;  %v17845_v3 = vadd.f32 %v17840_v10, %v7512_v51  ;;  %v7511_v41 = vmul.f32 %v17836_v27, %v7493_v32  ;;  %15989 = vrsqrt.f32 %v7478_v31  ;;  %v7468_v47 = vmul.f32 0.083333336, %v7456_v39 }
0x168c   : > { %v15978_v16 = vpop.eup %15977  ;;  %15991 = vrsqrt.f32 %v7477_v46  ;;  %v7467_v6 = vmul.f32 0.083333336, %v7453_v35 }
0x168d   : > { %v15980_v26 = vpop.eup %15979  ;;  %7544 = vst.msk [vmem:[#allocation4 + $0x10] sm:$0xff] %vm981_vm6, %v17845_v3  ;;  %v17851_v15 = vadd.f32 %v17840_v10, %v7511_v41  ;;  %v7496_v22 = vmul.f32 %v15978_v16, %v17759_v21  ;;  %v7480_v7 = vadd.f32 1e-05, %v7468_v47 }
0x168e   : > { %v7495_v60 = vmul.f32 %v15980_v26, %v17762_v53  ;;  %v7479_v52 = vadd.f32 1e-05, %v7467_v6 }
0x168f   : > { %7543 = vst.msk [vmem:[#allocation4 + $0x8] sm:$0xff] %vm981_vm6, %v17851_v15  ;;  %v7514_v36 = vmul.f32 %v17836_v27, %v7496_v22  ;;  %15993 = vrsqrt.f32 %v7480_v7 }
0x1690   : > { %v15982_v9 = vpop.eup %15981  ;;  %v7513_v28 = vmul.f32 %v17836_v27, %v7495_v60  ;;  %15995 = vrsqrt.f32 %v7479_v52 }
0x1691   : > { %v15984_v0 = vpop.eup %15983  ;;  %v17860_v54 = vadd.f32 %v17840_v10, %v7514_v36  ;;  %v7498_v21 = vmul.f32 %v15982_v9, %v17770_v5 }
0x1692   : > { %v17864_v57 = vadd.f32 %v17840_v10, %v7513_v28  ;;  %v7497_v53 = vmul.f32 %v15984_v0, %v17773_v23 }
0x1693   : > { %7546 = vst.msk [vmem:[#allocation4 + $0x20] sm:$0xff] %vm981_vm6, %v17860_v54  ;;  %v7516_v20 = vmul.f32 %v17836_v27, %v7498_v21 }
0x1694   : > { %v15986_v49 = vpop.eup %15985  ;;  %7545 = vst.msk [vmem:[#allocation4 + $0x18] sm:$0xff] %vm981_vm6, %v17864_v57  ;;  %v7515_v17 = vmul.f32 %v17836_v27, %v7497_v53  ;;  %v7914_v0 = vld [vmem:[#allocation4 + $0x10] sm:$0xff] }
0x1695   : > { %v15988_v42 = vpop.eup %15987  ;;  %v17874_v5 = vadd.f32 %v17840_v10, %v7516_v20  ;;  %v7500_v8 = vmul.f32 %v15986_v49, %v17782_v4  ;;  %v13346_v4 = vld [vmem:[%s19086_s18 + $0x80] sm:$0xff]  ;;  %v13361_v49 = vld [vmem:[%s19086_s18 + $0x90] sm:$0xff] }
0x1696   : > { %v17878_v23 = vadd.f32 %v17840_v10, %v7515_v17  ;;  %v7499_v63 = vmul.f32 %v15988_v42, %v17784_v37  ;;  %v7570_v61 = vld [vmem:[#allocation4 + $0x7] sm:$0xff]  ;;  %v7571_v18 = vld [vmem:[#allocation4 + $0xf] sm:$0xff] }
0x1697   : > { %v7555_v1 = vld [vmem:[#allocation4 + $0x6] sm:$0xff]  ;;  %7548 = vst.msk [vmem:[#allocation4 + $0x30] sm:$0xff] %vm981_vm6, %v17874_v5  ;;  %v7518_v25 = vmul.f32 %v17836_v27, %v7500_v8  ;;  %15180 = vmatprep.mubr.msk.f32.mxu1 %vm981_vm6, %v7570_v61  ;;  %v7556_v48 = vld [vmem:[#allocation4 + $0xe] sm:$0xff] }
0x1698   : > { %15202 = vmatprep.mubr.msk.f32.mxu0 %vm981_vm6, %v7555_v1  ;;  %v15990_v24 = vpop.eup %15989  ;;  %7547 = vst.msk [vmem:[#allocation4 + $0x28] sm:$0xff] %vm981_vm6, %v17878_v23  ;;  %v7517_v37 = vmul.f32 %v17836_v27, %v7499_v63  ;;  %15181 = vmatmul.mubr.msk.f32.vlgmr.msra.gmra.mxu1 %vm981_vm6, %v7571_v18  ;;  %v7913_v9 = vld [vmem:[#allocation4 + $0x8] sm:$0xff] }
0x1699   : > { %15203 = vmatmul.mubr.msk.f32.vlgmr.msra.gmra.mxu0 %vm981_vm6, %v7556_v48  ;;  %v15992_v11 = vpop.eup %15991  ;;  %v17894_v62 = vadd.f32 %v17840_v10, %v7518_v25  ;;  %v7502_v30 = vmul.f32 %v15990_v24, %v17793_v58  ;;  %15221 = vmatpush3.msk.msra.mxu1 %vm5477_vm5, %v17826_v34  ;;  %v8104_v28 = vld [vmem:[#allocation4 + $0x9] sm:$0xff] }
0x169a   : > { %15243 = vmatpush3.msk.msra.mxu0 %vm5477_vm5, %v17831_v56  ;;  %v17902_v50 = vadd.f32 %v17840_v10, %v7517_v37  ;;  %v7501_v33 = vmul.f32 %v15992_v11, %v17795_v45  ;;  %15222 = vmatprep.subr.mxu1 %v13331_v13  ;;  %v7916_v17 = vld [vmem:[#allocation4 + $0x20] sm:$0xff] }
0x169b   : > { %15244 = vmatprep.subr.mxu0 %v13346_v4  ;;  %7550 = vst.msk [vmem:[#allocation4 + $0x40] sm:$0xff] %vm981_vm6, %v17894_v62  ;;  %v7520_v58 = vmul.f32 %v17836_v27, %v7502_v30  ;;  %v7572_v43 = vld [vmem:[#allocation4 + $0x17] sm:$0xff]  ;;  %v7573_v34 = vld [vmem:[#allocation4 + $0x1f] sm:$0xff]  ;;  %15223 = vmatpush3.msra.mxu1 %v13331_v13 }
0x169c   : > { %19102 = vst [vmem:[#allocation19_spill] sm:$0xff] %v17902_v50  ;;  %v7557_v12 = vld [vmem:[#allocation4 + $0x16] sm:$0xff]  ;;  %15245 = vmatpush3.msra.mxu0 %v13346_v4  ;;  %v15994_v56 = vpop.eup %15993  ;;  %7549 = vst.msk [vmem:[#allocation4 + $0x38] sm:$0xff] %vm981_vm6, %v17902_v50  ;;  %v7519_v45 = vmul.f32 %v17836_v27, %v7501_v33  ;;  %15183 = vmatprep.mubr.msk.f32.mxu1 %vm981_vm6, %v7572_v43  ;;  %v7558_v14 = vld [vmem:[#allocation4 + $0x1e] sm:$0xff] }
0x169d   : > { %15205 = vmatprep.mubr.msk.f32.mxu0 %vm981_vm6, %v7557_v12  ;;  %v15996_v2 = vpop.eup %15995  ;;  %v17917_v19 = vadd.f32 %v17840_v10, %v7520_v58  ;;  %v7504_v38 = vmul.f32 %v15994_v56, %v17804_v55  ;;  %15184 = vmatmul.mubr.msk.f32.gmra.mxu1 %vm981_vm6, %v7573_v34  ;;  %v8105_v21 = vld [vmem:[#allocation4 + $0x11] sm:$0xff]  ;;  %v8106_v20 = vld [vmem:[#allocation4 + $0x19] sm:$0xff] }
0x169e   : > { %15206 = vmatmul.mubr.msk.f32.gmra.mxu0 %vm981_vm6, %v7558_v14  ;;  %v17923_v29 = vadd.f32 %v17840_v10, %v7519_v45  ;;  %v7503_v44 = vmul.f32 %v15996_v2, %v17807_v59  ;;  %15264 = vmatprep.subr.msk.mxu1 %vm5477_vm5, %v17906_v40  ;;  %v7915_v53 = vld [vmem:[#allocation4 + $0x18] sm:$0xff]  ;;  %v7918_v61 = vld [vmem:[#allocation4 + $0x30] sm:$0xff] }
0x169f   : > { %19103 = vst [vmem:[#allocation20_spill] sm:$0xff] %v17917_v19  ;;  %7552 = vst.msk [vmem:[#allocation4 + $0x50] sm:$0xff] %vm981_vm6, %v17917_v19  ;;  %v7522_v51 = vmul.f32 %v17836_v27, %v7504_v38  ;;  %v7574_v32 = vld [vmem:[#allocation4 + $0x27] sm:$0xff]  ;;  %v7575_v55 = vld [vmem:[#allocation4 + $0x2f] sm:$0xff] }
0x16a0   : > { %19104 = vst [vmem:[#allocation21_spill] sm:$0xff] %v17923_v29  ;;  %v7559_v31 = vld [vmem:[#allocation4 + $0x26] sm:$0xff]  ;;  %7551 = vst.msk [vmem:[#allocation4 + $0x48] sm:$0xff] %vm981_vm6, %v17923_v29  ;;  %v7521_v46 = vmul.f32 %v17836_v27, %v7503_v44  ;;  %15186 = vmatprep.mubr.msk.f32.mxu1 %vm981_vm6, %v7574_v32  ;;  %v7560_v59 = vld [vmem:[#allocation4 + $0x2e] sm:$0xff] }
0x16a1   : > { %15208 = vmatprep.mubr.msk.f32.mxu0 %vm981_vm6, %v7559_v31  ;;  %v17937_v39 = vadd.f32 %v17840_v10, %v7522_v51  ;;  %15187 = vmatmul.mubr.msk.f32.gmra.mxu1 %vm981_vm6, %v7575_v55  ;;  %v8107_v42 = vld [vmem:[#allocation4 + $0x21] sm:$0xff]  ;;  %v8108_v63 = vld [vmem:[#allocation4 + $0x29] sm:$0xff]  ;;  %v8296_v12 = vld [vmem:[#allocation4 + $0x12] sm:$0xff] }
0x16a2   : > { %15209 = vmatmul.mubr.msk.f32.gmra.mxu0 %vm981_vm6, %v7560_v59  ;;  %v17942_v35 = vadd.f32 %v17840_v10, %v7521_v46  ;;  %v7917_v8 = vld [vmem:[#allocation4 + $0x28] sm:$0xff]  ;;  %v7920_v48 = vld [vmem:[#allocation4 + $0x40] sm:$0xff]  ;;  %v13379_v59 = vld [vmem:[%s19093_s26 + $0x58] sm:$0xf] }
0x16a3   : > { %19105 = vst [vmem:[#allocation22_spill] sm:$0xff] %v17937_v39  ;;  %7554 = vst.msk [vmem:[#allocation4 + $0x60] sm:$0xff] %vm981_vm6, %v17937_v39  ;;  %v7576_v41 = vld [vmem:[#allocation4 + $0x37] sm:$0xff]  ;;  %v7577_v47 = vld [vmem:[#allocation4 + $0x3f] sm:$0xff] }
0x16a4   : > { %19106 = vst [vmem:[#allocation23_spill] sm:$0xff] %v17942_v35  ;;  %v7561_v27 = vld [vmem:[#allocation4 + $0x36] sm:$0xff]  ;;  %7553 = vst.msk [vmem:[#allocation4 + $0x58] sm:$0xff] %vm981_vm6, %v17942_v35  ;;  %15189 = vmatprep.mubr.msk.f32.mxu1 %vm981_vm6, %v7576_v41  ;;  %v7562_v16 = vld [vmem:[#allocation4 + $0x3e] sm:$0xff] }
0x16a5   : > { %15211 = vmatprep.mubr.msk.f32.mxu0 %vm981_vm6, %v7561_v27  ;;  %15190 = vmatmul.mubr.msk.f32.gmra.mxu1 %vm981_vm6, %v7577_v47  ;;  %v8109_v1 = vld [vmem:[#allocation4 + $0x31] sm:$0xff]  ;;  %v8110_v25 = vld [vmem:[#allocation4 + $0x39] sm:$0xff]  ;;  %v8298_v56 = vld [vmem:[#allocation4 + $0x22] sm:$0xff] }
0x16a6   : > { %15212 = vmatmul.mubr.msk.f32.gmra.mxu0 %vm981_vm6, %v7562_v16  ;;  %v7919_v18 = vld [vmem:[#allocation4 + $0x38] sm:$0xff]  ;;  %v7922_v37 = vld [vmem:[#allocation4 + $0x50] sm:$0xff]  ;;  %v13381_v55 = vld [vmem:[%s19093_s26 + $0x68] sm:$0xf] }
0x16a7   : > { %v7578_v10 = vld [vmem:[#allocation4 + $0x47] sm:$0xff]  ;;  %v7579_v26 = vld [vmem:[#allocation4 + $0x4f] sm:$0xff]  ;;  %v8297_v34 = vld [vmem:[#allocation4 + $0x1a] sm:$0xff]  ;;  %15286 = vmatprep.subr.msk.mxu0 %vm5477_vm5, %v13381_v55 }
0x16a8   : > { %v7563_v6 = vld [vmem:[#allocation4 + $0x46] sm:$0xff]  ;;  %15192 = vmatprep.mubr.msk.f32.mxu1 %vm981_vm6, %v7578_v10  ;;  %v7564_v22 = vld [vmem:[#allocation4 + $0x4e] sm:$0xff]  ;;  %v8301_v2 = vld [vmem:[#allocation4 + $0x3a] sm:$0xff] }
0x16a9   : > { %15214 = vmatprep.mubr.msk.f32.mxu0 %vm981_vm6, %v7563_v6  ;;  %15193 = vmatmul.mubr.msk.f32.gmra.mxu1 %vm981_vm6, %v7579_v26  ;;  %v8111_v13 = vld [vmem:[#allocation4 + $0x41] sm:$0xff]  ;;  %v8112_v24 = vld [vmem:[#allocation4 + $0x49] sm:$0xff]  ;;  %v8300_v14 = vld [vmem:[#allocation4 + $0x32] sm:$0xff] }
0x16aa   : > { %15215 = vmatmul.mubr.msk.f32.gmra.mxu0 %vm981_vm6, %v7564_v22  ;;  %v7921_v4 = vld [vmem:[#allocation4 + $0x48] sm:$0xff]  ;;  %v13380_v46 = vld [vmem:[%s19093_s26 + $0x60] sm:$0xff]  ;;  %v13378_v41 = vld [vmem:[%s19093_s26 + $0x50] sm:$0xff] }
0x16ab   : > { %v7580_v7 = vld [vmem:[#allocation4 + $0x57] sm:$0xff]  ;;  %v7581_v52 = vld [vmem:[#allocation4 + $0x5f] sm:$0xff]  ;;  %v8295_v43 = vld [vmem:[#allocation4 + $0xa] sm:$0xff] }
0x16ac   : > { %v7565_v60 = vld [vmem:[#allocation4 + $0x56] sm:$0xff]  ;;  %15195 = vmatprep.mubr.msk.f32.mxu1 %vm981_vm6, %v7580_v7  ;;  %v7566_v36 = vld [vmem:[#allocation4 + $0x5e] sm:$0xff]  ;;  %v8299_v45 = vld [vmem:[#allocation4 + $0x2a] sm:$0xff] }
0x16ad   : > { %15217 = vmatprep.mubr.msk.f32.mxu0 %vm981_vm6, %v7565_v60  ;;  %15196 = vmatmul.mubr.msk.f32.gmra.mxu1 %vm981_vm6, %v7581_v52  ;;  %v8113_v11 = vld [vmem:[#allocation4 + $0x51] sm:$0xff]  ;;  %v8114_v33 = vld [vmem:[#allocation4 + $0x59] sm:$0xff]  ;;  %v8115_v58 = vld [vmem:[#allocation4 + $0x61] sm:$0xff] }
0x16ae   : > { %15218 = vmatmul.mubr.msk.f32.gmra.mxu0 %vm981_vm6, %v7566_v36  ;;  %15224 = vmatprep.mubr.msk.f32.mxu1 %vm981_vm6, %v7913_v9  ;;  %v7923_v30 = vld [vmem:[#allocation4 + $0x58] sm:$0xff]  ;;  %v8302_v38 = vld [vmem:[#allocation4 + $0x42] sm:$0xff]  ;;  %v8303_v44 = vld [vmem:[#allocation4 + $0x4a] sm:$0xff] }
0x16af   : > { %15246 = vmatprep.mubr.msk.f32.mxu0 %vm981_vm6, %v8104_v28  ;;  %v8304_v51 = vld [vmem:[#allocation4 + $0x52] sm:$0xff]  ;;  %v8305_v32 = vld [vmem:[#allocation4 + $0x5a] sm:$0xff]  ;;  %v8306_v31 = vld [vmem:[#allocation4 + $0x62] sm:$0xff] }
0x16b0   : > { %v18008_v27 = vld [vmem:[%s19093_s26 + $0x78] sm:$0xf]  ;;  %v18013_v47 = vld [vmem:[%s19093_s26 + $0x88] sm:$0xf]  ;;  %v18036_v29 = vld [vmem:[%s19094_s28 + $0x1] ss:$0 sm:$0xff] }
0x16b1   : > { %15225 = vmatmul.mubr.msk.f32.vlgmr.msra.gmra.mxu1 %vm981_vm6, %v7914_v0 }
0x16b2   : > { %15247 = vmatmul.mubr.msk.f32.vlgmr.msra.gmra.mxu0 %vm981_vm6, %v8105_v21  ;;  %15227 = vmatprep.mubr.msk.f32.mxu1 %vm981_vm6, %v7915_v53 }
0x16b3   : > { %15249 = vmatprep.mubr.msk.f32.mxu0 %vm981_vm6, %v8106_v20  ;;  %15265 = vmatpush3.msk.msra.mxu1 %vm5477_vm5, %v17906_v40  ;;  %v7924_v40 = vld [vmem:[#allocation4 + $0x60] sm:$0xff] }
0x16b4   : > { %15266 = vmatprep.subr.mxu1 %v13361_v49  ;;  %15287 = vmatpush3.msk.msra.mxu0 %vm5477_vm5, %v13381_v55 }
0x16b5   : > { %15228 = vmatmul.mubr.msk.f32.gmra.mxu1 %vm981_vm6, %v7916_v17  ;;  %15288 = vmatprep.subr.mxu0 %v13380_v46 }
0x16b6   : > { %15250 = vmatmul.mubr.msk.f32.gmra.mxu0 %vm981_vm6, %v8107_v42  ;;  %15230 = vmatprep.mubr.msk.f32.mxu1 %vm981_vm6, %v7917_v8 }
0x16b7   : > { %15252 = vmatprep.mubr.msk.f32.mxu0 %vm981_vm6, %v8108_v63  ;;  %15267 = vmatpush3.msra.mxu1 %v13361_v49 }
0x16b8   : > { %15289 = vmatpush3.msra.mxu0 %v13380_v46  ;;  %15308 = vmatprep.subr.msk.mxu1 %vm5477_vm5, %v13379_v59 }
0x16b9   : > { %15231 = vmatmul.mubr.msk.f32.gmra.mxu1 %vm981_vm6, %v7918_v61  ;;  %15330 = vmatprep.subr.msk.mxu0 %vm5477_vm5, %v18008_v27 }
0x16ba   : > { %15253 = vmatmul.mubr.msk.f32.gmra.mxu0 %vm981_vm6, %v8109_v1  ;;  %15233 = vmatprep.mubr.msk.f32.mxu1 %vm981_vm6, %v7919_v18 }
0x16bb   : > { %15255 = vmatprep.mubr.msk.f32.mxu0 %vm981_vm6, %v8110_v25 }
0x16bd   : > { %15234 = vmatmul.mubr.msk.f32.gmra.mxu1 %vm981_vm6, %v7920_v48 }
0x16be   : > { %15256 = vmatmul.mubr.msk.f32.gmra.mxu0 %vm981_vm6, %v8111_v13  ;;  %15236 = vmatprep.mubr.msk.f32.mxu1 %vm981_vm6, %v7921_v4 }
0x16bf   : > { %15258 = vmatprep.mubr.msk.f32.mxu0 %vm981_vm6, %v8112_v24 }
0x16c1   : > { %15237 = vmatmul.mubr.msk.f32.gmra.mxu1 %vm981_vm6, %v7922_v37 }
0x16c2   : > { %15259 = vmatmul.mubr.msk.f32.gmra.mxu0 %vm981_vm6, %v8113_v11  ;;  %15239 = vmatprep.mubr.msk.f32.mxu1 %vm981_vm6, %v7923_v30 }
0x16c3   : > { %15261 = vmatprep.mubr.msk.f32.mxu0 %vm981_vm6, %v8114_v33 }
0x16c5   : > { %15240 = vmatmul.mubr.msk.f32.gmra.mxu1 %vm981_vm6, %v7924_v40 }
0x16c6   : > { %15262 = vmatmul.mubr.msk.f32.gmra.mxu0 %vm981_vm6, %v8115_v58  ;;  %15268 = vmatprep.mubr.msk.f32.mxu1 %vm981_vm6, %v8295_v43 }
0x16c9   : > { %15269 = vmatmul.mubr.msk.f32.vlgmr.msra.gmra.mxu1 %vm981_vm6, %v8296_v12 }
0x16ca   : > { %15271 = vmatprep.mubr.msk.f32.mxu1 %vm981_vm6, %v8297_v34  ;;  %15309 = vmatpush3.msk.msra.mxu1 %vm5477_vm5, %v13379_v59 }
0x16cb   : > { %15310 = vmatprep.subr.mxu1 %v13378_v41 }
0x16cc   : > { %15311 = vmatpush3.msra.mxu1 %v13378_v41 }
0x16cd   : > { %15272 = vmatmul.mubr.msk.f32.gmra.mxu1 %vm981_vm6, %v8298_v56  ;;  %15352 = vmatprep.subr.msk.mxu1 %vm5477_vm5, %v18013_v47 }
0x16ce   : > { %15274 = vmatprep.mubr.msk.f32.mxu1 %vm981_vm6, %v8299_v45 }
0x16d1   : > { %15275 = vmatmul.mubr.msk.f32.gmra.mxu1 %vm981_vm6, %v8300_v14 }
0x16d2   : > { %15277 = vmatprep.mubr.msk.f32.mxu1 %vm981_vm6, %v8301_v2 }
0x16d5   : > { %15278 = vmatmul.mubr.msk.f32.gmra.mxu1 %vm981_vm6, %v8302_v38 }
0x16d6   : > { %15280 = vmatprep.mubr.msk.f32.mxu1 %vm981_vm6, %v8303_v44 }
0x16d9   : > { %15281 = vmatmul.mubr.msk.f32.gmra.mxu1 %vm981_vm6, %v8304_v51 }
0x16da   : > { %15283 = vmatprep.mubr.msk.f32.mxu1 %vm981_vm6, %v8305_v32 }
0x16dd   : > { %15284 = vmatmul.mubr.msk.f32.gmra.mxu1 %vm981_vm6, %v8306_v31 }
0x1758   : > { %v15182_v16 = vpop.f32.mrf.mxu1 }
0x1759   : > { %v15204_v10 = vpop.f32.mrf.mxu0 }
0x175a   : > { %v7690_v6 = vpop.f32.mrf.mxu1  ;;  %v7860_v45 = vadd.f32 %v15204_v10, %v15182_v16 }
0x175b   : > { %v7854_v26 = vpop.f32.mrf.mxu0 }
0x175c   : > { %v7855_v2 = vadd.f32 %v7854_v26, %v7690_v6 }
0x175d   : > { %v15185_v22 = vpop.f32.mrf.mxu1 }
0x175e   : > { %v15207_v7 = vpop.f32.mrf.mxu0 }
0x175f   : > { %v7700_v60 = vpop.f32.mrf.mxu1  ;;  %v7870_v32 = vadd.f32 %v15207_v7, %v15185_v22 }
0x1760   : > { %v7864_v52 = vpop.f32.mrf.mxu0 }
0x1761   : > { %v15188_v36 = vpop.f32.mrf.mxu1  ;;  %v7865_v46 = vadd.f32 %v7864_v52, %v7700_v60 }
0x1762   : > { %v15210_v9 = vpop.f32.mrf.mxu0 }
0x1763   : > { %v7710_v28 = vpop.f32.mrf.mxu1  ;;  %v7880_v35 = vadd.f32 %v15210_v9, %v15188_v36 }
0x1764   : > { %v7874_v0 = vpop.f32.mrf.mxu0 }
0x1765   : > { %v15191_v21 = vpop.f32.mrf.mxu1  ;;  %v7875_v6 = vadd.f32 %v7874_v0, %v7710_v28 }
0x1766   : > { %v15213_v53 = vpop.f32.mrf.mxu0 }
0x1767   : > { %v7720_v20 = vpop.f32.mrf.mxu1 }
0x1768   : > { %v7884_v49 = vpop.f32.mrf.mxu0 }
0x1769   : > { %v18017_v17 = vpop.f32.mrf.mxu1 }
0x176a   : > { %v15216_v42 = vpop.f32.mrf.mxu0 }
0x176b   : > { %v18019_v8 = vpop.f32.mrf.mxu1 }
0x176c   : > { %v18021_v63 = vpop.f32.mrf.mxu0 }
0x176d   : > { %v18023_v61 = vpop.f32.mrf.mxu1 }
0x176e   : > { %v18025_v1 = vpop.f32.mrf.mxu0 }
0x176f   : > { %v18027_v18 = vpop.f32.mrf.mxu1 }
0x1770   : > { %v18029_v25 = vpop.f32.mrf.mxu0 }
0x1771   : > { %v15226_v48 = vpop.f32.mrf.mxu1 }
0x1772   : > { %v15248_v13 = vpop.f32.mrf.mxu0  ;;  %v8093_v38 = vadd.f32 %v15226_v48, %v7860_v45 }
0x1773   : > { %v8033_v4 = vpop.f32.mrf.mxu1 }
0x1774   : > { %v8224_v24 = vpop.f32.mrf.mxu0  ;;  %v8092_v31 = vadd.f32 %v8033_v4, %v7855_v2  ;;  %v8284_v59 = vadd.f32 %v15248_v13, %v8093_v38  ;;  %v7890_v4 = vadd.f32 %v15213_v53, %v15191_v21  ;;  %v7885_v38 = vadd.f32 %v7884_v49, %v7720_v20 }
0x1775   : > { %v15229_v37 = vpop.f32.mrf.mxu1 }
0x1776   : > { %v15251_v30 = vpop.f32.mrf.mxu0  ;;  %v8095_v41 = vadd.f32 %v15229_v37, %v7870_v32  ;;  %v8283_v50 = vadd.f32 %v8224_v24, %v8092_v31 }
0x1777   : > { %v8043_v11 = vpop.f32.mrf.mxu1 }
0x1778   : > { %v8234_v58 = vpop.f32.mrf.mxu0  ;;  %v8094_v16 = vadd.f32 %v8043_v11, %v7865_v46  ;;  %v8286_v45 = vadd.f32 %v15251_v30, %v8095_v41 }
0x1779   : > { %v15232_v33 = vpop.f32.mrf.mxu1 }
0x177a   : > { %v15254_v34 = vpop.f32.mrf.mxu0  ;;  %v8097_v26 = vadd.f32 %v15232_v33, %v7880_v35  ;;  %v8285_v13 = vadd.f32 %v8234_v58, %v8094_v16  ;;  %v7895_v58 = vadd.f32 %v18021_v63, %v18019_v8 }
0x177b   : > { %v8053_v40 = vpop.f32.mrf.mxu1 }
0x177c   : > { %v8244_v44 = vpop.f32.mrf.mxu0  ;;  %v8096_v2 = vadd.f32 %v8053_v40, %v7875_v6  ;;  %v8288_v24 = vadd.f32 %v15254_v34, %v8097_v26 }
0x177d   : > { %v15235_v43 = vpop.f32.mrf.mxu1 }
0x177e   : > { %v15257_v39 = vpop.f32.mrf.mxu0  ;;  %v8287_v21 = vadd.f32 %v8244_v44, %v8096_v2 }
0x177f   : > { %v8063_v12 = vpop.f32.mrf.mxu1 }
0x1780   : > { %v8254_v60 = vpop.f32.mrf.mxu0  ;;  %v8098_v33 = vadd.f32 %v8063_v12, %v7885_v38  ;;  %v7910_v12 = vadd.f32 %v18025_v1, %v18023_v61 }
0x1781   : > { %v15238_v56 = vpop.f32.mrf.mxu1 }
0x1782   : > { %v15260_v53 = vpop.f32.mrf.mxu0  ;;  %v8289_v41 = vadd.f32 %v8254_v60, %v8098_v33 }
0x1783   : > { %v8073_v14 = vpop.f32.mrf.mxu1 }
0x1784   : > { %v8100_v44 = vadd.f32 %v8073_v14, %v7895_v58  ;;  %v8264_v46 = vpop.f32.mrf.mxu0 }
0x1785   : > { %v18031_v51 = vpop.f32.mrf.mxu1 }
0x1786   : > { %v8103_v6 = vadd.f32 %v18031_v51, %v7910_v12  ;;  %v8291_v26 = vadd.f32 %v8264_v46, %v8100_v44 }
0x1787   : > { %v18033_v55 = vpop.f32.mrf.mxu1 }
0x1789   : > { %v15270_v19 = vpop.f32.mrf.mxu1 }
0x178a   : > { %v8475_v10 = vadd.f32 %v15270_v19, %v8284_v59  ;;  %v8099_v19 = vadd.f32 %v15235_v43, %v7890_v4 }
0x178b   : > { %v8415_v48 = vpop.f32.mrf.mxu1 }
0x178c   : > { %v8493_v22 = vadd.f32 %v18036_v29, %v8475_v10  ;;  %v8474_v7 = vadd.f32 %v8415_v48, %v8283_v50  ;;  %v7900_v50 = vadd.f32 %v15216_v42, %v18017_v17  ;;  %v8290_v32 = vadd.f32 %v15257_v39, %v8099_v19  ;;  %v15263_v48 = vpop.f32.mrf.mxu0 }
0x178d   : > { %v15273_v52 = vpop.f32.mrf.mxu1  ;;  %v7905_v39 = vadd.f32 %v18029_v25, %v18027_v18 }
0x178e   : > { %v8505_v36 = vmax.f32 %v8493_v22, 0.0  ;;  %v8492_v9 = vadd.f32 %v18036_v29, %v8474_v7  ;;  %v8477_v37 = vadd.f32 %v15273_v52, %v8286_v45  ;;  %v8101_v43 = vadd.f32 %v15238_v56, %v7900_v50  ;;  %v13408_v52 = vld [vmem:[%s19093_s26 + $0x70] sm:$0xff] }
0x178f   : > { %v8425_v11 = vpop.f32.mrf.mxu1  ;;  %v8102_v18 = vadd.f32 %v18033_v55, %v7905_v39 }
0x1790   : > { %8519 = vst.msk [vmem:[#allocation4 + $0x10] sm:$0xff] %vm981_vm6, %v8505_v36  ;;  %v8504_v35 = vmax.f32 %v8492_v9, 0.0  ;;  %v8495_v28 = vadd.f32 %v18036_v29, %v8477_v37  ;;  %v8476_v0 = vadd.f32 %v8425_v11, %v8285_v13  ;;  %v8292_v56 = vadd.f32 %v15260_v53, %v8101_v43  ;;  %v13423_v13 = vld [vmem:[%s19093_s26 + $0x80] sm:$0xff] }
0x1791   : > { %v15276_v30 = vpop.f32.mrf.mxu1  ;;  %v8294_v9 = vadd.f32 %v15263_v48, %v8103_v6  ;;  %v13438_v48 = vld [vmem:[%s19093_s26 + $0x90] sm:$0xff] }
0x1792   : > { %8518 = vst.msk [vmem:[#allocation4 + $0x8] sm:$0xff] %vm981_vm6, %v8504_v35  ;;  %v8507_v40 = vmax.f32 %v8495_v28, 0.0  ;;  %v8494_v20 = vadd.f32 %v18036_v29, %v8476_v0  ;;  %v8479_v49 = vadd.f32 %v15276_v30, %v8288_v24  ;;  %v8274_v24 = vpop.f32.mrf.mxu0 }
0x1793   : > { %v8435_v34 = vpop.f32.mrf.mxu1  ;;  %v8293_v0 = vadd.f32 %v8274_v24, %v8102_v18 }
0x1794   : > { %8521 = vst.msk [vmem:[#allocation4 + $0x20] sm:$0xff] %vm981_vm6, %v8507_v40  ;;  %v8506_v31 = vmax.f32 %v8494_v20, 0.0  ;;  %v8497_v17 = vadd.f32 %v18036_v29, %v8479_v49  ;;  %v8478_v42 = vadd.f32 %v8435_v34, %v8287_v21 }
0x1795   : > { %v15279_v59 = vpop.f32.mrf.mxu1 }
0x1796   : > { %8520 = vst.msk [vmem:[#allocation4 + $0x18] sm:$0xff] %vm981_vm6, %v8506_v31  ;;  %v8509_v16 = vmax.f32 %v8497_v17, 0.0  ;;  %v8496_v8 = vadd.f32 %v18036_v29, %v8478_v42  ;;  %v8481_v63 = vadd.f32 %v15279_v59, %v8290_v32 }
0x1797   : > { %v8445_v10 = vpop.f32.mrf.mxu1 }
0x1798   : > { %8523 = vst.msk [vmem:[#allocation4 + $0x30] sm:$0xff] %vm981_vm6, %v8509_v16  ;;  %v8508_v61 = vmax.f32 %v8496_v8, 0.0  ;;  %v8499_v1 = vadd.f32 %v18036_v29, %v8481_v63  ;;  %v8480_v14 = vadd.f32 %v8445_v10, %v8289_v41 }
0x1799   : > { %v15282_v45 = vpop.f32.mrf.mxu1  ;;  %v8545_v22 = vld [vmem:[#allocation4 + $0x7] sm:$0xff]  ;;  %v8546_v4 = vld [vmem:[#allocation4 + $0xf] sm:$0xff] }
0x179a   : > { %v8530_v7 = vld [vmem:[#allocation4 + $0x6] sm:$0xff]  ;;  %8522 = vst.msk [vmem:[#allocation4 + $0x28] sm:$0xff] %vm981_vm6, %v8508_v61  ;;  %v8511_v25 = vmax.f32 %v8499_v1, 0.0  ;;  %v8498_v51 = vadd.f32 %v18036_v29, %v8480_v14  ;;  %v8483_v2 = vadd.f32 %v15282_v45, %v8292_v56  ;;  %15290 = vmatprep.mubr.msk.f32.mxu0 %vm981_vm6, %v8545_v22  ;;  %v8531_v60 = vld [vmem:[#allocation4 + $0xe] sm:$0xff] }
0x179b   : > { %15312 = vmatprep.mubr.msk.f32.mxu1 %vm981_vm6, %v8530_v7  ;;  %v8455_v36 = vpop.f32.mrf.mxu1  ;;  %15291 = vmatmul.mubr.msk.f32.vlgmr.msra.gmra.mxu0 %vm981_vm6, %v8546_v4  ;;  %v8888_v10 = vld [vmem:[#allocation4 + $0x8] sm:$0xff]  ;;  %v8889_v61 = vld [vmem:[#allocation4 + $0x10] sm:$0xff]  ;;  %v8891_v45 = vld [vmem:[#allocation4 + $0x20] sm:$0xff] }
0x179c   : > { %15313 = vmatmul.mubr.msk.f32.vlgmr.msra.gmra.mxu1 %vm981_vm6, %v8531_v60  ;;  %8525 = vst.msk [vmem:[#allocation4 + $0x40] sm:$0xff] %vm981_vm6, %v8511_v25  ;;  %v8510_v55 = vmax.f32 %v8498_v51, 0.0  ;;  %v8501_v37 = vadd.f32 %v18036_v29, %v8483_v2  ;;  %v8482_v38 = vadd.f32 %v8455_v36, %v8291_v26  ;;  %15331 = vmatpush3.msk.msra.mxu0 %vm5477_vm5, %v18008_v27  ;;  %v9079_v6 = vld [vmem:[#allocation4 + $0x9] sm:$0xff] }
0x179d   : > { %15353 = vmatpush3.msk.msra.mxu1 %vm5477_vm5, %v18013_v47  ;;  %v15285_v11 = vpop.f32.mrf.mxu1  ;;  %v8547_v19 = vld [vmem:[#allocation4 + $0x17] sm:$0xff]  ;;  %v8548_v28 = vld [vmem:[#allocation4 + $0x1f] sm:$0xff]  ;;  %15332 = vmatprep.subr.mxu0 %v13408_v52 }
0x179e   : > { %v8532_v35 = vld [vmem:[#allocation4 + $0x16] sm:$0xff]  ;;  %15354 = vmatprep.subr.mxu1 %v13423_v13  ;;  %8524 = vst.msk [vmem:[#allocation4 + $0x38] sm:$0xff] %vm981_vm6, %v8510_v55  ;;  %v8513_v50 = vmax.f32 %v8501_v37, 0.0  ;;  %v8500_v21 = vadd.f32 %v18036_v29, %v8482_v38  ;;  %v8485_v53 = vadd.f32 %v15285_v11, %v8294_v9  ;;  %15293 = vmatprep.mubr.msk.f32.mxu0 %vm981_vm6, %v8547_v19  ;;  %v8533_v27 = vld [vmem:[#allocation4 + $0x1e] sm:$0xff]  ;;  %v9270_v19 = vld [vmem:[#allocation4 + $0xa] sm:$0xff] }
0x179f   : > { %15315 = vmatprep.mubr.msk.f32.mxu1 %vm981_vm6, %v8532_v35  ;;  %v13439_v47 = vld [vmem:[%s19093_s26 + $0x98] sm:$0xf]  ;;  %v8465_v30 = vpop.f32.mrf.mxu1  ;;  %15294 = vmatmul.mubr.msk.f32.gmra.mxu0 %vm981_vm6, %v8548_v28  ;;  %v8893_v18 = vld [vmem:[#allocation4 + $0x30] sm:$0xff] }
0x17a0   : > { %15316 = vmatmul.mubr.msk.f32.gmra.mxu1 %vm981_vm6, %v8533_v27  ;;  %8527 = vst.msk [vmem:[#allocation4 + $0x50] sm:$0xff] %vm981_vm6, %v8513_v50  ;;  %v8512_v33 = vmax.f32 %v8500_v21, 0.0  ;;  %v8503_v40 = vadd.f32 %v18036_v29, %v8485_v53  ;;  %v8484_v20 = vadd.f32 %v8465_v30, %v8293_v0  ;;  %15333 = vmatpush3.msra.mxu0 %v13408_v52  ;;  %v9080_v1 = vld [vmem:[#allocation4 + $0x11] sm:$0xff]  ;;  %v9081_v26 = vld [vmem:[#allocation4 + $0x19] sm:$0xff] }
0x17a1   : > { %15355 = vmatpush3.msra.mxu1 %v13423_v13  ;;  %v8549_v49 = vld [vmem:[#allocation4 + $0x27] sm:$0xff]  ;;  %v8550_v43 = vld [vmem:[#allocation4 + $0x2f] sm:$0xff]  ;;  %15374 = vmatprep.subr.msk.mxu0 %vm5477_vm5, %v13439_v47  ;;  %v8890_v14 = vld [vmem:[#allocation4 + $0x18] sm:$0xff] }
0x17a2   : > { %v8534_v58 = vld [vmem:[#allocation4 + $0x26] sm:$0xff]  ;;  %8526 = vst.msk [vmem:[#allocation4 + $0x48] sm:$0xff] %vm981_vm6, %v8512_v33  ;;  %v8515_v34 = vmax.f32 %v8503_v40, 0.0  ;;  %v8502_v32 = vadd.f32 %v18036_v29, %v8484_v20  ;;  %15296 = vmatprep.mubr.msk.f32.mxu0 %vm981_vm6, %v8549_v49  ;;  %v8535_v31 = vld [vmem:[#allocation4 + $0x2e] sm:$0xff]  ;;  %v9272_v28 = vld [vmem:[#allocation4 + $0x1a] sm:$0xff] }
0x17a3   : > { %15318 = vmatprep.mubr.msk.f32.mxu1 %vm981_vm6, %v8534_v58  ;;  %15297 = vmatmul.mubr.msk.f32.gmra.mxu0 %vm981_vm6, %v8550_v43  ;;  %v9082_v22 = vld [vmem:[#allocation4 + $0x21] sm:$0xff]  ;;  %v9083_v4 = vld [vmem:[#allocation4 + $0x29] sm:$0xff]  ;;  %v9271_v35 = vld [vmem:[#allocation4 + $0x12] sm:$0xff] }
0x17a4   : > { %15319 = vmatmul.mubr.msk.f32.gmra.mxu1 %vm981_vm6, %v8535_v31  ;;  %8529 = vst.msk [vmem:[#allocation4 + $0x60] sm:$0xff] %vm981_vm6, %v8515_v34  ;;  %v8514_v17 = vmax.f32 %v8502_v32, 0.0  ;;  %v8892_v7 = vld [vmem:[#allocation4 + $0x28] sm:$0xff]  ;;  %v8895_v60 = vld [vmem:[#allocation4 + $0x40] sm:$0xff] }
0x17a5   : > { %v8551_v42 = vld [vmem:[#allocation4 + $0x37] sm:$0xff]  ;;  %v8552_v44 = vld [vmem:[#allocation4 + $0x3f] sm:$0xff]  ;;  %v9274_v50 = vld [vmem:[#allocation4 + $0x2a] sm:$0xff] }
0x17a6   : > { %v8536_v12 = vld [vmem:[#allocation4 + $0x36] sm:$0xff]  ;;  %8528 = vst.msk [vmem:[#allocation4 + $0x58] sm:$0xff] %vm981_vm6, %v8514_v17  ;;  %15299 = vmatprep.mubr.msk.f32.mxu0 %vm981_vm6, %v8551_v42  ;;  %v8537_v29 = vld [vmem:[#allocation4 + $0x3e] sm:$0xff] }
0x17a7   : > { %15321 = vmatprep.mubr.msk.f32.mxu1 %vm981_vm6, %v8536_v12  ;;  %15300 = vmatmul.mubr.msk.f32.gmra.mxu0 %vm981_vm6, %v8552_v44  ;;  %v9084_v25 = vld [vmem:[#allocation4 + $0x31] sm:$0xff]  ;;  %v9085_v2 = vld [vmem:[#allocation4 + $0x39] sm:$0xff]  ;;  %v9273_v0 = vld [vmem:[#allocation4 + $0x22] sm:$0xff] }
0x17a8   : > { %15322 = vmatmul.mubr.msk.f32.gmra.mxu1 %vm981_vm6, %v8537_v29  ;;  %v8894_v51 = vld [vmem:[#allocation4 + $0x38] sm:$0xff]  ;;  %v8897_v9 = vld [vmem:[#allocation4 + $0x50] sm:$0xff] }
0x17a9   : > { %v8553_v46 = vld [vmem:[#allocation4 + $0x47] sm:$0xff]  ;;  %v8554_v41 = vld [vmem:[#allocation4 + $0x4f] sm:$0xff]  ;;  %v9276_v53 = vld [vmem:[#allocation4 + $0x3a] sm:$0xff] }
0x17aa   : > { %v8538_v59 = vld [vmem:[#allocation4 + $0x46] sm:$0xff]  ;;  %15302 = vmatprep.mubr.msk.f32.mxu0 %vm981_vm6, %v8553_v46  ;;  %v8539_v16 = vld [vmem:[#allocation4 + $0x4e] sm:$0xff] }
0x17ab   : > { %15324 = vmatprep.mubr.msk.f32.mxu1 %vm981_vm6, %v8538_v59  ;;  %15303 = vmatmul.mubr.msk.f32.gmra.mxu0 %vm981_vm6, %v8554_v41  ;;  %v9086_v52 = vld [vmem:[#allocation4 + $0x41] sm:$0xff]  ;;  %v9087_v36 = vld [vmem:[#allocation4 + $0x49] sm:$0xff]  ;;  %v9275_v21 = vld [vmem:[#allocation4 + $0x32] sm:$0xff] }
0x17ac   : > { %15325 = vmatmul.mubr.msk.f32.gmra.mxu1 %vm981_vm6, %v8539_v16  ;;  %v8896_v13 = vld [vmem:[#allocation4 + $0x48] sm:$0xff]  ;;  %v8899_v24 = vld [vmem:[#allocation4 + $0x60] sm:$0xff] }
0x17ad   : > { %v8555_v8 = vld [vmem:[#allocation4 + $0x57] sm:$0xff]  ;;  %v8556_v39 = vld [vmem:[#allocation4 + $0x5f] sm:$0xff] }
0x17ae   : > { %v8540_v63 = vld [vmem:[#allocation4 + $0x56] sm:$0xff]  ;;  %15305 = vmatprep.mubr.msk.f32.mxu0 %vm981_vm6, %v8555_v8  ;;  %v8541_v56 = vld [vmem:[#allocation4 + $0x5e] sm:$0xff] }
0x17af   : > { %15327 = vmatprep.mubr.msk.f32.mxu1 %vm981_vm6, %v8540_v63  ;;  %15306 = vmatmul.mubr.msk.f32.gmra.mxu0 %vm981_vm6, %v8556_v39  ;;  %v9088_v55 = vld [vmem:[#allocation4 + $0x51] sm:$0xff]  ;;  %v9089_v38 = vld [vmem:[#allocation4 + $0x59] sm:$0xff]  ;;  %v9090_v11 = vld [vmem:[#allocation4 + $0x61] sm:$0xff] }
0x17b0   : > { %15328 = vmatmul.mubr.msk.f32.gmra.mxu1 %vm981_vm6, %v8541_v56  ;;  %15334 = vmatprep.mubr.msk.f32.mxu0 %vm981_vm6, %v8888_v10  ;;  %v8898_v37 = vld [vmem:[#allocation4 + $0x58] sm:$0xff]  ;;  %v9277_v27 = vld [vmem:[#allocation4 + $0x42] sm:$0xff] }
0x17b1   : > { %15356 = vmatprep.mubr.msk.f32.mxu1 %vm981_vm6, %v9079_v6  ;;  %v9279_v30 = vld [vmem:[#allocation4 + $0x52] sm:$0xff]  ;;  %v9280_v33 = vld [vmem:[#allocation4 + $0x5a] sm:$0xff]  ;;  %v9281_v40 = vld [vmem:[#allocation4 + $0x62] sm:$0xff] }
0x17b3   : > { %15335 = vmatmul.mubr.msk.f32.vlgmr.msra.gmra.mxu0 %vm981_vm6, %v8889_v61 }
0x17b4   : > { %15357 = vmatmul.mubr.msk.f32.vlgmr.msra.gmra.mxu1 %vm981_vm6, %v9080_v1  ;;  %15337 = vmatprep.mubr.msk.f32.mxu0 %vm981_vm6, %v8890_v14 }
0x17b5   : > { %15359 = vmatprep.mubr.msk.f32.mxu1 %vm981_vm6, %v9081_v26  ;;  %15375 = vmatpush3.msk.msra.mxu0 %vm5477_vm5, %v13439_v47  ;;  %v9278_v47 = vld [vmem:[#allocation4 + $0x4a] sm:$0xff] }
0x17b6   : > { %15376 = vmatprep.subr.mxu0 %v13438_v48 }
0x17b7   : > { %15338 = vmatmul.mubr.msk.f32.gmra.mxu0 %vm981_vm6, %v8891_v45 }
0x17b8   : > { %15360 = vmatmul.mubr.msk.f32.gmra.mxu1 %vm981_vm6, %v9082_v22  ;;  %15340 = vmatprep.mubr.msk.f32.mxu0 %vm981_vm6, %v8892_v7 }
0x17b9   : > { %15362 = vmatprep.mubr.msk.f32.mxu1 %vm981_vm6, %v9083_v4  ;;  %15377 = vmatpush3.msra.mxu0 %v13438_v48 }
0x17bb   : > { %15341 = vmatmul.mubr.msk.f32.gmra.mxu0 %vm981_vm6, %v8893_v18 }
0x17bc   : > { %15363 = vmatmul.mubr.msk.f32.gmra.mxu1 %vm981_vm6, %v9084_v25  ;;  %15343 = vmatprep.mubr.msk.f32.mxu0 %vm981_vm6, %v8894_v51 }
0x17bd   : > { %15365 = vmatprep.mubr.msk.f32.mxu1 %vm981_vm6, %v9085_v2 }
0x17bf   : > { %15344 = vmatmul.mubr.msk.f32.gmra.mxu0 %vm981_vm6, %v8895_v60 }
0x17c0   : > { %15366 = vmatmul.mubr.msk.f32.gmra.mxu1 %vm981_vm6, %v9086_v52  ;;  %15346 = vmatprep.mubr.msk.f32.mxu0 %vm981_vm6, %v8896_v13 }
0x17c1   : > { %15368 = vmatprep.mubr.msk.f32.mxu1 %vm981_vm6, %v9087_v36 }
0x17c3   : > { %15347 = vmatmul.mubr.msk.f32.gmra.mxu0 %vm981_vm6, %v8897_v9 }
0x17c4   : > { %15369 = vmatmul.mubr.msk.f32.gmra.mxu1 %vm981_vm6, %v9088_v55  ;;  %15349 = vmatprep.mubr.msk.f32.mxu0 %vm981_vm6, %v8898_v37 }
0x17c5   : > { %15371 = vmatprep.mubr.msk.f32.mxu1 %vm981_vm6, %v9089_v38 }
0x17c7   : > { %15350 = vmatmul.mubr.msk.f32.gmra.mxu0 %vm981_vm6, %v8899_v24 }
0x17c8   : > { %15372 = vmatmul.mubr.msk.f32.gmra.mxu1 %vm981_vm6, %v9090_v11  ;;  %15378 = vmatprep.mubr.msk.f32.mxu0 %vm981_vm6, %v9270_v19 }
0x17cb   : > { %15379 = vmatmul.mubr.msk.f32.vlgmr.msra.gmra.mxu0 %vm981_vm6, %v9271_v35 }
0x17cc   : > { %15381 = vmatprep.mubr.msk.f32.mxu0 %vm981_vm6, %v9272_v28 }
0x17cf   : > { %15382 = vmatmul.mubr.msk.f32.gmra.mxu0 %vm981_vm6, %v9273_v0 }
0x17d0   : > { %15384 = vmatprep.mubr.msk.f32.mxu0 %vm981_vm6, %v9274_v50 }
0x17d3   : > { %15385 = vmatmul.mubr.msk.f32.gmra.mxu0 %vm981_vm6, %v9275_v21 }
0x17d4   : > { %15387 = vmatprep.mubr.msk.f32.mxu0 %vm981_vm6, %v9276_v53 }
0x17d7   : > { %15388 = vmatmul.mubr.msk.f32.gmra.mxu0 %vm981_vm6, %v9277_v27  ;;  %v18162_v27 = vld [vmem:[%s19095_s1 + $0x1] ss:$0 sm:$0xff] }
0x17d8   : > { %15390 = vmatprep.mubr.msk.f32.mxu0 %vm981_vm6, %v9278_v47 }
0x17db   : > { %15391 = vmatmul.mubr.msk.f32.gmra.mxu0 %vm981_vm6, %v9279_v30 }
0x17dc   : > { %15393 = vmatprep.mubr.msk.f32.mxu0 %vm981_vm6, %v9280_v33 }
0x17df   : > { %15394 = vmatmul.mubr.msk.f32.gmra.mxu0 %vm981_vm6, %v9281_v40 }
0x185b   : > { %v15292_v20 = vpop.f32.mrf.mxu0 }
0x185c   : > { %v15314_v49 = vpop.f32.mrf.mxu1 }
0x185d   : > { %v8665_v58 = vpop.f32.mrf.mxu0  ;;  %v8835_v36 = vadd.f32 %v15314_v49, %v15292_v20 }
0x185e   : > { %v8829_v43 = vpop.f32.mrf.mxu1 }
0x185f   : > { %v15295_v34 = vpop.f32.mrf.mxu0  ;;  %v8830_v55 = vadd.f32 %v8829_v43, %v8665_v58 }
0x1860   : > { %v15317_v32 = vpop.f32.mrf.mxu1 }
0x1861   : > { %v8675_v31 = vpop.f32.mrf.mxu0  ;;  %v8845_v11 = vadd.f32 %v15317_v32, %v15295_v34 }
0x1862   : > { %v8839_v17 = vpop.f32.mrf.mxu1 }
0x1863   : > { %v15298_v42 = vpop.f32.mrf.mxu0  ;;  %v8840_v28 = vadd.f32 %v8839_v17, %v8675_v31 }
0x1864   : > { %v15320_v12 = vpop.f32.mrf.mxu1 }
0x1865   : > { %v8685_v44 = vpop.f32.mrf.mxu0  ;;  %v8855_v53 = vadd.f32 %v15320_v12, %v15298_v42 }
0x1866   : > { %v8849_v29 = vpop.f32.mrf.mxu1 }
0x1867   : > { %v15301_v46 = vpop.f32.mrf.mxu0  ;;  %v8850_v20 = vadd.f32 %v8849_v29, %v8685_v44 }
0x1868   : > { %v15323_v59 = vpop.f32.mrf.mxu1 }
0x1869   : > { %v8695_v41 = vpop.f32.mrf.mxu0 }
0x186a   : > { %v8859_v16 = vpop.f32.mrf.mxu1 }
0x186b   : > { %v18141_v8 = vpop.f32.mrf.mxu0 }
0x186c   : > { %v18143_v63 = vpop.f32.mrf.mxu1 }
0x186d   : > { %v18145_v39 = vpop.f32.mrf.mxu0 }
0x186e   : > { %v18147_v56 = vpop.f32.mrf.mxu1 }
0x186f   : > { %v18149_v10 = vpop.f32.mrf.mxu0 }
0x1870   : > { %v18151_v6 = vpop.f32.mrf.mxu1 }
0x1871   : > { %v18153_v61 = vpop.f32.mrf.mxu0 }
0x1872   : > { %v18155_v1 = vpop.f32.mrf.mxu1 }
0x1873   : > { %v15336_v14 = vpop.f32.mrf.mxu0 }
0x1874   : > { %v15358_v26 = vpop.f32.mrf.mxu1  ;;  %v9068_v37 = vadd.f32 %v15336_v14, %v8835_v36 }
0x1875   : > { %v9008_v48 = vpop.f32.mrf.mxu0 }
0x1876   : > { %v9199_v45 = vpop.f32.mrf.mxu1  ;;  %v9067_v19 = vadd.f32 %v9008_v48, %v8830_v55  ;;  %v9259_v0 = vadd.f32 %v15358_v26, %v9068_v37  ;;  %v8865_v48 = vadd.f32 %v15323_v59, %v15301_v46 }
0x1877   : > { %v15339_v22 = vpop.f32.mrf.mxu0 }
0x1878   : > { %v15361_v4 = vpop.f32.mrf.mxu1  ;;  %v9070_v50 = vadd.f32 %v15339_v22, %v8845_v11  ;;  %v9258_v30 = vadd.f32 %v9199_v45, %v9067_v19  ;;  %v8860_v45 = vadd.f32 %v8859_v16, %v8695_v41 }
0x1879   : > { %v9018_v7 = vpop.f32.mrf.mxu0 }
0x187a   : > { %v9209_v51 = vpop.f32.mrf.mxu1  ;;  %v9069_v33 = vadd.f32 %v9018_v7, %v8840_v28  ;;  %v9261_v43 = vadd.f32 %v15361_v4, %v9070_v50 }
0x187b   : > { %v15342_v18 = vpop.f32.mrf.mxu0 }
0x187c   : > { %v15364_v52 = vpop.f32.mrf.mxu1  ;;  %v9072_v49 = vadd.f32 %v15342_v18, %v8855_v53  ;;  %v9260_v26 = vadd.f32 %v9209_v51, %v9069_v33 }
0x187d   : > { %v9028_v25 = vpop.f32.mrf.mxu0 }
0x187e   : > { %v9219_v38 = vpop.f32.mrf.mxu1  ;;  %v9071_v31 = vadd.f32 %v9028_v25, %v8850_v20  ;;  %v9263_v7 = vadd.f32 %v15364_v52, %v9072_v49  ;;  %v8875_v25 = vadd.f32 %v18143_v63, %v18141_v8 }
0x187f   : > { %v15345_v2 = vpop.f32.mrf.mxu0 }
0x1880   : > { %v15367_v21 = vpop.f32.mrf.mxu1  ;;  %v9074_v44 = vadd.f32 %v15345_v2, %v8865_v48  ;;  %v9262_v51 = vadd.f32 %v9219_v38, %v9071_v31  ;;  %v19107_v31 = vld [vmem:[#allocation19_spill] sm:$0xff] }
0x1881   : > { %v9038_v60 = vpop.f32.mrf.mxu0 }
0x1882   : > { %v9229_v14 = vpop.f32.mrf.mxu1  ;;  %v9265_v37 = vadd.f32 %v15367_v21, %v9074_v44 }
0x1883   : > { %v15348_v13 = vpop.f32.mrf.mxu0 }
0x1884   : > { %v15370_v18 = vpop.f32.mrf.mxu1  ;;  %v9076_v11 = vadd.f32 %v15348_v13, %v8875_v25 }
0x1885   : > { %v9048_v9 = vpop.f32.mrf.mxu0 }
0x1886   : > { %v9239_v8 = vpop.f32.mrf.mxu1 }
0x1887   : > { %v18157_v24 = vpop.f32.mrf.mxu0 }
0x1889   : > { %v18159_v35 = vpop.f32.mrf.mxu0 }
0x188b   : > { %v15380_v47 = vpop.f32.mrf.mxu0 }
0x188c   : > { %v9450_v40 = vadd.f32 %v15380_v47, %v9259_v0  ;;  %v9267_v47 = vadd.f32 %v15370_v18, %v9076_v11 }
0x188d   : > { %v9390_v58 = vpop.f32.mrf.mxu0 }
0x188e   : > { %v9468_v34 = vadd.f32 %v18162_v27, %v9450_v40  ;;  %v9449_v32 = vadd.f32 %v9390_v58, %v9258_v30 }
0x188f   : > { %v15383_v17 = vpop.f32.mrf.mxu0 }
0x1890   : > { %v9467_v42 = vadd.f32 %v18162_v27, %v9449_v32  ;;  %v9452_v12 = vadd.f32 %v15383_v17, %v9261_v43  ;;  %v18167_v22 = vadd.f32 %v9468_v34, %v17845_v3  ;;  %v9073_v3 = vadd.f32 %v9038_v60, %v8860_v45 }
0x1891   : > { %v9400_v29 = vpop.f32.mrf.mxu0 }
0x1892   : > { %v9470_v4 = vadd.f32 %v18162_v27, %v9452_v12  ;;  %v9451_v36 = vadd.f32 %v9400_v29, %v9260_v26  ;;  %v9498_v46 = vsel %vm981_vm6, %v18167_v22, 0.0  ;;  %v18173_v59 = vadd.f32 %v9467_v42, %v17851_v15 }
0x1893   : > { %v15386_v55 = vpop.f32.mrf.mxu0  ;;  %9499 = vadd.xlane.f32.xlu1 %v9498_v46  ;;  %v8870_v15 = vadd.f32 %v18147_v56, %v18145_v39  ;;  %v9264_v0 = vadd.f32 %v9229_v14, %v9073_v3  ;;  %v19109_v46 = vld [vmem:[#allocation21_spill] sm:$0xff] }
0x1894   : > { %v9469_v41 = vadd.f32 %v18162_v27, %v9451_v36  ;;  %v9454_v16 = vadd.f32 %v15386_v55, %v9263_v7  ;;  %v9495_v2 = vsel %vm981_vm6, %v18173_v59, 0.0  ;;  %v18181_v52 = vadd.f32 %v9470_v4, %v17860_v54  ;;  %v19108_v7 = vld [vmem:[#allocation20_spill] sm:$0xff]  ;;  %v19110_v55 = vld [vmem:[#allocation22_spill] sm:$0xff] }
0x1895   : > { %v9410_v19 = vpop.f32.mrf.mxu0  ;;  %9496 = vadd.xlane.f32.xlu0 %v9495_v2  ;;  %v8885_v54 = vadd.f32 %v18151_v6, %v18149_v10  ;;  %v9075_v50 = vadd.f32 %v9048_v9, %v8870_v15  ;;  %v15373_v6 = vpop.f32.mrf.mxu1  ;;  %v19111_v2 = vld [vmem:[#allocation23_spill] sm:$0xff] }
0x1896   : > { %v9472_v63 = vadd.f32 %v18162_v27, %v9454_v16  ;;  %v9453_v60 = vadd.f32 %v9410_v19, %v9262_v51  ;;  %v9504_v38 = vsel %vm981_vm6, %v18181_v52, 0.0  ;;  %v18189_v28 = vadd.f32 %v9469_v41, %v17864_v57 }
0x1897   : > { %v15389_v39 = vpop.f32.mrf.mxu0  ;;  %9505 = vadd.xlane.f32.xlu1 %v9504_v38  ;;  %v8880_v57 = vadd.f32 %v18155_v1, %v18153_v61  ;;  %v9078_v30 = vadd.f32 %v18157_v24, %v8885_v54  ;;  %v9249_v32 = vpop.f32.mrf.mxu1 }
0x1898   : > { %v9471_v56 = vadd.f32 %v18162_v27, %v9453_v60  ;;  %v9456_v13 = vadd.f32 %v15389_v39, %v9265_v37  ;;  %v9501_v21 = vsel %vm981_vm6, %v18189_v28, 0.0  ;;  %v18197_v53 = vadd.f32 %v9472_v63, %v17874_v5 }
0x1899   : > { %v9420_v10 = vpop.f32.mrf.mxu0  ;;  %9502 = vadd.xlane.f32.xlu0 %v9501_v21  ;;  %v9266_v5 = vadd.f32 %v9239_v8, %v9075_v50  ;;  %v9077_v49 = vadd.f32 %v18159_v35, %v8880_v57  ;;  %v9269_v14 = vadd.f32 %v15373_v6, %v9078_v30 }
0x189a   : > { %v9474_v9 = vadd.f32 %v18162_v27, %v9456_v13  ;;  %v9455_v33 = vadd.f32 %v9420_v10, %v9264_v0  ;;  %v9510_v40 = vsel %vm981_vm6, %v18197_v53, 0.0  ;;  %v18206_v20 = vadd.f32 %v9471_v56, %v17878_v23 }
0x189b   : > { %v15392_v58 = vpop.f32.mrf.mxu0  ;;  %9511 = vadd.xlane.f32.xlu1 %v9510_v40  ;;  %v9268_v26 = vadd.f32 %v9249_v32, %v9077_v49 }
0x189c   : > { %v9473_v61 = vadd.f32 %v18162_v27, %v9455_v33  ;;  %v9458_v1 = vadd.f32 %v15392_v58, %v9267_v47  ;;  %v9507_v24 = vsel %vm981_vm6, %v18206_v20, 0.0  ;;  %v18213_v43 = vadd.f32 %v9474_v9, %v17894_v62 }
0x189d   : > { %v9430_v34 = vpop.f32.mrf.mxu0  ;;  %9508 = vadd.xlane.f32.xlu0 %v9507_v24 }
0x189e   : > { %v9476_v23 = vadd.f32 %v18162_v27, %v9458_v1  ;;  %v9457_v48 = vadd.f32 %v9430_v34, %v9266_v5  ;;  %v9516_v35 = vsel %vm981_vm6, %v18213_v43, 0.0  ;;  %v18219_v17 = vadd.f32 %v9473_v61, %v19107_v31 }
0x189f   : > { %v15395_v42 = vpop.f32.mrf.mxu0  ;;  %9517 = vadd.xlane.f32.xlu1 %v9516_v35 }
0x18a0   : > { %v9475_v12 = vadd.f32 %v18162_v27, %v9457_v48  ;;  %v9460_v62 = vadd.f32 %v15395_v42, %v9269_v14  ;;  %v9513_v45 = vsel %vm981_vm6, %v18219_v17, 0.0  ;;  %v18225_v44 = vadd.f32 %v9476_v23, %v19108_v7 }
0x18a1   : > { %v9440_v29 = vpop.f32.mrf.mxu0  ;;  %9514 = vadd.xlane.f32.xlu0 %v9513_v45 }
0x18a2   : > { %v9478_v18 = vadd.f32 %v18162_v27, %v9460_v62  ;;  %v9459_v4 = vadd.f32 %v9440_v29, %v9268_v26  ;;  %v9522_v36 = vsel %vm981_vm6, %v18225_v44, 0.0  ;;  %v18231_v25 = vadd.f32 %v9475_v12, %v19109_v46 }
0x18a3   : > { %9523 = vadd.xlane.f32.xlu1 %v9522_v36 }
0x18a4   : > { %v9477_v51 = vadd.f32 %v18162_v27, %v9459_v4  ;;  %v9519_v3 = vsel %vm981_vm6, %v18231_v25, 0.0  ;;  %v18237_v41 = vadd.f32 %v9478_v18, %v19110_v55 }
0x18a5   : > { %9520 = vadd.xlane.f32.xlu0 %v9519_v3 }
0x18a6   : > { %v9528_v16 = vsel %vm981_vm6, %v18237_v41, 0.0  ;;  %v18242_v15 = vadd.f32 %v9477_v51, %v19111_v2  ;;  %v13460_v2 = vld [vmem:[%s19086_s18 + $0xa8] sm:$0xf] }
0x18a7   : > { %9529 = vadd.xlane.f32.xlu1 %v9528_v16  ;;  %v13462_v16 = vld [vmem:[%s19086_s18 + $0xb8] sm:$0xf]  ;;  %15418 = vmatprep.subr.msk.mxu0 %vm5477_vm5, %v13460_v2 }
0x18a8   : > { %v9525_v37 = vsel %vm981_vm6, %v18242_v15, 0.0  ;;  %15396 = vmatprep.subr.msk.mxu1 %vm5477_vm5, %v13462_v16  ;;  %15419 = vmatpush3.msk.msra.mxu0 %vm5477_vm5, %v13460_v2 }
0x18a9   : > { %9526 = vadd.xlane.f32.xlu0 %v9525_v37  ;;  %15397 = vmatpush3.msk.msra.mxu1 %vm5477_vm5, %v13462_v16  ;;  %v13459_v37 = vld [vmem:[%s19086_s18 + $0xa0] sm:$0xff] }
0x18aa   : > { %15420 = vmatprep.subr.mxu0 %v13459_v37 }
0x18ab   : > { %15421 = vmatpush3.msra.mxu0 %v13459_v37 }
0x191c   : > { %v9500_v11 = vpop.xlane.xlu1 %9499 }
0x191d   : > { %v9532_v27 = vmul.f32 0.083333336, %v9500_v11  ;;  %v18327_v11 = vld [vmem:[%s19086_s18 + $0xc8] sm:$0xf] }
0x191e   : > { %v9497_v19 = vpop.xlane.xlu0 %9496 }
0x191f   : > { %v18247_v8 = vsub.f32 %v18167_v22, %v9532_v27  ;;  %v9531_v63 = vmul.f32 0.083333336, %v9497_v19  ;;  %v18332_v27 = vld [vmem:[%s19086_s18 + $0xd8] sm:$0xf] }
0x1920   : > { %v9506_v60 = vpop.xlane.xlu1 %9505  ;;  %15462 = vmatprep.subr.msk.mxu0 %vm5477_vm5, %v18332_v27 }
0x1921   : > { %v18250_v38 = vsub.f32 %v18173_v59, %v9531_v63  ;;  %v9534_v54 = vmul.f32 0.083333336, %v9506_v60  ;;  %v9556_v0 = vmul.f32 %v18247_v8, %v18247_v8 }
0x1922   : > { %v9503_v50 = vpop.xlane.xlu0 %9502 }
0x1923   : > { %v18255_v39 = vsub.f32 %v18181_v52, %v9534_v54  ;;  %v9533_v56 = vmul.f32 0.083333336, %v9503_v50  ;;  %v9570_v13 = vsel %vm981_vm6, %v9556_v0, 0.0  ;;  %v9555_v22 = vmul.f32 %v18250_v38, %v18250_v38 }
0x1924   : > { %v9512_v21 = vpop.xlane.xlu1 %9511  ;;  %9571 = vadd.xlane.f32.xlu1 %v9570_v13 }
0x1925   : > { %v18261_v57 = vsub.f32 %v18189_v28, %v9533_v56  ;;  %v9536_v59 = vmul.f32 0.083333336, %v9512_v21  ;;  %v9567_v47 = vsel %vm981_vm6, %v9555_v22, 0.0  ;;  %v9558_v30 = vmul.f32 %v18255_v39, %v18255_v39 }
0x1926   : > { %v9509_v10 = vpop.xlane.xlu0 %9508  ;;  %9568 = vadd.xlane.f32.xlu0 %v9567_v47 }
0x1927   : > { %v18267_v52 = vsub.f32 %v18197_v53, %v9536_v59  ;;  %v9535_v6 = vmul.f32 0.083333336, %v9509_v10  ;;  %v9576_v9 = vsel %vm981_vm6, %v9558_v30, 0.0  ;;  %v9557_v33 = vmul.f32 %v18261_v57, %v18261_v57 }
0x1928   : > { %v9518_v40 = vpop.xlane.xlu1 %9517  ;;  %9577 = vadd.xlane.f32.xlu1 %v9576_v9 }
0x1929   : > { %v18273_v28 = vsub.f32 %v18206_v20, %v9535_v6  ;;  %v9538_v5 = vmul.f32 0.083333336, %v9518_v40  ;;  %v9573_v49 = vsel %vm981_vm6, %v9557_v33, 0.0  ;;  %v9560_v58 = vmul.f32 %v18267_v52, %v18267_v52 }
0x192a   : > { %v9515_v61 = vpop.xlane.xlu0 %9514  ;;  %9574 = vadd.xlane.f32.xlu0 %v9573_v49 }
0x192b   : > { %v18279_v53 = vsub.f32 %v18213_v43, %v9538_v5  ;;  %v9537_v1 = vmul.f32 0.083333336, %v9515_v61  ;;  %v9582_v24 = vsel %vm981_vm6, %v9560_v58, 0.0  ;;  %v9559_v14 = vmul.f32 %v18273_v28, %v18273_v28 }
0x192c   : > { %v9524_v34 = vpop.xlane.xlu1 %9523  ;;  %9583 = vadd.xlane.f32.xlu1 %v9582_v24 }
0x192d   : > { %v18285_v20 = vsub.f32 %v18219_v17, %v9537_v1  ;;  %v9540_v32 = vmul.f32 0.083333336, %v9524_v34  ;;  %v9579_v23 = vsel %vm981_vm6, %v9559_v14, 0.0  ;;  %v9562_v48 = vmul.f32 %v18279_v53, %v18279_v53 }
0x192e   : > { %v9521_v35 = vpop.xlane.xlu0 %9520  ;;  %9580 = vadd.xlane.f32.xlu0 %v9579_v23  ;;  %v18337_v23 = vld [vmem:[%s19101_s2 + $0x1] ss:$0 sm:$0xff] }
0x192f   : > { %v18291_v43 = vsub.f32 %v18225_v44, %v9540_v32  ;;  %v9539_v31 = vmul.f32 0.083333336, %v9521_v35  ;;  %v9588_v26 = vsel %vm981_vm6, %v9562_v48, 0.0  ;;  %v9561_v42 = vmul.f32 %v18285_v20, %v18285_v20 }
0x1930   : > { %9589 = vadd.xlane.f32.xlu1 %v9588_v26  ;;  %v9530_v17 = vpop.xlane.xlu1 %9529 }
0x1931   : > { %v18297_v12 = vsub.f32 %v18231_v25, %v9539_v31  ;;  %v9542_v62 = vmul.f32 0.083333336, %v9530_v17  ;;  %v9585_v45 = vsel %vm981_vm6, %v9561_v42, 0.0  ;;  %v9564_v7 = vmul.f32 %v18291_v43, %v18291_v43  ;;  %v18341_v17 = vld [vmem:[%s16245_s27 + $0x1] ss:$0 sm:$0xff] }
0x1932   : > { %9586 = vadd.xlane.f32.xlu0 %v9585_v45  ;;  %v9527_v44 = vpop.xlane.xlu0 %9526 }
0x1933   : > { %v18303_v29 = vsub.f32 %v18237_v41, %v9542_v62  ;;  %v9541_v18 = vmul.f32 0.083333336, %v9527_v44  ;;  %v9594_v4 = vsel %vm981_vm6, %v9564_v7, 0.0  ;;  %v9563_v36 = vmul.f32 %v18297_v12, %v18297_v12 }
0x1934   : > { %9595 = vadd.xlane.f32.xlu1 %v9594_v4 }
0x1935   : > { %v18309_v46 = vsub.f32 %v18242_v15, %v9541_v18  ;;  %v9591_v25 = vsel %vm981_vm6, %v9563_v36, 0.0  ;;  %v9566_v51 = vmul.f32 %v18303_v29, %v18303_v29  ;;  %v13461_v15 = vld [vmem:[%s19086_s18 + $0xb0] sm:$0xff] }
0x1936   : > { %9592 = vadd.xlane.f32.xlu0 %v9591_v25  ;;  %15398 = vmatprep.subr.mxu1 %v13461_v15 }
0x1937   : > { %v9600_v3 = vsel %vm981_vm6, %v9566_v51, 0.0  ;;  %v9565_v55 = vmul.f32 %v18309_v46, %v18309_v46  ;;  %15399 = vmatpush3.msra.mxu1 %v13461_v15 }
0x1938   : > { %9601 = vadd.xlane.f32.xlu1 %v9600_v3  ;;  %15440 = vmatprep.subr.msk.mxu1 %vm5477_vm5, %v18327_v11 }
0x1939   : > { %v9597_v41 = vsel %vm981_vm6, %v9565_v55, 0.0 }
0x193a   : > { %9598 = vadd.xlane.f32.xlu0 %v9597_v41 }
0x19ad   : > { %v9572_v19 = vpop.xlane.xlu1 %9571 }
0x19ae   : > { %v9604_v63 = vmul.f32 0.083333336, %v9572_v19 }
0x19af   : > { %v9569_v60 = vpop.xlane.xlu0 %9568 }
0x19b0   : > { %v9616_v54 = vadd.f32 1e-05, %v9604_v63  ;;  %v9603_v0 = vmul.f32 0.083333336, %v9569_v60 }
0x19b1   : > { %v9578_v50 = vpop.xlane.xlu1 %9577 }
0x19b2   : > { %15997 = vrsqrt.f32 %v9616_v54  ;;  %v9615_v56 = vadd.f32 1e-05, %v9603_v0  ;;  %v9606_v13 = vmul.f32 0.083333336, %v9578_v50 }
0x19b3   : > { %v9575_v22 = vpop.xlane.xlu0 %9574 }
0x19b4   : > { %15999 = vrsqrt.f32 %v9615_v56  ;;  %v9618_v21 = vadd.f32 1e-05, %v9606_v13  ;;  %v9605_v59 = vmul.f32 0.083333336, %v9575_v22 }
0x19b5   : > { %v9584_v47 = vpop.xlane.xlu1 %9583 }
0x19b6   : > { %16001 = vrsqrt.f32 %v9618_v21  ;;  %v9617_v30 = vadd.f32 1e-05, %v9605_v59  ;;  %v9608_v10 = vmul.f32 0.083333336, %v9584_v47 }
0x19b7   : > { %v9581_v6 = vpop.xlane.xlu0 %9580 }
0x19b8   : > { %16003 = vrsqrt.f32 %v9617_v30  ;;  %v9620_v9 = vadd.f32 1e-05, %v9608_v10  ;;  %v9607_v33 = vmul.f32 0.083333336, %v9581_v6 }
0x19b9   : > { %v9590_v40 = vpop.xlane.xlu1 %9589 }
0x19ba   : > { %16005 = vrsqrt.f32 %v9620_v9  ;;  %v9619_v5 = vadd.f32 1e-05, %v9607_v33  ;;  %v9610_v49 = vmul.f32 0.083333336, %v9590_v40 }
0x19bb   : > { %v9587_v58 = vpop.xlane.xlu0 %9586 }
0x19bc   : > { %16007 = vrsqrt.f32 %v9619_v5  ;;  %v9622_v61 = vadd.f32 1e-05, %v9610_v49  ;;  %v9609_v1 = vmul.f32 0.083333336, %v9587_v58  ;;  %v13504_v5 = vld [vmem:[%s19086_s18 + $0xd0] sm:$0xff] }
0x19bd   : > { %v9596_v24 = vpop.xlane.xlu1 %9595 }
0x19be   : > { %16009 = vrsqrt.f32 %v9622_v61  ;;  %v9621_v14 = vadd.f32 1e-05, %v9609_v1  ;;  %v9612_v34 = vmul.f32 0.083333336, %v9596_v24 }
0x19bf   : > { %v15998_v32 = vpop.eup %15997  ;;  %v9593_v48 = vpop.xlane.xlu0 %9592 }
0x19c0   : > { %v9640_v35 = vmul.f32 %v15998_v32, %v18247_v8  ;;  %16011 = vrsqrt.f32 %v9621_v14  ;;  %v9624_v31 = vadd.f32 1e-05, %v9612_v34  ;;  %v9611_v26 = vmul.f32 0.083333336, %v9593_v48 }
0x19c1   : > { %v16000_v42 = vpop.eup %15999  ;;  %v9602_v62 = vpop.xlane.xlu1 %9601 }
0x19c2   : > { %v9658_v45 = vmul.f32 %v18337_v23, %v9640_v35  ;;  %v9639_v7 = vmul.f32 %v16000_v42, %v18250_v38  ;;  %16013 = vrsqrt.f32 %v9624_v31  ;;  %v9623_v44 = vadd.f32 1e-05, %v9611_v26 }
0x19c3   : > { %v16002_v18 = vpop.eup %16001  ;;  %v9614_v4 = vmul.f32 0.083333336, %v9602_v62  ;;  %v9599_v36 = vpop.xlane.xlu0 %9598 }
0x19c4   : > { %v18346_v25 = vadd.f32 %v18341_v17, %v9658_v45  ;;  %v9657_v8 = vmul.f32 %v18337_v23, %v9639_v7  ;;  %v9642_v51 = vmul.f32 %v16002_v18, %v18255_v39  ;;  %16015 = vrsqrt.f32 %v9623_v44 }
0x19c5   : > { %v16004_v3 = vpop.eup %16003  ;;  %v9626_v55 = vadd.f32 1e-05, %v9614_v4  ;;  %v9613_v41 = vmul.f32 0.083333336, %v9599_v36 }
0x19c6   : > { %9690 = vst.msk [vmem:[#allocation4 + $0x10] sm:$0xff] %vm981_vm6, %v18346_v25  ;;  %v18353_v38 = vadd.f32 %v18341_v17, %v9657_v8  ;;  %v9660_v16 = vmul.f32 %v18337_v23, %v9642_v51  ;;  %v9641_v2 = vmul.f32 %v16004_v3, %v18261_v57 }
0x19c7   : > { %v16006_v15 = vpop.eup %16005  ;;  %16017 = vrsqrt.f32 %v9626_v55  ;;  %v9625_v37 = vadd.f32 1e-05, %v9613_v41 }
0x19c8   : > { %9689 = vst.msk [vmem:[#allocation4 + $0x8] sm:$0xff] %vm981_vm6, %v18353_v38  ;;  %v18360_v39 = vadd.f32 %v18341_v17, %v9660_v16  ;;  %v9659_v19 = vmul.f32 %v18337_v23, %v9641_v2  ;;  %v9644_v63 = vmul.f32 %v16006_v15, %v18267_v52 }
0x19c9   : > { %v16008_v60 = vpop.eup %16007  ;;  %16019 = vrsqrt.f32 %v9625_v37 }
0x19ca   : > { %9692 = vst.msk [vmem:[#allocation4 + $0x20] sm:$0xff] %vm981_vm6, %v18360_v39  ;;  %v18367_v57 = vadd.f32 %v18341_v17, %v9659_v19  ;;  %v9662_v54 = vmul.f32 %v18337_v23, %v9644_v63  ;;  %v9643_v0 = vmul.f32 %v16008_v60, %v18273_v28 }
0x19cb   : > { %v16010_v50 = vpop.eup %16009 }
0x19cc   : > { %9691 = vst.msk [vmem:[#allocation4 + $0x18] sm:$0xff] %vm981_vm6, %v18367_v57  ;;  %v18374_v56 = vadd.f32 %v18341_v17, %v9662_v54  ;;  %v9661_v52 = vmul.f32 %v18337_v23, %v9643_v0  ;;  %v9646_v13 = vmul.f32 %v16010_v50, %v18279_v53  ;;  %v13519_v50 = vld [vmem:[%s19086_s18 + $0xe0] sm:$0xff] }
0x19cd   : > { %v16012_v22 = vpop.eup %16011  ;;  %v10060_v63 = vld [vmem:[#allocation4 + $0x10] sm:$0xff] }
0x19ce   : > { %9694 = vst.msk [vmem:[#allocation4 + $0x30] sm:$0xff] %vm981_vm6, %v18374_v56  ;;  %v18381_v21 = vadd.f32 %v18341_v17, %v9661_v52  ;;  %v9664_v28 = vmul.f32 %v18337_v23, %v9646_v13  ;;  %v9645_v59 = vmul.f32 %v16012_v22, %v18285_v20  ;;  %v13489_v20 = vld [vmem:[%s19086_s18 + $0xc0] sm:$0xff] }
0x19cf   : > { %v16014_v47 = vpop.eup %16013  ;;  %v9716_v30 = vld [vmem:[#allocation4 + $0x7] sm:$0xff]  ;;  %v9717_v6 = vld [vmem:[#allocation4 + $0xf] sm:$0xff] }
0x19d0   : > { %v9701_v10 = vld [vmem:[#allocation4 + $0x6] sm:$0xff]  ;;  %9693 = vst.msk [vmem:[#allocation4 + $0x28] sm:$0xff] %vm981_vm6, %v18381_v21  ;;  %v18388_v53 = vadd.f32 %v18341_v17, %v9664_v28  ;;  %v9663_v9 = vmul.f32 %v18337_v23, %v9645_v59  ;;  %v9648_v33 = vmul.f32 %v16014_v47, %v18291_v43  ;;  %15400 = vmatprep.mubr.msk.f32.mxu1 %vm981_vm6, %v9716_v30  ;;  %v9702_v40 = vld [vmem:[#allocation4 + $0xe] sm:$0xff] }
0x19d1   : > { %15422 = vmatprep.mubr.msk.f32.mxu0 %vm981_vm6, %v9701_v10  ;;  %v16016_v49 = vpop.eup %16015  ;;  %15401 = vmatmul.mubr.msk.f32.vlgmr.msra.gmra.mxu1 %vm981_vm6, %v9717_v6  ;;  %v10059_v37 = vld [vmem:[#allocation4 + $0x8] sm:$0xff]  ;;  %v10062_v52 = vld [vmem:[#allocation4 + $0x20] sm:$0xff] }
0x19d2   : > { %15423 = vmatmul.mubr.msk.f32.vlgmr.msra.gmra.mxu0 %vm981_vm6, %v9702_v40  ;;  %9696 = vst.msk [vmem:[#allocation4 + $0x40] sm:$0xff] %vm981_vm6, %v18388_v53  ;;  %v18401_v58 = vadd.f32 %v18341_v17, %v9663_v9  ;;  %v9666_v43 = vmul.f32 %v18337_v23, %v9648_v33  ;;  %v9647_v61 = vmul.f32 %v16016_v49, %v18297_v12  ;;  %v10250_v19 = vld [vmem:[#allocation4 + $0x9] sm:$0xff] }
0x19d3   : > { %15441 = vmatpush3.msk.msra.mxu1 %vm5477_vm5, %v18327_v11  ;;  %15463 = vmatpush3.msk.msra.mxu0 %vm5477_vm5, %v18332_v27  ;;  %v9718_v1 = vld [vmem:[#allocation4 + $0x17] sm:$0xff]  ;;  %v9719_v14 = vld [vmem:[#allocation4 + $0x1f] sm:$0xff]  ;;  %v18418_v27 = vld [vmem:[%s19086_s18 + $0xe8] sm:$0xf] }
0x19d4   : > { %19112 = vst [vmem:[#allocation19_spill] sm:$0xff] %v18401_v58  ;;  %v9703_v24 = vld [vmem:[#allocation4 + $0x16] sm:$0xff]  ;;  %15442 = vmatprep.subr.mxu1 %v13489_v20  ;;  %15464 = vmatprep.subr.mxu0 %v13504_v5  ;;  %v16018_v34 = vpop.eup %16017  ;;  %9695 = vst.msk [vmem:[#allocation4 + $0x38] sm:$0xff] %vm981_vm6, %v18401_v58  ;;  %v18412_v32 = vadd.f32 %v18341_v17, %v9666_v43  ;;  %v9665_v12 = vmul.f32 %v18337_v23, %v9647_v61  ;;  %v9704_v11 = vld [vmem:[#allocation4 + $0x1e] sm:$0xff] }
0x19d5   : > { %15403 = vmatprep.mubr.msk.f32.mxu1 %vm981_vm6, %v9718_v1  ;;  %15425 = vmatprep.mubr.msk.f32.mxu0 %vm981_vm6, %v9703_v24  ;;  %v9650_v48 = vmul.f32 %v16018_v34, %v18303_v29  ;;  %v10251_v60 = vld [vmem:[#allocation4 + $0x11] sm:$0xff]  ;;  %v10252_v0 = vld [vmem:[#allocation4 + $0x19] sm:$0xff] }
0x19d6   : > { %19113 = vst [vmem:[#allocation20_spill] sm:$0xff] %v18412_v32  ;;  %15404 = vmatmul.mubr.msk.f32.gmra.mxu1 %vm981_vm6, %v9719_v14  ;;  %15426 = vmatmul.mubr.msk.f32.gmra.mxu0 %vm981_vm6, %v9704_v11  ;;  %v16020_v35 = vpop.eup %16019  ;;  %9698 = vst.msk [vmem:[#allocation4 + $0x50] sm:$0xff] %vm981_vm6, %v18412_v32  ;;  %v18426_v31 = vadd.f32 %v18341_v17, %v9665_v12  ;;  %v10061_v54 = vld [vmem:[#allocation4 + $0x18] sm:$0xff]  ;;  %v10064_v59 = vld [vmem:[#allocation4 + $0x30] sm:$0xff] }
0x19d7   : > { %15443 = vmatpush3.msra.mxu1 %v13489_v20  ;;  %15465 = vmatpush3.msra.mxu0 %v13504_v5  ;;  %v9668_v26 = vmul.f32 %v18337_v23, %v9650_v48  ;;  %v9649_v42 = vmul.f32 %v16020_v35, %v18309_v46  ;;  %v9720_v62 = vld [vmem:[#allocation4 + $0x27] sm:$0xff]  ;;  %v9721_v29 = vld [vmem:[#allocation4 + $0x2f] sm:$0xff]  ;;  %v10443_v34 = vld [vmem:[#allocation4 + $0x1a] sm:$0xff] }
0x19d8   : > { %19114 = vst [vmem:[#allocation21_spill] sm:$0xff] %v18426_v31  ;;  %v9705_v45 = vld [vmem:[#allocation4 + $0x26] sm:$0xff]  ;;  %15484 = vmatprep.subr.msk.mxu1 %vm5477_vm5, %v18418_v27  ;;  %9697 = vst.msk [vmem:[#allocation4 + $0x48] sm:$0xff] %vm981_vm6, %v18426_v31  ;;  %15406 = vmatprep.mubr.msk.f32.mxu1 %vm981_vm6, %v9720_v62  ;;  %v9706_v7 = vld [vmem:[#allocation4 + $0x2e] sm:$0xff] }
0x19d9   : > { %15428 = vmatprep.mubr.msk.f32.mxu0 %vm981_vm6, %v9705_v45  ;;  %v18437_v44 = vadd.f32 %v18341_v17, %v9668_v26  ;;  %v9667_v18 = vmul.f32 %v18337_v23, %v9649_v42  ;;  %v10253_v13 = vld [vmem:[#allocation4 + $0x21] sm:$0xff]  ;;  %v10254_v28 = vld [vmem:[#allocation4 + $0x29] sm:$0xff]  ;;  %v10442_v14 = vld [vmem:[#allocation4 + $0x12] sm:$0xff] }
0x19da   : > { %15407 = vmatmul.mubr.msk.f32.gmra.mxu1 %vm981_vm6, %v9721_v29  ;;  %15429 = vmatmul.mubr.msk.f32.gmra.mxu0 %vm981_vm6, %v9706_v7  ;;  %v10063_v22 = vld [vmem:[#allocation4 + $0x28] sm:$0xff]  ;;  %v10066_v6 = vld [vmem:[#allocation4 + $0x40] sm:$0xff]  ;;  %v13539_v29 = vld [vmem:[%s19093_s26 + $0xb8] sm:$0xf] }
0x19db   : > { %19115 = vst [vmem:[#allocation22_spill] sm:$0xff] %v18437_v44  ;;  %9700 = vst.msk [vmem:[#allocation4 + $0x60] sm:$0xff] %vm981_vm6, %v18437_v44  ;;  %v18445_v46 = vadd.f32 %v18341_v17, %v9667_v18  ;;  %v9722_v4 = vld [vmem:[#allocation4 + $0x37] sm:$0xff]  ;;  %v9723_v8 = vld [vmem:[#allocation4 + $0x3f] sm:$0xff]  ;;  %15506 = vmatprep.subr.msk.mxu0 %vm5477_vm5, %v13539_v29 }
0x19dc   : > { %v9707_v36 = vld [vmem:[#allocation4 + $0x36] sm:$0xff]  ;;  %15409 = vmatprep.mubr.msk.f32.mxu1 %vm981_vm6, %v9722_v4  ;;  %v9708_v51 = vld [vmem:[#allocation4 + $0x3e] sm:$0xff]  ;;  %v10441_v24 = vld [vmem:[#allocation4 + $0xa] sm:$0xff] }
0x19dd   : > { %19116 = vst [vmem:[#allocation23_spill] sm:$0xff] %v18445_v46  ;;  %15431 = vmatprep.mubr.msk.f32.mxu0 %vm981_vm6, %v9707_v36  ;;  %9699 = vst.msk [vmem:[#allocation4 + $0x58] sm:$0xff] %vm981_vm6, %v18445_v46  ;;  %v10255_v47 = vld [vmem:[#allocation4 + $0x31] sm:$0xff]  ;;  %v10256_v10 = vld [vmem:[#allocation4 + $0x39] sm:$0xff] }
0x19de   : > { %15410 = vmatmul.mubr.msk.f32.gmra.mxu1 %vm981_vm6, %v9723_v8  ;;  %15432 = vmatmul.mubr.msk.f32.gmra.mxu0 %vm981_vm6, %v9708_v51  ;;  %v10065_v30 = vld [vmem:[#allocation4 + $0x38] sm:$0xff]  ;;  %v10068_v20 = vld [vmem:[#allocation4 + $0x50] sm:$0xff]  ;;  %v10444_v12 = vld [vmem:[#allocation4 + $0x22] sm:$0xff] }
0x19df   : > { %v9724_v23 = vld [vmem:[#allocation4 + $0x47] sm:$0xff]  ;;  %v9725_v55 = vld [vmem:[#allocation4 + $0x4f] sm:$0xff]  ;;  %v10447_v48 = vld [vmem:[#allocation4 + $0x3a] sm:$0xff] }
0x19e0   : > { %v9709_v3 = vld [vmem:[#allocation4 + $0x46] sm:$0xff]  ;;  %15412 = vmatprep.mubr.msk.f32.mxu1 %vm981_vm6, %v9724_v23  ;;  %v9710_v17 = vld [vmem:[#allocation4 + $0x4e] sm:$0xff]  ;;  %v18514_v8 = vld [vmem:[%s19093_s26 + $0xd8] sm:$0xf] }
0x19e1   : > { %15434 = vmatprep.mubr.msk.f32.mxu0 %vm981_vm6, %v9709_v3  ;;  %v10257_v9 = vld [vmem:[#allocation4 + $0x41] sm:$0xff]  ;;  %v10258_v40 = vld [vmem:[#allocation4 + $0x49] sm:$0xff] }
0x19e2   : > { %15413 = vmatmul.mubr.msk.f32.gmra.mxu1 %vm981_vm6, %v9725_v55  ;;  %15435 = vmatmul.mubr.msk.f32.gmra.mxu0 %vm981_vm6, %v9710_v17  ;;  %v10067_v33 = vld [vmem:[#allocation4 + $0x48] sm:$0xff]  ;;  %v10070_v61 = vld [vmem:[#allocation4 + $0x60] sm:$0xff]  ;;  %v13538_v7 = vld [vmem:[%s19093_s26 + $0xb0] sm:$0xff] }
0x19e3   : > { %v10261_v1 = vld [vmem:[#allocation4 + $0x61] sm:$0xff]  ;;  %v10445_v11 = vld [vmem:[#allocation4 + $0x2a] sm:$0xff] }
0x19e4   : > { %v9726_v41 = vld [vmem:[#allocation4 + $0x57] sm:$0xff]  ;;  %v9727_v2 = vld [vmem:[#allocation4 + $0x5f] sm:$0xff]  ;;  %v10449_v26 = vld [vmem:[#allocation4 + $0x4a] sm:$0xff] }
0x19e5   : > { %v9711_v16 = vld [vmem:[#allocation4 + $0x56] sm:$0xff]  ;;  %15415 = vmatprep.mubr.msk.f32.mxu1 %vm981_vm6, %v9726_v41  ;;  %v9712_v15 = vld [vmem:[#allocation4 + $0x5e] sm:$0xff]  ;;  %v13537_v18 = vld [vmem:[%s19093_s26 + $0xa8] sm:$0xf] }
0x19e6   : > { %15437 = vmatprep.mubr.msk.f32.mxu0 %vm981_vm6, %v9711_v16  ;;  %15416 = vmatmul.mubr.msk.f32.gmra.mxu1 %vm981_vm6, %v9727_v2  ;;  %v10259_v5 = vld [vmem:[#allocation4 + $0x51] sm:$0xff]  ;;  %v10260_v43 = vld [vmem:[#allocation4 + $0x59] sm:$0xff]  ;;  %v10448_v35 = vld [vmem:[#allocation4 + $0x42] sm:$0xff] }
0x19e7   : > { %15438 = vmatmul.mubr.msk.f32.gmra.mxu0 %vm981_vm6, %v9712_v15  ;;  %15444 = vmatprep.mubr.msk.f32.mxu1 %vm981_vm6, %v10059_v37  ;;  %v10069_v49 = vld [vmem:[#allocation4 + $0x58] sm:$0xff]  ;;  %v10452_v45 = vld [vmem:[#allocation4 + $0x62] sm:$0xff] }
0x19e8   : > { %15466 = vmatprep.mubr.msk.f32.mxu0 %vm981_vm6, %v10250_v19  ;;  %v10450_v42 = vld [vmem:[#allocation4 + $0x52] sm:$0xff]  ;;  %v10451_v62 = vld [vmem:[#allocation4 + $0x5a] sm:$0xff]  ;;  %v18509_v36 = vld [vmem:[%s19093_s26 + $0xc8] sm:$0xf] }
0x19e9   : > { %v13536_v4 = vld [vmem:[%s19093_s26 + $0xa0] sm:$0xff] }
0x19ea   : > { %15445 = vmatmul.mubr.msk.f32.vlgmr.msra.gmra.mxu1 %vm981_vm6, %v10060_v63  ;;  %v18537_v31 = vld [vmem:[%s19094_s28 + $0x2] ss:$0 sm:$0xff] }
0x19eb   : > { %15467 = vmatmul.mubr.msk.f32.vlgmr.msra.gmra.mxu0 %vm981_vm6, %v10251_v60  ;;  %15447 = vmatprep.mubr.msk.f32.mxu1 %vm981_vm6, %v10061_v54 }
0x19ec   : > { %15469 = vmatprep.mubr.msk.f32.mxu0 %vm981_vm6, %v10252_v0  ;;  %15485 = vmatpush3.msk.msra.mxu1 %vm5477_vm5, %v18418_v27  ;;  %v10446_v27 = vld [vmem:[#allocation4 + $0x32] sm:$0xff] }
0x19ed   : > { %15486 = vmatprep.subr.mxu1 %v13519_v50  ;;  %15507 = vmatpush3.msk.msra.mxu0 %vm5477_vm5, %v13539_v29 }
0x19ee   : > { %15448 = vmatmul.mubr.msk.f32.gmra.mxu1 %vm981_vm6, %v10062_v52  ;;  %15508 = vmatprep.subr.mxu0 %v13538_v7 }
0x19ef   : > { %15470 = vmatmul.mubr.msk.f32.gmra.mxu0 %vm981_vm6, %v10253_v13  ;;  %15450 = vmatprep.mubr.msk.f32.mxu1 %vm981_vm6, %v10063_v22 }
0x19f0   : > { %15472 = vmatprep.mubr.msk.f32.mxu0 %vm981_vm6, %v10254_v28  ;;  %15487 = vmatpush3.msra.mxu1 %v13519_v50 }
0x19f1   : > { %15509 = vmatpush3.msra.mxu0 %v13538_v7  ;;  %15528 = vmatprep.subr.msk.mxu1 %vm5477_vm5, %v13537_v18 }
0x19f2   : > { %15451 = vmatmul.mubr.msk.f32.gmra.mxu1 %vm981_vm6, %v10064_v59  ;;  %15550 = vmatprep.subr.msk.mxu0 %vm5477_vm5, %v18509_v36 }
0x19f3   : > { %15473 = vmatmul.mubr.msk.f32.gmra.mxu0 %vm981_vm6, %v10255_v47  ;;  %15453 = vmatprep.mubr.msk.f32.mxu1 %vm981_vm6, %v10065_v30 }
0x19f4   : > { %15475 = vmatprep.mubr.msk.f32.mxu0 %vm981_vm6, %v10256_v10 }
0x19f6   : > { %15454 = vmatmul.mubr.msk.f32.gmra.mxu1 %vm981_vm6, %v10066_v6 }
0x19f7   : > { %15476 = vmatmul.mubr.msk.f32.gmra.mxu0 %vm981_vm6, %v10257_v9  ;;  %15456 = vmatprep.mubr.msk.f32.mxu1 %vm981_vm6, %v10067_v33 }
0x19f8   : > { %15478 = vmatprep.mubr.msk.f32.mxu0 %vm981_vm6, %v10258_v40 }
0x19fa   : > { %15457 = vmatmul.mubr.msk.f32.gmra.mxu1 %vm981_vm6, %v10068_v20 }
0x19fb   : > { %15479 = vmatmul.mubr.msk.f32.gmra.mxu0 %vm981_vm6, %v10259_v5  ;;  %15459 = vmatprep.mubr.msk.f32.mxu1 %vm981_vm6, %v10069_v49 }
0x19fc   : > { %15481 = vmatprep.mubr.msk.f32.mxu0 %vm981_vm6, %v10260_v43 }
0x19fe   : > { %15460 = vmatmul.mubr.msk.f32.gmra.mxu1 %vm981_vm6, %v10070_v61 }
0x19ff   : > { %15482 = vmatmul.mubr.msk.f32.gmra.mxu0 %vm981_vm6, %v10261_v1  ;;  %15488 = vmatprep.mubr.msk.f32.mxu1 %vm981_vm6, %v10441_v24 }
0x1a02   : > { %15489 = vmatmul.mubr.msk.f32.vlgmr.msra.gmra.mxu1 %vm981_vm6, %v10442_v14 }
0x1a03   : > { %15491 = vmatprep.mubr.msk.f32.mxu1 %vm981_vm6, %v10443_v34  ;;  %15529 = vmatpush3.msk.msra.mxu1 %vm5477_vm5, %v13537_v18 }
0x1a04   : > { %15530 = vmatprep.subr.mxu1 %v13536_v4 }
0x1a05   : > { %15531 = vmatpush3.msra.mxu1 %v13536_v4 }
0x1a06   : > { %15492 = vmatmul.mubr.msk.f32.gmra.mxu1 %vm981_vm6, %v10444_v12  ;;  %15572 = vmatprep.subr.msk.mxu1 %vm5477_vm5, %v18514_v8 }
0x1a07   : > { %15494 = vmatprep.mubr.msk.f32.mxu1 %vm981_vm6, %v10445_v11 }
0x1a0a   : > { %15495 = vmatmul.mubr.msk.f32.gmra.mxu1 %vm981_vm6, %v10446_v27 }
0x1a0b   : > { %15497 = vmatprep.mubr.msk.f32.mxu1 %vm981_vm6, %v10447_v48 }
0x1a0e   : > { %15498 = vmatmul.mubr.msk.f32.gmra.mxu1 %vm981_vm6, %v10448_v35 }
0x1a0f   : > { %15500 = vmatprep.mubr.msk.f32.mxu1 %vm981_vm6, %v10449_v26 }
0x1a12   : > { %15501 = vmatmul.mubr.msk.f32.gmra.mxu1 %vm981_vm6, %v10450_v42 }
0x1a13   : > { %15503 = vmatprep.mubr.msk.f32.mxu1 %vm981_vm6, %v10451_v62 }
0x1a16   : > { %15504 = vmatmul.mubr.msk.f32.gmra.mxu1 %vm981_vm6, %v10452_v45 }
0x1a91   : > { %v15402_v51 = vpop.f32.mrf.mxu1 }
0x1a92   : > { %v15424_v23 = vpop.f32.mrf.mxu0 }
0x1a93   : > { %v9836_v3 = vpop.f32.mrf.mxu1  ;;  %v10006_v11 = vadd.f32 %v15424_v23, %v15402_v51 }
0x1a94   : > { %v10000_v55 = vpop.f32.mrf.mxu0 }
0x1a95   : > { %v10001_v48 = vadd.f32 %v10000_v55, %v9836_v3 }
0x1a96   : > { %v15405_v17 = vpop.f32.mrf.mxu1  ;;  %v15427_v41 = vpop.f32.mrf.mxu0 }
0x1a97   : > { %v10016_v62 = vadd.f32 %v15427_v41, %v15405_v17 }
0x1a98   : > { %v9846_v16 = vpop.f32.mrf.mxu1  ;;  %v10010_v2 = vpop.f32.mrf.mxu0 }
0x1a99   : > { %v10011_v7 = vadd.f32 %v10010_v2, %v9846_v16 }
0x1a9a   : > { %v15408_v15 = vpop.f32.mrf.mxu1  ;;  %v15430_v37 = vpop.f32.mrf.mxu0 }
0x1a9b   : > { %v10026_v46 = vadd.f32 %v15430_v37, %v15408_v15 }
0x1a9c   : > { %v9856_v19 = vpop.f32.mrf.mxu1  ;;  %v10020_v63 = vpop.f32.mrf.mxu0 }
0x1a9d   : > { %v10021_v3 = vadd.f32 %v10020_v63, %v9856_v19 }
0x1a9e   : > { %v15411_v60 = vpop.f32.mrf.mxu1  ;;  %v15433_v54 = vpop.f32.mrf.mxu0 }
0x1aa0   : > { %v9866_v0 = vpop.f32.mrf.mxu1  ;;  %v10030_v50 = vpop.f32.mrf.mxu0 }
0x1aa2   : > { %v18518_v52 = vpop.f32.mrf.mxu1  ;;  %v15436_v13 = vpop.f32.mrf.mxu0 }
0x1aa4   : > { %v18520_v22 = vpop.f32.mrf.mxu1  ;;  %v18522_v28 = vpop.f32.mrf.mxu0 }
0x1aa6   : > { %v18524_v59 = vpop.f32.mrf.mxu1 }
0x1aa7   : > { %v18526_v47 = vpop.f32.mrf.mxu0 }
0x1aa8   : > { %v18528_v30 = vpop.f32.mrf.mxu1 }
0x1aa9   : > { %v18530_v10 = vpop.f32.mrf.mxu0 }
0x1aaa   : > { %v15446_v6 = vpop.f32.mrf.mxu1 }
0x1aab   : > { %v15468_v9 = vpop.f32.mrf.mxu0  ;;  %v10239_v35 = vadd.f32 %v15446_v6, %v10006_v11 }
0x1aac   : > { %v10179_v33 = vpop.f32.mrf.mxu1 }
0x1aad   : > { %v10370_v40 = vpop.f32.mrf.mxu0  ;;  %v10238_v45 = vadd.f32 %v10179_v33, %v10001_v48  ;;  %v10430_v18 = vadd.f32 %v15468_v9, %v10239_v35  ;;  %v10036_v33 = vadd.f32 %v15433_v54, %v15411_v60  ;;  %v10031_v35 = vadd.f32 %v10030_v50, %v9866_v0 }
0x1aae   : > { %v15449_v20 = vpop.f32.mrf.mxu1 }
0x1aaf   : > { %v15471_v49 = vpop.f32.mrf.mxu0  ;;  %v10241_v4 = vadd.f32 %v15449_v20, %v10016_v62  ;;  %v10429_v58 = vadd.f32 %v10370_v40, %v10238_v45 }
0x1ab0   : > { %v10189_v5 = vpop.f32.mrf.mxu1 }
0x1ab1   : > { %v10380_v1 = vpop.f32.mrf.mxu0  ;;  %v10240_v51 = vadd.f32 %v10189_v5, %v10011_v7  ;;  %v10432_v11 = vadd.f32 %v15471_v49, %v10241_v4 }
0x1ab2   : > { %v15452_v43 = vpop.f32.mrf.mxu1 }
0x1ab3   : > { %v15474_v34 = vpop.f32.mrf.mxu0  ;;  %v10243_v55 = vadd.f32 %v15452_v43, %v10026_v46  ;;  %v10431_v9 = vadd.f32 %v10380_v1, %v10240_v51  ;;  %v10041_v1 = vadd.f32 %v18522_v28, %v18520_v22 }
0x1ab4   : > { %v10199_v61 = vpop.f32.mrf.mxu1 }
0x1ab5   : > { %v10390_v26 = vpop.f32.mrf.mxu0  ;;  %v10242_v48 = vadd.f32 %v10199_v61, %v10021_v3  ;;  %v10434_v40 = vadd.f32 %v15474_v34, %v10243_v55 }
0x1ab6   : > { %v15455_v24 = vpop.f32.mrf.mxu1 }
0x1ab7   : > { %v15477_v44 = vpop.f32.mrf.mxu0  ;;  %v10433_v60 = vadd.f32 %v10390_v26, %v10242_v48 }
0x1ab8   : > { %v10209_v14 = vpop.f32.mrf.mxu1 }
0x1ab9   : > { %v10400_v16 = vpop.f32.mrf.mxu0  ;;  %v10244_v43 = vadd.f32 %v10209_v14, %v10031_v35  ;;  %v10056_v14 = vadd.f32 %v18526_v47, %v18524_v59 }
0x1aba   : > { %v15458_v12 = vpop.f32.mrf.mxu1 }
0x1abb   : > { %v15480_v54 = vpop.f32.mrf.mxu0  ;;  %v10435_v4 = vadd.f32 %v10400_v16, %v10244_v43 }
0x1abc   : > { %v10219_v27 = vpop.f32.mrf.mxu1 }
0x1abd   : > { %v10246_v26 = vadd.f32 %v10219_v27, %v10041_v1  ;;  %v10410_v7 = vpop.f32.mrf.mxu0 }
0x1abe   : > { %v18532_v42 = vpop.f32.mrf.mxu1 }
0x1abf   : > { %v10249_v3 = vadd.f32 %v18532_v42, %v10056_v14  ;;  %v10437_v55 = vadd.f32 %v10410_v7, %v10246_v26 }
0x1ac0   : > { %v18534_v29 = vpop.f32.mrf.mxu1 }
0x1ac2   : > { %v15490_v32 = vpop.f32.mrf.mxu1 }
0x1ac3   : > { %v10621_v23 = vadd.f32 %v15490_v32, %v10430_v18  ;;  %v10245_v32 = vadd.f32 %v15455_v24, %v10036_v33 }
0x1ac4   : > { %v10561_v6 = vpop.f32.mrf.mxu1 }
0x1ac5   : > { %v10639_v17 = vadd.f32 %v18537_v31, %v10621_v23  ;;  %v10620_v41 = vadd.f32 %v10561_v6, %v10429_v58  ;;  %v10046_v58 = vadd.f32 %v15436_v13, %v18518_v52  ;;  %v10436_v62 = vadd.f32 %v15477_v44, %v10245_v32  ;;  %v15483_v6 = vpop.f32.mrf.mxu0 }
0x1ac6   : > { %v15493_v2 = vpop.f32.mrf.mxu1  ;;  %v10051_v44 = vadd.f32 %v18530_v10, %v18528_v30 }
0x1ac7   : > { %v10651_v15 = vmax.f32 %v10639_v17, 0.0  ;;  %v10638_v37 = vadd.f32 %v18537_v31, %v10620_v41  ;;  %v10623_v20 = vadd.f32 %v15493_v2, %v10432_v11  ;;  %v10247_v24 = vadd.f32 %v15458_v12, %v10046_v58  ;;  %v13566_v2 = vld [vmem:[%s19093_s26 + $0xc0] sm:$0xff] }
0x1ac8   : > { %v10571_v5 = vpop.f32.mrf.mxu1  ;;  %v10248_v30 = vadd.f32 %v18534_v29, %v10051_v44 }
0x1ac9   : > { %10665 = vst.msk [vmem:[#allocation4 + $0x10] sm:$0xff] %vm981_vm6, %v10651_v15  ;;  %v10650_v46 = vmax.f32 %v10638_v37, 0.0  ;;  %v10641_v19 = vadd.f32 %v18537_v31, %v10623_v20  ;;  %v10622_v63 = vadd.f32 %v10571_v5, %v10431_v9  ;;  %v10438_v12 = vadd.f32 %v15480_v54, %v10247_v24  ;;  %v13581_v9 = vld [vmem:[%s19093_s26 + $0xd0] sm:$0xff] }
0x1aca   : > { %v15496_v49 = vpop.f32.mrf.mxu1  ;;  %v10440_v37 = vadd.f32 %v15483_v6, %v10249_v3  ;;  %v13596_v6 = vld [vmem:[%s19093_s26 + $0xe0] sm:$0xff] }
0x1acb   : > { %10664 = vst.msk [vmem:[#allocation4 + $0x8] sm:$0xff] %vm981_vm6, %v10650_v46  ;;  %v10653_v61 = vmax.f32 %v10641_v19, 0.0  ;;  %v10640_v0 = vadd.f32 %v18537_v31, %v10622_v63  ;;  %v10625_v50 = vadd.f32 %v15496_v49, %v10434_v40  ;;  %v10420_v40 = vpop.f32.mrf.mxu0 }
0x1acc   : > { %v10581_v34 = vpop.f32.mrf.mxu1  ;;  %v10439_v63 = vadd.f32 %v10420_v40, %v10248_v30 }
0x1acd   : > { %10667 = vst.msk [vmem:[#allocation4 + $0x20] sm:$0xff] %vm981_vm6, %v10653_v61  ;;  %v10652_v45 = vmax.f32 %v10640_v0, 0.0  ;;  %v10643_v52 = vadd.f32 %v18537_v31, %v10625_v50  ;;  %v10624_v13 = vadd.f32 %v10581_v34, %v10433_v60 }
0x1ace   : > { %v15499_v18 = vpop.f32.mrf.mxu1 }
0x1acf   : > { %10666 = vst.msk [vmem:[#allocation4 + $0x18] sm:$0xff] %vm981_vm6, %v10652_v45  ;;  %v10655_v51 = vmax.f32 %v10643_v52, 0.0  ;;  %v10642_v22 = vadd.f32 %v18537_v31, %v10624_v13  ;;  %v10627_v28 = vadd.f32 %v15499_v18, %v10436_v62 }
0x1ad0   : > { %v10591_v23 = vpop.f32.mrf.mxu1 }
0x1ad1   : > { %10669 = vst.msk [vmem:[#allocation4 + $0x30] sm:$0xff] %vm981_vm6, %v10655_v51  ;;  %v10654_v59 = vmax.f32 %v10642_v22, 0.0  ;;  %v10645_v47 = vadd.f32 %v18537_v31, %v10627_v28  ;;  %v10626_v27 = vadd.f32 %v10591_v23, %v10435_v4 }
0x1ad2   : > { %v15502_v11 = vpop.f32.mrf.mxu1  ;;  %v10691_v17 = vld [vmem:[#allocation4 + $0x7] sm:$0xff]  ;;  %v10692_v33 = vld [vmem:[#allocation4 + $0xf] sm:$0xff] }
0x1ad3   : > { %v10676_v41 = vld [vmem:[#allocation4 + $0x6] sm:$0xff]  ;;  %10668 = vst.msk [vmem:[#allocation4 + $0x28] sm:$0xff] %vm981_vm6, %v10654_v59  ;;  %v10657_v10 = vmax.f32 %v10645_v47, 0.0  ;;  %v10644_v42 = vadd.f32 %v18537_v31, %v10626_v27  ;;  %v10629_v48 = vadd.f32 %v15502_v11, %v10438_v12  ;;  %15510 = vmatprep.mubr.msk.f32.mxu0 %vm981_vm6, %v10691_v17  ;;  %v10677_v16 = vld [vmem:[#allocation4 + $0xe] sm:$0xff] }
0x1ad4   : > { %15532 = vmatprep.mubr.msk.f32.mxu1 %vm981_vm6, %v10676_v41  ;;  %v10601_v15 = vpop.f32.mrf.mxu1  ;;  %15511 = vmatmul.mubr.msk.f32.vlgmr.msra.gmra.mxu0 %vm981_vm6, %v10692_v33  ;;  %v11034_v23 = vld [vmem:[#allocation4 + $0x8] sm:$0xff]  ;;  %v11035_v59 = vld [vmem:[#allocation4 + $0x10] sm:$0xff]  ;;  %v11037_v11 = vld [vmem:[#allocation4 + $0x20] sm:$0xff] }
0x1ad5   : > { %15533 = vmatmul.mubr.msk.f32.vlgmr.msra.gmra.mxu1 %vm981_vm6, %v10677_v16  ;;  %10671 = vst.msk [vmem:[#allocation4 + $0x40] sm:$0xff] %vm981_vm6, %v10657_v10  ;;  %v10656_v29 = vmax.f32 %v10644_v42, 0.0  ;;  %v10647_v20 = vadd.f32 %v18537_v31, %v10629_v48  ;;  %v10628_v35 = vadd.f32 %v10601_v15, %v10437_v55  ;;  %15551 = vmatpush3.msk.msra.mxu0 %vm5477_vm5, %v18509_v36  ;;  %v11225_v3 = vld [vmem:[#allocation4 + $0x9] sm:$0xff] }
0x1ad6   : > { %15573 = vmatpush3.msk.msra.mxu1 %vm5477_vm5, %v18514_v8  ;;  %v15505_v5 = vpop.f32.mrf.mxu1  ;;  %v10693_v32 = vld [vmem:[#allocation4 + $0x17] sm:$0xff]  ;;  %v10694_v19 = vld [vmem:[#allocation4 + $0x1f] sm:$0xff]  ;;  %15552 = vmatprep.subr.mxu0 %v13566_v2  ;;  %v13597_v8 = vld [vmem:[%s19093_s26 + $0xe8] sm:$0xf] }
0x1ad7   : > { %v10678_v46 = vld [vmem:[#allocation4 + $0x16] sm:$0xff]  ;;  %15574 = vmatprep.subr.mxu1 %v13581_v9  ;;  %10670 = vst.msk [vmem:[#allocation4 + $0x38] sm:$0xff] %vm981_vm6, %v10656_v29  ;;  %v10659_v58 = vmax.f32 %v10647_v20, 0.0  ;;  %v10646_v60 = vadd.f32 %v18537_v31, %v10628_v35  ;;  %v10631_v54 = vadd.f32 %v15505_v5, %v10440_v37  ;;  %15513 = vmatprep.mubr.msk.f32.mxu0 %vm981_vm6, %v10693_v32  ;;  %v10679_v36 = vld [vmem:[#allocation4 + $0x1e] sm:$0xff]  ;;  %v11416_v32 = vld [vmem:[#allocation4 + $0xa] sm:$0xff] }
0x1ad8   : > { %15535 = vmatprep.mubr.msk.f32.mxu1 %vm981_vm6, %v10678_v46  ;;  %v10611_v49 = vpop.f32.mrf.mxu1  ;;  %15514 = vmatmul.mubr.msk.f32.gmra.mxu0 %vm981_vm6, %v10694_v19  ;;  %v11226_v47 = vld [vmem:[#allocation4 + $0x11] sm:$0xff]  ;;  %v11227_v55 = vld [vmem:[#allocation4 + $0x19] sm:$0xff] }
0x1ad9   : > { %15536 = vmatmul.mubr.msk.f32.gmra.mxu1 %vm981_vm6, %v10679_v36  ;;  %10673 = vst.msk [vmem:[#allocation4 + $0x50] sm:$0xff] %vm981_vm6, %v10659_v58  ;;  %v10658_v43 = vmax.f32 %v10646_v60, 0.0  ;;  %v10649_v61 = vadd.f32 %v18537_v31, %v10631_v54  ;;  %v10630_v0 = vadd.f32 %v10611_v49, %v10439_v63  ;;  %15553 = vmatpush3.msra.mxu0 %v13566_v2  ;;  %v11036_v27 = vld [vmem:[#allocation4 + $0x18] sm:$0xff]  ;;  %v11039_v30 = vld [vmem:[#allocation4 + $0x30] sm:$0xff] }
0x1ada   : > { %15575 = vmatpush3.msra.mxu1 %v13581_v9  ;;  %v10695_v50 = vld [vmem:[#allocation4 + $0x27] sm:$0xff]  ;;  %v10696_v24 = vld [vmem:[#allocation4 + $0x2f] sm:$0xff]  ;;  %15594 = vmatprep.subr.msk.mxu0 %vm5477_vm5, %v13597_v8  ;;  %v11418_v19 = vld [vmem:[#allocation4 + $0x1a] sm:$0xff] }
0x1adb   : > { %v10680_v1 = vld [vmem:[#allocation4 + $0x26] sm:$0xff]  ;;  %10672 = vst.msk [vmem:[#allocation4 + $0x48] sm:$0xff] %vm981_vm6, %v10658_v43  ;;  %v10661_v34 = vmax.f32 %v10649_v61, 0.0  ;;  %v10648_v62 = vadd.f32 %v18537_v31, %v10630_v0  ;;  %15516 = vmatprep.mubr.msk.f32.mxu0 %vm981_vm6, %v10695_v50  ;;  %v10681_v45 = vld [vmem:[#allocation4 + $0x2e] sm:$0xff] }
0x1adc   : > { %15538 = vmatprep.mubr.msk.f32.mxu1 %vm981_vm6, %v10680_v1  ;;  %15517 = vmatmul.mubr.msk.f32.gmra.mxu0 %vm981_vm6, %v10696_v24  ;;  %v11228_v17 = vld [vmem:[#allocation4 + $0x21] sm:$0xff]  ;;  %v11229_v33 = vld [vmem:[#allocation4 + $0x29] sm:$0xff]  ;;  %v11417_v46 = vld [vmem:[#allocation4 + $0x12] sm:$0xff] }
0x1add   : > { %15539 = vmatmul.mubr.msk.f32.gmra.mxu1 %vm981_vm6, %v10681_v45  ;;  %10675 = vst.msk [vmem:[#allocation4 + $0x60] sm:$0xff] %vm981_vm6, %v10661_v34  ;;  %v10660_v52 = vmax.f32 %v10648_v62, 0.0  ;;  %v11038_v41 = vld [vmem:[#allocation4 + $0x28] sm:$0xff]  ;;  %v11041_v16 = vld [vmem:[#allocation4 + $0x40] sm:$0xff] }
0x1ade   : > { %v10697_v13 = vld [vmem:[#allocation4 + $0x37] sm:$0xff]  ;;  %v10698_v26 = vld [vmem:[#allocation4 + $0x3f] sm:$0xff]  ;;  %v11420_v58 = vld [vmem:[#allocation4 + $0x2a] sm:$0xff] }
0x1adf   : > { %v10682_v14 = vld [vmem:[#allocation4 + $0x36] sm:$0xff]  ;;  %10674 = vst.msk [vmem:[#allocation4 + $0x58] sm:$0xff] %vm981_vm6, %v10660_v52  ;;  %15519 = vmatprep.mubr.msk.f32.mxu0 %vm981_vm6, %v10697_v13  ;;  %v10683_v31 = vld [vmem:[#allocation4 + $0x3e] sm:$0xff] }
0x1ae0   : > { %15541 = vmatprep.mubr.msk.f32.mxu1 %vm981_vm6, %v10682_v14  ;;  %15520 = vmatmul.mubr.msk.f32.gmra.mxu0 %vm981_vm6, %v10698_v26  ;;  %v11230_v10 = vld [vmem:[#allocation4 + $0x31] sm:$0xff]  ;;  %v11231_v48 = vld [vmem:[#allocation4 + $0x39] sm:$0xff]  ;;  %v11419_v63 = vld [vmem:[#allocation4 + $0x22] sm:$0xff] }
0x1ae1   : > { %15542 = vmatmul.mubr.msk.f32.gmra.mxu1 %vm981_vm6, %v10683_v31  ;;  %v11040_v42 = vld [vmem:[#allocation4 + $0x38] sm:$0xff]  ;;  %v11043_v37 = vld [vmem:[#allocation4 + $0x50] sm:$0xff] }
0x1ae2   : > { %v10699_v7 = vld [vmem:[#allocation4 + $0x47] sm:$0xff]  ;;  %v10700_v4 = vld [vmem:[#allocation4 + $0x4f] sm:$0xff]  ;;  %v11422_v54 = vld [vmem:[#allocation4 + $0x3a] sm:$0xff] }
0x1ae3   : > { %v10684_v18 = vld [vmem:[#allocation4 + $0x46] sm:$0xff]  ;;  %15522 = vmatprep.mubr.msk.f32.mxu0 %vm981_vm6, %v10699_v7  ;;  %v10685_v51 = vld [vmem:[#allocation4 + $0x4e] sm:$0xff] }
0x1ae4   : > { %15544 = vmatprep.mubr.msk.f32.mxu1 %vm981_vm6, %v10684_v18  ;;  %15523 = vmatmul.mubr.msk.f32.gmra.mxu0 %vm981_vm6, %v10700_v4  ;;  %v11232_v2 = vld [vmem:[#allocation4 + $0x41] sm:$0xff]  ;;  %v11233_v15 = vld [vmem:[#allocation4 + $0x49] sm:$0xff]  ;;  %v11421_v60 = vld [vmem:[#allocation4 + $0x32] sm:$0xff] }
0x1ae5   : > { %15545 = vmatmul.mubr.msk.f32.gmra.mxu1 %vm981_vm6, %v10685_v51  ;;  %v11042_v9 = vld [vmem:[#allocation4 + $0x48] sm:$0xff]  ;;  %v11045_v40 = vld [vmem:[#allocation4 + $0x60] sm:$0xff] }
0x1ae6   : > { %v10701_v22 = vld [vmem:[#allocation4 + $0x57] sm:$0xff]  ;;  %v10702_v44 = vld [vmem:[#allocation4 + $0x5f] sm:$0xff] }
0x1ae7   : > { %v10686_v28 = vld [vmem:[#allocation4 + $0x56] sm:$0xff]  ;;  %15525 = vmatprep.mubr.msk.f32.mxu0 %vm981_vm6, %v10701_v22  ;;  %v10687_v12 = vld [vmem:[#allocation4 + $0x5e] sm:$0xff] }
0x1ae8   : > { %15547 = vmatprep.mubr.msk.f32.mxu1 %vm981_vm6, %v10686_v28  ;;  %15526 = vmatmul.mubr.msk.f32.gmra.mxu0 %vm981_vm6, %v10702_v44  ;;  %v11234_v29 = vld [vmem:[#allocation4 + $0x51] sm:$0xff]  ;;  %v11235_v35 = vld [vmem:[#allocation4 + $0x59] sm:$0xff]  ;;  %v11236_v5 = vld [vmem:[#allocation4 + $0x61] sm:$0xff] }
0x1ae9   : > { %15548 = vmatmul.mubr.msk.f32.gmra.mxu1 %vm981_vm6, %v10687_v12  ;;  %15554 = vmatprep.mubr.msk.f32.mxu0 %vm981_vm6, %v11034_v23  ;;  %v11044_v20 = vld [vmem:[#allocation4 + $0x58] sm:$0xff]  ;;  %v11423_v36 = vld [vmem:[#allocation4 + $0x42] sm:$0xff] }
0x1aea   : > { %15576 = vmatprep.mubr.msk.f32.mxu1 %vm981_vm6, %v11225_v3  ;;  %v11425_v49 = vld [vmem:[#allocation4 + $0x52] sm:$0xff]  ;;  %v11426_v43 = vld [vmem:[#allocation4 + $0x5a] sm:$0xff]  ;;  %v11427_v61 = vld [vmem:[#allocation4 + $0x62] sm:$0xff] }
0x1aec   : > { %15555 = vmatmul.mubr.msk.f32.vlgmr.msra.gmra.mxu0 %vm981_vm6, %v11035_v59 }
0x1aed   : > { %15577 = vmatmul.mubr.msk.f32.vlgmr.msra.gmra.mxu1 %vm981_vm6, %v11226_v47  ;;  %15557 = vmatprep.mubr.msk.f32.mxu0 %vm981_vm6, %v11036_v27 }
0x1aee   : > { %15579 = vmatprep.mubr.msk.f32.mxu1 %vm981_vm6, %v11227_v55  ;;  %15595 = vmatpush3.msk.msra.mxu0 %vm5477_vm5, %v13597_v8  ;;  %v11424_v8 = vld [vmem:[#allocation4 + $0x4a] sm:$0xff] }
0x1aef   : > { %15596 = vmatprep.subr.mxu0 %v13596_v6 }
0x1af0   : > { %15558 = vmatmul.mubr.msk.f32.gmra.mxu0 %vm981_vm6, %v11037_v11 }
0x1af1   : > { %15580 = vmatmul.mubr.msk.f32.gmra.mxu1 %vm981_vm6, %v11228_v17  ;;  %15560 = vmatprep.mubr.msk.f32.mxu0 %vm981_vm6, %v11038_v41 }
0x1af2   : > { %15582 = vmatprep.mubr.msk.f32.mxu1 %vm981_vm6, %v11229_v33  ;;  %15597 = vmatpush3.msra.mxu0 %v13596_v6 }
0x1af4   : > { %15561 = vmatmul.mubr.msk.f32.gmra.mxu0 %vm981_vm6, %v11039_v30 }
0x1af5   : > { %15583 = vmatmul.mubr.msk.f32.gmra.mxu1 %vm981_vm6, %v11230_v10  ;;  %15563 = vmatprep.mubr.msk.f32.mxu0 %vm981_vm6, %v11040_v42 }
0x1af6   : > { %15585 = vmatprep.mubr.msk.f32.mxu1 %vm981_vm6, %v11231_v48 }
0x1af8   : > { %15564 = vmatmul.mubr.msk.f32.gmra.mxu0 %vm981_vm6, %v11041_v16 }
0x1af9   : > { %15586 = vmatmul.mubr.msk.f32.gmra.mxu1 %vm981_vm6, %v11232_v2  ;;  %15566 = vmatprep.mubr.msk.f32.mxu0 %vm981_vm6, %v11042_v9 }
0x1afa   : > { %15588 = vmatprep.mubr.msk.f32.mxu1 %vm981_vm6, %v11233_v15 }
0x1afc   : > { %15567 = vmatmul.mubr.msk.f32.gmra.mxu0 %vm981_vm6, %v11043_v37 }
0x1afd   : > { %15589 = vmatmul.mubr.msk.f32.gmra.mxu1 %vm981_vm6, %v11234_v29  ;;  %15569 = vmatprep.mubr.msk.f32.mxu0 %vm981_vm6, %v11044_v20 }
0x1afe   : > { %15591 = vmatprep.mubr.msk.f32.mxu1 %vm981_vm6, %v11235_v35 }
0x1b00   : > { %15570 = vmatmul.mubr.msk.f32.gmra.mxu0 %vm981_vm6, %v11045_v40 }
0x1b01   : > { %15592 = vmatmul.mubr.msk.f32.gmra.mxu1 %vm981_vm6, %v11236_v5  ;;  %15598 = vmatprep.mubr.msk.f32.mxu0 %vm981_vm6, %v11416_v32 }
0x1b04   : > { %15599 = vmatmul.mubr.msk.f32.vlgmr.msra.gmra.mxu0 %vm981_vm6, %v11417_v46 }
0x1b05   : > { %15601 = vmatprep.mubr.msk.f32.mxu0 %vm981_vm6, %v11418_v19 }
0x1b08   : > { %15602 = vmatmul.mubr.msk.f32.gmra.mxu0 %vm981_vm6, %v11419_v63 }
0x1b09   : > { %15604 = vmatprep.mubr.msk.f32.mxu0 %vm981_vm6, %v11420_v58 }
0x1b0c   : > { %15605 = vmatmul.mubr.msk.f32.gmra.mxu0 %vm981_vm6, %v11421_v60 }
0x1b0d   : > { %15607 = vmatprep.mubr.msk.f32.mxu0 %vm981_vm6, %v11422_v54 }
0x1b10   : > { %15608 = vmatmul.mubr.msk.f32.gmra.mxu0 %vm981_vm6, %v11423_v36  ;;  %v18663_v36 = vld [vmem:[%s19095_s1 + $0x2] ss:$0 sm:$0xff] }
0x1b11   : > { %15610 = vmatprep.mubr.msk.f32.mxu0 %vm981_vm6, %v11424_v8 }
0x1b14   : > { %15611 = vmatmul.mubr.msk.f32.gmra.mxu0 %vm981_vm6, %v11425_v49 }
0x1b15   : > { %15613 = vmatprep.mubr.msk.f32.mxu0 %vm981_vm6, %v11426_v43 }
0x1b18   : > { %15614 = vmatmul.mubr.msk.f32.gmra.mxu0 %vm981_vm6, %v11427_v61 }
0x1b94   : > { %v15512_v0 = vpop.f32.mrf.mxu0 }
0x1b95   : > { %v15534_v50 = vpop.f32.mrf.mxu1 }
0x1b96   : > { %v10811_v1 = vpop.f32.mrf.mxu0  ;;  %v10981_v15 = vadd.f32 %v15534_v50, %v15512_v0 }
0x1b97   : > { %v10975_v24 = vpop.f32.mrf.mxu1 }
0x1b98   : > { %v15515_v34 = vpop.f32.mrf.mxu0  ;;  %v10976_v29 = vadd.f32 %v10975_v24, %v10811_v1 }
0x1b99   : > { %v15537_v62 = vpop.f32.mrf.mxu1 }
0x1b9a   : > { %v10821_v45 = vpop.f32.mrf.mxu0  ;;  %v10991_v5 = vadd.f32 %v15537_v62, %v15515_v34 }
0x1b9b   : > { %v10985_v52 = vpop.f32.mrf.mxu1 }
0x1b9c   : > { %v15518_v13 = vpop.f32.mrf.mxu0  ;;  %v10986_v19 = vadd.f32 %v10985_v52, %v10821_v45 }
0x1b9d   : > { %v15540_v14 = vpop.f32.mrf.mxu1 }
0x1b9e   : > { %v10831_v26 = vpop.f32.mrf.mxu0  ;;  %v11001_v54 = vadd.f32 %v15540_v14, %v15518_v13 }
0x1b9f   : > { %v10995_v31 = vpop.f32.mrf.mxu1 }
0x1ba0   : > { %v15521_v7 = vpop.f32.mrf.mxu0  ;;  %v10996_v0 = vadd.f32 %v10995_v31, %v10831_v26 }
0x1ba1   : > { %v15543_v18 = vpop.f32.mrf.mxu1 }
0x1ba2   : > { %v10841_v4 = vpop.f32.mrf.mxu0 }
0x1ba3   : > { %v11005_v51 = vpop.f32.mrf.mxu1 }
0x1ba4   : > { %v18642_v22 = vpop.f32.mrf.mxu0 }
0x1ba5   : > { %v18644_v28 = vpop.f32.mrf.mxu1 }
0x1ba6   : > { %v18646_v44 = vpop.f32.mrf.mxu0 }
0x1ba7   : > { %v18648_v12 = vpop.f32.mrf.mxu1 }
0x1ba8   : > { %v18650_v23 = vpop.f32.mrf.mxu0 }
0x1ba9   : > { %v18652_v3 = vpop.f32.mrf.mxu1 }
0x1baa   : > { %v18654_v59 = vpop.f32.mrf.mxu0 }
0x1bab   : > { %v18656_v47 = vpop.f32.mrf.mxu1 }
0x1bac   : > { %v15556_v27 = vpop.f32.mrf.mxu0 }
0x1bad   : > { %v15578_v55 = vpop.f32.mrf.mxu1  ;;  %v11214_v20 = vadd.f32 %v15556_v27, %v10981_v15 }
0x1bae   : > { %v11154_v6 = vpop.f32.mrf.mxu0 }
0x1baf   : > { %v11345_v11 = vpop.f32.mrf.mxu1  ;;  %v11213_v32 = vadd.f32 %v11154_v6, %v10976_v29  ;;  %v11405_v63 = vadd.f32 %v15578_v55, %v11214_v20  ;;  %v11011_v6 = vadd.f32 %v15543_v18, %v15521_v7 }
0x1bb0   : > { %v15559_v17 = vpop.f32.mrf.mxu0 }
0x1bb1   : > { %v15581_v33 = vpop.f32.mrf.mxu1  ;;  %v11216_v58 = vadd.f32 %v15559_v17, %v10991_v5  ;;  %v11404_v49 = vadd.f32 %v11345_v11, %v11213_v32  ;;  %v11006_v11 = vadd.f32 %v11005_v51, %v10841_v4 }
0x1bb2   : > { %v11164_v41 = vpop.f32.mrf.mxu0 }
0x1bb3   : > { %v11355_v42 = vpop.f32.mrf.mxu1  ;;  %v11215_v43 = vadd.f32 %v11164_v41, %v10986_v19  ;;  %v11407_v24 = vadd.f32 %v15581_v33, %v11216_v58 }
0x1bb4   : > { %v15562_v30 = vpop.f32.mrf.mxu0 }
0x1bb5   : > { %v15584_v2 = vpop.f32.mrf.mxu1  ;;  %v11218_v50 = vadd.f32 %v15562_v30, %v11001_v54  ;;  %v11406_v55 = vadd.f32 %v11355_v42, %v11215_v43 }
0x1bb6   : > { %v11174_v10 = vpop.f32.mrf.mxu0 }
0x1bb7   : > { %v11365_v35 = vpop.f32.mrf.mxu1  ;;  %v11217_v45 = vadd.f32 %v11174_v10, %v10996_v0  ;;  %v11409_v41 = vadd.f32 %v15584_v2, %v11218_v50  ;;  %v11021_v10 = vadd.f32 %v18644_v28, %v18642_v22 }
0x1bb8   : > { %v15565_v48 = vpop.f32.mrf.mxu0 }
0x1bb9   : > { %v15587_v60 = vpop.f32.mrf.mxu1  ;;  %v11220_v26 = vadd.f32 %v15565_v48, %v11011_v6  ;;  %v11408_v42 = vadd.f32 %v11365_v35, %v11217_v45  ;;  %v19117_v45 = vld [vmem:[#allocation19_spill] sm:$0xff] }
0x1bba   : > { %v11184_v16 = vpop.f32.mrf.mxu0 }
0x1bbb   : > { %v11375_v27 = vpop.f32.mrf.mxu1  ;;  %v11411_v20 = vadd.f32 %v15587_v60, %v11220_v26 }
0x1bbc   : > { %v15568_v9 = vpop.f32.mrf.mxu0 }
0x1bbd   : > { %v15590_v30 = vpop.f32.mrf.mxu1  ;;  %v11222_v5 = vadd.f32 %v15568_v9, %v11021_v10 }
0x1bbe   : > { %v11194_v37 = vpop.f32.mrf.mxu0 }
0x1bbf   : > { %v11385_v22 = vpop.f32.mrf.mxu1 }
0x1bc0   : > { %v18658_v40 = vpop.f32.mrf.mxu0 }
0x1bc2   : > { %v18660_v46 = vpop.f32.mrf.mxu0 }
0x1bc4   : > { %v15600_v8 = vpop.f32.mrf.mxu0 }
0x1bc5   : > { %v11596_v61 = vadd.f32 %v15600_v8, %v11405_v63  ;;  %v11413_v8 = vadd.f32 %v15590_v30, %v11222_v5 }
0x1bc6   : > { %v11536_v1 = vpop.f32.mrf.mxu0 }
0x1bc7   : > { %v11614_v34 = vadd.f32 %v18663_v36, %v11596_v61  ;;  %v11595_v62 = vadd.f32 %v11536_v1, %v11404_v49 }
0x1bc8   : > { %v15603_v52 = vpop.f32.mrf.mxu0 }
0x1bc9   : > { %v11613_v13 = vadd.f32 %v18663_v36, %v11595_v62  ;;  %v11598_v14 = vadd.f32 %v15603_v52, %v11407_v24  ;;  %v18668_v17 = vadd.f32 %v11614_v34, %v18346_v25  ;;  %v11219_v25 = vadd.f32 %v11184_v16, %v11006_v11 }
0x1bca   : > { %v11546_v31 = vpop.f32.mrf.mxu0 }
0x1bcb   : > { %v11616_v33 = vadd.f32 %v18663_v36, %v11598_v14  ;;  %v11597_v15 = vadd.f32 %v11546_v31, %v11406_v55  ;;  %v11644_v7 = vsel %vm981_vm6, %v18668_v17, 0.0  ;;  %v18674_v18 = vadd.f32 %v11613_v13, %v18353_v38 }
0x1bcc   : > { %v15606_v29 = vpop.f32.mrf.mxu0  ;;  %11645 = vadd.xlane.f32.xlu1 %v11644_v7  ;;  %v11016_v38 = vadd.f32 %v18648_v12, %v18646_v44  ;;  %v11410_v63 = vadd.f32 %v11375_v27, %v11219_v25  ;;  %v19119_v7 = vld [vmem:[#allocation21_spill] sm:$0xff] }
0x1bcd   : > { %v11615_v4 = vadd.f32 %v18663_v36, %v11597_v15  ;;  %v11600_v51 = vadd.f32 %v15606_v29, %v11409_v41  ;;  %v11641_v48 = vsel %vm981_vm6, %v18674_v18, 0.0  ;;  %v18682_v2 = vadd.f32 %v11616_v33, %v18360_v39  ;;  %v19118_v41 = vld [vmem:[#allocation20_spill] sm:$0xff]  ;;  %v19120_v29 = vld [vmem:[#allocation22_spill] sm:$0xff] }
0x1bce   : > { %v11556_v32 = vpop.f32.mrf.mxu0  ;;  %11642 = vadd.xlane.f32.xlu0 %v11641_v48  ;;  %v11031_v39 = vadd.f32 %v18652_v3, %v18650_v23  ;;  %v11221_v58 = vadd.f32 %v11194_v37, %v11016_v38  ;;  %v15593_v3 = vpop.f32.mrf.mxu1  ;;  %v19121_v48 = vld [vmem:[#allocation23_spill] sm:$0xff] }
0x1bcf   : > { %v11618_v28 = vadd.f32 %v18663_v36, %v11600_v51  ;;  %v11599_v16 = vadd.f32 %v11556_v32, %v11408_v42  ;;  %v11650_v35 = vsel %vm981_vm6, %v18682_v2, 0.0  ;;  %v18690_v19 = vadd.f32 %v11615_v4, %v18367_v57 }
0x1bd0   : > { %v15609_v44 = vpop.f32.mrf.mxu0  ;;  %11651 = vadd.xlane.f32.xlu1 %v11650_v35  ;;  %v11026_v57 = vadd.f32 %v18656_v47, %v18654_v59  ;;  %v11224_v49 = vadd.f32 %v18658_v40, %v11031_v39  ;;  %v11395_v62 = vpop.f32.mrf.mxu1 }
0x1bd1   : > { %v11617_v12 = vadd.f32 %v18663_v36, %v11599_v16  ;;  %v11602_v9 = vadd.f32 %v15609_v44, %v11411_v20  ;;  %v11647_v60 = vsel %vm981_vm6, %v18690_v19, 0.0  ;;  %v18698_v54 = vadd.f32 %v11618_v28, %v18374_v56 }
0x1bd2   : > { %v11566_v23 = vpop.f32.mrf.mxu0  ;;  %11648 = vadd.xlane.f32.xlu0 %v11647_v60  ;;  %v11412_v56 = vadd.f32 %v11385_v22, %v11221_v58  ;;  %v11223_v50 = vadd.f32 %v18660_v46, %v11026_v57  ;;  %v11415_v27 = vadd.f32 %v15593_v3, %v11224_v49 }
0x1bd3   : > { %v11620_v37 = vadd.f32 %v18663_v36, %v11602_v9  ;;  %v11601_v43 = vadd.f32 %v11566_v23, %v11410_v63  ;;  %v11656_v61 = vsel %vm981_vm6, %v18698_v54, 0.0  ;;  %v18707_v0 = vadd.f32 %v11617_v12, %v18381_v21 }
0x1bd4   : > { %v15612_v1 = vpop.f32.mrf.mxu0  ;;  %11657 = vadd.xlane.f32.xlu1 %v11656_v61  ;;  %v11414_v55 = vadd.f32 %v11395_v62, %v11223_v50 }
0x1bd5   : > { %v11619_v59 = vadd.f32 %v18663_v36, %v11601_v43  ;;  %v11604_v47 = vadd.f32 %v15612_v1, %v11413_v8  ;;  %v11653_v40 = vsel %vm981_vm6, %v18707_v0, 0.0  ;;  %v18714_v24 = vadd.f32 %v11620_v37, %v18388_v53 }
0x1bd6   : > { %v11576_v34 = vpop.f32.mrf.mxu0  ;;  %11654 = vadd.xlane.f32.xlu0 %v11653_v40 }
0x1bd7   : > { %v11622_v21 = vadd.f32 %v18663_v36, %v11604_v47  ;;  %v11603_v6 = vadd.f32 %v11576_v34, %v11412_v56  ;;  %v11662_v46 = vsel %vm981_vm6, %v18714_v24, 0.0  ;;  %v18720_v52 = vadd.f32 %v11619_v59, %v19117_v45 }
0x1bd8   : > { %v15615_v13 = vpop.f32.mrf.mxu0  ;;  %11663 = vadd.xlane.f32.xlu1 %v11662_v46 }
0x1bd9   : > { %v11621_v14 = vadd.f32 %v18663_v36, %v11603_v6  ;;  %v11606_v53 = vadd.f32 %v15615_v13, %v11415_v27  ;;  %v11659_v11 = vsel %vm981_vm6, %v18720_v52, 0.0  ;;  %v18726_v26 = vadd.f32 %v11622_v21, %v19118_v41 }
0x1bda   : > { %v11586_v31 = vpop.f32.mrf.mxu0  ;;  %11660 = vadd.xlane.f32.xlu0 %v11659_v11 }
0x1bdb   : > { %v11624_v30 = vadd.f32 %v18663_v36, %v11606_v53  ;;  %v11605_v33 = vadd.f32 %v11586_v31, %v11414_v55  ;;  %v11668_v15 = vsel %vm981_vm6, %v18726_v26, 0.0  ;;  %v18732_v10 = vadd.f32 %v11621_v14, %v19119_v7 }
0x1bdc   : > { %11669 = vadd.xlane.f32.xlu1 %v11668_v15 }
0x1bdd   : > { %v11623_v42 = vadd.f32 %v18663_v36, %v11605_v33  ;;  %v11665_v25 = vsel %vm981_vm6, %v18732_v10, 0.0  ;;  %v18738_v4 = vadd.f32 %v11624_v30, %v19120_v29 }
0x1bde   : > { %11666 = vadd.xlane.f32.xlu0 %v11665_v25 }
0x1bdf   : > { %v11674_v51 = vsel %vm981_vm6, %v18738_v4, 0.0  ;;  %v18743_v38 = vadd.f32 %v11623_v42, %v19121_v48  ;;  %v11859_v48 = vld [vmem:[%s16250_s4 + $0x8] sm:$0xf] }
0x1be0   : > { %11675 = vadd.xlane.f32.xlu1 %v11674_v51  ;;  %v13617_v51 = vld [vmem:[%s16250_s4 + $0x18] sm:$0xf]  ;;  %15638 = vmatprep.subr.msk.mxu0 %vm5477_vm5, %v11859_v48 }
0x1be1   : > { %v11671_v20 = vsel %vm981_vm6, %v18743_v38, 0.0  ;;  %15616 = vmatprep.subr.msk.mxu1 %vm5477_vm5, %v13617_v51  ;;  %15639 = vmatpush3.msk.msra.mxu0 %vm5477_vm5, %v11859_v48 }
0x1be2   : > { %11672 = vadd.xlane.f32.xlu0 %v11671_v20  ;;  %15617 = vmatpush3.msk.msra.mxu1 %vm5477_vm5, %v13617_v51  ;;  %v11858_v20 = vld [vmem:[%s16250_s4] sm:$0xff] }
0x1be3   : > { %15640 = vmatprep.subr.mxu0 %v11858_v20 }
0x1be4   : > { %15641 = vmatpush3.msra.mxu0 %v11858_v20 }
0x1c55   : > { %v11646_v5 = vpop.xlane.xlu1 %11645 }
0x1c56   : > { %v11678_v36 = vmul.f32 0.083333336, %v11646_v5  ;;  %v18828_v5 = vld [vmem:[%s16250_s4 + $0x28] sm:$0xf] }
0x1c57   : > { %v11643_v32 = vpop.xlane.xlu0 %11642 }
0x1c58   : > { %v18748_v22 = vsub.f32 %v18668_v17, %v11678_v36  ;;  %v11677_v28 = vmul.f32 0.083333336, %v11643_v32  ;;  %v18833_v36 = vld [vmem:[%s16250_s4 + $0x38] sm:$0xf] }
0x1c59   : > { %v11652_v16 = vpop.xlane.xlu1 %11651  ;;  %15682 = vmatprep.subr.msk.mxu0 %vm5477_vm5, %v18833_v36 }
0x1c5a   : > { %v18751_v35 = vsub.f32 %v18674_v18, %v11677_v28  ;;  %v11680_v39 = vmul.f32 0.083333336, %v11652_v16  ;;  %v11702_v63 = vmul.f32 %v18748_v22, %v18748_v22 }
0x1c5b   : > { %v11649_v58 = vpop.xlane.xlu0 %11648 }
0x1c5c   : > { %v18756_v44 = vsub.f32 %v18682_v2, %v11680_v39  ;;  %v11679_v12 = vmul.f32 0.083333336, %v11649_v58  ;;  %v11716_v9 = vsel %vm981_vm6, %v11702_v63, 0.0  ;;  %v11701_v17 = vmul.f32 %v18751_v35, %v18751_v35 }
0x1c5d   : > { %v11658_v60 = vpop.xlane.xlu1 %11657  ;;  %11717 = vadd.xlane.f32.xlu1 %v11716_v9 }
0x1c5e   : > { %v18762_v57 = vsub.f32 %v18690_v19, %v11679_v12  ;;  %v11682_v18 = vmul.f32 0.083333336, %v11658_v60  ;;  %v11713_v8 = vsel %vm981_vm6, %v11701_v17, 0.0  ;;  %v11704_v49 = vmul.f32 %v18756_v44, %v18756_v44 }
0x1c5f   : > { %v11655_v23 = vpop.xlane.xlu0 %11654  ;;  %11714 = vadd.xlane.f32.xlu0 %v11713_v8 }
0x1c60   : > { %v18768_v2 = vsub.f32 %v18698_v54, %v11682_v18  ;;  %v11681_v3 = vmul.f32 0.083333336, %v11655_v23  ;;  %v11722_v37 = vsel %vm981_vm6, %v11704_v49, 0.0  ;;  %v11703_v43 = vmul.f32 %v18762_v57, %v18762_v57 }
0x1c61   : > { %v11664_v61 = vpop.xlane.xlu1 %11663  ;;  %11723 = vadd.xlane.f32.xlu1 %v11722_v37 }
0x1c62   : > { %v18774_v19 = vsub.f32 %v18707_v0, %v11681_v3  ;;  %v11684_v56 = vmul.f32 0.083333336, %v11664_v61  ;;  %v11719_v50 = vsel %vm981_vm6, %v11703_v43, 0.0  ;;  %v11706_v1 = vmul.f32 %v18768_v2, %v18768_v2 }
0x1c63   : > { %v11661_v59 = vpop.xlane.xlu0 %11660  ;;  %11720 = vadd.xlane.f32.xlu0 %v11719_v50 }
0x1c64   : > { %v18780_v54 = vsub.f32 %v18714_v24, %v11684_v56  ;;  %v11683_v47 = vmul.f32 0.083333336, %v11661_v59  ;;  %v11728_v40 = vsel %vm981_vm6, %v11706_v1, 0.0  ;;  %v11705_v27 = vmul.f32 %v18774_v19, %v18774_v19 }
0x1c65   : > { %v11670_v34 = vpop.xlane.xlu1 %11669  ;;  %11729 = vadd.xlane.f32.xlu1 %v11728_v40 }
0x1c66   : > { %v18786_v0 = vsub.f32 %v18720_v52, %v11683_v47  ;;  %v11686_v62 = vmul.f32 0.083333336, %v11670_v34  ;;  %v11725_v21 = vsel %vm981_vm6, %v11705_v27, 0.0  ;;  %v11708_v6 = vmul.f32 %v18780_v54, %v18780_v54 }
0x1c67   : > { %v11667_v46 = vpop.xlane.xlu0 %11666  ;;  %11726 = vadd.xlane.f32.xlu0 %v11725_v21  ;;  %v18838_v21 = vld [vmem:[%s19101_s2 + $0x2] ss:$0 sm:$0xff] }
0x1c68   : > { %v18792_v24 = vsub.f32 %v18726_v26, %v11686_v62  ;;  %v11685_v45 = vmul.f32 0.083333336, %v11667_v46  ;;  %v11734_v55 = vsel %vm981_vm6, %v11708_v6, 0.0  ;;  %v11707_v13 = vmul.f32 %v18786_v0, %v18786_v0 }
0x1c69   : > { %11735 = vadd.xlane.f32.xlu1 %v11734_v55  ;;  %v11676_v52 = vpop.xlane.xlu1 %11675 }
0x1c6a   : > { %v18798_v14 = vsub.f32 %v18732_v10, %v11685_v45  ;;  %v11688_v53 = vmul.f32 0.083333336, %v11676_v52  ;;  %v11731_v11 = vsel %vm981_vm6, %v11707_v13, 0.0  ;;  %v11710_v41 = vmul.f32 %v18792_v24, %v18792_v24  ;;  %v18842_v52 = vld [vmem:[%s16245_s27 + $0x2] ss:$0 sm:$0xff] }
0x1c6b   : > { %11732 = vadd.xlane.f32.xlu0 %v11731_v11  ;;  %v11673_v26 = vpop.xlane.xlu0 %11672 }
0x1c6c   : > { %v18804_v31 = vsub.f32 %v18738_v4, %v11688_v53  ;;  %v11687_v30 = vmul.f32 0.083333336, %v11673_v26  ;;  %v11740_v33 = vsel %vm981_vm6, %v11710_v41, 0.0  ;;  %v11709_v15 = vmul.f32 %v18798_v14, %v18798_v14 }
0x1c6d   : > { %11741 = vadd.xlane.f32.xlu1 %v11740_v33 }
0x1c6e   : > { %v18810_v7 = vsub.f32 %v18743_v38, %v11687_v30  ;;  %v11737_v10 = vsel %vm981_vm6, %v11709_v15, 0.0  ;;  %v11712_v42 = vmul.f32 %v18804_v31, %v18804_v31  ;;  %v13616_v38 = vld [vmem:[%s16250_s4 + $0x10] sm:$0xff] }
0x1c6f   : > { %11738 = vadd.xlane.f32.xlu0 %v11737_v10  ;;  %15618 = vmatprep.subr.mxu1 %v13616_v38 }
0x1c70   : > { %v11746_v25 = vsel %vm981_vm6, %v11712_v42, 0.0  ;;  %v11711_v29 = vmul.f32 %v18810_v7, %v18810_v7  ;;  %15619 = vmatpush3.msra.mxu1 %v13616_v38 }
0x1c71   : > { %11747 = vadd.xlane.f32.xlu1 %v11746_v25  ;;  %15660 = vmatprep.subr.msk.mxu1 %vm5477_vm5, %v18828_v5 }
0x1c72   : > { %v11743_v4 = vsel %vm981_vm6, %v11711_v29, 0.0 }
0x1c73   : > { %11744 = vadd.xlane.f32.xlu0 %v11743_v4 }
0x1ce6   : > { %v11718_v32 = vpop.xlane.xlu1 %11717 }
0x1ce7   : > { %v11750_v28 = vmul.f32 0.083333336, %v11718_v32 }
0x1ce8   : > { %v11715_v16 = vpop.xlane.xlu0 %11714 }
0x1ce9   : > { %v11762_v39 = vadd.f32 1e-05, %v11750_v28  ;;  %v11749_v63 = vmul.f32 0.083333336, %v11715_v16 }
0x1cea   : > { %v11724_v58 = vpop.xlane.xlu1 %11723 }
0x1ceb   : > { %16021 = vrsqrt.f32 %v11762_v39  ;;  %v11761_v12 = vadd.f32 1e-05, %v11749_v63  ;;  %v11752_v9 = vmul.f32 0.083333336, %v11724_v58 }
0x1cec   : > { %v11721_v17 = vpop.xlane.xlu0 %11720 }
0x1ced   : > { %16023 = vrsqrt.f32 %v11761_v12  ;;  %v11764_v60 = vadd.f32 1e-05, %v11752_v9  ;;  %v11751_v18 = vmul.f32 0.083333336, %v11721_v17 }
0x1cee   : > { %v11730_v8 = vpop.xlane.xlu1 %11729 }
0x1cef   : > { %16025 = vrsqrt.f32 %v11764_v60  ;;  %v11763_v49 = vadd.f32 1e-05, %v11751_v18  ;;  %v11754_v23 = vmul.f32 0.083333336, %v11730_v8 }
0x1cf0   : > { %v11727_v3 = vpop.xlane.xlu0 %11726 }
0x1cf1   : > { %16027 = vrsqrt.f32 %v11763_v49  ;;  %v11766_v37 = vadd.f32 1e-05, %v11754_v23  ;;  %v11753_v43 = vmul.f32 0.083333336, %v11727_v3 }
0x1cf2   : > { %v11736_v61 = vpop.xlane.xlu1 %11735 }
0x1cf3   : > { %16029 = vrsqrt.f32 %v11766_v37  ;;  %v11765_v56 = vadd.f32 1e-05, %v11753_v43  ;;  %v11756_v50 = vmul.f32 0.083333336, %v11736_v61 }
0x1cf4   : > { %v11733_v1 = vpop.xlane.xlu0 %11732 }
0x1cf5   : > { %16031 = vrsqrt.f32 %v11765_v56  ;;  %v11768_v59 = vadd.f32 1e-05, %v11756_v50  ;;  %v11755_v47 = vmul.f32 0.083333336, %v11733_v1  ;;  %v13644_v56 = vld [vmem:[%s16250_s4 + $0x20] sm:$0xff]  ;;  %v13659_v50 = vld [vmem:[%s16250_s4 + $0x30] sm:$0xff] }
0x1cf6   : > { %v11742_v40 = vpop.xlane.xlu1 %11741 }
0x1cf7   : > { %16033 = vrsqrt.f32 %v11768_v59  ;;  %v11767_v27 = vadd.f32 1e-05, %v11755_v47  ;;  %v11758_v34 = vmul.f32 0.083333336, %v11742_v40 }
0x1cf8   : > { %v16022_v62 = vpop.eup %16021  ;;  %v11739_v6 = vpop.xlane.xlu0 %11738 }
0x1cf9   : > { %v11786_v46 = vmul.f32 %v16022_v62, %v18748_v22  ;;  %16035 = vrsqrt.f32 %v11767_v27  ;;  %v11770_v45 = vadd.f32 1e-05, %v11758_v34  ;;  %v11757_v55 = vmul.f32 0.083333336, %v11739_v6 }
0x1cfa   : > { %v16024_v13 = vpop.eup %16023  ;;  %v11748_v53 = vpop.xlane.xlu1 %11747 }
0x1cfb   : > { %v11804_v11 = vmul.f32 %v18838_v21, %v11786_v46  ;;  %v11785_v41 = vmul.f32 %v16024_v13, %v18751_v35  ;;  %16037 = vrsqrt.f32 %v11770_v45  ;;  %v11769_v26 = vadd.f32 1e-05, %v11757_v55 }
0x1cfc   : > { %v16026_v30 = vpop.eup %16025  ;;  %v11760_v33 = vmul.f32 0.083333336, %v11748_v53  ;;  %v11745_v15 = vpop.xlane.xlu0 %11744 }
0x1cfd   : > { %v11822_v10 = vadd.f32 %v18842_v52, %v11804_v11  ;;  %v11803_v22 = vmul.f32 %v18838_v21, %v11785_v41  ;;  %v11788_v42 = vmul.f32 %v16026_v30, %v18756_v44  ;;  %16039 = vrsqrt.f32 %v11769_v26 }
0x1cfe   : > { %v16028_v25 = vpop.eup %16027  ;;  %v11772_v29 = vadd.f32 1e-05, %v11760_v33  ;;  %v11759_v4 = vmul.f32 0.083333336, %v11745_v15 }
0x1cff   : > { %11835 = vst.msk [vmem:[#allocation4 + $0x10] sm:$0xff] %vm981_vm6, %v11822_v10  ;;  %v11821_v51 = vadd.f32 %v18842_v52, %v11803_v22  ;;  %v11806_v35 = vmul.f32 %v18838_v21, %v11788_v42  ;;  %v11787_v48 = vmul.f32 %v16028_v25, %v18762_v57 }
0x1d00   : > { %v16030_v38 = vpop.eup %16029  ;;  %16041 = vrsqrt.f32 %v11772_v29  ;;  %v11771_v20 = vadd.f32 1e-05, %v11759_v4 }
0x1d01   : > { %11834 = vst.msk [vmem:[#allocation4 + $0x8] sm:$0xff] %vm981_vm6, %v11821_v51  ;;  %v11824_v32 = vadd.f32 %v18842_v52, %v11806_v35  ;;  %v11805_v44 = vmul.f32 %v18838_v21, %v11787_v48  ;;  %v11790_v28 = vmul.f32 %v16030_v38, %v18768_v2 }
0x1d02   : > { %v16032_v16 = vpop.eup %16031  ;;  %16043 = vrsqrt.f32 %v11771_v20 }
0x1d03   : > { %11837 = vst.msk [vmem:[#allocation4 + $0x20] sm:$0xff] %vm981_vm6, %v11824_v32  ;;  %v11823_v39 = vadd.f32 %v18842_v52, %v11805_v44  ;;  %v11808_v63 = vmul.f32 %v18838_v21, %v11790_v28  ;;  %v11789_v57 = vmul.f32 %v16032_v16, %v18774_v19  ;;  %v13674_v16 = vld [vmem:[%s16250_s4 + $0x40] sm:$0xff] }
0x1d04   : > { %v16034_v58 = vpop.eup %16033 }
0x1d05   : > { %11836 = vst.msk [vmem:[#allocation4 + $0x18] sm:$0xff] %vm981_vm6, %v11823_v39  ;;  %v11826_v12 = vadd.f32 %v18842_v52, %v11808_v63  ;;  %v11807_v9 = vmul.f32 %v18838_v21, %v11789_v57  ;;  %v11792_v17 = vmul.f32 %v16034_v58, %v18780_v54 }
0x1d06   : > { %v16036_v2 = vpop.eup %16035  ;;  %v12204_v20 = vld [vmem:[#allocation4 + $0x10] sm:$0xff] }
0x1d07   : > { %11839 = vst.msk [vmem:[#allocation4 + $0x30] sm:$0xff] %vm981_vm6, %v11826_v12  ;;  %v11825_v60 = vadd.f32 %v18842_v52, %v11807_v9  ;;  %v11810_v18 = vmul.f32 %v18838_v21, %v11792_v17  ;;  %v11791_v19 = vmul.f32 %v16036_v2, %v18786_v0 }
0x1d08   : > { %v16038_v8 = vpop.eup %16037  ;;  %v11860_v49 = vld [vmem:[#allocation4 + $0x7] sm:$0xff]  ;;  %v11861_v3 = vld [vmem:[#allocation4 + $0xf] sm:$0xff] }
0x1d09   : > { %v11846_v23 = vld [vmem:[#allocation4 + $0x6] sm:$0xff]  ;;  %11838 = vst.msk [vmem:[#allocation4 + $0x28] sm:$0xff] %vm981_vm6, %v11825_v60  ;;  %v11828_v37 = vadd.f32 %v18842_v52, %v11810_v18  ;;  %v11809_v54 = vmul.f32 %v18838_v21, %v11791_v19  ;;  %v11794_v43 = vmul.f32 %v16038_v8, %v18792_v24  ;;  %15620 = vmatprep.mubr.msk.f32.mxu1 %vm981_vm6, %v11860_v49  ;;  %v11847_v61 = vld [vmem:[#allocation4 + $0xe] sm:$0xff] }
0x1d0a   : > { %15642 = vmatprep.mubr.msk.f32.mxu0 %vm981_vm6, %v11846_v23  ;;  %v16040_v0 = vpop.eup %16039  ;;  %15621 = vmatmul.mubr.msk.f32.vlgmr.msra.gmra.mxu1 %vm981_vm6, %v11861_v3  ;;  %v12203_v48 = vld [vmem:[#allocation4 + $0x8] sm:$0xff]  ;;  %v12206_v39 = vld [vmem:[#allocation4 + $0x20] sm:$0xff] }
0x1d0b   : > { %15643 = vmatmul.mubr.msk.f32.vlgmr.msra.gmra.mxu0 %vm981_vm6, %v11847_v61  ;;  %11841 = vst.msk [vmem:[#allocation4 + $0x40] sm:$0xff] %vm981_vm6, %v11828_v37  ;;  %v11827_v1 = vadd.f32 %v18842_v52, %v11809_v54  ;;  %v11812_v59 = vmul.f32 %v18838_v21, %v11794_v43  ;;  %v11793_v24 = vmul.f32 %v16040_v0, %v18798_v14  ;;  %v12394_v38 = vld [vmem:[#allocation4 + $0x9] sm:$0xff] }
0x1d0c   : > { %15661 = vmatpush3.msk.msra.mxu1 %vm5477_vm5, %v18828_v5  ;;  %15683 = vmatpush3.msk.msra.mxu0 %vm5477_vm5, %v18833_v36  ;;  %v11862_v47 = vld [vmem:[#allocation4 + $0x17] sm:$0xff]  ;;  %v11863_v27 = vld [vmem:[#allocation4 + $0x1f] sm:$0xff]  ;;  %v18893_v5 = vld [vmem:[%s16250_s4 + $0x48] sm:$0xf] }
0x1d0d   : > { %v11848_v40 = vld [vmem:[#allocation4 + $0x16] sm:$0xff]  ;;  %15662 = vmatprep.subr.mxu1 %v13644_v56  ;;  %15684 = vmatprep.subr.mxu0 %v13659_v50  ;;  %v16042_v34 = vpop.eup %16041  ;;  %11840 = vst.msk [vmem:[#allocation4 + $0x38] sm:$0xff] %vm981_vm6, %v11827_v1  ;;  %v11830_v62 = vadd.f32 %v18842_v52, %v11812_v59  ;;  %v11811_v6 = vmul.f32 %v18838_v21, %v11793_v24  ;;  %v11849_v14 = vld [vmem:[#allocation4 + $0x1e] sm:$0xff]  ;;  %v12585_v61 = vld [vmem:[#allocation4 + $0xa] sm:$0xff] }
0x1d0e   : > { %15623 = vmatprep.mubr.msk.f32.mxu1 %vm981_vm6, %v11862_v47  ;;  %15645 = vmatprep.mubr.msk.f32.mxu0 %vm981_vm6, %v11848_v40  ;;  %v11796_v36 = vmul.f32 %v16042_v34, %v18804_v31  ;;  %v12395_v32 = vld [vmem:[#allocation4 + $0x11] sm:$0xff]  ;;  %v12396_v28 = vld [vmem:[#allocation4 + $0x19] sm:$0xff] }
0x1d0f   : > { %15624 = vmatmul.mubr.msk.f32.gmra.mxu1 %vm981_vm6, %v11863_v27  ;;  %15646 = vmatmul.mubr.msk.f32.gmra.mxu0 %vm981_vm6, %v11849_v14  ;;  %v16044_v46 = vpop.eup %16043  ;;  %11843 = vst.msk [vmem:[#allocation4 + $0x50] sm:$0xff] %vm981_vm6, %v11830_v62  ;;  %v11829_v45 = vadd.f32 %v18842_v52, %v11811_v6  ;;  %v12205_v44 = vld [vmem:[#allocation4 + $0x18] sm:$0xff]  ;;  %v12208_v12 = vld [vmem:[#allocation4 + $0x30] sm:$0xff] }
0x1d10   : > { %15663 = vmatpush3.msra.mxu1 %v13644_v56  ;;  %15685 = vmatpush3.msra.mxu0 %v13659_v50  ;;  %v11814_v55 = vmul.f32 %v18838_v21, %v11796_v36  ;;  %v11795_v13 = vmul.f32 %v16044_v46, %v18810_v7  ;;  %v11864_v53 = vld [vmem:[#allocation4 + $0x27] sm:$0xff]  ;;  %v11865_v41 = vld [vmem:[#allocation4 + $0x2f] sm:$0xff]  ;;  %v12587_v50 = vld [vmem:[#allocation4 + $0x1a] sm:$0xff] }
0x1d11   : > { %v11850_v11 = vld [vmem:[#allocation4 + $0x26] sm:$0xff]  ;;  %15704 = vmatprep.subr.msk.mxu1 %vm5477_vm5, %v18893_v5  ;;  %11842 = vst.msk [vmem:[#allocation4 + $0x48] sm:$0xff] %vm981_vm6, %v11829_v45  ;;  %15626 = vmatprep.mubr.msk.f32.mxu1 %vm981_vm6, %v11864_v53  ;;  %v11851_v31 = vld [vmem:[#allocation4 + $0x2e] sm:$0xff] }
0x1d12   : > { %15648 = vmatprep.mubr.msk.f32.mxu0 %vm981_vm6, %v11850_v11  ;;  %v11832_v26 = vadd.f32 %v18842_v52, %v11814_v55  ;;  %v11813_v30 = vmul.f32 %v18838_v21, %v11795_v13  ;;  %v12397_v63 = vld [vmem:[#allocation4 + $0x21] sm:$0xff]  ;;  %v12398_v58 = vld [vmem:[#allocation4 + $0x29] sm:$0xff]  ;;  %v12586_v56 = vld [vmem:[#allocation4 + $0x12] sm:$0xff] }
0x1d13   : > { %15627 = vmatmul.mubr.msk.f32.gmra.mxu1 %vm981_vm6, %v11865_v41  ;;  %15649 = vmatmul.mubr.msk.f32.gmra.mxu0 %vm981_vm6, %v11851_v31  ;;  %v12207_v57 = vld [vmem:[#allocation4 + $0x28] sm:$0xff]  ;;  %v12210_v60 = vld [vmem:[#allocation4 + $0x40] sm:$0xff] }
0x1d14   : > { %11845 = vst.msk [vmem:[#allocation4 + $0x60] sm:$0xff] %vm981_vm6, %v11832_v26  ;;  %v11831_v7 = vadd.f32 %v18842_v52, %v11813_v30  ;;  %v11866_v33 = vld [vmem:[#allocation4 + $0x37] sm:$0xff]  ;;  %v11867_v10 = vld [vmem:[#allocation4 + $0x3f] sm:$0xff]  ;;  %v12589_v1 = vld [vmem:[#allocation4 + $0x2a] sm:$0xff] }
0x1d15   : > { %v11852_v15 = vld [vmem:[#allocation4 + $0x36] sm:$0xff]  ;;  %15629 = vmatprep.mubr.msk.f32.mxu1 %vm981_vm6, %v11866_v33  ;;  %v11853_v22 = vld [vmem:[#allocation4 + $0x3e] sm:$0xff] }
0x1d16   : > { %15651 = vmatprep.mubr.msk.f32.mxu0 %vm981_vm6, %v11852_v15  ;;  %11844 = vst.msk [vmem:[#allocation4 + $0x58] sm:$0xff] %vm981_vm6, %v11831_v7  ;;  %v12399_v9 = vld [vmem:[#allocation4 + $0x31] sm:$0xff]  ;;  %v12400_v2 = vld [vmem:[#allocation4 + $0x39] sm:$0xff]  ;;  %v12588_v0 = vld [vmem:[#allocation4 + $0x22] sm:$0xff] }
0x1d17   : > { %15630 = vmatmul.mubr.msk.f32.gmra.mxu1 %vm981_vm6, %v11867_v10  ;;  %15652 = vmatmul.mubr.msk.f32.gmra.mxu0 %vm981_vm6, %v11853_v22  ;;  %v12209_v17 = vld [vmem:[#allocation4 + $0x38] sm:$0xff]  ;;  %v12212_v49 = vld [vmem:[#allocation4 + $0x50] sm:$0xff] }
0x1d18   : > { %v11868_v21 = vld [vmem:[#allocation4 + $0x47] sm:$0xff]  ;;  %v11869_v25 = vld [vmem:[#allocation4 + $0x4f] sm:$0xff]  ;;  %v12591_v24 = vld [vmem:[#allocation4 + $0x3a] sm:$0xff] }
0x1d19   : > { %v11854_v42 = vld [vmem:[#allocation4 + $0x46] sm:$0xff]  ;;  %15632 = vmatprep.mubr.msk.f32.mxu1 %vm981_vm6, %v11868_v21  ;;  %v11855_v52 = vld [vmem:[#allocation4 + $0x4e] sm:$0xff] }
0x1d1a   : > { %15654 = vmatprep.mubr.msk.f32.mxu0 %vm981_vm6, %v11854_v42  ;;  %v12401_v18 = vld [vmem:[#allocation4 + $0x41] sm:$0xff]  ;;  %v12402_v8 = vld [vmem:[#allocation4 + $0x49] sm:$0xff]  ;;  %v12590_v59 = vld [vmem:[#allocation4 + $0x32] sm:$0xff] }
0x1d1b   : > { %15633 = vmatmul.mubr.msk.f32.gmra.mxu1 %vm981_vm6, %v11869_v25  ;;  %15655 = vmatmul.mubr.msk.f32.gmra.mxu0 %vm981_vm6, %v11855_v52  ;;  %v12211_v19 = vld [vmem:[#allocation4 + $0x48] sm:$0xff]  ;;  %v12214_v54 = vld [vmem:[#allocation4 + $0x60] sm:$0xff] }
0x1d1c   : > { %v12405_v43 = vld [vmem:[#allocation4 + $0x61] sm:$0xff]  ;;  %v12593_v40 = vld [vmem:[#allocation4 + $0x4a] sm:$0xff] }
0x1d1d   : > { %v11870_v29 = vld [vmem:[#allocation4 + $0x57] sm:$0xff]  ;;  %v11871_v51 = vld [vmem:[#allocation4 + $0x5f] sm:$0xff] }
0x1d1e   : > { %v11856_v4 = vld [vmem:[#allocation4 + $0x56] sm:$0xff]  ;;  %15635 = vmatprep.mubr.msk.f32.mxu1 %vm981_vm6, %v11870_v29  ;;  %v11857_v35 = vld [vmem:[#allocation4 + $0x5e] sm:$0xff] }
0x1d1f   : > { %15657 = vmatprep.mubr.msk.f32.mxu0 %vm981_vm6, %v11856_v4  ;;  %15636 = vmatmul.mubr.msk.f32.gmra.mxu1 %vm981_vm6, %v11871_v51  ;;  %v12403_v23 = vld [vmem:[#allocation4 + $0x51] sm:$0xff]  ;;  %v12404_v37 = vld [vmem:[#allocation4 + $0x59] sm:$0xff]  ;;  %v12592_v47 = vld [vmem:[#allocation4 + $0x42] sm:$0xff] }
0x1d20   : > { %15658 = vmatmul.mubr.msk.f32.gmra.mxu0 %vm981_vm6, %v11857_v35  ;;  %15664 = vmatprep.mubr.msk.f32.mxu1 %vm981_vm6, %v12203_v48  ;;  %v12213_v3 = vld [vmem:[#allocation4 + $0x58] sm:$0xff]  ;;  %v12596_v62 = vld [vmem:[#allocation4 + $0x62] sm:$0xff] }
0x1d21   : > { %15686 = vmatprep.mubr.msk.f32.mxu0 %vm981_vm6, %v12394_v38  ;;  %v12594_v27 = vld [vmem:[#allocation4 + $0x52] sm:$0xff]  ;;  %v12595_v34 = vld [vmem:[#allocation4 + $0x5a] sm:$0xff] }
0x1d23   : > { %15665 = vmatmul.mubr.msk.f32.vlgmr.msra.gmra.mxu1 %vm981_vm6, %v12204_v20 }
0x1d24   : > { %15687 = vmatmul.mubr.msk.f32.vlgmr.msra.gmra.mxu0 %vm981_vm6, %v12395_v32  ;;  %15667 = vmatprep.mubr.msk.f32.mxu1 %vm981_vm6, %v12205_v44 }
0x1d25   : > { %15689 = vmatprep.mubr.msk.f32.mxu0 %vm981_vm6, %v12396_v28  ;;  %15705 = vmatpush3.msk.msra.mxu1 %vm5477_vm5, %v18893_v5 }
0x1d26   : > { %15706 = vmatprep.subr.mxu1 %v13674_v16 }
0x1d27   : > { %15668 = vmatmul.mubr.msk.f32.gmra.mxu1 %vm981_vm6, %v12206_v39 }
0x1d28   : > { %15690 = vmatmul.mubr.msk.f32.gmra.mxu0 %vm981_vm6, %v12397_v63  ;;  %15670 = vmatprep.mubr.msk.f32.mxu1 %vm981_vm6, %v12207_v57 }
0x1d29   : > { %15692 = vmatprep.mubr.msk.f32.mxu0 %vm981_vm6, %v12398_v58  ;;  %15707 = vmatpush3.msra.mxu1 %v13674_v16 }
0x1d2b   : > { %15671 = vmatmul.mubr.msk.f32.gmra.mxu1 %vm981_vm6, %v12208_v12 }
0x1d2c   : > { %15693 = vmatmul.mubr.msk.f32.gmra.mxu0 %vm981_vm6, %v12399_v9  ;;  %15673 = vmatprep.mubr.msk.f32.mxu1 %vm981_vm6, %v12209_v17 }
0x1d2d   : > { %15695 = vmatprep.mubr.msk.f32.mxu0 %vm981_vm6, %v12400_v2 }
0x1d2f   : > { %15674 = vmatmul.mubr.msk.f32.gmra.mxu1 %vm981_vm6, %v12210_v60 }
0x1d30   : > { %15696 = vmatmul.mubr.msk.f32.gmra.mxu0 %vm981_vm6, %v12401_v18  ;;  %15676 = vmatprep.mubr.msk.f32.mxu1 %vm981_vm6, %v12211_v19 }
0x1d31   : > { %15698 = vmatprep.mubr.msk.f32.mxu0 %vm981_vm6, %v12402_v8 }
0x1d33   : > { %15677 = vmatmul.mubr.msk.f32.gmra.mxu1 %vm981_vm6, %v12212_v49 }
0x1d34   : > { %15699 = vmatmul.mubr.msk.f32.gmra.mxu0 %vm981_vm6, %v12403_v23  ;;  %15679 = vmatprep.mubr.msk.f32.mxu1 %vm981_vm6, %v12213_v3 }
0x1d35   : > { %15701 = vmatprep.mubr.msk.f32.mxu0 %vm981_vm6, %v12404_v37 }
0x1d37   : > { %15680 = vmatmul.mubr.msk.f32.gmra.mxu1 %vm981_vm6, %v12214_v54 }
0x1d38   : > { %15702 = vmatmul.mubr.msk.f32.gmra.mxu0 %vm981_vm6, %v12405_v43  ;;  %15708 = vmatprep.mubr.msk.f32.mxu1 %vm981_vm6, %v12585_v61  ;;  %v18987_v43 = vld [vmem:[%s16255_s30] ss:$0 sm:$0xff] }
0x1d3b   : > { %15709 = vmatmul.mubr.msk.f32.vlgmr.msra.gmra.mxu1 %vm981_vm6, %v12586_v56 }
0x1d3c   : > { %15711 = vmatprep.mubr.msk.f32.mxu1 %vm981_vm6, %v12587_v50 }
0x1d3f   : > { %15712 = vmatmul.mubr.msk.f32.gmra.mxu1 %vm981_vm6, %v12588_v0 }
0x1d40   : > { %15714 = vmatprep.mubr.msk.f32.mxu1 %vm981_vm6, %v12589_v1 }
0x1d43   : > { %15715 = vmatmul.mubr.msk.f32.gmra.mxu1 %vm981_vm6, %v12590_v59 }
0x1d44   : > { %15717 = vmatprep.mubr.msk.f32.mxu1 %vm981_vm6, %v12591_v24 }
0x1d47   : > { %15718 = vmatmul.mubr.msk.f32.gmra.mxu1 %vm981_vm6, %v12592_v47 }
0x1d48   : > { %15720 = vmatprep.mubr.msk.f32.mxu1 %vm981_vm6, %v12593_v40 }
0x1d4b   : > { %15721 = vmatmul.mubr.msk.f32.gmra.mxu1 %vm981_vm6, %v12594_v27 }
0x1d4c   : > { %15723 = vmatprep.mubr.msk.f32.mxu1 %vm981_vm6, %v12595_v34 }
0x1d4f   : > { %15724 = vmatmul.mubr.msk.f32.gmra.mxu1 %vm981_vm6, %v12596_v62 }
0x1dca   : > { %v15622_v6 = vpop.f32.mrf.mxu1 }
0x1dcb   : > { %v15644_v14 = vpop.f32.mrf.mxu0 }
0x1dcc   : > { %v11980_v5 = vpop.f32.mrf.mxu1  ;;  %v12150_v12 = vadd.f32 %v15644_v14, %v15622_v6 }
0x1dcd   : > { %v12144_v36 = vpop.f32.mrf.mxu0 }
0x1dce   : > { %v12145_v17 = vadd.f32 %v12144_v36, %v11980_v5 }
0x1dcf   : > { %v15625_v46 = vpop.f32.mrf.mxu1  ;;  %v15647_v45 = vpop.f32.mrf.mxu0 }
0x1dd0   : > { %v12160_v19 = vadd.f32 %v15647_v45, %v15625_v46 }
0x1dd1   : > { %v11990_v55 = vpop.f32.mrf.mxu1  ;;  %v12154_v13 = vpop.f32.mrf.mxu0 }
0x1dd2   : > { %v12155_v23 = vadd.f32 %v12154_v13, %v11990_v55 }
0x1dd3   : > { %v15628_v53 = vpop.f32.mrf.mxu1  ;;  %v15650_v11 = vpop.f32.mrf.mxu0 }
0x1dd4   : > { %v12170_v56 = vadd.f32 %v15650_v11, %v15628_v53 }
0x1dd5   : > { %v12000_v41 = vpop.f32.mrf.mxu1  ;;  %v12164_v31 = vpop.f32.mrf.mxu0 }
0x1dd6   : > { %v12165_v59 = vadd.f32 %v12164_v31, %v12000_v41 }
0x1dd7   : > { %v15631_v26 = vpop.f32.mrf.mxu1  ;;  %v15653_v30 = vpop.f32.mrf.mxu0 }
0x1dd8   : > { %v12180_v62 = vadd.f32 %v15653_v30, %v15631_v26 }
0x1dd9   : > { %v12010_v7 = vpop.f32.mrf.mxu1  ;;  %v12174_v33 = vpop.f32.mrf.mxu0 }
0x1dda   : > { %v12175_v55 = vadd.f32 %v12174_v33, %v12010_v7 }
0x1ddb   : > { %v18965_v15 = vpop.f32.mrf.mxu1  ;;  %v18967_v10 = vpop.f32.mrf.mxu0 }
0x1ddc   : > { %v12190_v26 = vadd.f32 %v18967_v10, %v18965_v15 }
0x1ddd   : > { %v18969_v22 = vpop.f32.mrf.mxu1  ;;  %v18971_v21 = vpop.f32.mrf.mxu0 }
0x1ddf   : > { %v18973_v42 = vpop.f32.mrf.mxu1 }
0x1de0   : > { %v18975_v25 = vpop.f32.mrf.mxu0 }
0x1de1   : > { %v18977_v52 = vpop.f32.mrf.mxu1 }
0x1de2   : > { %v18979_v29 = vpop.f32.mrf.mxu0 }
0x1de3   : > { %v15666_v4 = vpop.f32.mrf.mxu1 }
0x1de4   : > { %v15688_v51 = vpop.f32.mrf.mxu0  ;;  %v12383_v2 = vadd.f32 %v15666_v4, %v12150_v12 }
0x1de5   : > { %v12323_v35 = vpop.f32.mrf.mxu1 }
0x1de6   : > { %v12514_v48 = vpop.f32.mrf.mxu0  ;;  %v12382_v8 = vadd.f32 %v12323_v35, %v12145_v17  ;;  %v12574_v3 = vadd.f32 %v15688_v51, %v12383_v2 }
0x1de7   : > { %v15669_v38 = vpop.f32.mrf.mxu1 }
0x1de8   : > { %v15691_v32 = vpop.f32.mrf.mxu0  ;;  %v12385_v37 = vadd.f32 %v15669_v38, %v12160_v19  ;;  %v12573_v50 = vadd.f32 %v12514_v48, %v12382_v8  ;;  %v12185_v48 = vadd.f32 %v18971_v21, %v18969_v22 }
0x1de9   : > { %v12333_v20 = vpop.f32.mrf.mxu1 }
0x1dea   : > { %v12524_v16 = vpop.f32.mrf.mxu0  ;;  %v12384_v0 = vadd.f32 %v12333_v20, %v12155_v23  ;;  %v12576_v47 = vadd.f32 %v15691_v32, %v12385_v37 }
0x1deb   : > { %v15672_v44 = vpop.f32.mrf.mxu1 }
0x1dec   : > { %v15694_v57 = vpop.f32.mrf.mxu0  ;;  %v12387_v40 = vadd.f32 %v15672_v44, %v12170_v56  ;;  %v12575_v5 = vadd.f32 %v12524_v16, %v12384_v0  ;;  %v12200_v44 = vadd.f32 %v18975_v25, %v18973_v42 }
0x1ded   : > { %v12343_v28 = vpop.f32.mrf.mxu1 }
0x1dee   : > { %v12534_v60 = vpop.f32.mrf.mxu0  ;;  %v12386_v36 = vadd.f32 %v12343_v28, %v12165_v59  ;;  %v12578_v53 = vadd.f32 %v15694_v57, %v12387_v40  ;;  %v12195_v57 = vadd.f32 %v18979_v29, %v18977_v52 }
0x1def   : > { %v15675_v39 = vpop.f32.mrf.mxu1 }
0x1df0   : > { %v15697_v54 = vpop.f32.mrf.mxu0  ;;  %v12389_v11 = vadd.f32 %v15675_v39, %v12180_v62  ;;  %v12577_v51 = vadd.f32 %v12534_v60, %v12386_v36 }
0x1df1   : > { %v12353_v63 = vpop.f32.mrf.mxu1 }
0x1df2   : > { %v12544_v6 = vpop.f32.mrf.mxu0  ;;  %v12388_v35 = vadd.f32 %v12353_v63, %v12175_v55  ;;  %v12580_v20 = vadd.f32 %v15697_v54, %v12389_v11 }
0x1df3   : > { %v15678_v58 = vpop.f32.mrf.mxu1 }
0x1df4   : > { %v15700_v30 = vpop.f32.mrf.mxu0  ;;  %v12391_v32 = vadd.f32 %v15678_v58, %v12190_v26  ;;  %v12579_v39 = vadd.f32 %v12544_v6, %v12388_v35 }
0x1df5   : > { %v12363_v9 = vpop.f32.mrf.mxu1 }
0x1df6   : > { %v12554_v28 = vpop.f32.mrf.mxu0  ;;  %v12390_v63 = vadd.f32 %v12363_v9, %v12185_v48  ;;  %v12582_v12 = vadd.f32 %v15700_v30, %v12391_v32 }
0x1df7   : > { %v18981_v18 = vpop.f32.mrf.mxu1 }
0x1df8   : > { %v12393_v17 = vadd.f32 %v18981_v18, %v12200_v44  ;;  %v15703_v9 = vpop.f32.mrf.mxu0  ;;  %v12581_v60 = vadd.f32 %v12554_v28, %v12390_v63 }
0x1df9   : > { %v18984_v49 = vpop.f32.mrf.mxu1 }
0x1dfa   : > { %v12392_v19 = vadd.f32 %v18984_v49, %v12195_v57  ;;  %v12584_v18 = vadd.f32 %v15703_v9, %v12393_v17  ;;  %v12564_v37 = vpop.f32.mrf.mxu0 }
0x1dfb   : > { %v15710_v61 = vpop.f32.mrf.mxu1 }
0x1dfc   : > { %v12765_v1 = vadd.f32 %v15710_v61, %v12574_v3  ;;  %v12583_v61 = vadd.f32 %v12564_v37, %v12392_v19 }
0x1dfd   : > { %v12705_v24 = vpop.f32.mrf.mxu1 }
0x1dfe   : > { %v12783_v27 = vadd.f32 %v18987_v43, %v12765_v1  ;;  %v12764_v34 = vadd.f32 %v12705_v24, %v12573_v50 }
0x1dff   : > { %v15713_v14 = vpop.f32.mrf.mxu1 }
0x1e00   : > { %12795 = vst.msk [vmem:[%s18990_s10 + $0x8] sm:$0xff] %vm1012_vm0, %v12783_v27  ;;  %v12782_v46 = vadd.f32 %v18987_v43, %v12764_v34  ;;  %v12767_v45 = vadd.f32 %v15713_v14, %v12576_v47 }
0x1e01   : > { %v12715_v13 = vpop.f32.mrf.mxu1 }
0x1e02   : > { %12794 = vst.msk [vmem:[%s18990_s10] sm:$0xff] %vm1012_vm0, %v12782_v46  ;;  %v12785_v41 = vadd.f32 %v18987_v43, %v12767_v45  ;;  %v12766_v31 = vadd.f32 %v12715_v13, %v12575_v5 }
0x1e03   : > { %v15716_v4 = vpop.f32.mrf.mxu1 }
0x1e04   : > { %12797 = vst.msk [vmem:[%s18990_s10 + $0x18] sm:$0xff] %vm1012_vm0, %v12785_v41  ;;  %v12784_v7 = vadd.f32 %v18987_v43, %v12766_v31  ;;  %v12769_v33 = vadd.f32 %v15716_v4, %v12578_v53 }
0x1e05   : > { %v12725_v38 = vpop.f32.mrf.mxu1 }
0x1e06   : > { %12796 = vst.msk [vmem:[%s18990_s10 + $0x10] sm:$0xff] %vm1012_vm0, %v12784_v7  ;;  %v12787_v15 = vadd.f32 %v18987_v43, %v12769_v33  ;;  %v12768_v10 = vadd.f32 %v12725_v38, %v12577_v51 }
0x1e07   : > { %v15719_v16 = vpop.f32.mrf.mxu1 }
0x1e08   : > { %12799 = vst.msk [vmem:[%s18990_s10 + $0x28] sm:$0xff] %vm1012_vm0, %v12787_v15  ;;  %v12786_v22 = vadd.f32 %v18987_v43, %v12768_v10  ;;  %v12771_v21 = vadd.f32 %v15719_v16, %v12580_v20 }
0x1e09   : > { %v12735_v58 = vpop.f32.mrf.mxu1 }
0x1e0a   : > { %12798 = vst.msk [vmem:[%s18990_s10 + $0x20] sm:$0xff] %vm1012_vm0, %v12786_v22  ;;  %v12789_v42 = vadd.f32 %v18987_v43, %v12771_v21  ;;  %v12770_v25 = vadd.f32 %v12735_v58, %v12579_v39 }
0x1e0b   : > { %v15722_v2 = vpop.f32.mrf.mxu1 }
0x1e0c   : > { %12801 = vst.msk [vmem:[%s18990_s10 + $0x38] sm:$0xff] %vm1012_vm0, %v12789_v42  ;;  %v12788_v52 = vadd.f32 %v18987_v43, %v12770_v25  ;;  %v12773_v29 = vadd.f32 %v15722_v2, %v12582_v12 }
0x1e0d   : > { %v12745_v8 = vpop.f32.mrf.mxu1 }
0x1e0e   : > { %12800 = vst.msk [vmem:[%s18990_s10 + $0x30] sm:$0xff] %vm1012_vm0, %v12788_v52  ;;  %v12791_v23 = vadd.f32 %v18987_v43, %v12773_v29  ;;  %v12772_v3 = vadd.f32 %v12745_v8, %v12581_v60 }
0x1e0f   : > { %v15725_v54 = vpop.f32.mrf.mxu1 }
0x1e10   : > { %12803 = vst.msk [vmem:[%s18990_s10 + $0x48] sm:$0xff] %vm1012_vm0, %v12791_v23  ;;  %v12790_v49 = vadd.f32 %v18987_v43, %v12772_v3  ;;  %v12775_v56 = vadd.f32 %v15725_v54, %v12584_v18 }
0x1e11   : > { %v12755_v50 = vpop.f32.mrf.mxu1 }
0x1e12   : > { %12802 = vst.msk [vmem:[%s18990_s10 + $0x40] sm:$0xff] %vm1012_vm0, %v12790_v49  ;;  %v12793_v0 = vadd.f32 %v18987_v43, %v12775_v56  ;;  %v12774_v1 = vadd.f32 %v12755_v50, %v12583_v61 }
0x1e14   : > { %12805 = vst.msk [vmem:[%s18990_s10 + $0x58] sm:$0xff] %vm1012_vm0, %v12793_v0  ;;  %v12792_v59 = vadd.f32 %v18987_v43, %v12774_v1 }
0x1e16   : > { %12804 = vst.msk [vmem:[%s18990_s10 + $0x50] sm:$0xff] %vm1012_vm0, %v12792_v59 }
0x1e17 PF: > { %s73_s22 = sadd.s32 1, %s16051_s22  }
0x1e18   : > { %p70_p4 = scmp.ge.s32.totalorder %s73_s22, 4  }
0x1e1a   :  { %72 = sbr.rel (!%p70_p4) target bundleno = 47 (0x2f), region = 252 }

</bundles_post_ra>
